<compile_context>
chip_gen: v7x
topology: tpu7x:2x2x1
jax: 0.10.0
libtpu: 0.0.40
codegen_flags: <defaults>
</compile_context>

<pallas_src>
import math

import jax
import jax.numpy as jnp
from jax.experimental import pallas as pl
from jax.experimental.pallas import tpu as pltpu

# ----------------------------- model dimensions ------------------------------
S = 8                 # sequence length
H = 128               # hidden size
NH = 4                # attention heads
HD = H // NH          # head dim
I = 256               # FFN intermediate
L = 2                 # encoder layers
VOCAB = 50
NUM_FEATS = 2         # num_numeric_features
LN_EPS = 1e-12

BB = 16               # batch elements per grid step
BS_BLOCK = BB * S     # flattened rows per grid step (sublane axis) = 128
assert S & (S - 1) == 0 and BS_BLOCK & (BS_BLOCK - 1) == 0
S_SHIFT = S.bit_length() - 1
NEG = -1e9


# ----------------------------- in-kernel helpers -----------------------------
def _layer_norm(x, gamma, beta):
    mu = jnp.mean(x, axis=-1, keepdims=True)
    var = jnp.mean(jnp.square(x - mu), axis=-1, keepdims=True)
    return (x - mu) * jax.lax.rsqrt(var + LN_EPS) * gamma + beta


# ------------------------- fully fused forward kernel -------------------------
def fused_forward_kernel(
        x_ref, kv_ref, num_ref,
        embg_ref, embb_ref,
        wqkv_ref, bqkv_ref, wo_ref, bo_ref,
        g1_ref, be1_ref, w1_ref, bi1_ref, w2_ref, bi2_ref, g2_ref, be2_ref,
        wn_ref, bn_ref, wfc_c_ref, wfc_n_ref, bfc_ref,
        out_ref):
    f32 = jnp.float32
    bf16 = jnp.bfloat16

    # ---- packed additive attention mask for all NH heads, built once per step ----
    # Packed score row r = head r//BS_BLOCK, query row r%BS_BLOCK.  Queries attend only
    # to valid keys of their own batch element (block-diagonal over flattened batch*seq).
    kv = kv_ref[0]                                                      # (1, BS_BLOCK)
    row_ids = jax.lax.broadcasted_iota(jnp.int32, (NH * BS_BLOCK, BS_BLOCK), 0)
    col_ids = jax.lax.broadcasted_iota(jnp.int32, (NH * BS_BLOCK, BS_BLOCK), 1)
    q_batch = (row_ids & (BS_BLOCK - 1)) >> S_SHIFT
    k_batch = col_ids >> S_SHIFT
    valid = (q_batch == k_batch) & (kv > 0.5)
    mask = jnp.where(valid, 0.0, NEG)                                   # (NH*BS, BS) f32

    x = _layer_norm(x_ref[...], embg_ref[...], embb_ref[...])           # (BS_BLOCK, H)

    for l in range(L):                                                  # unrolled layers
        # fused QKV projection: one (BS,H)@(H,3H) bf16 matmul, f32 accumulation
        qkv = jnp.dot(x.astype(bf16), wqkv_ref[l],
                      preferred_element_type=f32) + bqkv_ref[l]         # (BS, 3H)
        q = qkv[:, 0:H].astype(bf16)        # 1/sqrt(HD) folded into Wq/bq at setup
        kT = qkv[:, H:2 * H].T.astype(bf16)                             # (H, BS)
        v = qkv[:, 2 * H:3 * H].astype(bf16)

        # all-head scores packed along sublanes -> one masked softmax
        scores = jnp.concatenate(
            [jnp.dot(q[:, h * HD:(h + 1) * HD], kT[h * HD:(h + 1) * HD, :],
                     preferred_element_type=f32) for h in range(NH)],
            axis=0) + mask                                              # (NH*BS, BS)
        m = jnp.max(scores, axis=-1, keepdims=True)
        e = jnp.exp(scores - m)
        p = (e * pl.reciprocal(jnp.sum(e, axis=-1, keepdims=True), approx=True)
             ).astype(bf16)

        # per-head context, lane-concat to (BS, H), single K=H output GEMM
        ctx = jnp.concatenate(
            [jnp.dot(p[h * BS_BLOCK:(h + 1) * BS_BLOCK, :],
                     v[:, h * HD:(h + 1) * HD],
                     preferred_element_type=f32) for h in range(NH)],
            axis=1)                                                     # (BS, H)
        attn = jnp.dot(ctx.astype(bf16), wo_ref[l],
                       preferred_element_type=f32) + bo_ref[l]

        h1 = _layer_norm(x + attn, g1_ref[l], be1_ref[l])
        ff = jnp.dot(h1.astype(bf16), w1_ref[l], preferred_element_type=f32) + bi1_ref[l]
        # TODO(synk): HF BERT default is exact (erf) GELU; tanh approximation used here.
        ff = jax.nn.gelu(ff, approximate=True)
        ff = jnp.dot(ff.astype(bf16), w2_ref[l], preferred_element_type=f32) + bi2_ref[l]
        x = _layer_norm(h1 + ff, g2_ref[l], be2_ref[l])

    # -------------------- head: numeric_embed + concat + fc --------------------
    cls = x.reshape(BB, S, H)[:, 0, :]                                  # (BB, H) cls rows

    num = num_ref[...]                                                  # (BB, NUM_FEATS)
    ne = bn_ref[...]                                                    # (1, H) -> (BB, H)
    for f in range(NUM_FEATS):                                          # K=2 -> VPU bcast
        ne = ne + num[:, f:f + 1] * wn_ref[f:f + 1, :]

    # fc(concat([cls, ne])) = sum_lanes(cls*Wfc_cls + ne*Wfc_num) + b
    head = cls * wfc_c_ref[...] + ne * wfc_n_ref[...]
    out_ref[...] = jnp.sum(head, axis=-1, keepdims=True) + bfc_ref[...]


# --------------------------------- wrapper -----------------------------------
def forward(x_emb, key_valid, numeric, params):
    num_blocks = x_emb.shape[0] // BS_BLOCK

    def resident(arr):
        nd = arr.ndim
        return pl.BlockSpec(arr.shape, lambda i, _nd=nd: (0,) * _nd)

    in_specs = [
        pl.BlockSpec((BS_BLOCK, H), lambda i: (i, 0)),        # x_emb: streamed per block
        pl.BlockSpec((1, 1, BS_BLOCK), lambda i: (i, 0, 0)),  # key-valid row per block
        pl.BlockSpec((BB, NUM_FEATS), lambda i: (i, 0)),      # numeric feats per block
    ] + [resident(p) for p in params]                         # weights: resident in VMEM

    return pl.pallas_call(
        fused_forward_kernel,
        out_shape=jax.ShapeDtypeStruct((num_blocks * BB, 1), jnp.float32),
        grid=(num_blocks,),
        in_specs=in_specs,
        out_specs=pl.BlockSpec((BB, 1), lambda i: (i, 0)),
        compiler_params=pltpu.CompilerParams(dimension_semantics=("parallel",)),
    )(x_emb, key_valid, numeric, *params)


# ----------------------------------- main --------------------------------------
if __name__ == "__main__":
    B = 32
    key = jax.random.PRNGKey(0)
    keys = iter(jax.random.split(key, 64))

    def nrm(shape):
        return jax.random.normal(next(keys), shape, jnp.float32) * 0.02

    # embeddings
    tok_emb = nrm((VOCAB, H))
    pos_emb = nrm((S, H))
    typ_emb = nrm((1, H))                       # all tokens are token_type 0
    emb_g = jnp.ones((1, H), jnp.float32)
    emb_b = jnp.zeros((1, H), jnp.float32)

    # encoder layers (weights stored [in, out]); QKV fused, attention scale folded in
    scale = 1.0 / math.sqrt(HD)
    wqkv_l, bqkv_l, wo_l, bo_l = [], [], [], []
    g1_l, be1_l, w1_l, bi1_l, w2_l, bi2_l, g2_l, be2_l = ([] for _ in range(8))
    for _ in range(L):
        wq, bq = nrm((H, H)), nrm((1, H))
        wk, bk = nrm((H, H)), nrm((1, H))
        wv, bv = nrm((H, H)), nrm((1, H))
        wqkv_l.append(jnp.concatenate([wq * scale, wk, wv], axis=1))   # (H, 3H)
        bqkv_l.append(jnp.concatenate([bq * scale, bk, bv], axis=1))   # (1, 3H)
        wo_l.append(nrm((H, H)));  bo_l.append(nrm((1, H)))
        g1_l.append(jnp.ones((1, H), jnp.float32)); be1_l.append(jnp.zeros((1, H), jnp.float32))
        w1_l.append(nrm((H, I)));  bi1_l.append(nrm((1, I)))
        w2_l.append(nrm((I, H)));  bi2_l.append(nrm((1, H)))
        g2_l.append(jnp.ones((1, H), jnp.float32)); be2_l.append(jnp.zeros((1, H), jnp.float32))

    stack = lambda xs: jnp.stack(xs, axis=0)
    # MXU-input weights in bf16 (f32 accumulation in-kernel); biases / LN params stay f32
    wqkv = stack(wqkv_l).astype(jnp.bfloat16)
    wo   = stack(wo_l).astype(jnp.bfloat16)
    w1   = stack(w1_l).astype(jnp.bfloat16)
    w2   = stack(w2_l).astype(jnp.bfloat16)
    bqkv, bo = stack(bqkv_l), stack(bo_l)
    g1, be1 = stack(g1_l), stack(be1_l)
    bi1, bi2 = stack(bi1_l), stack(bi2_l)
    g2, be2 = stack(g2_l), stack(be2_l)

    # head: numeric_embed Linear(NUM_FEATS -> H); fc Linear(2H -> 1) split into the
    # cls half and numeric half, stored as (1, H) row vectors for the VPU path.
    wn = nrm((NUM_FEATS, H))
    bn = nrm((1, H))
    wfc_cls = nrm((1, H))
    wfc_num = nrm((1, H))
    bfc = nrm((1, 1))

    params = (emb_g, emb_b,
              wqkv, bqkv, wo, bo, g1, be1, w1, bi1, w2, bi2, g2, be2,
              wn, bn, wfc_cls, wfc_num, bfc)

    # ---------------------------------- inputs -----------------------------------
    input_ids = jax.random.randint(next(keys), (B, S), 0, VOCAB)
    lens = 4 + (jnp.arange(B) % (S - 3))                       # valid lengths in [4, S]
    attention_mask = (jnp.arange(S)[None, :] < lens[:, None]).astype(jnp.float32)
    numeric_features = jax.random.normal(next(keys), (B, NUM_FEATS), jnp.float32)

    # pad batch to a multiple of the per-step batch block
    B_pad = ((B + BB - 1) // BB) * BB
    num_blocks = B_pad // BB
    pad = B_pad - B
    ids_p = jnp.pad(input_ids, ((0, pad), (0, 0)))
    am_p = jnp.pad(attention_mask, ((0, pad), (0, 0)))
    nf_p = jnp.pad(numeric_features, ((0, pad), (0, 0)))

    # plain-JAX glue: embedding-table gather + position/type add (layernorm runs in-kernel)
    x_emb = (tok_emb[ids_p] + pos_emb[None, :, :] + typ_emb[None, :, :]).reshape(
        num_blocks * BS_BLOCK, H)
    key_valid = am_p.reshape(num_blocks, 1, BS_BLOCK)
    numeric_flat = nf_p.reshape(num_blocks * BB, NUM_FEATS)

    out = forward(x_emb, key_valid, numeric_flat, params)
    out = jax.block_until_ready(out)[:B]
    assert out.shape == (B, 1) and out.dtype == jnp.float32
    assert bool(jnp.all(jnp.isfinite(out)))
    print("KERNEL_OK")
</pallas_src>

<mosaic_0001>
module attributes {stable_mosaic.version = 11 : i64} {
  func.func @fused_forward_kernel(%arg0: i32, %arg1: memref<128x128xf32, #tpu.memory_space<vmem>>, %arg2: memref<1x1x128xf32, #tpu.memory_space<vmem>>, %arg3: memref<16x2xf32, #tpu.memory_space<vmem>>, %arg4: memref<1x128xf32, #tpu.memory_space<vmem>>, %arg5: memref<1x128xf32, #tpu.memory_space<vmem>>, %arg6: memref<2x128x384xbf16, #tpu.memory_space<vmem>>, %arg7: memref<2x1x384xf32, #tpu.memory_space<vmem>>, %arg8: memref<2x128x128xbf16, #tpu.memory_space<vmem>>, %arg9: memref<2x1x128xf32, #tpu.memory_space<vmem>>, %arg10: memref<2x1x128xf32, #tpu.memory_space<vmem>>, %arg11: memref<2x1x128xf32, #tpu.memory_space<vmem>>, %arg12: memref<2x128x256xbf16, #tpu.memory_space<vmem>>, %arg13: memref<2x1x256xf32, #tpu.memory_space<vmem>>, %arg14: memref<2x256x128xbf16, #tpu.memory_space<vmem>>, %arg15: memref<2x1x128xf32, #tpu.memory_space<vmem>>, %arg16: memref<2x1x128xf32, #tpu.memory_space<vmem>>, %arg17: memref<2x1x128xf32, #tpu.memory_space<vmem>>, %arg18: memref<2x128xf32, #tpu.memory_space<vmem>>, %arg19: memref<1x128xf32, #tpu.memory_space<vmem>>, %arg20: memref<1x128xf32, #tpu.memory_space<vmem>>, %arg21: memref<1x128xf32, #tpu.memory_space<vmem>>, %arg22: memref<1x1xf32, #tpu.memory_space<vmem>>, %arg23: memref<16x1xf32, #tpu.memory_space<vmem>>) attributes {dimension_semantics = [#tpu.dimension_semantics<parallel>], iteration_bounds = array<i64: 2>, scalar_prefetch = 0 : i64, scratch_operands = 0 : i64, tpu.core_type = #tpu.core_type<tc>, window_params = [{transform_indices = @transform_0, window_bounds = array<i64: 128, 128>}, {transform_indices = @transform_1, window_bounds = array<i64: 1, 1, 128>}, {transform_indices = @transform_2, window_bounds = array<i64: 16, 2>}, {pipeline_mode = #tpu.pipeline_mode<synchronous>, transform_indices = @transform_3, window_bounds = array<i64: 1, 128>}, {pipeline_mode = #tpu.pipeline_mode<synchronous>, transform_indices = @transform_4, window_bounds = array<i64: 1, 128>}, {pipeline_mode = #tpu.pipeline_mode<synchronous>, transform_indices = @transform_5, window_bounds = array<i64: 2, 128, 384>}, {pipeline_mode = #tpu.pipeline_mode<synchronous>, transform_indices = @transform_6, window_bounds = array<i64: 2, 1, 384>}, {pipeline_mode = #tpu.pipeline_mode<synchronous>, transform_indices = @transform_7, window_bounds = array<i64: 2, 128, 128>}, {pipeline_mode = #tpu.pipeline_mode<synchronous>, transform_indices = @transform_8, window_bounds = array<i64: 2, 1, 128>}, {pipeline_mode = #tpu.pipeline_mode<synchronous>, transform_indices = @transform_9, window_bounds = array<i64: 2, 1, 128>}, {pipeline_mode = #tpu.pipeline_mode<synchronous>, transform_indices = @transform_10, window_bounds = array<i64: 2, 1, 128>}, {pipeline_mode = #tpu.pipeline_mode<synchronous>, transform_indices = @transform_11, window_bounds = array<i64: 2, 128, 256>}, {pipeline_mode = #tpu.pipeline_mode<synchronous>, transform_indices = @transform_12, window_bounds = array<i64: 2, 1, 256>}, {pipeline_mode = #tpu.pipeline_mode<synchronous>, transform_indices = @transform_13, window_bounds = array<i64: 2, 256, 128>}, {pipeline_mode = #tpu.pipeline_mode<synchronous>, transform_indices = @transform_14, window_bounds = array<i64: 2, 1, 128>}, {pipeline_mode = #tpu.pipeline_mode<synchronous>, transform_indices = @transform_15, window_bounds = array<i64: 2, 1, 128>}, {pipeline_mode = #tpu.pipeline_mode<synchronous>, transform_indices = @transform_16, window_bounds = array<i64: 2, 1, 128>}, {pipeline_mode = #tpu.pipeline_mode<synchronous>, transform_indices = @transform_17, window_bounds = array<i64: 2, 128>}, {pipeline_mode = #tpu.pipeline_mode<synchronous>, transform_indices = @transform_18, window_bounds = array<i64: 1, 128>}, {pipeline_mode = #tpu.pipeline_mode<synchronous>, transform_indices = @transform_19, window_bounds = array<i64: 1, 128>}, {pipeline_mode = #tpu.pipeline_mode<synchronous>, transform_indices = @transform_20, window_bounds = array<i64: 1, 128>}, {pipeline_mode = #tpu.pipeline_mode<synchronous>, transform_indices = @transform_21, window_bounds = array<i64: 1, 1>}, {transform_indices = @transform_22, window_bounds = array<i64: 16, 1>}]} {
    %c0 = arith.constant 0 : index
    %c0_0 = arith.constant 0 : index
    %c0_1 = arith.constant 0 : index
    %0 = vector.load %arg2[%c0, %c0_0, %c0_1] : memref<1x1x128xf32, #tpu.memory_space<vmem>>, vector<1x1x128xf32>
    %1 = vector.shape_cast %0 : vector<1x1x128xf32> to vector<1x128xf32>
    %2 = tpu.iota {dimensions = array<i32: 0>} : vector<512x128xi32>
    %3 = tpu.iota {dimensions = array<i32: 1>} : vector<512x128xi32>
    %c127_i32 = arith.constant 127 : i32
    %4 = vector.broadcast %c127_i32 : i32 to vector<512x128xi32>
    %5 = arith.andi %2, %4 : vector<512x128xi32>
    %c3_i32 = arith.constant 3 : i32
    %6 = vector.broadcast %c3_i32 : i32 to vector<512x128xi32>
    %7 = arith.shrsi %5, %6 : vector<512x128xi32>
    %c3_i32_2 = arith.constant 3 : i32
    %8 = vector.broadcast %c3_i32_2 : i32 to vector<512x128xi32>
    %9 = arith.shrsi %3, %8 : vector<512x128xi32>
    %10 = arith.cmpi eq, %7, %9 : vector<512x128xi32>
    %cst = arith.constant 5.000000e-01 : f32
    %11 = vector.broadcast %cst : f32 to vector<1x128xf32>
    %12 = arith.cmpf ogt, %1, %11 : vector<1x128xf32>
    %13 = vector.broadcast %12 : vector<1x128xi1> to vector<512x128xi1>
    %14 = arith.andi %10, %13 : vector<512x128xi1>
    %cst_3 = arith.constant 0.000000e+00 : f32
    %cst_4 = arith.constant -1.000000e+09 : f32
    %15 = vector.broadcast %cst_3 : f32 to vector<512x128xf32>
    %16 = vector.broadcast %cst_4 : f32 to vector<512x128xf32>
    %17 = arith.select %14, %15, %16 : vector<512x128xi1>, vector<512x128xf32>
    %c0_5 = arith.constant 0 : index
    %c0_6 = arith.constant 0 : index
    %18 = vector.load %arg1[%c0_5, %c0_6] : memref<128x128xf32, #tpu.memory_space<vmem>>, vector<128x128xf32>
    %c0_7 = arith.constant 0 : index
    %c0_8 = arith.constant 0 : index
    %19 = vector.load %arg4[%c0_7, %c0_8] : memref<1x128xf32, #tpu.memory_space<vmem>>, vector<1x128xf32>
    %c0_9 = arith.constant 0 : index
    %c0_10 = arith.constant 0 : index
    %20 = vector.load %arg5[%c0_9, %c0_10] : memref<1x128xf32, #tpu.memory_space<vmem>>, vector<1x128xf32>
    %cst_11 = arith.constant dense<0.000000e+00> : vector<128xf32>
    %21 = vector.multi_reduction <add>, %18, %cst_11 [1] : vector<128x128xf32> to vector<128xf32>
    %22 = vector.shape_cast %21 : vector<128xf32> to vector<128x1xf32>
    %cst_12 = arith.constant 1.280000e+02 : f32
    %23 = vector.broadcast %cst_12 : f32 to vector<128x1xf32>
    %24 = arith.divf %22, %23 : vector<128x1xf32>
    %25 = vector.broadcast %24 : vector<128x1xf32> to vector<128x128xf32>
    %26 = arith.subf %18, %25 : vector<128x128xf32>
    %27 = arith.mulf %26, %26 : vector<128x128xf32>
    %cst_13 = arith.constant dense<0.000000e+00> : vector<128xf32>
    %28 = vector.multi_reduction <add>, %27, %cst_13 [1] : vector<128x128xf32> to vector<128xf32>
    %29 = vector.shape_cast %28 : vector<128xf32> to vector<128x1xf32>
    %cst_14 = arith.constant 1.280000e+02 : f32
    %30 = vector.broadcast %cst_14 : f32 to vector<128x1xf32>
    %31 = arith.divf %29, %30 : vector<128x1xf32>
    %32 = vector.broadcast %24 : vector<128x1xf32> to vector<128x128xf32>
    %33 = arith.subf %18, %32 : vector<128x128xf32>
    %cst_15 = arith.constant 9.99999996E-13 : f32
    %34 = vector.broadcast %cst_15 : f32 to vector<128x1xf32>
    %35 = arith.addf %31, %34 : vector<128x1xf32>
    %36 = math.rsqrt %35 : vector<128x1xf32>
    %37 = vector.broadcast %36 : vector<128x1xf32> to vector<128x128xf32>
    %38 = arith.mulf %33, %37 : vector<128x128xf32>
    %39 = vector.broadcast %19 : vector<1x128xf32> to vector<128x128xf32>
    %40 = arith.mulf %38, %39 : vector<128x128xf32>
    %41 = vector.broadcast %20 : vector<1x128xf32> to vector<128x128xf32>
    %42 = arith.addf %40, %41 : vector<128x128xf32>
    %43 = arith.truncf %42 : vector<128x128xf32> to vector<128x128xbf16>
    %c0_16 = arith.constant 0 : index
    %c0_17 = arith.constant 0 : index
    %c0_18 = arith.constant 0 : index
    %44 = vector.load %arg6[%c0_16, %c0_17, %c0_18] : memref<2x128x384xbf16, #tpu.memory_space<vmem>>, vector<1x128x384xbf16>
    %45 = vector.shape_cast %44 : vector<1x128x384xbf16> to vector<128x384xbf16>
    %cst_19 = arith.constant dense<0.000000e+00> : vector<128x384xf32>
    %46 = tpu.matmul %43, %45, %cst_19 {dimension_numbers = #tpu.dot_dimension_numbers<[1], [0], [0], [1], [0, 0, 1, 1], [], []>} : vector<128x128xbf16>, vector<128x384xbf16>, vector<128x384xf32> -> vector<128x384xf32>
    %c0_20 = arith.constant 0 : index
    %c0_21 = arith.constant 0 : index
    %c0_22 = arith.constant 0 : index
    %47 = vector.load %arg7[%c0_20, %c0_21, %c0_22] : memref<2x1x384xf32, #tpu.memory_space<vmem>>, vector<1x1x384xf32>
    %48 = vector.shape_cast %47 : vector<1x1x384xf32> to vector<1x384xf32>
    %49 = vector.broadcast %48 : vector<1x384xf32> to vector<128x384xf32>
    %50 = arith.addf %46, %49 : vector<128x384xf32>
    %51 = vector.extract_strided_slice %50 {offsets = [0, 0], sizes = [128, 128], strides = [1, 1]} : vector<128x384xf32> to vector<128x128xf32>
    %52 = arith.truncf %51 : vector<128x128xf32> to vector<128x128xbf16>
    %53 = vector.extract_strided_slice %50 {offsets = [0, 128], sizes = [128, 128], strides = [1, 1]} : vector<128x384xf32> to vector<128x128xf32>
    %54 = tpu.transpose %53, [1, 0] : vector<128x128xf32> -> vector<128x128xf32>
    %55 = arith.truncf %54 : vector<128x128xf32> to vector<128x128xbf16>
    %56 = vector.extract_strided_slice %50 {offsets = [0, 256], sizes = [128, 128], strides = [1, 1]} : vector<128x384xf32> to vector<128x128xf32>
    %57 = arith.truncf %56 : vector<128x128xf32> to vector<128x128xbf16>
    %58 = vector.extract_strided_slice %52 {offsets = [0, 0], sizes = [128, 32], strides = [1, 1]} : vector<128x128xbf16> to vector<128x32xbf16>
    %59 = vector.extract_strided_slice %55 {offsets = [0, 0], sizes = [32, 128], strides = [1, 1]} : vector<128x128xbf16> to vector<32x128xbf16>
    %cst_23 = arith.constant dense<0.000000e+00> : vector<128x128xf32>
    %60 = tpu.matmul %58, %59, %cst_23 {dimension_numbers = #tpu.dot_dimension_numbers<[1], [0], [0], [1], [0, 0, 1, 1], [], []>} : vector<128x32xbf16>, vector<32x128xbf16>, vector<128x128xf32> -> vector<128x128xf32>
    %61 = vector.extract_strided_slice %52 {offsets = [0, 32], sizes = [128, 32], strides = [1, 1]} : vector<128x128xbf16> to vector<128x32xbf16>
    %62 = vector.extract_strided_slice %55 {offsets = [32, 0], sizes = [32, 128], strides = [1, 1]} : vector<128x128xbf16> to vector<32x128xbf16>
    %cst_24 = arith.constant dense<0.000000e+00> : vector<128x128xf32>
    %63 = tpu.matmul %61, %62, %cst_24 {dimension_numbers = #tpu.dot_dimension_numbers<[1], [0], [0], [1], [0, 0, 1, 1], [], []>} : vector<128x32xbf16>, vector<32x128xbf16>, vector<128x128xf32> -> vector<128x128xf32>
    %64 = vector.extract_strided_slice %52 {offsets = [0, 64], sizes = [128, 32], strides = [1, 1]} : vector<128x128xbf16> to vector<128x32xbf16>
    %65 = vector.extract_strided_slice %55 {offsets = [64, 0], sizes = [32, 128], strides = [1, 1]} : vector<128x128xbf16> to vector<32x128xbf16>
    %cst_25 = arith.constant dense<0.000000e+00> : vector<128x128xf32>
    %66 = tpu.matmul %64, %65, %cst_25 {dimension_numbers = #tpu.dot_dimension_numbers<[1], [0], [0], [1], [0, 0, 1, 1], [], []>} : vector<128x32xbf16>, vector<32x128xbf16>, vector<128x128xf32> -> vector<128x128xf32>
    %67 = vector.extract_strided_slice %52 {offsets = [0, 96], sizes = [128, 32], strides = [1, 1]} : vector<128x128xbf16> to vector<128x32xbf16>
    %68 = vector.extract_strided_slice %55 {offsets = [96, 0], sizes = [32, 128], strides = [1, 1]} : vector<128x128xbf16> to vector<32x128xbf16>
    %cst_26 = arith.constant dense<0.000000e+00> : vector<128x128xf32>
    %69 = tpu.matmul %67, %68, %cst_26 {dimension_numbers = #tpu.dot_dimension_numbers<[1], [0], [0], [1], [0, 0, 1, 1], [], []>} : vector<128x32xbf16>, vector<32x128xbf16>, vector<128x128xf32> -> vector<128x128xf32>
    %70 = tpu.concatenate %60, %63, %66, %69 in 0 : vector<128x128xf32>, vector<128x128xf32>, vector<128x128xf32>, vector<128x128xf32> -> vector<512x128xf32>
    %71 = arith.addf %70, %17 : vector<512x128xf32>
    %cst_27 = arith.constant dense<0xFF800000> : vector<512xf32>
    %72 = vector.multi_reduction <maximumf>, %71, %cst_27 [1] : vector<512x128xf32> to vector<512xf32>
    %73 = vector.shape_cast %72 : vector<512xf32> to vector<512x1xf32>
    %74 = vector.broadcast %73 : vector<512x1xf32> to vector<512x128xf32>
    %75 = arith.subf %71, %74 : vector<512x128xf32>
    %76 = math.exp %75 : vector<512x128xf32>
    %cst_28 = arith.constant dense<0.000000e+00> : vector<512xf32>
    %77 = vector.multi_reduction <add>, %76, %cst_28 [1] : vector<512x128xf32> to vector<512xf32>
    %78 = vector.shape_cast %77 : vector<512xf32> to vector<512x1xf32>
    %79 = tpu.reciprocal %78 {approx = true} : vector<512x1xf32> -> vector<512x1xf32>
    %80 = vector.broadcast %79 : vector<512x1xf32> to vector<512x128xf32>
    %81 = arith.mulf %76, %80 : vector<512x128xf32>
    %82 = arith.truncf %81 : vector<512x128xf32> to vector<512x128xbf16>
    %83 = vector.extract_strided_slice %82 {offsets = [0, 0], sizes = [128, 128], strides = [1, 1]} : vector<512x128xbf16> to vector<128x128xbf16>
    %84 = vector.extract_strided_slice %57 {offsets = [0, 0], sizes = [128, 32], strides = [1, 1]} : vector<128x128xbf16> to vector<128x32xbf16>
    %cst_29 = arith.constant dense<0.000000e+00> : vector<128x32xf32>
    %85 = tpu.matmul %83, %84, %cst_29 {dimension_numbers = #tpu.dot_dimension_numbers<[1], [0], [0], [1], [0, 0, 1, 1], [], []>} : vector<128x128xbf16>, vector<128x32xbf16>, vector<128x32xf32> -> vector<128x32xf32>
    %86 = vector.extract_strided_slice %82 {offsets = [128, 0], sizes = [128, 128], strides = [1, 1]} : vector<512x128xbf16> to vector<128x128xbf16>
    %87 = vector.extract_strided_slice %57 {offsets = [0, 32], sizes = [128, 32], strides = [1, 1]} : vector<128x128xbf16> to vector<128x32xbf16>
    %cst_30 = arith.constant dense<0.000000e+00> : vector<128x32xf32>
    %88 = tpu.matmul %86, %87, %cst_30 {dimension_numbers = #tpu.dot_dimension_numbers<[1], [0], [0], [1], [0, 0, 1, 1], [], []>} : vector<128x128xbf16>, vector<128x32xbf16>, vector<128x32xf32> -> vector<128x32xf32>
    %89 = vector.extract_strided_slice %82 {offsets = [256, 0], sizes = [128, 128], strides = [1, 1]} : vector<512x128xbf16> to vector<128x128xbf16>
    %90 = vector.extract_strided_slice %57 {offsets = [0, 64], sizes = [128, 32], strides = [1, 1]} : vector<128x128xbf16> to vector<128x32xbf16>
    %cst_31 = arith.constant dense<0.000000e+00> : vector<128x32xf32>
    %91 = tpu.matmul %89, %90, %cst_31 {dimension_numbers = #tpu.dot_dimension_numbers<[1], [0], [0], [1], [0, 0, 1, 1], [], []>} : vector<128x128xbf16>, vector<128x32xbf16>, vector<128x32xf32> -> vector<128x32xf32>
    %92 = vector.extract_strided_slice %82 {offsets = [384, 0], sizes = [128, 128], strides = [1, 1]} : vector<512x128xbf16> to vector<128x128xbf16>
    %93 = vector.extract_strided_slice %57 {offsets = [0, 96], sizes = [128, 32], strides = [1, 1]} : vector<128x128xbf16> to vector<128x32xbf16>
    %cst_32 = arith.constant dense<0.000000e+00> : vector<128x32xf32>
    %94 = tpu.matmul %92, %93, %cst_32 {dimension_numbers = #tpu.dot_dimension_numbers<[1], [0], [0], [1], [0, 0, 1, 1], [], []>} : vector<128x128xbf16>, vector<128x32xbf16>, vector<128x32xf32> -> vector<128x32xf32>
    %95 = tpu.concatenate %85, %88, %91, %94 in 1 : vector<128x32xf32>, vector<128x32xf32>, vector<128x32xf32>, vector<128x32xf32> -> vector<128x128xf32>
    %96 = arith.truncf %95 : vector<128x128xf32> to vector<128x128xbf16>
    %c0_33 = arith.constant 0 : index
    %c0_34 = arith.constant 0 : index
    %c0_35 = arith.constant 0 : index
    %97 = vector.load %arg8[%c0_33, %c0_34, %c0_35] : memref<2x128x128xbf16, #tpu.memory_space<vmem>>, vector<1x128x128xbf16>
    %98 = vector.shape_cast %97 : vector<1x128x128xbf16> to vector<128x128xbf16>
    %cst_36 = arith.constant dense<0.000000e+00> : vector<128x128xf32>
    %99 = tpu.matmul %96, %98, %cst_36 {dimension_numbers = #tpu.dot_dimension_numbers<[1], [0], [0], [1], [0, 0, 1, 1], [], []>} : vector<128x128xbf16>, vector<128x128xbf16>, vector<128x128xf32> -> vector<128x128xf32>
    %c0_37 = arith.constant 0 : index
    %c0_38 = arith.constant 0 : index
    %c0_39 = arith.constant 0 : index
    %100 = vector.load %arg9[%c0_37, %c0_38, %c0_39] : memref<2x1x128xf32, #tpu.memory_space<vmem>>, vector<1x1x128xf32>
    %101 = vector.shape_cast %100 : vector<1x1x128xf32> to vector<1x128xf32>
    %102 = vector.broadcast %101 : vector<1x128xf32> to vector<128x128xf32>
    %103 = arith.addf %99, %102 : vector<128x128xf32>
    %104 = arith.addf %42, %103 : vector<128x128xf32>
    %c0_40 = arith.constant 0 : index
    %c0_41 = arith.constant 0 : index
    %c0_42 = arith.constant 0 : index
    %105 = vector.load %arg10[%c0_40, %c0_41, %c0_42] : memref<2x1x128xf32, #tpu.memory_space<vmem>>, vector<1x1x128xf32>
    %106 = vector.shape_cast %105 : vector<1x1x128xf32> to vector<1x128xf32>
    %c0_43 = arith.constant 0 : index
    %c0_44 = arith.constant 0 : index
    %c0_45 = arith.constant 0 : index
    %107 = vector.load %arg11[%c0_43, %c0_44, %c0_45] : memref<2x1x128xf32, #tpu.memory_space<vmem>>, vector<1x1x128xf32>
    %108 = vector.shape_cast %107 : vector<1x1x128xf32> to vector<1x128xf32>
    %cst_46 = arith.constant dense<0.000000e+00> : vector<128xf32>
    %109 = vector.multi_reduction <add>, %104, %cst_46 [1] : vector<128x128xf32> to vector<128xf32>
    %110 = vector.shape_cast %109 : vector<128xf32> to vector<128x1xf32>
    %cst_47 = arith.constant 1.280000e+02 : f32
    %111 = vector.broadcast %cst_47 : f32 to vector<128x1xf32>
    %112 = arith.divf %110, %111 : vector<128x1xf32>
    %113 = vector.broadcast %112 : vector<128x1xf32> to vector<128x128xf32>
    %114 = arith.subf %104, %113 : vector<128x128xf32>
    %115 = arith.mulf %114, %114 : vector<128x128xf32>
    %cst_48 = arith.constant dense<0.000000e+00> : vector<128xf32>
    %116 = vector.multi_reduction <add>, %115, %cst_48 [1] : vector<128x128xf32> to vector<128xf32>
    %117 = vector.shape_cast %116 : vector<128xf32> to vector<128x1xf32>
    %cst_49 = arith.constant 1.280000e+02 : f32
    %118 = vector.broadcast %cst_49 : f32 to vector<128x1xf32>
    %119 = arith.divf %117, %118 : vector<128x1xf32>
    %120 = vector.broadcast %112 : vector<128x1xf32> to vector<128x128xf32>
    %121 = arith.subf %104, %120 : vector<128x128xf32>
    %cst_50 = arith.constant 9.99999996E-13 : f32
    %122 = vector.broadcast %cst_50 : f32 to vector<128x1xf32>
    %123 = arith.addf %119, %122 : vector<128x1xf32>
    %124 = math.rsqrt %123 : vector<128x1xf32>
    %125 = vector.broadcast %124 : vector<128x1xf32> to vector<128x128xf32>
    %126 = arith.mulf %121, %125 : vector<128x128xf32>
    %127 = vector.broadcast %106 : vector<1x128xf32> to vector<128x128xf32>
    %128 = arith.mulf %126, %127 : vector<128x128xf32>
    %129 = vector.broadcast %108 : vector<1x128xf32> to vector<128x128xf32>
    %130 = arith.addf %128, %129 : vector<128x128xf32>
    %131 = arith.truncf %130 : vector<128x128xf32> to vector<128x128xbf16>
    %c0_51 = arith.constant 0 : index
    %c0_52 = arith.constant 0 : index
    %c0_53 = arith.constant 0 : index
    %132 = vector.load %arg12[%c0_51, %c0_52, %c0_53] : memref<2x128x256xbf16, #tpu.memory_space<vmem>>, vector<1x128x256xbf16>
    %133 = vector.shape_cast %132 : vector<1x128x256xbf16> to vector<128x256xbf16>
    %cst_54 = arith.constant dense<0.000000e+00> : vector<128x256xf32>
    %134 = tpu.matmul %131, %133, %cst_54 {dimension_numbers = #tpu.dot_dimension_numbers<[1], [0], [0], [1], [0, 0, 1, 1], [], []>} : vector<128x128xbf16>, vector<128x256xbf16>, vector<128x256xf32> -> vector<128x256xf32>
    %c0_55 = arith.constant 0 : index
    %c0_56 = arith.constant 0 : index
    %c0_57 = arith.constant 0 : index
    %135 = vector.load %arg13[%c0_55, %c0_56, %c0_57] : memref<2x1x256xf32, #tpu.memory_space<vmem>>, vector<1x1x256xf32>
    %136 = vector.shape_cast %135 : vector<1x1x256xf32> to vector<1x256xf32>
    %137 = vector.broadcast %136 : vector<1x256xf32> to vector<128x256xf32>
    %138 = arith.addf %134, %137 : vector<128x256xf32>
    %139 = arith.mulf %138, %138 : vector<128x256xf32>
    %140 = arith.mulf %138, %139 : vector<128x256xf32>
    %cst_58 = arith.constant 4.471500e-02 : f32
    %141 = vector.broadcast %cst_58 : f32 to vector<128x256xf32>
    %142 = arith.mulf %141, %140 : vector<128x256xf32>
    %143 = arith.addf %138, %142 : vector<128x256xf32>
    %cst_59 = arith.constant 0.797884583 : f32
    %144 = vector.broadcast %cst_59 : f32 to vector<128x256xf32>
    %145 = arith.mulf %144, %143 : vector<128x256xf32>
    %146 = math.tanh %145 : vector<128x256xf32>
    %cst_60 = arith.constant 1.000000e+00 : f32
    %147 = vector.broadcast %cst_60 : f32 to vector<128x256xf32>
    %148 = arith.addf %147, %146 : vector<128x256xf32>
    %cst_61 = arith.constant 5.000000e-01 : f32
    %149 = vector.broadcast %cst_61 : f32 to vector<128x256xf32>
    %150 = arith.mulf %149, %148 : vector<128x256xf32>
    %151 = arith.mulf %138, %150 : vector<128x256xf32>
    %152 = arith.truncf %151 : vector<128x256xf32> to vector<128x256xbf16>
    %c0_62 = arith.constant 0 : index
    %c0_63 = arith.constant 0 : index
    %c0_64 = arith.constant 0 : index
    %153 = vector.load %arg14[%c0_62, %c0_63, %c0_64] : memref<2x256x128xbf16, #tpu.memory_space<vmem>>, vector<1x256x128xbf16>
    %154 = vector.shape_cast %153 : vector<1x256x128xbf16> to vector<256x128xbf16>
    %cst_65 = arith.constant dense<0.000000e+00> : vector<128x128xf32>
    %155 = tpu.matmul %152, %154, %cst_65 {dimension_numbers = #tpu.dot_dimension_numbers<[1], [0], [0], [1], [0, 0, 1, 1], [], []>} : vector<128x256xbf16>, vector<256x128xbf16>, vector<128x128xf32> -> vector<128x128xf32>
    %c0_66 = arith.constant 0 : index
    %c0_67 = arith.constant 0 : index
    %c0_68 = arith.constant 0 : index
    %156 = vector.load %arg15[%c0_66, %c0_67, %c0_68] : memref<2x1x128xf32, #tpu.memory_space<vmem>>, vector<1x1x128xf32>
    %157 = vector.shape_cast %156 : vector<1x1x128xf32> to vector<1x128xf32>
    %158 = vector.broadcast %157 : vector<1x128xf32> to vector<128x128xf32>
    %159 = arith.addf %155, %158 : vector<128x128xf32>
    %160 = arith.addf %130, %159 : vector<128x128xf32>
    %c0_69 = arith.constant 0 : index
    %c0_70 = arith.constant 0 : index
    %c0_71 = arith.constant 0 : index
    %161 = vector.load %arg16[%c0_69, %c0_70, %c0_71] : memref<2x1x128xf32, #tpu.memory_space<vmem>>, vector<1x1x128xf32>
    %162 = vector.shape_cast %161 : vector<1x1x128xf32> to vector<1x128xf32>
    %c0_72 = arith.constant 0 : index
    %c0_73 = arith.constant 0 : index
    %c0_74 = arith.constant 0 : index
    %163 = vector.load %arg17[%c0_72, %c0_73, %c0_74] : memref<2x1x128xf32, #tpu.memory_space<vmem>>, vector<1x1x128xf32>
    %164 = vector.shape_cast %163 : vector<1x1x128xf32> to vector<1x128xf32>
    %cst_75 = arith.constant dense<0.000000e+00> : vector<128xf32>
    %165 = vector.multi_reduction <add>, %160, %cst_75 [1] : vector<128x128xf32> to vector<128xf32>
    %166 = vector.shape_cast %165 : vector<128xf32> to vector<128x1xf32>
    %cst_76 = arith.constant 1.280000e+02 : f32
    %167 = vector.broadcast %cst_76 : f32 to vector<128x1xf32>
    %168 = arith.divf %166, %167 : vector<128x1xf32>
    %169 = vector.broadcast %168 : vector<128x1xf32> to vector<128x128xf32>
    %170 = arith.subf %160, %169 : vector<128x128xf32>
    %171 = arith.mulf %170, %170 : vector<128x128xf32>
    %cst_77 = arith.constant dense<0.000000e+00> : vector<128xf32>
    %172 = vector.multi_reduction <add>, %171, %cst_77 [1] : vector<128x128xf32> to vector<128xf32>
    %173 = vector.shape_cast %172 : vector<128xf32> to vector<128x1xf32>
    %cst_78 = arith.constant 1.280000e+02 : f32
    %174 = vector.broadcast %cst_78 : f32 to vector<128x1xf32>
    %175 = arith.divf %173, %174 : vector<128x1xf32>
    %176 = vector.broadcast %168 : vector<128x1xf32> to vector<128x128xf32>
    %177 = arith.subf %160, %176 : vector<128x128xf32>
    %cst_79 = arith.constant 9.99999996E-13 : f32
    %178 = vector.broadcast %cst_79 : f32 to vector<128x1xf32>
    %179 = arith.addf %175, %178 : vector<128x1xf32>
    %180 = math.rsqrt %179 : vector<128x1xf32>
    %181 = vector.broadcast %180 : vector<128x1xf32> to vector<128x128xf32>
    %182 = arith.mulf %177, %181 : vector<128x128xf32>
    %183 = vector.broadcast %162 : vector<1x128xf32> to vector<128x128xf32>
    %184 = arith.mulf %182, %183 : vector<128x128xf32>
    %185 = vector.broadcast %164 : vector<1x128xf32> to vector<128x128xf32>
    %186 = arith.addf %184, %185 : vector<128x128xf32>
    %187 = arith.truncf %186 : vector<128x128xf32> to vector<128x128xbf16>
    %c1 = arith.constant 1 : index
    %c0_80 = arith.constant 0 : index
    %c0_81 = arith.constant 0 : index
    %188 = vector.load %arg6[%c1, %c0_80, %c0_81] : memref<2x128x384xbf16, #tpu.memory_space<vmem>>, vector<1x128x384xbf16>
    %189 = vector.shape_cast %188 : vector<1x128x384xbf16> to vector<128x384xbf16>
    %cst_82 = arith.constant dense<0.000000e+00> : vector<128x384xf32>
    %190 = tpu.matmul %187, %189, %cst_82 {dimension_numbers = #tpu.dot_dimension_numbers<[1], [0], [0], [1], [0, 0, 1, 1], [], []>} : vector<128x128xbf16>, vector<128x384xbf16>, vector<128x384xf32> -> vector<128x384xf32>
    %c1_83 = arith.constant 1 : index
    %c0_84 = arith.constant 0 : index
    %c0_85 = arith.constant 0 : index
    %191 = vector.load %arg7[%c1_83, %c0_84, %c0_85] : memref<2x1x384xf32, #tpu.memory_space<vmem>>, vector<1x1x384xf32>
    %192 = vector.shape_cast %191 : vector<1x1x384xf32> to vector<1x384xf32>
    %193 = vector.broadcast %192 : vector<1x384xf32> to vector<128x384xf32>
    %194 = arith.addf %190, %193 : vector<128x384xf32>
    %195 = vector.extract_strided_slice %194 {offsets = [0, 0], sizes = [128, 128], strides = [1, 1]} : vector<128x384xf32> to vector<128x128xf32>
    %196 = arith.truncf %195 : vector<128x128xf32> to vector<128x128xbf16>
    %197 = vector.extract_strided_slice %194 {offsets = [0, 128], sizes = [128, 128], strides = [1, 1]} : vector<128x384xf32> to vector<128x128xf32>
    %198 = tpu.transpose %197, [1, 0] : vector<128x128xf32> -> vector<128x128xf32>
    %199 = arith.truncf %198 : vector<128x128xf32> to vector<128x128xbf16>
    %200 = vector.extract_strided_slice %194 {offsets = [0, 256], sizes = [128, 128], strides = [1, 1]} : vector<128x384xf32> to vector<128x128xf32>
    %201 = arith.truncf %200 : vector<128x128xf32> to vector<128x128xbf16>
    %202 = vector.extract_strided_slice %196 {offsets = [0, 0], sizes = [128, 32], strides = [1, 1]} : vector<128x128xbf16> to vector<128x32xbf16>
    %203 = vector.extract_strided_slice %199 {offsets = [0, 0], sizes = [32, 128], strides = [1, 1]} : vector<128x128xbf16> to vector<32x128xbf16>
    %cst_86 = arith.constant dense<0.000000e+00> : vector<128x128xf32>
    %204 = tpu.matmul %202, %203, %cst_86 {dimension_numbers = #tpu.dot_dimension_numbers<[1], [0], [0], [1], [0, 0, 1, 1], [], []>} : vector<128x32xbf16>, vector<32x128xbf16>, vector<128x128xf32> -> vector<128x128xf32>
    %205 = vector.extract_strided_slice %196 {offsets = [0, 32], sizes = [128, 32], strides = [1, 1]} : vector<128x128xbf16> to vector<128x32xbf16>
    %206 = vector.extract_strided_slice %199 {offsets = [32, 0], sizes = [32, 128], strides = [1, 1]} : vector<128x128xbf16> to vector<32x128xbf16>
    %cst_87 = arith.constant dense<0.000000e+00> : vector<128x128xf32>
    %207 = tpu.matmul %205, %206, %cst_87 {dimension_numbers = #tpu.dot_dimension_numbers<[1], [0], [0], [1], [0, 0, 1, 1], [], []>} : vector<128x32xbf16>, vector<32x128xbf16>, vector<128x128xf32> -> vector<128x128xf32>
    %208 = vector.extract_strided_slice %196 {offsets = [0, 64], sizes = [128, 32], strides = [1, 1]} : vector<128x128xbf16> to vector<128x32xbf16>
    %209 = vector.extract_strided_slice %199 {offsets = [64, 0], sizes = [32, 128], strides = [1, 1]} : vector<128x128xbf16> to vector<32x128xbf16>
    %cst_88 = arith.constant dense<0.000000e+00> : vector<128x128xf32>
    %210 = tpu.matmul %208, %209, %cst_88 {dimension_numbers = #tpu.dot_dimension_numbers<[1], [0], [0], [1], [0, 0, 1, 1], [], []>} : vector<128x32xbf16>, vector<32x128xbf16>, vector<128x128xf32> -> vector<128x128xf32>
    %211 = vector.extract_strided_slice %196 {offsets = [0, 96], sizes = [128, 32], strides = [1, 1]} : vector<128x128xbf16> to vector<128x32xbf16>
    %212 = vector.extract_strided_slice %199 {offsets = [96, 0], sizes = [32, 128], strides = [1, 1]} : vector<128x128xbf16> to vector<32x128xbf16>
    %cst_89 = arith.constant dense<0.000000e+00> : vector<128x128xf32>
    %213 = tpu.matmul %211, %212, %cst_89 {dimension_numbers = #tpu.dot_dimension_numbers<[1], [0], [0], [1], [0, 0, 1, 1], [], []>} : vector<128x32xbf16>, vector<32x128xbf16>, vector<128x128xf32> -> vector<128x128xf32>
    %214 = tpu.concatenate %204, %207, %210, %213 in 0 : vector<128x128xf32>, vector<128x128xf32>, vector<128x128xf32>, vector<128x128xf32> -> vector<512x128xf32>
    %215 = arith.addf %214, %17 : vector<512x128xf32>
    %cst_90 = arith.constant dense<0xFF800000> : vector<512xf32>
    %216 = vector.multi_reduction <maximumf>, %215, %cst_90 [1] : vector<512x128xf32> to vector<512xf32>
    %217 = vector.shape_cast %216 : vector<512xf32> to vector<512x1xf32>
    %218 = vector.broadcast %217 : vector<512x1xf32> to vector<512x128xf32>
    %219 = arith.subf %215, %218 : vector<512x128xf32>
    %220 = math.exp %219 : vector<512x128xf32>
    %cst_91 = arith.constant dense<0.000000e+00> : vector<512xf32>
    %221 = vector.multi_reduction <add>, %220, %cst_91 [1] : vector<512x128xf32> to vector<512xf32>
    %222 = vector.shape_cast %221 : vector<512xf32> to vector<512x1xf32>
    %223 = tpu.reciprocal %222 {approx = true} : vector<512x1xf32> -> vector<512x1xf32>
    %224 = vector.broadcast %223 : vector<512x1xf32> to vector<512x128xf32>
    %225 = arith.mulf %220, %224 : vector<512x128xf32>
    %226 = arith.truncf %225 : vector<512x128xf32> to vector<512x128xbf16>
    %227 = vector.extract_strided_slice %226 {offsets = [0, 0], sizes = [128, 128], strides = [1, 1]} : vector<512x128xbf16> to vector<128x128xbf16>
    %228 = vector.extract_strided_slice %201 {offsets = [0, 0], sizes = [128, 32], strides = [1, 1]} : vector<128x128xbf16> to vector<128x32xbf16>
    %cst_92 = arith.constant dense<0.000000e+00> : vector<128x32xf32>
    %229 = tpu.matmul %227, %228, %cst_92 {dimension_numbers = #tpu.dot_dimension_numbers<[1], [0], [0], [1], [0, 0, 1, 1], [], []>} : vector<128x128xbf16>, vector<128x32xbf16>, vector<128x32xf32> -> vector<128x32xf32>
    %230 = vector.extract_strided_slice %226 {offsets = [128, 0], sizes = [128, 128], strides = [1, 1]} : vector<512x128xbf16> to vector<128x128xbf16>
    %231 = vector.extract_strided_slice %201 {offsets = [0, 32], sizes = [128, 32], strides = [1, 1]} : vector<128x128xbf16> to vector<128x32xbf16>
    %cst_93 = arith.constant dense<0.000000e+00> : vector<128x32xf32>
    %232 = tpu.matmul %230, %231, %cst_93 {dimension_numbers = #tpu.dot_dimension_numbers<[1], [0], [0], [1], [0, 0, 1, 1], [], []>} : vector<128x128xbf16>, vector<128x32xbf16>, vector<128x32xf32> -> vector<128x32xf32>
    %233 = vector.extract_strided_slice %226 {offsets = [256, 0], sizes = [128, 128], strides = [1, 1]} : vector<512x128xbf16> to vector<128x128xbf16>
    %234 = vector.extract_strided_slice %201 {offsets = [0, 64], sizes = [128, 32], strides = [1, 1]} : vector<128x128xbf16> to vector<128x32xbf16>
    %cst_94 = arith.constant dense<0.000000e+00> : vector<128x32xf32>
    %235 = tpu.matmul %233, %234, %cst_94 {dimension_numbers = #tpu.dot_dimension_numbers<[1], [0], [0], [1], [0, 0, 1, 1], [], []>} : vector<128x128xbf16>, vector<128x32xbf16>, vector<128x32xf32> -> vector<128x32xf32>
    %236 = vector.extract_strided_slice %226 {offsets = [384, 0], sizes = [128, 128], strides = [1, 1]} : vector<512x128xbf16> to vector<128x128xbf16>
    %237 = vector.extract_strided_slice %201 {offsets = [0, 96], sizes = [128, 32], strides = [1, 1]} : vector<128x128xbf16> to vector<128x32xbf16>
    %cst_95 = arith.constant dense<0.000000e+00> : vector<128x32xf32>
    %238 = tpu.matmul %236, %237, %cst_95 {dimension_numbers = #tpu.dot_dimension_numbers<[1], [0], [0], [1], [0, 0, 1, 1], [], []>} : vector<128x128xbf16>, vector<128x32xbf16>, vector<128x32xf32> -> vector<128x32xf32>
    %239 = tpu.concatenate %229, %232, %235, %238 in 1 : vector<128x32xf32>, vector<128x32xf32>, vector<128x32xf32>, vector<128x32xf32> -> vector<128x128xf32>
    %240 = arith.truncf %239 : vector<128x128xf32> to vector<128x128xbf16>
    %c1_96 = arith.constant 1 : index
    %c0_97 = arith.constant 0 : index
    %c0_98 = arith.constant 0 : index
    %241 = vector.load %arg8[%c1_96, %c0_97, %c0_98] : memref<2x128x128xbf16, #tpu.memory_space<vmem>>, vector<1x128x128xbf16>
    %242 = vector.shape_cast %241 : vector<1x128x128xbf16> to vector<128x128xbf16>
    %cst_99 = arith.constant dense<0.000000e+00> : vector<128x128xf32>
    %243 = tpu.matmul %240, %242, %cst_99 {dimension_numbers = #tpu.dot_dimension_numbers<[1], [0], [0], [1], [0, 0, 1, 1], [], []>} : vector<128x128xbf16>, vector<128x128xbf16>, vector<128x128xf32> -> vector<128x128xf32>
    %c1_100 = arith.constant 1 : index
    %c0_101 = arith.constant 0 : index
    %c0_102 = arith.constant 0 : index
    %244 = vector.load %arg9[%c1_100, %c0_101, %c0_102] : memref<2x1x128xf32, #tpu.memory_space<vmem>>, vector<1x1x128xf32>
    %245 = vector.shape_cast %244 : vector<1x1x128xf32> to vector<1x128xf32>
    %246 = vector.broadcast %245 : vector<1x128xf32> to vector<128x128xf32>
    %247 = arith.addf %243, %246 : vector<128x128xf32>
    %248 = arith.addf %186, %247 : vector<128x128xf32>
    %c1_103 = arith.constant 1 : index
    %c0_104 = arith.constant 0 : index
    %c0_105 = arith.constant 0 : index
    %249 = vector.load %arg10[%c1_103, %c0_104, %c0_105] : memref<2x1x128xf32, #tpu.memory_space<vmem>>, vector<1x1x128xf32>
    %250 = vector.shape_cast %249 : vector<1x1x128xf32> to vector<1x128xf32>
    %c1_106 = arith.constant 1 : index
    %c0_107 = arith.constant 0 : index
    %c0_108 = arith.constant 0 : index
    %251 = vector.load %arg11[%c1_106, %c0_107, %c0_108] : memref<2x1x128xf32, #tpu.memory_space<vmem>>, vector<1x1x128xf32>
    %252 = vector.shape_cast %251 : vector<1x1x128xf32> to vector<1x128xf32>
    %cst_109 = arith.constant dense<0.000000e+00> : vector<128xf32>
    %253 = vector.multi_reduction <add>, %248, %cst_109 [1] : vector<128x128xf32> to vector<128xf32>
    %254 = vector.shape_cast %253 : vector<128xf32> to vector<128x1xf32>
    %cst_110 = arith.constant 1.280000e+02 : f32
    %255 = vector.broadcast %cst_110 : f32 to vector<128x1xf32>
    %256 = arith.divf %254, %255 : vector<128x1xf32>
    %257 = vector.broadcast %256 : vector<128x1xf32> to vector<128x128xf32>
    %258 = arith.subf %248, %257 : vector<128x128xf32>
    %259 = arith.mulf %258, %258 : vector<128x128xf32>
    %cst_111 = arith.constant dense<0.000000e+00> : vector<128xf32>
    %260 = vector.multi_reduction <add>, %259, %cst_111 [1] : vector<128x128xf32> to vector<128xf32>
    %261 = vector.shape_cast %260 : vector<128xf32> to vector<128x1xf32>
    %cst_112 = arith.constant 1.280000e+02 : f32
    %262 = vector.broadcast %cst_112 : f32 to vector<128x1xf32>
    %263 = arith.divf %261, %262 : vector<128x1xf32>
    %264 = vector.broadcast %256 : vector<128x1xf32> to vector<128x128xf32>
    %265 = arith.subf %248, %264 : vector<128x128xf32>
    %cst_113 = arith.constant 9.99999996E-13 : f32
    %266 = vector.broadcast %cst_113 : f32 to vector<128x1xf32>
    %267 = arith.addf %263, %266 : vector<128x1xf32>
    %268 = math.rsqrt %267 : vector<128x1xf32>
    %269 = vector.broadcast %268 : vector<128x1xf32> to vector<128x128xf32>
    %270 = arith.mulf %265, %269 : vector<128x128xf32>
    %271 = vector.broadcast %250 : vector<1x128xf32> to vector<128x128xf32>
    %272 = arith.mulf %270, %271 : vector<128x128xf32>
    %273 = vector.broadcast %252 : vector<1x128xf32> to vector<128x128xf32>
    %274 = arith.addf %272, %273 : vector<128x128xf32>
    %275 = arith.truncf %274 : vector<128x128xf32> to vector<128x128xbf16>
    %c1_114 = arith.constant 1 : index
    %c0_115 = arith.constant 0 : index
    %c0_116 = arith.constant 0 : index
    %276 = vector.load %arg12[%c1_114, %c0_115, %c0_116] : memref<2x128x256xbf16, #tpu.memory_space<vmem>>, vector<1x128x256xbf16>
    %277 = vector.shape_cast %276 : vector<1x128x256xbf16> to vector<128x256xbf16>
    %cst_117 = arith.constant dense<0.000000e+00> : vector<128x256xf32>
    %278 = tpu.matmul %275, %277, %cst_117 {dimension_numbers = #tpu.dot_dimension_numbers<[1], [0], [0], [1], [0, 0, 1, 1], [], []>} : vector<128x128xbf16>, vector<128x256xbf16>, vector<128x256xf32> -> vector<128x256xf32>
    %c1_118 = arith.constant 1 : index
    %c0_119 = arith.constant 0 : index
    %c0_120 = arith.constant 0 : index
    %279 = vector.load %arg13[%c1_118, %c0_119, %c0_120] : memref<2x1x256xf32, #tpu.memory_space<vmem>>, vector<1x1x256xf32>
    %280 = vector.shape_cast %279 : vector<1x1x256xf32> to vector<1x256xf32>
    %281 = vector.broadcast %280 : vector<1x256xf32> to vector<128x256xf32>
    %282 = arith.addf %278, %281 : vector<128x256xf32>
    %283 = arith.mulf %282, %282 : vector<128x256xf32>
    %284 = arith.mulf %282, %283 : vector<128x256xf32>
    %cst_121 = arith.constant 4.471500e-02 : f32
    %285 = vector.broadcast %cst_121 : f32 to vector<128x256xf32>
    %286 = arith.mulf %285, %284 : vector<128x256xf32>
    %287 = arith.addf %282, %286 : vector<128x256xf32>
    %cst_122 = arith.constant 0.797884583 : f32
    %288 = vector.broadcast %cst_122 : f32 to vector<128x256xf32>
    %289 = arith.mulf %288, %287 : vector<128x256xf32>
    %290 = math.tanh %289 : vector<128x256xf32>
    %cst_123 = arith.constant 1.000000e+00 : f32
    %291 = vector.broadcast %cst_123 : f32 to vector<128x256xf32>
    %292 = arith.addf %291, %290 : vector<128x256xf32>
    %cst_124 = arith.constant 5.000000e-01 : f32
    %293 = vector.broadcast %cst_124 : f32 to vector<128x256xf32>
    %294 = arith.mulf %293, %292 : vector<128x256xf32>
    %295 = arith.mulf %282, %294 : vector<128x256xf32>
    %296 = arith.truncf %295 : vector<128x256xf32> to vector<128x256xbf16>
    %c1_125 = arith.constant 1 : index
    %c0_126 = arith.constant 0 : index
    %c0_127 = arith.constant 0 : index
    %297 = vector.load %arg14[%c1_125, %c0_126, %c0_127] : memref<2x256x128xbf16, #tpu.memory_space<vmem>>, vector<1x256x128xbf16>
    %298 = vector.shape_cast %297 : vector<1x256x128xbf16> to vector<256x128xbf16>
    %cst_128 = arith.constant dense<0.000000e+00> : vector<128x128xf32>
    %299 = tpu.matmul %296, %298, %cst_128 {dimension_numbers = #tpu.dot_dimension_numbers<[1], [0], [0], [1], [0, 0, 1, 1], [], []>} : vector<128x256xbf16>, vector<256x128xbf16>, vector<128x128xf32> -> vector<128x128xf32>
    %c1_129 = arith.constant 1 : index
    %c0_130 = arith.constant 0 : index
    %c0_131 = arith.constant 0 : index
    %300 = vector.load %arg15[%c1_129, %c0_130, %c0_131] : memref<2x1x128xf32, #tpu.memory_space<vmem>>, vector<1x1x128xf32>
    %301 = vector.shape_cast %300 : vector<1x1x128xf32> to vector<1x128xf32>
    %302 = vector.broadcast %301 : vector<1x128xf32> to vector<128x128xf32>
    %303 = arith.addf %299, %302 : vector<128x128xf32>
    %304 = arith.addf %274, %303 : vector<128x128xf32>
    %c1_132 = arith.constant 1 : index
    %c0_133 = arith.constant 0 : index
    %c0_134 = arith.constant 0 : index
    %305 = vector.load %arg16[%c1_132, %c0_133, %c0_134] : memref<2x1x128xf32, #tpu.memory_space<vmem>>, vector<1x1x128xf32>
    %306 = vector.shape_cast %305 : vector<1x1x128xf32> to vector<1x128xf32>
    %c1_135 = arith.constant 1 : index
    %c0_136 = arith.constant 0 : index
    %c0_137 = arith.constant 0 : index
    %307 = vector.load %arg17[%c1_135, %c0_136, %c0_137] : memref<2x1x128xf32, #tpu.memory_space<vmem>>, vector<1x1x128xf32>
    %308 = vector.shape_cast %307 : vector<1x1x128xf32> to vector<1x128xf32>
    %cst_138 = arith.constant dense<0.000000e+00> : vector<128xf32>
    %309 = vector.multi_reduction <add>, %304, %cst_138 [1] : vector<128x128xf32> to vector<128xf32>
    %310 = vector.shape_cast %309 : vector<128xf32> to vector<128x1xf32>
    %cst_139 = arith.constant 1.280000e+02 : f32
    %311 = vector.broadcast %cst_139 : f32 to vector<128x1xf32>
    %312 = arith.divf %310, %311 : vector<128x1xf32>
    %313 = vector.broadcast %312 : vector<128x1xf32> to vector<128x128xf32>
    %314 = arith.subf %304, %313 : vector<128x128xf32>
    %315 = arith.mulf %314, %314 : vector<128x128xf32>
    %cst_140 = arith.constant dense<0.000000e+00> : vector<128xf32>
    %316 = vector.multi_reduction <add>, %315, %cst_140 [1] : vector<128x128xf32> to vector<128xf32>
    %317 = vector.shape_cast %316 : vector<128xf32> to vector<128x1xf32>
    %cst_141 = arith.constant 1.280000e+02 : f32
    %318 = vector.broadcast %cst_141 : f32 to vector<128x1xf32>
    %319 = arith.divf %317, %318 : vector<128x1xf32>
    %320 = vector.broadcast %312 : vector<128x1xf32> to vector<128x128xf32>
    %321 = arith.subf %304, %320 : vector<128x128xf32>
    %cst_142 = arith.constant 9.99999996E-13 : f32
    %322 = vector.broadcast %cst_142 : f32 to vector<128x1xf32>
    %323 = arith.addf %319, %322 : vector<128x1xf32>
    %324 = math.rsqrt %323 : vector<128x1xf32>
    %325 = vector.broadcast %324 : vector<128x1xf32> to vector<128x128xf32>
    %326 = arith.mulf %321, %325 : vector<128x128xf32>
    %327 = vector.broadcast %306 : vector<1x128xf32> to vector<128x128xf32>
    %328 = arith.mulf %326, %327 : vector<128x128xf32>
    %329 = vector.broadcast %308 : vector<1x128xf32> to vector<128x128xf32>
    %330 = arith.addf %328, %329 : vector<128x128xf32>
    %331 = vector.shape_cast %330 : vector<128x128xf32> to vector<16x8x128xf32>
    %332 = vector.extract_strided_slice %331 {offsets = [0, 0, 0], sizes = [16, 1, 128], strides = [1, 1, 1]} : vector<16x8x128xf32> to vector<16x1x128xf32>
    %333 = vector.shape_cast %332 : vector<16x1x128xf32> to vector<16x128xf32>
    %c0_143 = arith.constant 0 : index
    %c0_144 = arith.constant 0 : index
    %334 = vector.load %arg3[%c0_143, %c0_144] : memref<16x2xf32, #tpu.memory_space<vmem>>, vector<16x2xf32>
    %c0_145 = arith.constant 0 : index
    %c0_146 = arith.constant 0 : index
    %335 = vector.load %arg19[%c0_145, %c0_146] : memref<1x128xf32, #tpu.memory_space<vmem>>, vector<1x128xf32>
    %336 = vector.extract_strided_slice %334 {offsets = [0, 0], sizes = [16, 1], strides = [1, 1]} : vector<16x2xf32> to vector<16x1xf32>
    %c0_147 = arith.constant 0 : index
    %c0_148 = arith.constant 0 : index
    %337 = vector.load %arg18[%c0_147, %c0_148] : memref<2x128xf32, #tpu.memory_space<vmem>>, vector<1x128xf32>
    %338 = vector.broadcast %336 : vector<16x1xf32> to vector<16x128xf32>
    %339 = vector.broadcast %337 : vector<1x128xf32> to vector<16x128xf32>
    %340 = arith.mulf %338, %339 : vector<16x128xf32>
    %341 = vector.broadcast %335 : vector<1x128xf32> to vector<16x128xf32>
    %342 = arith.addf %341, %340 : vector<16x128xf32>
    %343 = vector.extract_strided_slice %334 {offsets = [0, 1], sizes = [16, 1], strides = [1, 1]} : vector<16x2xf32> to vector<16x1xf32>
    %c1_149 = arith.constant 1 : index
    %c0_150 = arith.constant 0 : index
    %344 = vector.load %arg18[%c1_149, %c0_150] : memref<2x128xf32, #tpu.memory_space<vmem>>, vector<1x128xf32>
    %345 = vector.broadcast %343 : vector<16x1xf32> to vector<16x128xf32>
    %346 = vector.broadcast %344 : vector<1x128xf32> to vector<16x128xf32>
    %347 = arith.mulf %345, %346 : vector<16x128xf32>
    %348 = arith.addf %342, %347 : vector<16x128xf32>
    %c0_151 = arith.constant 0 : index
    %c0_152 = arith.constant 0 : index
    %349 = vector.load %arg20[%c0_151, %c0_152] : memref<1x128xf32, #tpu.memory_space<vmem>>, vector<1x128xf32>
    %350 = vector.broadcast %349 : vector<1x128xf32> to vector<16x128xf32>
    %351 = arith.mulf %333, %350 : vector<16x128xf32>
    %c0_153 = arith.constant 0 : index
    %c0_154 = arith.constant 0 : index
    %352 = vector.load %arg21[%c0_153, %c0_154] : memref<1x128xf32, #tpu.memory_space<vmem>>, vector<1x128xf32>
    %353 = vector.broadcast %352 : vector<1x128xf32> to vector<16x128xf32>
    %354 = arith.mulf %348, %353 : vector<16x128xf32>
    %355 = arith.addf %351, %354 : vector<16x128xf32>
    %cst_155 = arith.constant dense<0.000000e+00> : vector<16xf32>
    %356 = vector.multi_reduction <add>, %355, %cst_155 [1] : vector<16x128xf32> to vector<16xf32>
    %357 = vector.shape_cast %356 : vector<16xf32> to vector<16x1xf32>
    %c0_156 = arith.constant 0 : index
    %c0_157 = arith.constant 0 : index
    %358 = vector.load %arg22[%c0_156, %c0_157] : memref<1x1xf32, #tpu.memory_space<vmem>>, vector<1x1xf32>
    %359 = vector.broadcast %358 : vector<1x1xf32> to vector<16x1xf32>
    %360 = arith.addf %357, %359 : vector<16x1xf32>
    %c0_158 = arith.constant 0 : index
    %c0_159 = arith.constant 0 : index
    %361 = vector.load %arg23[%c0_158, %c0_159] : memref<16x1xf32, #tpu.memory_space<vmem>>, vector<16x1xf32>
    tpu.vector_store %arg23[%c0_158, %c0_159], %360 {strides = array<i32>} : memref<16x1xf32, #tpu.memory_space<vmem>>, vector<16x1xf32>,
    return
  }
  func.func @transform_0(%arg0: i32) -> (i32, i32) {
    %c0_i32 = arith.constant 0 : i32
    %c0_i32_0 = arith.constant 0 : i32
    return %arg0, %c0_i32 : i32, i32
  }
  func.func @transform_1(%arg0: i32) -> (i32, i32, i32) {
    %c0_i32 = arith.constant 0 : i32
    %c0_i32_0 = arith.constant 0 : i32
    %c0_i32_1 = arith.constant 0 : i32
    return %arg0, %c0_i32, %c0_i32_0 : i32, i32, i32
  }
  func.func @transform_2(%arg0: i32) -> (i32, i32) {
    %c0_i32 = arith.constant 0 : i32
    %c0_i32_0 = arith.constant 0 : i32
    return %arg0, %c0_i32 : i32, i32
  }
  func.func @transform_3(%arg0: i32) -> (i32, i32) {
    %c0_i32 = arith.constant 0 : i32
    %c0_i32_0 = arith.constant 0 : i32
    %c0_i32_1 = arith.constant 0 : i32
    return %c0_i32, %c0_i32_0 : i32, i32
  }
  func.func @transform_4(%arg0: i32) -> (i32, i32) {
    %c0_i32 = arith.constant 0 : i32
    %c0_i32_0 = arith.constant 0 : i32
    %c0_i32_1 = arith.constant 0 : i32
    return %c0_i32, %c0_i32_0 : i32, i32
  }
  func.func @transform_5(%arg0: i32) -> (i32, i32, i32) {
    %c0_i32 = arith.constant 0 : i32
    %c0_i32_0 = arith.constant 0 : i32
    %c0_i32_1 = arith.constant 0 : i32
    %c0_i32_2 = arith.constant 0 : i32
    return %c0_i32, %c0_i32_0, %c0_i32_1 : i32, i32, i32
  }
  func.func @transform_6(%arg0: i32) -> (i32, i32, i32) {
    %c0_i32 = arith.constant 0 : i32
    %c0_i32_0 = arith.constant 0 : i32
    %c0_i32_1 = arith.constant 0 : i32
    %c0_i32_2 = arith.constant 0 : i32
    return %c0_i32, %c0_i32_0, %c0_i32_1 : i32, i32, i32
  }
  func.func @transform_7(%arg0: i32) -> (i32, i32, i32) {
    %c0_i32 = arith.constant 0 : i32
    %c0_i32_0 = arith.constant 0 : i32
    %c0_i32_1 = arith.constant 0 : i32
    %c0_i32_2 = arith.constant 0 : i32
    return %c0_i32, %c0_i32_0, %c0_i32_1 : i32, i32, i32
  }
  func.func @transform_8(%arg0: i32) -> (i32, i32, i32) {
    %c0_i32 = arith.constant 0 : i32
    %c0_i32_0 = arith.constant 0 : i32
    %c0_i32_1 = arith.constant 0 : i32
    %c0_i32_2 = arith.constant 0 : i32
    return %c0_i32, %c0_i32_0, %c0_i32_1 : i32, i32, i32
  }
  func.func @transform_9(%arg0: i32) -> (i32, i32, i32) {
    %c0_i32 = arith.constant 0 : i32
    %c0_i32_0 = arith.constant 0 : i32
    %c0_i32_1 = arith.constant 0 : i32
    %c0_i32_2 = arith.constant 0 : i32
    return %c0_i32, %c0_i32_0, %c0_i32_1 : i32, i32, i32
  }
  func.func @transform_10(%arg0: i32) -> (i32, i32, i32) {
    %c0_i32 = arith.constant 0 : i32
    %c0_i32_0 = arith.constant 0 : i32
    %c0_i32_1 = arith.constant 0 : i32
    %c0_i32_2 = arith.constant 0 : i32
    return %c0_i32, %c0_i32_0, %c0_i32_1 : i32, i32, i32
  }
  func.func @transform_11(%arg0: i32) -> (i32, i32, i32) {
    %c0_i32 = arith.constant 0 : i32
    %c0_i32_0 = arith.constant 0 : i32
    %c0_i32_1 = arith.constant 0 : i32
    %c0_i32_2 = arith.constant 0 : i32
    return %c0_i32, %c0_i32_0, %c0_i32_1 : i32, i32, i32
  }
  func.func @transform_12(%arg0: i32) -> (i32, i32, i32) {
    %c0_i32 = arith.constant 0 : i32
    %c0_i32_0 = arith.constant 0 : i32
    %c0_i32_1 = arith.constant 0 : i32
    %c0_i32_2 = arith.constant 0 : i32
    return %c0_i32, %c0_i32_0, %c0_i32_1 : i32, i32, i32
  }
  func.func @transform_13(%arg0: i32) -> (i32, i32, i32) {
    %c0_i32 = arith.constant 0 : i32
    %c0_i32_0 = arith.constant 0 : i32
    %c0_i32_1 = arith.constant 0 : i32
    %c0_i32_2 = arith.constant 0 : i32
    return %c0_i32, %c0_i32_0, %c0_i32_1 : i32, i32, i32
  }
  func.func @transform_14(%arg0: i32) -> (i32, i32, i32) {
    %c0_i32 = arith.constant 0 : i32
    %c0_i32_0 = arith.constant 0 : i32
    %c0_i32_1 = arith.constant 0 : i32
    %c0_i32_2 = arith.constant 0 : i32
    return %c0_i32, %c0_i32_0, %c0_i32_1 : i32, i32, i32
  }
  func.func @transform_15(%arg0: i32) -> (i32, i32, i32) {
    %c0_i32 = arith.constant 0 : i32
    %c0_i32_0 = arith.constant 0 : i32
    %c0_i32_1 = arith.constant 0 : i32
    %c0_i32_2 = arith.constant 0 : i32
    return %c0_i32, %c0_i32_0, %c0_i32_1 : i32, i32, i32
  }
  func.func @transform_16(%arg0: i32) -> (i32, i32, i32) {
    %c0_i32 = arith.constant 0 : i32
    %c0_i32_0 = arith.constant 0 : i32
    %c0_i32_1 = arith.constant 0 : i32
    %c0_i32_2 = arith.constant 0 : i32
    return %c0_i32, %c0_i32_0, %c0_i32_1 : i32, i32, i32
  }
  func.func @transform_17(%arg0: i32) -> (i32, i32) {
    %c0_i32 = arith.constant 0 : i32
    %c0_i32_0 = arith.constant 0 : i32
    %c0_i32_1 = arith.constant 0 : i32
    return %c0_i32, %c0_i32_0 : i32, i32
  }
  func.func @transform_18(%arg0: i32) -> (i32, i32) {
    %c0_i32 = arith.constant 0 : i32
    %c0_i32_0 = arith.constant 0 : i32
    %c0_i32_1 = arith.constant 0 : i32
    return %c0_i32, %c0_i32_0 : i32, i32
  }
  func.func @transform_19(%arg0: i32) -> (i32, i32) {
    %c0_i32 = arith.constant 0 : i32
    %c0_i32_0 = arith.constant 0 : i32
    %c0_i32_1 = arith.constant 0 : i32
    return %c0_i32, %c0_i32_0 : i32, i32
  }
  func.func @transform_20(%arg0: i32) -> (i32, i32) {
    %c0_i32 = arith.constant 0 : i32
    %c0_i32_0 = arith.constant 0 : i32
    %c0_i32_1 = arith.constant 0 : i32
    return %c0_i32, %c0_i32_0 : i32, i32
  }
  func.func @transform_21(%arg0: i32) -> (i32, i32) {
    %c0_i32 = arith.constant 0 : i32
    %c0_i32_0 = arith.constant 0 : i32
    %c0_i32_1 = arith.constant 0 : i32
    return %c0_i32, %c0_i32_0 : i32, i32
  }
  func.func @transform_22(%arg0: i32) -> (i32, i32) {
    %c0_i32 = arith.constant 0 : i32
    %c0_i32_0 = arith.constant 0 : i32
    return %arg0, %c0_i32 : i32, i32
  }
}

</mosaic_0001>

<bundles_post_ra>
// kernel: tpu_custom_call.1
= control target key start
LH: loop header
LB: loop body
LE: loop exit
PB: predicated region body
PF: predicated region fallthrough
CT: control target
= control target key end

     0   :  { %s17210_s0 = inlined_call_operand.hbm [shape: f32[256,128], index: 0, kind: input, shape index: {}]   ;;  %s17211_s1 = inlined_call_operand.vmem [shape: f32[2,1,128], index: 1, kind: input, shape index: {}]   ;;  %s17212_s2 = inlined_call_operand.vmem [shape: f32[32,2], index: 2, kind: input, shape index: {}]   ;;  %s17213_s3 = inlined_call_operand.vmem [shape: f32[1,128], index: 3, kind: input, shape index: {}]   ;;  %s17214_s4 = inlined_call_operand.vmem [shape: f32[1,128], index: 4, kind: input, shape index: {}]   ;;  %s17215_s5 = inlined_call_operand.hbm [shape: bf16[2,128,384], index: 5, kind: input, shape index: {}]   ;;  %s17216_s6 = inlined_call_operand.vmem [shape: f32[2,1,384], index: 6, kind: input, shape index: {}]   ;;  %s17217_s7 = inlined_call_operand.hbm [shape: bf16[2,128,128], index: 7, kind: input, shape index: {}]   ;;  %s17218_s8 = inlined_call_operand.vmem [shape: f32[2,1,128], index: 8, kind: input, shape index: {}]   ;;  %s17219_s9 = inlined_call_operand.vmem [shape: f32[2,1,128], index: 9, kind: input, shape index: {}]   ;;  %s17220_s10 = inlined_call_operand.vmem [shape: f32[2,1,128], index: 10, kind: input, shape index: {}]   ;;  %s17221_s11 = inlined_call_operand.hbm [shape: bf16[2,128,256], index: 11, kind: input, shape index: {}]   ;;  %s17222_s12 = inlined_call_operand.vmem [shape: f32[2,1,256], index: 12, kind: input, shape index: {}]   ;;  %s17223_s13 = inlined_call_operand.hbm [shape: bf16[2,256,128], index: 13, kind: input, shape index: {}]   ;;  %s17224_s14 = inlined_call_operand.vmem [shape: f32[2,1,128], index: 14, kind: input, shape index: {}]   ;;  %s17225_s15 = inlined_call_operand.vmem [shape: f32[2,1,128], index: 15, kind: input, shape index: {}]   ;;  %s17226_s16 = inlined_call_operand.vmem [shape: f32[2,1,128], index: 16, kind: input, shape index: {}]   ;;  %s17227_s17 = inlined_call_operand.vmem [shape: f32[2,128], index: 17, kind: input, shape index: {}]   ;;  %s17228_s18 = inlined_call_operand.vmem [shape: f32[1,128], index: 18, kind: input, shape index: {}]   ;;  %s17229_s19 = inlined_call_operand.vmem [shape: f32[1,128], index: 19, kind: input, shape index: {}]   ;;  %s17230_s20 = inlined_call_operand.vmem [shape: f32[1,128], index: 20, kind: input, shape index: {}]   ;;  %s17231_s21 = inlined_call_operand.<no memory space> [shape: f32[1,1], index: 21, kind: input, shape index: {}]   ;;  %s17232_s22 = inlined_call_operand.vmem [shape: f32[32,1], index: 22, kind: output, shape index: {}]  }
   0x1   :  { %17469 = sst [smem:[#allocation140_spill]] %s17210_s0  ;;  %v27_v0 = vstv %s17231_s21 }
   0x2   :  { %17470 = sst [smem:[#allocation141_spill]] %s17211_s1  ;;  %28 = vst [vmem:[#allocation2] sm:$0x1] %v27_v0 }
   0x3   :  { %17471 = sst [smem:[#allocation142_spill]] %s17212_s2 }
   0x4   :  { %17472 = sst [smem:[#allocation143_spill]] %s17213_s3 }
   0x5   :  { %17473 = sst [smem:[#allocation144_spill]] %s17214_s4 }
   0x6   :  { %17474 = sst [smem:[#allocation145_spill]] %s17215_s5 }
   0x7   :  { %17475 = sst [smem:[#allocation146_spill]] %s17216_s6 }
   0x8   :  { %17476 = sst [smem:[#allocation147_spill]] %s17226_s16 }
   0x9   :  { %17477 = sst [smem:[#allocation148_spill]] %s17227_s17 }
   0xa   :  { %17478 = sst [smem:[#allocation149_spill]] %s17228_s18 }
   0xb   :  { %17479 = sst [smem:[#allocation150_spill]] %s17229_s19 }
   0xc   :  { %17480 = sst [smem:[#allocation151_spill]] %s17230_s20 }
   0xd   :  { %17481 = sst [smem:[#allocation152_spill]] %s17232_s22 }
   0xe   :  { %29 = vsyncpa [#allocation4], 0 }
   0xf   :  { %31 = vsyncpa [#allocation4 + $0x1], 0 }
  0x10   :  { %32 = vsyncpa [#allocation6], 0 }
  0x11   :  { %33 = vsyncpa [#allocation9], 0  ;;  %s12154_s29 = smov 0   ;;  %s12156_s30 = smov 0  }
  0x12   :  { %s12158_s4 = smov 0   ;;  %s12160_s0 = smov 0  }
  0x13 LB: > { %s12173_s21 = sadd.s32 4294967295, %s12017_s0   ;;  %p59_p0 = scmp.ne.s32.totalorder %s12009_s30, %s12005_s29  ;;  %s12017_s0 = sphi %s12160_s0, %s17965_s0   ;;  %s12013_s4 = sphi %s12158_s4, %s17964_s4   ;;  %s12009_s30 = sphi %s12156_s30, %s17963_s30   ;;  %s12005_s29 = sphi %s12154_s29, %s17962_s29  }
  0x14   : > { %p17236_p1 = scmp.eq.s32.totalorder %s12173_s21, 0  ;;  %p9351_p2 = scmp.ge.s32.totalorder %s12017_s0, 1 }
  0x15   : > { %p547_p3 = scmp.lt.s32.totalorder %s12017_s0, 3  ;;  %s12019_s5 = smov [#allocation5]  }
  0x16   : > { %p12181_p4 = por %p17236_p1, %p59_p0  ;;  %s565_s24 = sshll.u32 %s12019_s5, 4  ;;  %s566_s24 = int_to_ptr.vmem [resolvable:$true] %s565_s24 }
  0x17   : > { %p12185_p5 = pnand %p9351_p2, %p547_p3  ;;  %s12020_s25 = smov [#allocation8]  }
  0x18   : > { %s17482_s23 = scalar_select %p12181_p4, 1, 0 }
  0x19   : > { %s17483_s1 = scalar_select %p12185_p5, 1, 0 }
  0x1a   : > { %p10555_p6 = pneg %p12185_p5  ;;  %s603_s26 = sshll.u32 %s12020_s25, 4  ;;  %s12197_s26 = int_to_ptr.vmem [resolvable:$true] %s603_s26 }
  0x1b   : > { %s17485_s3 = sld [smem:[#allocation145_spill]] }
  0x1c   : > { %p12193_p7 = pnand %p10555_p6, %p17236_p1 }
  0x1e   : > { %p12207_p9 = pneg %p12193_p7 }
  0x21   : > { %s11833_s28 = scalar_lea.hbm %s17485_s3, 6144 }
  0x22   : > { %p11834_p8 = scmp.ne.s32.totalorder %s17485_s3, %s11833_s28  ;;  %p11840_p12 = scmp.lt.u32.totalorder %s11833_s28, %s17485_s3 }
  0x24   : > { %p11836_p10 = pnand %p12207_p9, %p11834_p8 }
  0x26   : > { %p11837_p11 = pneg %p11836_p10 }
  0x28   : > { %p11842_p13 = pnand %p11840_p12, %p11837_p11 }
  0x2a   : > { %11845 = shalt.err (!%p11842_p13)
}
  0x2b   : > { %s11846_s2 = scalar_lea.vmem %s566_s24, 6144  ;;  %p11854_p6 = scmp.lt.s32.totalorder %s566_s24, %s566_s24 }
  0x2c   : > { %p11847_p0 = scmp.ne.s32.totalorder %s566_s24, %s11846_s2  ;;  %p11855_p1 = scmp.lt.s32.totalorder %s11846_s2, %s11846_s2 }
  0x2e   : > { %p11849_p2 = pnand %p11847_p0, %p12207_p9  ;;  %p11856_p4 = por %p11855_p1, %p11854_p6 }
  0x30   : > { %p11850_p3 = pneg %p11849_p2 }
  0x32   : > { %p11857_p5 = pnand %p11856_p4, %p11850_p3 }
  0x34   : > { %11860 = shalt.err (!%p11857_p5)
}
  0x35   : > { %s12021_s22 = smov 192   ;;  %s12022_s27 = smov 12  }
  0x36   : > { %10558 = dma.hbm_to_vmem [thread:$0]  (!%p12193_p7), %s17485_s3, 6144, %s566_s24, [#allocation6], %s12021_s22, %s12021_s22, %s12022_s27  }
  0x37   : > { %s11861_s19 = scalar_lea.hbm %s17221_s11, 4096 }
  0x38   : > { %p11862_p8 = scmp.ne.s32.totalorder %s17221_s11, %s11861_s19  ;;  %p11868_p5 = scmp.lt.u32.totalorder %s11861_s19, %s17221_s11 }
  0x3a   : > { %p11864_p1 = pnand %p11862_p8, %p12207_p9 }
  0x3c   : > { %p11865_p4 = pneg %p11864_p1 }
  0x3e   : > { %p11870_p10 = pnand %p11868_p5, %p11865_p4 }
  0x40   : > { %11873 = shalt.err (!%p11870_p10)
}
  0x41   : > { %s11874_s24 = scalar_lea.vmem %s12197_s26, 4096  ;;  %p11882_p0 = scmp.lt.s32.totalorder %s12197_s26, %s12197_s26 }
  0x42   : > { %p11875_p11 = scmp.ne.s32.totalorder %s12197_s26, %s11874_s24  ;;  %p11883_p2 = scmp.lt.s32.totalorder %s11874_s24, %s11874_s24 }
  0x44   : > { %p11877_p12 = pnand %p11875_p11, %p12207_p9  ;;  %p11884_p3 = por %p11883_p2, %p11882_p0 }
  0x46   : > { %p11878_p13 = pneg %p11877_p12 }
  0x48   : > { %p11885_p6 = pnand %p11884_p3, %p11878_p13 }
  0x4a   : > { %11888 = shalt.err (!%p11885_p6)
}
  0x4b   : > { %s17242_s17 = smov 128   ;;  %s17243_s16 = smov 8  }
  0x4c   : > { %10564 = dma.hbm_to_vmem [thread:$0]  (!%p12193_p7), %s17221_s11, 4096, %s12197_s26, [#allocation9], %s17242_s17, %s17242_s17, %s17243_s16  }
  0x4d   : > { %s12025_s22 = smov [#allocation7]   ;;  %s11889_s29 = scalar_lea.hbm %s17217_s7, 2048 }
  0x4e   : > { %s581_s27 = sshll.u32 %s12025_s22, 4  ;;  %p11890_p8 = scmp.ne.s32.totalorder %s17217_s7, %s11889_s29  ;;  %s582_s27 = int_to_ptr.vmem [resolvable:$true] %s581_s27 }
  0x4f   : > { %p11896_p5 = scmp.lt.u32.totalorder %s11889_s29, %s17217_s7 }
  0x50   : > { %p11892_p1 = pnand %p11890_p8, %p12207_p9 }
  0x52   : > { %p11893_p4 = pneg %p11892_p1 }
  0x54   : > { %p11898_p10 = pnand %p11896_p5, %p11893_p4 }
  0x56   : > { %11901 = shalt.err (!%p11898_p10)
}
  0x57   : > { %s11902_s26 = scalar_lea.vmem %s582_s27, 2048  ;;  %p11910_p0 = scmp.lt.s32.totalorder %s582_s27, %s582_s27 }
  0x58   : > { %p11903_p11 = scmp.ne.s32.totalorder %s582_s27, %s11902_s26  ;;  %p11911_p2 = scmp.lt.s32.totalorder %s11902_s26, %s11902_s26 }
  0x5a   : > { %p11905_p12 = pnand %p11903_p11, %p12207_p9  ;;  %p11912_p3 = por %p11911_p2, %p11910_p0 }
  0x5c   : > { %p11906_p13 = pneg %p11905_p12 }
  0x5e   : > { %p11913_p6 = pnand %p11912_p3, %p11906_p13 }
  0x60   : > { %11916 = shalt.err (!%p11913_p6)
}
  0x61   : > { %s12026_s18 = smov 64   ;;  %s12027_s19 = smov 4  }
  0x62   : > { %10561 = dma.hbm_to_vmem [thread:$0]  (!%p12193_p7), %s17217_s7, 2048, %s582_s27, [#allocation6], %s12026_s18, %s12026_s18, %s12027_s19  }
  0x63   : > { %s12028_s20 = smov [#allocation10]   ;;  %s11917_s2 = scalar_lea.hbm %s17223_s13, 4096 }
  0x64   : > { %s619_s28 = sshll.u32 %s12028_s20, 4  ;;  %p11918_p8 = scmp.ne.s32.totalorder %s17223_s13, %s11917_s2  ;;  %s620_s28 = int_to_ptr.vmem [resolvable:$true] %s619_s28 }
  0x65   : > { %p11924_p5 = scmp.lt.u32.totalorder %s11917_s2, %s17223_s13 }
  0x66   : > { %p11920_p1 = pnand %p11918_p8, %p12207_p9 }
  0x68   : > { %p11921_p4 = pneg %p11920_p1 }
  0x6a   : > { %p11926_p10 = pnand %p11924_p5, %p11921_p4 }
  0x6c   : > { %11929 = shalt.err (!%p11926_p10)
}
  0x6d   : > { %s11930_s27 = scalar_lea.vmem %s620_s28, 4096  ;;  %p11938_p0 = scmp.lt.s32.totalorder %s620_s28, %s620_s28 }
  0x6e   : > { %p11931_p11 = scmp.ne.s32.totalorder %s620_s28, %s11930_s27  ;;  %p11939_p2 = scmp.lt.s32.totalorder %s11930_s27, %s11930_s27 }
  0x70   : > { %p11933_p12 = pnand %p11931_p11, %p12207_p9  ;;  %p11940_p3 = por %p11939_p2, %p11938_p0 }
  0x72   : > { %p11934_p13 = pneg %p11933_p12 }
  0x74   : > { %p11941_p6 = pnand %p11940_p3, %p11934_p13 }
  0x76   : > { %11944 = shalt.err (!%p11941_p6)
}
  0x77   : > { %10567 = dma.hbm_to_vmem [thread:$0]  (!%p12193_p7), %s17223_s13, 4096, %s620_s28, [#allocation9], %s12026_s18, %s12026_s18, %s12027_s19  }
  0x78   : > { %s12286_s5 = sadd.s32 1, %s12017_s0   ;;  %s46_s17 = sadd.s32 1, %s12013_s4 }
  0x79   : > { %s43_s16 = ssub.s32 %s12017_s0, %s12286_s5  ;;  %p53_p9 = scmp.ne.s32.totalorder %s12013_s4, %s12009_s30 }
  0x7a   : > { %p44_p8 = scmp.eq.s32.totalorder %s43_s16, 0  ;;  %p54_p1 = scmp.eq.s32.totalorder %s12017_s0, 0 }
  0x7b   : > { %p10576_p4 = scmp.lt.s32.totalorder %s12017_s0, 2  ;;  %s657_s6 = sand.u32 1, %s12013_s4  }
  0x7c   : > { %s12297_s20 = scalar_select %p44_p8, %s12013_s4, %s46_s17  }
  0x7d   : > { %p55_p5 = por %p54_p1, %p53_p9  ;;  %s9357_s29 = sshll.u32 %s657_s6, 7 }
  0x7e   : > { %s9592_s25 = sshll.u32 %s12017_s0, 11  ;;  %s17487_s26 = sld [smem:[#allocation140_spill]] }
  0x7f   : > { %s661_s18 = scalar_lea.vmem [#allocation3], %s9357_s29  ;;  %p12305_p7 = pnand %p10576_p4, %p55_p5 }
  0x80   : > { %s668_s19 = sshll.u32 %s661_s18, 4  ;;  %s12311_s0 = scalar_lea.sflag [#allocation4], %s657_s6  ;;  %s12309_s19 = int_to_ptr.vmem [resolvable:$true] %s668_s19 }
  0x81   : > { %p11947_p11 = pneg %p12305_p7 }
  0x84   : > { %s12303_s27 = scalar_lea.hbm %s17487_s26, %s9592_s25  ;;  %s11950_s16 = scalar_lea.hbm %s17487_s26, 4096 }
  0x85   : > { %s11945_s3 = scalar_lea.hbm %s12303_s27, 2048  ;;  %p11951_p0 = scmp.lt.u32.totalorder %s12303_s27, %s17487_s26 }
  0x86   : > { %p11946_p10 = scmp.ne.s32.totalorder %s12303_s27, %s11945_s3  ;;  %p11952_p2 = scmp.lt.u32.totalorder %s11950_s16, %s11945_s3 }
  0x87   : > { %p11954_p6 = scmp.lt.u32.totalorder %s11945_s3, %s12303_s27 }
  0x88   : > { %p11948_p12 = pnand %p11947_p11, %p11946_p10  ;;  %p11953_p3 = por %p11952_p2, %p11951_p0 }
  0x8a   : > { %p11949_p13 = pneg %p11948_p12  ;;  %p11955_p9 = por %p11954_p6, %p11953_p3 }
  0x8c   : > { %p11956_p8 = pnand %p11955_p9, %p11949_p13 }
  0x8e   : > { %11959 = shalt.err (!%p11956_p8)
}
  0x8f   : > { %s11960_s6 = scalar_lea.vmem %s12309_s19, 2048  ;;  %s12029_s2 = smov [#allocation3]  }
  0x90   : > { %p11961_p1 = scmp.ne.s32.totalorder %s12309_s19, %s11960_s6  ;;  %s11965_s24 = sshll.u32 %s12029_s2, 4  ;;  %s11966_s24 = int_to_ptr.vmem [resolvable:$false] %s11965_s24 }
  0x91   : > { %s11967_s18 = scalar_lea.vmem %s11966_s24, 4096  ;;  %p11968_p10 = scmp.lt.s32.totalorder %s12309_s19, %s11966_s24 }
  0x92   : > { %p11963_p4 = pnand %p11961_p1, %p11947_p11  ;;  %p11969_p12 = scmp.lt.s32.totalorder %s11967_s18, %s11960_s6 }
  0x94   : > { %p11964_p5 = pneg %p11963_p4  ;;  %p11970_p0 = por %p11969_p12, %p11968_p10 }
  0x96   : > { %p11971_p2 = pnand %p11970_p0, %p11964_p5 }
  0x98   : > { %11974 = shalt.err (!%p11971_p2)
}
  0x99   : > { %s17489_s3 = smov 8   ;;  %s17490_s22 = smov 128  }
  0x9a   : > { %10571 = dma.hbm_to_vmem [thread:$0]  (!%p12305_p7), %s12303_s27, 2048, %s12309_s19, %s12311_s0, %s17490_s22, %s17490_s22, %s17489_s3  }
  0x9b   : > { %p17491_p11 = scmp.ne.s32.totalorder %s17483_s1, 0 }
  0x9d   : > { %695 = sbr.rel (%p17491_p11) target bundleno = 6200 (0x1838), region = 108 }
  0xa4   : > { %s697_s17 = sand.u32 1, %s12009_s30   ;;  %p17492_p13 = scmp.ne.s32.totalorder %s17482_s23, 0 }
  0xa5   : > { %s9361_s16 = sshll.u32 %s697_s17, 7  ;;  %s698_s29 = scalar_lea.sflag [#allocation4], %s697_s17 }
  0xa6   : > { %s12345_s25 = scalar_lea.vmem [#allocation3], %s9361_s16 }
  0xa7   : > { %11992 = dma.done.wait (%p17492_p13), %s698_s29, 2048  }
  0xa8   : > { %11994 = vsyncadd (%p17492_p13), %s698_s29, 4294965248  ;;  %p17493_p3 = scmp.eq.s32.totalorder %s12173_s21, 0 }
  0xaa   : > { %11996 = dma.done.wait (%p17493_p3), [#allocation6], 8192   ;;  %p17494_p7 = pmov %p17493_p3 }
  0xab   : > { %p17495_p6 = pmov %p17493_p3 }
  0xac   : > { %11998 = vsyncadd (%p17494_p7), [#allocation6], 4294959104 }
  0xad   : > { %12000 = dma.done.wait (%p17495_p6), [#allocation9], 8192   ;;  %p17496_p9 = pmov %p17493_p3 }
  0xae   : > { %v1199_v1 = vld [vmem:[%s12345_s25] sm:$0xff]  ;;  %v1201_v2 = vld [vmem:[%s12345_s25 + $0x10] sm:$0xff]  ;;  %v1200_v3 = vld [vmem:[%s12345_s25 + $0x8] sm:$0xff]  ;;  %s17497_s27 = sld [smem:[#allocation143_spill]]  ;;  %s17498_s0 = sld [smem:[#allocation144_spill]]  ;;  %vm1889_vm0 = vcmask 261120  }
  0xaf   : > { %12002 = vsyncadd (%p17496_p9), [#allocation9], 4294959104  ;;  %1217 = vadd.xlane.f32.xlu0 %v1199_v1  ;;  %1221 = vadd.xlane.f32.xlu1 %v1201_v2  ;;  %v1202_v4 = vld [vmem:[%s12345_s25 + $0x18] sm:$0xff]  ;;  %v1203_v5 = vld [vmem:[%s12345_s25 + $0x20] sm:$0xff]  ;;  %s17517_s24 = sld [smem:[#allocation146_spill]]  ;;  %s12031_s18 = smov 96  }
  0xb0   : > { %v1204_v6 = vld [vmem:[%s12345_s25 + $0x28] sm:$0xff]  ;;  %v12366_v7 = vld [vmem:[%s12345_s25 + $0x30] sm:$0xff]  ;;  %v12369_v8 = vld [vmem:[%s12345_s25 + $0x38] sm:$0xff]  ;;  %s12032_s3 = smov 64   ;;  %s12033_s22 = smov 32  }
  0xb1   : > { %v12372_v9 = vld [vmem:[%s12345_s25 + $0x40] sm:$0xff]  ;;  %v12375_v10 = vld [vmem:[%s12345_s25 + $0x48] sm:$0xff]  ;;  %v12380_v11 = vld [vmem:[%s12345_s25 + $0x50] sm:$0xff]  ;;  %p787_p8 = scmp.lt.s32.totalorder %s12173_s21, 1  ;;  %s17750_s19 = sld [smem:[#allocation147_spill]] }
  0xb2   : > { %v12383_v12 = vld [vmem:[%s12345_s25 + $0x58] sm:$0xff]  ;;  %v12388_v13 = vld [vmem:[%s12345_s25 + $0x60] sm:$0xff]  ;;  %v12391_v14 = vld [vmem:[%s12345_s25 + $0x68] sm:$0xff]  ;;  %s9366_s1 = sshll.u32 %s12173_s21, 1  ;;  %s17956_s29 = sld [smem:[#allocation148_spill]] }
  0xb3   : > { %1219 = vadd.xlane.f32.xlu0 %v1200_v3  ;;  %1223 = vadd.xlane.f32.xlu1 %v1202_v4  ;;  %v12396_v15 = vld [vmem:[%s12345_s25 + $0x70] sm:$0xff]  ;;  %v12399_v16 = vld [vmem:[%s12345_s25 + $0x78] sm:$0xff]  ;;  %v10875_v18 = vld [vmem:[#allocation5] ss:$12 sps:$4 sm:$0xff]   ;;  %s788_s17 = scalar_select %p787_p8, %s12173_s21, 1 }
  0xb4   : > { %v10873_v17 = vld [vmem:[#allocation5 + $0x4] ss:$12 sps:$4 sm:$0xff]   ;;  %v10876_v19 = vld [vmem:[#allocation5 + $0x1c] ss:$12 sps:$4 sm:$0xff]   ;;  %s17522_s25 = sld [smem:[#allocation141_spill]]  ;;  %p791_p1 = scmp.lt.s32.totalorder %s9366_s1, 3 }
  0xb5   : > { %v10878_v20 = vld [vmem:[#allocation5 + $0x8] ss:$12 sps:$4 sm:$0xff]   ;;  %1623 = vmatprep.subr.bf16.mxu0 %v10873_v17  ;;  %v10879_v59 = vld [vmem:[#allocation5 + $0x18] ss:$12 sps:$4 sm:$0xff]   ;;  %s17959_s6 = sld [smem:[#allocation150_spill]]  ;;  %s17960_s16 = sld [smem:[#allocation151_spill]] }
  0xb6   : > { %1624 = vmatpush1.bf16.msra.mxu0 %v10875_v18  ;;  %9993 = vmatprep.subr.bf16.mxu1 %v10878_v20  ;;  %s17967_s1 = smov (!%p791_p1, %s9366_s1), 3 }
  0xb7   : > { %1225 = vadd.xlane.f32.xlu0 %v1203_v5  ;;  %1227 = vadd.xlane.f32.xlu1 %v1204_v6  ;;  %s9367_s21 = sshll.u32 %s17967_s1, 3 }
  0xb8   : > { %1625 = vmatprep.subr.bf16.mxu0 %v10876_v19  ;;  %9994 = vmatpush3.bf16.msra.mxu1 %v10878_v20  ;;  %v10884_v19 = vld [vmem:[#allocation5 + $0x4c] ss:$12 sps:$4 sm:$0xff]  }
  0xb9   : > { %v10886_v20 = vld [vmem:[#allocation5 + $0x38] ss:$12 sps:$4 sm:$0xff]  }
  0xba   : > { %1626 = vmatpush1.bf16.msra.mxu0 %v10879_v59  ;;  %s789_s23 = scalar_lea.vmem %s17522_s25, %s788_s17  ;;  %s17957_s25 = smov %s17956_s29 }
  0xbb   : > { %1229 = vadd.xlane.f32.xlu0 %v12366_v7  ;;  %1231 = vadd.xlane.f32.xlu1 %v12369_v8 }
  0xbf   : > { %1233 = vadd.xlane.f32.xlu0 %v12372_v9  ;;  %1235 = vadd.xlane.f32.xlu1 %v12375_v10 }
  0xc3   : > { %1237 = vadd.xlane.f32.xlu0 %v12380_v11  ;;  %1239 = vadd.xlane.f32.xlu1 %v12383_v12 }
  0xc7   : > { %1241 = vadd.xlane.f32.xlu0 %v12388_v13  ;;  %1243 = vadd.xlane.f32.xlu1 %v12391_v14 }
  0xcb   : > { %1245 = vadd.xlane.f32.xlu0 %v12396_v15  ;;  %1247 = vadd.xlane.f32.xlu1 %v12399_v16 }
 0x13c   : > { %v1218_v21 = vpop.xlane.xlu0 %1217  ;;  %v1222_v22 = vpop.xlane.xlu1 %1221 }
 0x13d   : > { %v1250_v23 = vmul.f32 0.0078125, %v1218_v21  ;;  %v1252_v24 = vmul.f32 0.0078125, %v1222_v22 }
 0x13f   : > { %v12405_v25 = vsub.f32 %v1199_v1, %v1250_v23  ;;  %v12407_v26 = vsub.f32 %v1201_v2, %v1252_v24  ;;  %v10880_v1 = vld [vmem:[#allocation5 + $0x34] ss:$12 sps:$4 sm:$0xff]  }
 0x140   : > { %v1220_v27 = vpop.xlane.xlu0 %1219  ;;  %v1224_v28 = vpop.xlane.xlu1 %1223  ;;  %v10882_v2 = vld [vmem:[#allocation5 + $0x20] ss:$12 sps:$4 sm:$0xff]   ;;  %1627 = vmatprep.subr.bf16.mxu0 %v10880_v1  ;;  %v10887_v23 = vld [vmem:[#allocation5 + $0x48] ss:$12 sps:$4 sm:$0xff]  }
 0x141   : > { %v1251_v29 = vmul.f32 0.0078125, %v1220_v27  ;;  %v1282_v30 = vmul.f32 %v12405_v25, %v12405_v25  ;;  %v1253_v31 = vmul.f32 0.0078125, %v1224_v28  ;;  %v1284_v32 = vmul.f32 %v12407_v26, %v12407_v26  ;;  %9995 = vmatprep.subr.bf16.mxu1 %v10882_v2 }
 0x142   : > { %9996 = vmatpush3.bf16.msra.mxu1 %v10882_v2 }
 0x143   : > { %1298 = vadd.xlane.f32.xlu0 %v1282_v30  ;;  %v12413_v33 = vsub.f32 %v1200_v3, %v1251_v29  ;;  %v12415_v34 = vsub.f32 %v1202_v4, %v1253_v31  ;;  %9997 = vmatprep.subr.bf16.mxu1 %v10886_v20  ;;  %v10888_v30 = vld [vmem:[#allocation5 + $0x64] ss:$12 sps:$4 sm:$0xff]  }
 0x144   : > { %v1226_v35 = vpop.xlane.xlu0 %1225  ;;  %v1228_v36 = vpop.xlane.xlu1 %1227  ;;  %v10890_v31 = vld [vmem:[#allocation5 + $0x50] ss:$12 sps:$4 sm:$0xff]  }
 0x145   : > { %v1254_v37 = vmul.f32 0.0078125, %v1226_v35  ;;  %v1283_v38 = vmul.f32 %v12413_v33, %v12413_v33  ;;  %v1255_v39 = vmul.f32 0.0078125, %v1228_v36  ;;  %v1285_v40 = vmul.f32 %v12415_v34, %v12415_v34 }
 0x146   : > { %9998 = vmatpush3.bf16.msra.mxu1 %v10886_v20 }
 0x147   : > { %1302 = vadd.xlane.f32.xlu0 %v1284_v32  ;;  %1300 = vadd.xlane.f32.xlu1 %v1283_v38  ;;  %v12421_v41 = vsub.f32 %v1203_v5, %v1254_v37  ;;  %v12423_v42 = vsub.f32 %v1204_v6, %v1255_v39  ;;  %v10891_v32 = vld [vmem:[#allocation5 + $0x60] ss:$12 sps:$4 sm:$0xff]   ;;  %v10894_v37 = vld [vmem:[#allocation5 + $0x68] ss:$12 sps:$4 sm:$0xff]   ;;  %v10895_v38 = vld [vmem:[#allocation5 + $0x78] ss:$12 sps:$4 sm:$0xff]  }
 0x148   : > { %v1230_v43 = vpop.xlane.xlu0 %1229  ;;  %v1232_v44 = vpop.xlane.xlu1 %1231  ;;  %9999 = vmatprep.subr.bf16.mxu1 %v10890_v31  ;;  %v10898_v39 = vld [vmem:[#allocation5 + $0x80] ss:$12 sps:$4 sm:$0xff]  }
 0x149   : > { %v1256_v45 = vmul.f32 0.0078125, %v1230_v43  ;;  %v1286_v46 = vmul.f32 %v12421_v41, %v12421_v41  ;;  %v1257_v47 = vmul.f32 0.0078125, %v1232_v44  ;;  %v1287_v48 = vmul.f32 %v12423_v42, %v12423_v42  ;;  %v10900_v43 = vld [vmem:[#allocation5 + $0xac] ss:$12 sps:$4 sm:$0xff]  }
 0x14a   : > { %10000 = vmatpush3.bf16.msra.mxu1 %v10890_v31  ;;  %v10902_v44 = vld [vmem:[#allocation5 + $0x98] ss:$12 sps:$4 sm:$0xff]  }
 0x14b   : > { %1304 = vadd.xlane.f32.xlu1 %v1285_v40  ;;  %1306 = vadd.xlane.f32.xlu0 %v1286_v46  ;;  %v12430_v49 = vsub.f32 %v12366_v7, %v1256_v45  ;;  %v12433_v50 = vsub.f32 %v12369_v8, %v1257_v47  ;;  %v10883_v8 = vld [vmem:[#allocation5 + $0x30] ss:$12 sps:$4 sm:$0xff]   ;;  %v10903_v45 = vld [vmem:[#allocation5 + $0xa8] ss:$12 sps:$4 sm:$0xff]   ;;  %v17245_v47 = vmov 0  }
 0x14c   : > { %v1234_v51 = vpop.xlane.xlu0 %1233  ;;  %v1236_v52 = vpop.xlane.xlu1 %1235  ;;  %1628 = vmatpush1.bf16.msra.mxu0 %v10883_v8  ;;  %10001 = vmatprep.subr.bf16.mxu1 %v10894_v37  ;;  %v10899_v40 = vld [vmem:[#allocation5 + $0x90] ss:$12 sps:$4 sm:$0xff]  }
 0x14d   : > { %v1258_v53 = vmul.f32 0.0078125, %v1234_v51  ;;  %v1288_v54 = vmul.f32 %v12430_v49, %v12430_v49  ;;  %v1259_v55 = vmul.f32 0.0078125, %v1236_v52  ;;  %v1289_v56 = vmul.f32 %v12433_v50, %v12433_v50  ;;  %1629 = vmatprep.subr.bf16.mxu0 %v10884_v19  ;;  %v10904_v46 = vld [vmem:[#allocation5 + $0xb0] ss:$12 sps:$4 sm:$0xff]   ;;  %1655 = vmatprep.mubr.bf16.mxu0 %v17245_v47 }
 0x14e   : > { %10002 = vmatpush3.bf16.msra.mxu1 %v10894_v37  ;;  %10869 = vset.pattern.permute.xlu0 %v17245_v47 }
 0x14f   : > { %1308 = vadd.xlane.f32.xlu1 %v1287_v48  ;;  %1310 = vadd.xlane.f32.xlu0 %v1288_v54  ;;  %v12440_v57 = vsub.f32 %v12372_v9, %v1258_v53  ;;  %v12443_v58 = vsub.f32 %v12375_v10, %v1259_v55 }
 0x150   : > { %v1238_v60 = vpop.xlane.xlu0 %1237  ;;  %v1240_v61 = vpop.xlane.xlu1 %1239  ;;  %1630 = vmatpush1.bf16.msra.mxu0 %v10887_v23  ;;  %10003 = vmatprep.subr.bf16.mxu1 %v10898_v39  ;;  %v12485_v23 = vld [vmem:[%s17497_s27] ss:$0 sm:$0xff]  ;;  %s17961_s27 = sld [smem:[#allocation152_spill]] }
 0x151   : > { %v1260_v62 = vmul.f32 0.0078125, %v1238_v60  ;;  %v1290_v63 = vmul.f32 %v12440_v57, %v12440_v57  ;;  %v1261_v0 = vmul.f32 0.0078125, %v1240_v61  ;;  %v1291_v3 = vmul.f32 %v12443_v58, %v12443_v58  ;;  %1631 = vmatprep.subr.bf16.mxu0 %v10888_v30 }
 0x152   : > { %10004 = vmatpush3.bf16.msra.mxu1 %v10898_v39 }
 0x153   : > { %1312 = vadd.xlane.f32.xlu1 %v1289_v56  ;;  %1314 = vadd.xlane.f32.xlu0 %v1290_v63  ;;  %v12450_v4 = vsub.f32 %v12380_v11, %v1260_v62  ;;  %v12453_v5 = vsub.f32 %v12383_v12, %v1261_v0 }
 0x154   : > { %v1242_v6 = vpop.xlane.xlu0 %1241  ;;  %v1244_v7 = vpop.xlane.xlu1 %1243  ;;  %1632 = vmatpush1.bf16.msra.mxu0 %v10891_v32  ;;  %10005 = vmatprep.subr.bf16.mxu1 %v10902_v44 }
 0x155   : > { %v1262_v9 = vmul.f32 0.0078125, %v1242_v6  ;;  %v1292_v10 = vmul.f32 %v12450_v4, %v12450_v4  ;;  %v1263_v17 = vmul.f32 0.0078125, %v1244_v7  ;;  %v1293_v11 = vmul.f32 %v12453_v5, %v12453_v5 }
 0x156   : > { %10006 = vmatpush3.bf16.msra.mxu1 %v10902_v44  ;;  %s800_s28 = scalar_lea.vmem %s17961_s27, %s9367_s21 }
 0x157   : > { %1316 = vadd.xlane.f32.xlu1 %v1291_v3  ;;  %1318 = vadd.xlane.f32.xlu0 %v1292_v10  ;;  %v12460_v12 = vsub.f32 %v12388_v13, %v1262_v9  ;;  %v12463_v18 = vsub.f32 %v12391_v14, %v1263_v17 }
 0x158   : > { %v1246_v21 = vpop.xlane.xlu0 %1245  ;;  %v1248_v22 = vpop.xlane.xlu1 %1247  ;;  %10007 = vmatprep.subr.bf16.mxu1 %v10904_v46 }
 0x159   : > { %v1264_v24 = vmul.f32 0.0078125, %v1246_v21  ;;  %v1294_v27 = vmul.f32 %v12460_v12, %v12460_v12  ;;  %v1265_v28 = vmul.f32 0.0078125, %v1248_v22  ;;  %v1295_v13 = vmul.f32 %v12463_v18, %v12463_v18 }
 0x15a   : > { %10008 = vmatpush3.bf16.msra.mxu1 %v10904_v46 }
 0x15b   : > { %1320 = vadd.xlane.f32.xlu1 %v1293_v11  ;;  %1322 = vadd.xlane.f32.xlu0 %v1294_v27  ;;  %v12470_v14 = vsub.f32 %v12396_v15, %v1264_v24  ;;  %v12473_v29 = vsub.f32 %v12399_v16, %v1265_v28  ;;  %v10892_v15 = vld [vmem:[#allocation5 + $0x7c] ss:$12 sps:$4 sm:$0xff]   ;;  %v10896_v16 = vld [vmem:[#allocation5 + $0x94] ss:$12 sps:$4 sm:$0xff]  }
 0x15c   : > { %1633 = vmatprep.subr.bf16.mxu0 %v10892_v15  ;;  %v12492_v15 = vld [vmem:[%s17498_s0] ss:$0 sm:$0xff]  ;;  %s17955_s0 = sld [smem:[#allocation142_spill]] }
 0x15d   : > { %v1296_v35 = vmul.f32 %v12470_v14, %v12470_v14  ;;  %v1297_v36 = vmul.f32 %v12473_v29, %v12473_v29  ;;  %1634 = vmatpush1.bf16.msra.mxu0 %v10895_v38 }
 0x15e   : > { %1635 = vmatprep.subr.bf16.mxu0 %v10896_v16 }
 0x15f   : > { %1324 = vadd.xlane.f32.xlu1 %v1295_v13  ;;  %1326 = vadd.xlane.f32.xlu0 %v1296_v35 }
 0x161   : > { %1636 = vmatpush1.bf16.msra.mxu0 %v10899_v40 }
 0x162   : > { %1637 = vmatprep.subr.bf16.mxu0 %v10900_v43 }
 0x163   : > { %1328 = vadd.xlane.f32.xlu1 %v1297_v36 }
 0x165   : > { %1638 = vmatpush1.bf16.msra.mxu0 %v10903_v45 }
 0x1d0   : > { %v1299_v48 = vpop.xlane.xlu0 %1298 }
 0x1d1   : > { %v1330_v51 = vmul.f32 0.0078125, %v1299_v48 }
 0x1d3   : > { %v1346_v52 = vadd.f32 1e-12, %v1330_v51 }
 0x1d4   : > { %v1301_v53 = vpop.xlane.xlu1 %1300  ;;  %v1303_v54 = vpop.xlane.xlu0 %1302 }
 0x1d5   : > { %11033 = vrsqrt.f32 %v1346_v52  ;;  %v1331_v55 = vmul.f32 0.0078125, %v1301_v53  ;;  %v1332_v56 = vmul.f32 0.0078125, %v1303_v54 }
 0x1d7   : > { %v1347_v59 = vadd.f32 1e-12, %v1331_v55  ;;  %v1348_v60 = vadd.f32 1e-12, %v1332_v56 }
 0x1d8   : > { %v1305_v61 = vpop.xlane.xlu1 %1304  ;;  %v1307_v62 = vpop.xlane.xlu0 %1306 }
 0x1d9   : > { %11035 = vrsqrt.f32 %v1347_v59  ;;  %v1333_v63 = vmul.f32 0.0078125, %v1305_v61  ;;  %v1334_v0 = vmul.f32 0.0078125, %v1307_v62 }
 0x1da   : > { %11037 = vrsqrt.f32 %v1348_v60 }
 0x1db   : > { %v1349_v1 = vadd.f32 1e-12, %v1333_v63  ;;  %v1350_v2 = vadd.f32 1e-12, %v1334_v0 }
 0x1dc   : > { %v1309_v3 = vpop.xlane.xlu1 %1308  ;;  %v1311_v6 = vpop.xlane.xlu0 %1310 }
 0x1dd   : > { %11039 = vrsqrt.f32 %v1349_v1  ;;  %v1335_v7 = vmul.f32 0.0078125, %v1309_v3  ;;  %v1336_v8 = vmul.f32 0.0078125, %v1311_v6 }
 0x1de   : > { %11041 = vrsqrt.f32 %v1350_v2 }
 0x1df   : > { %v11034_v9 = vpop.eup %11033  ;;  %v1351_v10 = vadd.f32 1e-12, %v1335_v7  ;;  %v1352_v17 = vadd.f32 1e-12, %v1336_v8 }
 0x1e0   : > { %v1313_v11 = vpop.xlane.xlu1 %1312  ;;  %v1315_v19 = vpop.xlane.xlu0 %1314  ;;  %v1378_v20 = vmul.f32 %v11034_v9, %v12405_v25 }
 0x1e1   : > { %11043 = vrsqrt.f32 %v1351_v10  ;;  %v1337_v21 = vmul.f32 0.0078125, %v1313_v11  ;;  %v1338_v22 = vmul.f32 0.0078125, %v1315_v19 }
 0x1e2   : > { %11045 = vrsqrt.f32 %v1352_v17  ;;  %v1400_v35 = vmul.f32 %v12485_v23, %v1378_v20 }
 0x1e3   : > { %v11036_v24 = vpop.eup %11035  ;;  %v1353_v27 = vadd.f32 1e-12, %v1337_v21  ;;  %v1354_v28 = vadd.f32 1e-12, %v1338_v22 }
 0x1e4   : > { %v11038_v13 = vpop.eup %11037  ;;  %v1317_v30 = vpop.xlane.xlu1 %1316  ;;  %v1379_v32 = vmul.f32 %v11036_v24, %v12413_v33  ;;  %v12498_v46 = vadd.f32 %v12492_v15, %v1400_v35 }
 0x1e5   : > { %v1319_v31 = vpop.xlane.xlu0 %1318  ;;  %11047 = vrsqrt.f32 %v1353_v27  ;;  %v1339_v25 = vmul.f32 0.0078125, %v1317_v30  ;;  %v1380_v37 = vmul.f32 %v11038_v13, %v12407_v26 }
 0x1e6   : > { %v1340_v36 = vmul.f32 0.0078125, %v1319_v31  ;;  %11049 = vrsqrt.f32 %v1354_v28  ;;  %v1401_v38 = vmul.f32 %v12485_v23, %v1379_v32  ;;  %17499 = vst [vmem:[#allocation14_spill] sm:$0xff] %v12498_v46 }
 0x1e7   : > { %v11040_v16 = vpop.eup %11039  ;;  %v1355_v39 = vadd.f32 1e-12, %v1339_v25  ;;  %v1402_v33 = vmul.f32 %v12485_v23, %v1380_v37 }
 0x1e8   : > { %v1356_v40 = vadd.f32 1e-12, %v1340_v36  ;;  %v11042_v43 = vpop.eup %11041  ;;  %v1321_v44 = vpop.xlane.xlu1 %1320  ;;  %v12501_v48 = vadd.f32 %v12492_v15, %v1401_v38  ;;  %v1381_v51 = vmul.f32 %v11040_v16, %v12415_v34 }
 0x1e9   : > { %v1323_v45 = vpop.xlane.xlu0 %1322  ;;  %11051 = vrsqrt.f32 %v1355_v39  ;;  %v1341_v26 = vmul.f32 0.0078125, %v1321_v44  ;;  %v1382_v55 = vmul.f32 %v11042_v43, %v12421_v41  ;;  %v12509_v61 = vadd.f32 %v12492_v15, %v1402_v33 }
 0x1ea   : > { %17500 = vst [vmem:[#allocation15_spill] sm:$0xff] %v12501_v48  ;;  %v1342_v52 = vmul.f32 0.0078125, %v1323_v45  ;;  %11053 = vrsqrt.f32 %v1356_v40  ;;  %v1438_v53 = vpack.c.bf16 %v12501_v48, %v12498_v46  ;;  %v1403_v54 = vmul.f32 %v12485_v23, %v1381_v51 }
 0x1eb   : > { %v11044_v56 = vpop.eup %11043  ;;  %v1357_v59 = vadd.f32 1e-12, %v1341_v26  ;;  %17501 = vst [vmem:[#allocation16_spill] sm:$0xff] %v12509_v61  ;;  %v1404_v2 = vmul.f32 %v12485_v23, %v1382_v55 }
 0x1ec   : > { %v1358_v60 = vadd.f32 1e-12, %v1342_v52  ;;  %v11046_v62 = vpop.eup %11045  ;;  %v1325_v63 = vpop.xlane.xlu1 %1324  ;;  %1656 = vmatmul.mubr.bf16.vlgmr.msra.gmra.mrb[0].mxu0 %v1438_v53  ;;  %10009 = vmatprep.mubr.bf16.mxu1 %v1438_v53  ;;  %v12512_v0 = vadd.f32 %v12492_v15, %v1403_v54  ;;  %v1383_v1 = vmul.f32 %v11044_v56, %v12423_v42 }
 0x1ed   : > { %v1327_v34 = vpop.xlane.xlu0 %1326  ;;  %11055 = vrsqrt.f32 %v1357_v59  ;;  %v1343_v41 = vmul.f32 0.0078125, %v1325_v63  ;;  %1665 = vmatprep.mubr.bf16.mxu0 %v17245_v47  ;;  %v1384_v6 = vmul.f32 %v11046_v62, %v12430_v49  ;;  %v12523_v20 = vadd.f32 %v12492_v15, %v1404_v2 }
 0x1ee   : > { %17502 = vst [vmem:[#allocation17_spill] sm:$0xff] %v12512_v0  ;;  %v1344_v3 = vmul.f32 0.0078125, %v1327_v34  ;;  %11057 = vrsqrt.f32 %v1358_v60  ;;  %v1439_v7 = vpack.c.bf16 %v12512_v0, %v12509_v61  ;;  %v1405_v8 = vmul.f32 %v12485_v23, %v1383_v1 }
 0x1ef   : > { %v11048_v9 = vpop.eup %11047  ;;  %v1359_v10 = vadd.f32 1e-12, %v1343_v41  ;;  %v1406_v42 = vmul.f32 %v12485_v23, %v1384_v6  ;;  %17503 = vst [vmem:[#allocation18_spill] sm:$0xff] %v12523_v20  ;;  %v12603_v41 = vld [vmem:[%s17517_s24] sm:$0x7] }
 0x1f0   : > { %v1360_v17 = vadd.f32 1e-12, %v1344_v3  ;;  %v11050_v11 = vpop.eup %11049  ;;  %v1329_v19 = vpop.xlane.xlu1 %1328  ;;  %10010 = vmatmul.mubr.bf16.vlgmr.msra.gmra.mrb[0].mxu1 %v1439_v7  ;;  %v12526_v21 = vadd.f32 %v12492_v15, %v1405_v8  ;;  %v1385_v49 = vmul.f32 %v11048_v9, %v12433_v50 }
 0x1f1   : > { %11059 = vrsqrt.f32 %v1359_v10  ;;  %v1345_v22 = vmul.f32 0.0078125, %v1329_v19  ;;  %v1386_v24 = vmul.f32 %v11050_v11, %v12440_v57  ;;  %v12534_v31 = vadd.f32 %v12492_v15, %v1406_v42 }
 0x1f2   : > { %17504 = vst [vmem:[#allocation19_spill] sm:$0xff] %v12526_v21  ;;  %11061 = vrsqrt.f32 %v1360_v17  ;;  %v1440_v27 = vpack.c.bf16 %v12526_v21, %v12523_v20  ;;  %v1407_v28 = vmul.f32 %v12485_v23, %v1385_v49 }
 0x1f3   : > { %v11052_v13 = vpop.eup %11051  ;;  %v1361_v30 = vadd.f32 1e-12, %v1345_v22  ;;  %17505 = vst [vmem:[#allocation20_spill] sm:$0xff] %v12534_v31  ;;  %v1408_v57 = vmul.f32 %v12485_v23, %v1386_v24 }
 0x1f4   : > { %v11054_v32 = vpop.eup %11053  ;;  %1666 = vmatmul.mubr.bf16.gmra.mrb[4].mxu0 %v1439_v7  ;;  %10013 = vmatprep.mubr.bf16.mxu1 %v1440_v27  ;;  %v12537_v50 = vadd.f32 %v12492_v15, %v1407_v28  ;;  %v1387_v35 = vmul.f32 %v11052_v13, %v12443_v58 }
 0x1f5   : > { %11063 = vrsqrt.f32 %v1361_v30  ;;  %1675 = vmatprep.mubr.bf16.mxu0 %v17245_v47  ;;  %v1388_v25 = vmul.f32 %v11054_v32, %v12450_v4  ;;  %v12548_v40 = vadd.f32 %v12492_v15, %v1408_v57 }
 0x1f6   : > { %17506 = vst [vmem:[#allocation21_spill] sm:$0xff] %v12537_v50  ;;  %v1441_v36 = vpack.c.bf16 %v12537_v50, %v12534_v31  ;;  %v1409_v37 = vmul.f32 %v12485_v23, %v1387_v35 }
 0x1f7   : > { %v11056_v38 = vpop.eup %11055  ;;  %v1410_v16 = vmul.f32 %v12485_v23, %v1388_v25  ;;  %17507 = vst [vmem:[#allocation22_spill] sm:$0xff] %v12548_v40 }
 0x1f8   : > { %v11058_v39 = vpop.eup %11057  ;;  %10014 = vmatmul.mubr.bf16.gmra.mrb[4].mxu1 %v1441_v36  ;;  %v12551_v58 = vadd.f32 %v12492_v15, %v1409_v37  ;;  %v1389_v33 = vmul.f32 %v11056_v38, %v12453_v5 }
 0x1f9   : > { %v1390_v4 = vmul.f32 %v11058_v39, %v12460_v12  ;;  %v12559_v51 = vadd.f32 %v12492_v15, %v1410_v16 }
 0x1fa   : > { %17508 = vst [vmem:[#allocation23_spill] sm:$0xff] %v12551_v58  ;;  %v1442_v43 = vpack.c.bf16 %v12551_v58, %v12548_v40  ;;  %v1411_v44 = vmul.f32 %v12485_v23, %v1389_v33 }
 0x1fb   : > { %v11060_v45 = vpop.eup %11059  ;;  %17509 = vst [vmem:[#allocation24_spill] sm:$0xff] %v12559_v51  ;;  %v1412_v5 = vmul.f32 %v12485_v23, %v1390_v4 }
 0x1fc   : > { %v11062_v26 = vpop.eup %11061  ;;  %1676 = vmatmul.mubr.bf16.gmra.mrb[8].mxu0 %v1440_v27  ;;  %10017 = vmatprep.mubr.bf16.mxu1 %v1442_v43  ;;  %v12562_v52 = vadd.f32 %v12492_v15, %v1411_v44  ;;  %v1391_v53 = vmul.f32 %v11060_v45, %v12463_v18 }
 0x1fd   : > { %1685 = vmatprep.mubr.bf16.mxu0 %v17245_v47  ;;  %v1392_v12 = vmul.f32 %v11062_v26, %v12470_v14  ;;  %v12572_v59 = vadd.f32 %v12492_v15, %v1412_v5 }
 0x1fe   : > { %17510 = vst [vmem:[#allocation25_spill] sm:$0xff] %v12562_v52  ;;  %v1443_v54 = vpack.c.bf16 %v12562_v52, %v12559_v51  ;;  %v1413_v55 = vmul.f32 %v12485_v23, %v1391_v53 }
 0x1ff   : > { %v11064_v56 = vpop.eup %11063  ;;  %17511 = vst [vmem:[#allocation26_spill] sm:$0xff] %v12572_v59  ;;  %v1414_v62 = vmul.f32 %v12485_v23, %v1392_v12 }
 0x200   : > { %10018 = vmatmul.mubr.bf16.gmra.mrb[8].mxu1 %v1443_v54  ;;  %v12575_v60 = vadd.f32 %v12492_v15, %v1413_v55  ;;  %v1393_v18 = vmul.f32 %v11064_v56, %v12473_v29 }
 0x201   : > { %v12583_v34 = vadd.f32 %v12492_v15, %v1414_v62 }
 0x202   : > { %17512 = vst [vmem:[#allocation27_spill] sm:$0xff] %v12575_v60  ;;  %v1444_v14 = vpack.c.bf16 %v12575_v60, %v12572_v59  ;;  %v1415_v63 = vmul.f32 %v12485_v23, %v1393_v18  ;;  %v804_v23 = vlaneseq }
 0x203   : > { %17513 = vst [vmem:[#allocation28_spill] sm:$0xff] %v12583_v34 }
 0x204   : > { %1686 = vmatmul.mubr.bf16.gmra.mrb[12].mxu0 %v1441_v36  ;;  %10021 = vmatprep.mubr.bf16.mxu1 %v1444_v14  ;;  %v12586_v1 = vadd.f32 %v12492_v15, %v1415_v63  ;;  %v12595_v15 = vshrl.u32 %v804_v23, 7 }
 0x205   : > { %1695 = vmatprep.mubr.bf16.mxu0 %v17245_v47 }
 0x206   : > { %17514 = vst [vmem:[#allocation29_spill] sm:$0xff] %v12586_v1  ;;  %v1445_v29 = vpack.c.bf16 %v12586_v1, %v12583_v34  ;;  %17515 = vst [vmem:[#allocation30_spill] sm:$0xff] %v12595_v15  ;;  %v12598_v2 = vsub.s32 0, %v12595_v15  ;;  %v17244_v6 = vsub.s32 2, %v12595_v15  ;;  %v830_v34 = vadd.s32 200, %v12595_v15 }
 0x207   : > { %v831_v52 = vadd.s32 208, %v12595_v15  ;;  %v836_v50 = vadd.s32 248, %v12595_v15  ;;  %v829_v61 = vadd.s32 192, %v12595_v15 }
 0x208   : > { %10022 = vmatmul.mubr.bf16.gmra.mrb[12].mxu1 %v1445_v29  ;;  %17516 = vst [vmem:[#allocation31_spill] sm:$0xff] %v12598_v2  ;;  %v12607_v3 = vrot.slane %v12603_v41, %v12598_v2  ;;  %v12619_v11 = vrot.slane %v12603_v41, %v17244_v6  ;;  %v827_v6 = vadd.s32 176, %v12595_v15 }
 0x20c   : > { %1696 = vmatmul.mubr.bf16.gmra.mrb[16].mxu0 %v1442_v43 }
 0x20d   : > { %1705 = vmatprep.mubr.bf16.mxu0 %v17245_v47 }
 0x214   : > { %1706 = vmatmul.mubr.bf16.gmra.mrb[20].mxu0 %v1443_v54 }
 0x215   : > { %1715 = vmatprep.mubr.bf16.mxu0 %v17245_v47 }
 0x21c   : > { %1716 = vmatmul.mubr.bf16.gmra.mrb[24].mxu0 %v1444_v14 }
 0x21d   : > { %1725 = vmatprep.mubr.bf16.mxu0 %v17245_v47 }
 0x224   : > { %1726 = vmatmul.mubr.bf16.gmra.mrb[28].mxu0 %v1445_v29 }
 0x2bf   : > { %v1657_v7 = vpop.f32.mrb[0].mxu0 }
 0x2c0   : > { %v12610_v8 = vpop.f32.mrb[1].mxu0  ;;  %v1658_v10 = vadd.f32 %v1657_v7, %v12607_v3 }
 0x2c1   : > { %v1661_v9 = vpop.f32.mrb[2].mxu0 }
 0x2c2   : > { %v1662_v17 = vadd.f32 %v1661_v9, %v12607_v3  ;;  %v12614_v42 = vpop.f32.mrb[3].mxu0 }
 0x2c3   : > { %v10011_v19 = vpop.f32.mrb[0].mxu1 }
 0x2c4   : > { %v12621_v49 = vpack.c.bf16 %v1662_v17, %v1658_v10  ;;  %v1770_v22 = vpop.f32.mrb[1].mxu1  ;;  %v1779_v27 = vadd.f32 %v10011_v19, %v12619_v11 }
 0x2c5   : > { %v10012_v24 = vpop.f32.mrb[2].mxu1  ;;  %v1771_v30 = vadd.f32 %v1770_v22, %v12619_v11 }
 0x2c6   : > { %v1782_v28 = vadd.f32 %v10012_v24, %v12619_v11  ;;  %2019 = vrot.lane.b32.xlu0 %v12621_v49, %s12031_s18  ;;  %v1773_v13 = vpop.f32.mrb[3].mxu1  ;;  %10029 = vmatprep.mubr.msk.bf16.mxu1 %vm1889_vm0, %v12621_v49 }
 0x2c7   : > { %v1774_v32 = vadd.f32 %v1773_v13, %v12619_v11  ;;  %v1667_v35 = vpop.f32.mrb[4].mxu0 }
 0x2c8   : > { %v12631_v57 = vpack.c.bf16 %v1782_v28, %v1779_v27  ;;  %v12633_v25 = vpop.f32.mrb[5].mxu0  ;;  %v1668_v38 = vadd.f32 %v1667_v35, %v12607_v3 }
 0x2c9   : > { %v12635_v36 = vpack.c.bf16 %v1774_v32, %v1771_v30  ;;  %v1671_v37 = vpop.f32.mrb[6].mxu0 }
 0x2ca   : > { %v1672_v16 = vadd.f32 %v1671_v37, %v12607_v3  ;;  %v12639_v39 = vpop.f32.mrb[7].mxu0 }
 0x2cb   : > { %v10015_v33 = vpop.f32.mrb[4].mxu1 }
 0x2cc   : > { %v12641_v4 = vpack.c.bf16 %v1672_v16, %v1668_v38  ;;  %v1786_v43 = vpop.f32.mrb[5].mxu1  ;;  %v1795_v45 = vadd.f32 %v10015_v33, %v12619_v11 }
 0x2cd   : > { %v10016_v44 = vpop.f32.mrb[6].mxu1  ;;  %v1787_v5 = vadd.f32 %v1786_v43, %v12619_v11 }
 0x2ce   : > { %v1798_v26 = vadd.f32 %v10016_v44, %v12619_v11  ;;  %2021 = vrot.lane.b32.xlu1 %v12641_v4, %s12031_s18  ;;  %v1789_v53 = vpop.f32.mrb[7].mxu1 }
 0x2cf   : > { %v1790_v12 = vadd.f32 %v1789_v53, %v12619_v11  ;;  %v1677_v54 = vpop.f32.mrb[8].mxu0 }
 0x2d0   : > { %v12649_v55 = vpack.c.bf16 %v1798_v26, %v1795_v45  ;;  %v12651_v56 = vpop.f32.mrb[9].mxu0  ;;  %v1678_v14 = vadd.f32 %v1677_v54, %v12607_v3 }
 0x2d1   : > { %v12653_v18 = vpack.c.bf16 %v1790_v12, %v1787_v5  ;;  %v1681_v62 = vpop.f32.mrb[10].mxu0 }
 0x2d2   : > { %v1682_v63 = vadd.f32 %v1681_v62, %v12607_v3  ;;  %v12657_v29 = vpop.f32.mrb[11].mxu0 }
 0x2d3   : > { %v10019_v7 = vpop.f32.mrb[8].mxu1 }
 0x2d4   : > { %v12659_v9 = vpack.c.bf16 %v1682_v63, %v1678_v14  ;;  %v1802_v10 = vpop.f32.mrb[9].mxu1  ;;  %v1811_v19 = vadd.f32 %v10019_v7, %v12619_v11 }
 0x2d5   : > { %v10020_v17 = vpop.f32.mrb[10].mxu1  ;;  %v1803_v27 = vadd.f32 %v1802_v10, %v12619_v11 }
 0x2d6   : > { %v1814_v22 = vadd.f32 %v10020_v17, %v12619_v11  ;;  %2023 = vrot.lane.b32.xlu0 %v12659_v9, %s12031_s18  ;;  %v1805_v24 = vpop.f32.mrb[11].mxu1 }
 0x2d7   : > { %v1806_v28 = vadd.f32 %v1805_v24, %v12619_v11  ;;  %v1687_v13 = vpop.f32.mrb[12].mxu0 }
 0x2d8   : > { %v12667_v30 = vpack.c.bf16 %v1814_v22, %v1811_v19  ;;  %v12669_v32 = vpop.f32.mrb[13].mxu0  ;;  %v1688_v38 = vadd.f32 %v1687_v13, %v12607_v3 }
 0x2d9   : > { %v12671_v35 = vpack.c.bf16 %v1806_v28, %v1803_v27  ;;  %v1691_v37 = vpop.f32.mrb[14].mxu0 }
 0x2da   : > { %v1692_v16 = vadd.f32 %v1691_v37, %v12607_v3  ;;  %v12675_v33 = vpop.f32.mrb[15].mxu0 }
 0x2db   : > { %v10023_v43 = vpop.f32.mrb[12].mxu1 }
 0x2dc   : > { %v12677_v44 = vpack.c.bf16 %v1692_v16, %v1688_v38  ;;  %v1818_v45 = vpop.f32.mrb[13].mxu1  ;;  %v1827_v53 = vadd.f32 %v10023_v43, %v12619_v11 }
 0x2dd   : > { %v10024_v26 = vpop.f32.mrb[14].mxu1  ;;  %v1819_v54 = vadd.f32 %v1818_v45, %v12619_v11  ;;  %v12700_v45 = vsub.s32 1, %v12595_v15 }
 0x2de   : > { %v1830_v5 = vadd.f32 %v10024_v26, %v12619_v11  ;;  %2025 = vrot.lane.b32.xlu0 %v12677_v44, %s12031_s18  ;;  %v1821_v12 = vpop.f32.mrb[15].mxu1 }
 0x2df   : > { %v1822_v62 = vadd.f32 %v1821_v12, %v12619_v11  ;;  %v1697_v14 = vpop.f32.mrb[16].mxu0  ;;  %17519 = vst [vmem:[#allocation33_spill] sm:$0xff] %v12700_v45 }
 0x2e0   : > { %v12685_v63 = vpack.c.bf16 %v1830_v5, %v1827_v53  ;;  %v1699_v7 = vpop.f32.mrb[17].mxu0  ;;  %v1698_v19 = vadd.f32 %v1697_v14, %v12607_v3  ;;  %v1487_v5 = vrot.slane %v12603_v41, %v12700_v45 }
 0x2e1   : > { %v12687_v10 = vpack.c.bf16 %v1822_v62, %v1819_v54  ;;  %v1701_v17 = vpop.f32.mrb[18].mxu0 }
 0x2e2   : > { %17518 = vst [vmem:[#allocation32_spill] sm:$0xff] %v12685_v63  ;;  %v1702_v22 = vadd.f32 %v1701_v17, %v12607_v3  ;;  %v1703_v24 = vpop.f32.mrb[19].mxu0 }
 0x2e4   : > { %v12691_v27 = vpack.c.bf16 %v1702_v22, %v1698_v19  ;;  %v1660_v19 = vadd.f32 %v12610_v8, %v1487_v5  ;;  %v1674_v8 = vadd.f32 %v12639_v39, %v1487_v5  ;;  %v1694_v39 = vadd.f32 %v12675_v33, %v1487_v5 }
 0x2e6   : > { %2027 = vrot.lane.b32.xlu0 %v12691_v27, %s12031_s18 }
 0x2e7   : > { %v1707_v28 = vpop.f32.mrb[20].mxu0 }
 0x2e8   : > { %v1709_v13 = vpop.f32.mrb[21].mxu0  ;;  %v1708_v37 = vadd.f32 %v1707_v28, %v12607_v3 }
 0x2e9   : > { %v1711_v11 = vpop.f32.mrb[22].mxu0 }
 0x2ea   : > { %v1712_v38 = vadd.f32 %v1711_v11, %v12607_v3  ;;  %v1713_v16 = vpop.f32.mrb[23].mxu0  ;;  %v1664_v11 = vadd.f32 %v12614_v42, %v1487_v5  ;;  %v1680_v42 = vadd.f32 %v12651_v56, %v1487_v5  ;;  %v1700_v56 = vadd.f32 %v1699_v7, %v1487_v5 }
 0x2ec   : > { %v12697_v43 = vpack.c.bf16 %v1712_v38, %v1708_v37 }
 0x2ee   : > { %2029 = vrot.lane.b32.xlu0 %v12697_v43, %s12031_s18 }
 0x2ef   : > { %v1717_v26 = vpop.f32.mrb[24].mxu0 }
 0x2f0   : > { %v1719_v53 = vpop.f32.mrb[25].mxu0  ;;  %v1718_v54 = vadd.f32 %v1717_v26, %v12607_v3 }
 0x2f1   : > { %v1721_v12 = vpop.f32.mrb[26].mxu0  ;;  %v1720_v33 = vadd.f32 %v1719_v53, %v1487_v5 }
 0x2f2   : > { %v1722_v62 = vadd.f32 %v1721_v12, %v12607_v3  ;;  %v1723_v14 = vpop.f32.mrb[27].mxu0 }
 0x2f3   : > { %v1724_v7 = vadd.f32 %v1723_v14, %v1487_v5 }
 0x2f4   : > { %v12708_v17 = vpack.c.bf16 %v1722_v62, %v1718_v54  ;;  %v1670_v54 = vadd.f32 %v12633_v25, %v1487_v5  ;;  %v1690_v25 = vadd.f32 %v12669_v32, %v1487_v5  ;;  %v1714_v32 = vadd.f32 %v1713_v16, %v1487_v5 }
 0x2f6   : > { %2031 = vrot.lane.b32.xlu0 %v12708_v17, %s12031_s18 }
 0x2f7   : > { %1841 = vxpose.xlu1.b32.start [1/16] %v1660_v19, 128  ;;  %v1727_v22 = vpop.f32.mrb[28].mxu0 }
 0x2f8   : > { %v1729_v28 = vpop.f32.mrb[29].mxu0  ;;  %v1728_v41 = vadd.f32 %v1727_v22, %v12607_v3 }
 0x2f9   : > { %v1731_v37 = vpop.f32.mrb[30].mxu0 }
 0x2fa   : > { %v1732_v38 = vadd.f32 %v1731_v37, %v12607_v3  ;;  %v1733_v26 = vpop.f32.mrb[31].mxu0  ;;  %v1684_v3 = vadd.f32 %v12657_v29, %v1487_v5  ;;  %v1704_v29 = vadd.f32 %v1703_v24, %v1487_v5  ;;  %v1730_v24 = vadd.f32 %v1729_v28, %v1487_v5 }
 0x2fb   : > { %1842 = vxpose.xlu1.b32.cont [2/16] %v1664_v11, 128 }
 0x2fc   : > { %v12716_v12 = vpack.c.bf16 %v1732_v38, %v1728_v41 }
 0x2fe   : > { %2033 = vrot.lane.b32.xlu0 %v12716_v12, %s12031_s18 }
 0x2ff   : > { %1843 = vxpose.xlu1.b32.cont [3/16] %v1670_v54, 128 }
 0x302   : > { %2156 = vrot.lane.b32.xlu0 %v12621_v49, %s12032_s3 }
 0x303   : > { %1844 = vxpose.xlu1.b32.cont [4/16] %v1674_v8, 128 }
 0x306   : > { %2158 = vrot.lane.b32.xlu0 %v12641_v4, %s12032_s3 }
 0x307   : > { %1845 = vxpose.xlu1.b32.cont [5/16] %v1680_v42, 128 }
 0x30a   : > { %2293 = vrot.lane.b32.xlu0 %v12621_v49, %s12033_s22  ;;  %v1710_v49 = vadd.f32 %v1709_v13, %v1487_v5  ;;  %v1734_v13 = vadd.f32 %v1733_v26, %v1487_v5 }
 0x30b   : > { %1846 = vxpose.xlu1.b32.cont [6/16] %v1684_v3, 128 }
 0x30e   : > { %2295 = vrot.lane.b32.xlu0 %v12641_v4, %s12033_s22 }
 0x30f   : > { %1847 = vxpose.xlu1.b32.cont [7/16] %v1690_v25, 128 }
 0x312   : > { %2160 = vrot.lane.b32.xlu0 %v12659_v9, %s12032_s3 }
 0x313   : > { %1848 = vxpose.xlu1.b32.cont [8/16] %v1694_v39, 128 }
 0x316   : > { %2162 = vrot.lane.b32.xlu0 %v12677_v44, %s12032_s3 }
 0x317   : > { %1849 = vxpose.xlu1.b32.cont [9/16] %v1700_v56, 128 }
 0x31a   : > { %2297 = vrot.lane.b32.xlu0 %v12659_v9, %s12033_s22 }
 0x31b   : > { %1850 = vxpose.xlu1.b32.cont [10/16] %v1704_v29, 128 }
 0x31e   : > { %2299 = vrot.lane.b32.xlu0 %v12677_v44, %s12033_s22 }
 0x31f   : > { %1851 = vxpose.xlu1.b32.cont [11/16] %v1710_v49, 128 }
 0x322   : > { %2164 = vrot.lane.b32.xlu0 %v12691_v27, %s12032_s3 }
 0x323   : > { %1852 = vxpose.xlu1.b32.cont [12/16] %v1714_v32, 128 }
 0x326   : > { %2166 = vrot.lane.b32.xlu0 %v12697_v43, %s12032_s3 }
 0x327   : > { %1853 = vxpose.xlu1.b32.cont [13/16] %v1720_v33, 128 }
 0x32a   : > { %2301 = vrot.lane.b32.xlu0 %v12691_v27, %s12033_s22 }
 0x32b   : > { %1854 = vxpose.xlu1.b32.cont [14/16] %v1724_v7, 128 }
 0x32e   : > { %2303 = vrot.lane.b32.xlu0 %v12697_v43, %s12033_s22 }
 0x32f   : > { %1855 = vxpose.xlu1.b32.cont [15/16] %v1730_v24, 128 }
 0x332   : > { %2168 = vrot.lane.b32.xlu0 %v12708_v17, %s12032_s3 }
 0x333   : > { %1856 = vxpose.xlu1.b32.end [16/16] %v1734_v13, 128 }
 0x336   : > { %2170 = vrot.lane.b32.xlu0 %v12716_v12, %s12032_s3 }
 0x338   : > { %v2020_v16 = vpop.permute.xlu0 %2019 }
 0x339   : > { %10049 = vmatprep.mubr.msk.bf16.mxu0 %vm1889_vm0, %v2020_v16 }
 0x33a   : > { %2305 = vrot.lane.b32.xlu0 %v12708_v17, %s12033_s22 }
 0x33e   : > { %2307 = vrot.lane.b32.xlu0 %v12716_v12, %s12033_s22 }
 0x340   : > { %v2022_v28 = vpop.permute.xlu1 %2021 }
 0x342   : > { %3207 = vrot.lane.b32.xlu0 %v12635_v36, %s12031_s18 }
 0x346   : > { %3213 = vrot.lane.b32.xlu0 %v12649_v55, %s12031_s18 }
 0x348   : > { %v2024_v53 = vpop.permute.xlu0 %2023 }
 0x34a   : > { %3219 = vrot.lane.b32.xlu0 %v12687_v10, %s12031_s18 }
 0x34e   : > { %3328 = vrot.lane.b32.xlu0 %v12635_v36, %s12032_s3 }
 0x350   : > { %v12783_v5 = vpop.permute.xlu0 %2025 }
 0x351   : > { %3209 = vrot.lane.b32.xlu1 %v12631_v57, %s12031_s18 }
 0x352   : > { %3330 = vrot.lane.b32.xlu0 %v12631_v57, %s12032_s3 }
 0x355   : > { %3211 = vrot.lane.b32.xlu1 %v12653_v18, %s12031_s18 }
 0x356   : > { %3334 = vrot.lane.b32.xlu0 %v12649_v55, %s12032_s3 }
 0x358   : > { %v12787_v62 = vpop.permute.xlu0 %2027 }
 0x359   : > { %3215 = vrot.lane.b32.xlu1 %v12671_v35, %s12031_s18 }
 0x35a   : > { %3336 = vrot.lane.b32.xlu0 %v12671_v35, %s12032_s3 }
 0x35d   : > { %3217 = vrot.lane.b32.xlu1 %v12667_v30, %s12031_s18 }
 0x35e   : > { %3338 = vrot.lane.b32.xlu0 %v12667_v30, %s12032_s3 }
 0x360   : > { %v12791_v14 = vpop.permute.xlu0 %2029 }
 0x361   : > { %3221 = vrot.lane.b32.xlu1 %v12685_v63, %s12031_s18 }
 0x365   : > { %3449 = vrot.lane.b32.xlu1 %v12635_v36, %s12033_s22 }
 0x368   : > { %v12795_v19 = vpop.permute.xlu0 %2031 }
 0x369   : > { %3451 = vrot.lane.b32.xlu1 %v12631_v57, %s12033_s22 }
 0x36d   : > { %3332 = vrot.lane.b32.xlu1 %v12653_v18, %s12032_s3 }
 0x370   : > { %v12799_v22 = vpop.permute.xlu0 %2033 }
 0x371   : > { %3453 = vrot.lane.b32.xlu1 %v12653_v18, %s12033_s22 }
 0x374   : > { %v2157_v11 = vpop.permute.xlu0 %2156 }
 0x375   : > { %3455 = vrot.lane.b32.xlu1 %v12649_v55, %s12033_s22 }
 0x377   : > { %v1857_v37 = vpop.trf.xlu1 }
 0x378   : > { %v2159_v41 = vpop.permute.xlu0 %2158 }
 0x379   : > { %3457 = vrot.lane.b32.xlu1 %v12671_v35, %s12033_s22 }
 0x37b   : > { %v1858_v38 = vpop.trf.xlu1 }
 0x37c   : > { %v1873_v26 = vpack.c.bf16 %v1858_v38, %v1857_v37  ;;  %v12807_v54 = vpop.permute.xlu0 %2293 }
 0x37d   : > { %3459 = vrot.lane.b32.xlu1 %v12667_v30, %s12033_s22 }
 0x37e   : > { %10025 = vmatprep.subr.bf16.mxu1 %v1873_v26 }
 0x37f   : > { %10026 = vmatpush3.bf16.msra.mxu1 %v1873_v26  ;;  %v1859_v8 = vpop.trf.xlu1 }
 0x380   : > { %v12811_v42 = vpop.permute.xlu0 %2295 }
 0x381   : > { %3340 = vrot.lane.b32.xlu1 %v12687_v10, %s12032_s3 }
 0x383   : > { %v1860_v3 = vpop.trf.xlu1 }
 0x384   : > { %v1874_v25 = vpack.c.bf16 %v1860_v3, %v1859_v8  ;;  %v2161_v39 = vpop.permute.xlu0 %2160 }
 0x385   : > { %3461 = vrot.lane.b32.xlu1 %v12687_v10, %s12033_s22 }
 0x386   : > { %10027 = vmatprep.subr.bf16.mxu1 %v1874_v25 }
 0x387   : > { %10028 = vmatpush3.bf16.msra.mxu1 %v1874_v25  ;;  %v1861_v56 = vpop.trf.xlu1  ;;  %v803_v25 = vld [vmem:[%s789_s23] sm:$0x1] }
 0x388   : > { %v2163_v29 = vpop.permute.xlu0 %2162  ;;  %vm1064_vm1 = vcmp.gt.f32.partialorder %v803_v25, 0.5 }
 0x38a   : > { %10030 = vmatmul.mubr.msk.bf16.vlgmr.msra.gmra.mrb[16].mxu1 %vm1889_vm0, %v12641_v4 }
 0x38b   : > { %10033 = vmatprep.mubr.msk.bf16.mxu1 %vm1889_vm0, %v12659_v9  ;;  %v1862_v49 = vpop.trf.xlu1 }
 0x38c   : > { %v1875_v32 = vpack.c.bf16 %v1862_v49, %v1861_v56  ;;  %v12821_v33 = vpop.permute.xlu0 %2297  ;;  %v806_v56 = vadd.s32 8, %v12595_v15 }
 0x38e   : > { %10045 = vmatprep.subr.bf16.mxu0 %v1875_v32 }
 0x38f   : > { %10046 = vmatpush3.bf16.msra.mxu0 %v1875_v32  ;;  %v1863_v7 = vpop.trf.xlu1  ;;  %v1065_v32 = vsel %vm1064_vm1, 1, %v17245_v47 }
 0x390   : > { %v12823_v24 = vpop.permute.xlu0 %2299 }
 0x392   : > { %10034 = vmatmul.mubr.msk.bf16.gmra.mrb[20].mxu1 %vm1889_vm0, %v12677_v44 }
 0x393   : > { %10037 = vmatprep.mubr.msk.bf16.mxu1 %vm1889_vm0, %v12691_v27  ;;  %v1864_v13 = vpop.trf.xlu1 }
 0x394   : > { %v1876_v4 = vpack.c.bf16 %v1864_v13, %v1863_v7  ;;  %v2165_v16 = vpop.permute.xlu0 %2164  ;;  %v808_v7 = vadd.s32 24, %v12595_v15  ;;  %v1069_v13 = vrot.slane %v1065_v32, %v12598_v2 }
 0x396   : > { %10047 = vmatprep.subr.bf16.mxu0 %v1876_v4  ;;  %vm12908_vm2 = vcmp.eq.s32.totalorder %v1069_v13, 1  ;;  %v814_v13 = vadd.s32 72, %v12595_v15 }
 0x397   : > { %10048 = vmatpush3.bf16.msra.mxu0 %v1876_v4  ;;  %v1865_v9 = vpop.trf.xlu1 }
 0x398   : > { %v2167_v37 = vpop.permute.xlu0 %2166 }
 0x39a   : > { %10038 = vmatmul.mubr.msk.bf16.gmra.mrb[24].mxu1 %vm1889_vm0, %v12697_v43  ;;  %10050 = vmatmul.mubr.msk.bf16.vlgmr.msra.gmra.mrb[32].mxu0 %vm1889_vm0, %v2022_v28 }
 0x39b   : > { %10041 = vmatprep.mubr.msk.bf16.mxu1 %vm1889_vm0, %v12708_v17  ;;  %v1866_v38 = vpop.trf.xlu1  ;;  %10053 = vmatprep.mubr.msk.bf16.mxu0 %vm1889_vm0, %v2024_v53 }
 0x39c   : > { %v1877_v44 = vpack.c.bf16 %v1866_v38, %v1865_v9  ;;  %v2302_v27 = vpop.permute.xlu0 %2301  ;;  %v874_v38 = vand.u32 127, %v808_v7 }
 0x39e   : > { %10065 = vmatprep.subr.bf16.mxu1 %v1877_v44 }
 0x39f   : > { %v1867_v26 = vpop.trf.xlu1  ;;  %10066 = vmatpush3.bf16.msra.mxu1 %v1877_v44 }
 0x3a0   : > { %v12835_v8 = vpop.permute.xlu0 %2303 }
 0x3a2   : > { %10042 = vmatmul.mubr.msk.bf16.gmra.mrb[28].mxu1 %vm1889_vm0, %v12716_v12  ;;  %10054 = vmatmul.mubr.msk.bf16.gmra.mrb[36].mxu0 %vm1889_vm0, %v12783_v5 }
 0x3a3   : > { %v1868_v43 = vpop.trf.xlu1  ;;  %10057 = vmatprep.mubr.msk.bf16.mxu0 %vm1889_vm0, %v12787_v62  ;;  %10069 = vmatprep.mubr.msk.bf16.mxu1 %vm1889_vm0, %v2157_v11 }
 0x3a4   : > { %v1878_v17 = vpack.c.bf16 %v1868_v43, %v1867_v26  ;;  %v2169_v53 = vpop.permute.xlu0 %2168  ;;  %v938_v43 = vshra.s32 %v874_v38, 3 }
 0x3a6   : > { %10067 = vmatprep.subr.bf16.mxu1 %v1878_v17 }
 0x3a7   : > { %10068 = vmatpush3.bf16.msra.mxu1 %v1878_v17  ;;  %v1869_v28 = vpop.trf.xlu1 }
 0x3a8   : > { %10105 = vmatprep.subr.bf16.mxu1 %v12635_v36  ;;  %v2171_v3 = vpop.permute.xlu0 %2170 }
 0x3aa   : > { %10058 = vmatmul.mubr.msk.bf16.gmra.mrb[40].mxu0 %vm1889_vm0, %v12791_v14  ;;  %10070 = vmatmul.mubr.msk.bf16.vlgmr.msra.gmra.mrb[32].mxu1 %vm1889_vm0, %v2159_v41 }
 0x3ab   : > { %v1870_v12 = vpop.trf.xlu1  ;;  %10061 = vmatprep.mubr.msk.bf16.mxu0 %vm1889_vm0, %v12795_v19  ;;  %10073 = vmatprep.mubr.msk.bf16.mxu1 %vm1889_vm0, %v2161_v39  ;;  %v807_v39 = vadd.s32 16, %v12595_v15 }
 0x3ac   : > { %v1879_v5 = vpack.c.bf16 %v1870_v12, %v1869_v28  ;;  %10106 = vmatpush3.bf16.msra.mxu1 %v12635_v36  ;;  %v2306_v62 = vpop.permute.xlu0 %2305  ;;  %v17247_v28 = vmov -1e+09  }
 0x3ad   : > { %10107 = vmatprep.subr.bf16.mxu1 %v12631_v57  ;;  %v873_v49 = vand.u32 127, %v807_v39 }
 0x3ae   : > { %10085 = vmatprep.subr.bf16.mxu0 %v1879_v5 }
 0x3af   : > { %v1871_v11 = vpop.trf.xlu1  ;;  %10086 = vmatpush3.bf16.msra.mxu0 %v1879_v5  ;;  %v937_v4 = vshra.s32 %v873_v49, 3 }
 0x3b0   : > { %10108 = vmatpush3.bf16.msra.mxu1 %v12631_v57  ;;  %v2308_v14 = vpop.permute.xlu0 %2307 }
 0x3b1   : > { %10109 = vmatprep.subr.bf16.mxu1 %v12653_v18 }
 0x3b2   : > { %10062 = vmatmul.mubr.msk.bf16.gmra.mrb[44].mxu0 %vm1889_vm0, %v12799_v22  ;;  %10074 = vmatmul.mubr.msk.bf16.gmra.mrb[36].mxu1 %vm1889_vm0, %v2163_v29  ;;  %v870_v29 = vand.u32 127, %v804_v23  ;;  %v811_v23 = vadd.s32 48, %v12595_v15 }
 0x3b3   : > { %v1872_v19 = vpop.trf.xlu1  ;;  %10077 = vmatprep.mubr.msk.bf16.mxu1 %vm1889_vm0, %v2165_v16  ;;  %10089 = vmatprep.mubr.msk.bf16.mxu0 %vm1889_vm0, %v12807_v54 }
 0x3b4   : > { %v1880_v36 = vpack.c.bf16 %v1872_v19, %v1871_v11  ;;  %10110 = vmatpush3.bf16.msra.mxu1 %v12653_v18  ;;  %v3208_v57 = vpop.permute.xlu0 %3207  ;;  %v12904_v16 = vshra.s32 %v870_v29, 3  ;;  %v877_v17 = vand.u32 127, %v811_v23  ;;  %v823_v19 = vadd.s32 144, %v12595_v15 }
 0x3b5   : > { %10111 = vmatprep.subr.bf16.mxu1 %v12649_v55 }
 0x3b6   : > { %10087 = vmatprep.subr.bf16.mxu0 %v1880_v36  ;;  %vm1002_vm3 = vcmp.eq.s32.totalorder %v937_v4, %v12904_v16  ;;  %vm1003_vm9 = vcmp.eq.s32.totalorder %v938_v43, %v12904_v16  ;;  %v941_v11 = vshra.s32 %v877_v17, 3  ;;  %v889_v29 = vand.u32 127, %v823_v19 }
 0x3b7   : > { %10088 = vmatpush3.bf16.msra.mxu0 %v1880_v36  ;;  %vm1073_vm5 = vmand %vm1002_vm3, %vm12908_vm2  ;;  %v813_v43 = vadd.s32 64, %v12595_v15 }
 0x3b8   : > { %10112 = vmatpush3.bf16.msra.mxu1 %v12649_v55  ;;  %10137 = vmatprep.subr.bf16.mxu0 %v3208_v57  ;;  %v3214_v18 = vpop.permute.xlu0 %3213  ;;  %vm1074_vm10 = vmand %vm1003_vm9, %vm12908_vm2  ;;  %vm1006_vm12 = vcmp.eq.s32.totalorder %v941_v11, %v12904_v16 }
 0x3b9   : > { %10113 = vmatprep.subr.bf16.mxu1 %v12671_v35  ;;  %vm1077_vm14 = vmand %vm1006_vm12, %vm12908_vm2 }
 0x3ba   : > { %10078 = vmatmul.mubr.msk.bf16.gmra.mrb[40].mxu1 %vm1889_vm0, %v2167_v37  ;;  %10090 = vmatmul.mubr.msk.bf16.vlgmr.msra.gmra.mrb[48].mxu0 %vm1889_vm0, %v12811_v42  ;;  %v812_v37 = vadd.s32 56, %v12595_v15 }
 0x3bb   : > { %10081 = vmatprep.mubr.msk.bf16.mxu1 %vm1889_vm0, %v2169_v53  ;;  %10093 = vmatprep.mubr.msk.bf16.mxu0 %vm1889_vm0, %v12821_v33  ;;  %v871_v33 = vand.u32 127, %v12595_v15  ;;  %v809_v53 = vadd.s32 32, %v12595_v15 }
 0x3bc   : > { %10114 = vmatpush3.bf16.msra.mxu1 %v12671_v35  ;;  %10138 = vmatpush3.bf16.msra.mxu0 %v3208_v57  ;;  %v3220_v55 = vpop.permute.xlu0 %3219  ;;  %v878_v26 = vand.u32 127, %v812_v37  ;;  %v821_v37 = vadd.s32 128, %v12595_v15 }
 0x3bd   : > { %10115 = vmatprep.subr.bf16.mxu1 %v12667_v30  ;;  %v935_v9 = vshra.s32 %v871_v33, 3  ;;  %v12952_v33 = vsel %vm1074_vm10, 0.0, %v17247_v28 }
 0x3be   : > { %v942_v12 = vshra.s32 %v878_v26, 3  ;;  %17528 = vst [vmem:[#allocation39_spill] sm:$0xff] %v12952_v33  ;;  %v12971_v26 = vsel %vm1077_vm14, 0.0, %v17247_v28  ;;  %v887_v19 = vand.u32 127, %v821_v37 }
 0x3bf   : > { %vm1000_vm4 = vcmp.eq.s32.totalorder %v935_v9, %v12904_v16  ;;  %v953_v9 = vshra.s32 %v889_v29, 3  ;;  %17530 = vst [vmem:[#allocation41_spill] sm:$0xff] %v12971_v26  ;;  %v822_v29 = vadd.s32 136, %v12595_v15 }
 0x3c0   : > { %10116 = vmatpush3.bf16.msra.mxu1 %v12667_v30  ;;  %v12881_v41 = vpop.permute.xlu0 %3328  ;;  %vm1071_vm7 = vmand %vm1000_vm4, %vm12908_vm2  ;;  %vm1007_vm11 = vcmp.eq.s32.totalorder %v942_v12, %v12904_v16  ;;  %v880_v12 = vand.u32 127, %v814_v13 }
 0x3c1   : > { %10117 = vmatprep.subr.bf16.mxu1 %v12687_v10  ;;  %17520 = vst [vmem:[#allocation34_spill] sm:$0xff] %v12881_v41  ;;  %vm1078_vm13 = vmand %vm1007_vm11, %vm12908_vm2 }
 0x3c2   : > { %10082 = vmatmul.mubr.msk.bf16.gmra.mrb[44].mxu1 %vm1889_vm0, %v2171_v3  ;;  %10094 = vmatmul.mubr.msk.bf16.gmra.mrb[52].mxu0 %vm1889_vm0, %v12823_v24  ;;  %v872_v24 = vand.u32 127, %v806_v56  ;;  %v12922_v3 = vsel %vm1073_vm5, 0.0, %v17247_v28  ;;  %v815_v56 = vadd.s32 80, %v12595_v15 }
 0x3c3   : > { %v3210_v22 = vpop.permute.xlu1 %3209  ;;  %10097 = vmatprep.mubr.msk.bf16.mxu0 %vm1889_vm0, %v2302_v27  ;;  %17525 = vst [vmem:[#allocation36_spill] sm:$0xff] %v12922_v3 }
 0x3c4   : > { %10118 = vmatpush3.bf16.msra.mxu1 %v12687_v10  ;;  %10139 = vmatprep.subr.bf16.mxu0 %v3210_v22  ;;  %v936_v44 = vshra.s32 %v872_v24, 3  ;;  %v881_v4 = vand.u32 127, %v815_v56  ;;  %v951_v56 = vshra.s32 %v887_v19, 3 }
 0x3c5   : > { %10119 = vmatprep.subr.bf16.mxu1 %v12685_v63  ;;  %10140 = vmatpush3.bf16.msra.mxu0 %v3210_v22 }
 0x3c6   : > { %vm1001_vm6 = vcmp.eq.s32.totalorder %v936_v44, %v12904_v16  ;;  %v12965_v44 = vsel %vm1078_vm13, 0.0, %v17247_v28  ;;  %vm1016_vm14 = vcmp.eq.s32.totalorder %v951_v56, %v12904_v16 }
 0x3c7   : > { %v3212_v35 = vpop.permute.xlu1 %3211  ;;  %vm1072_vm8 = vmand %vm1001_vm6, %vm12908_vm2  ;;  %17529 = vst [vmem:[#allocation40_spill] sm:$0xff] %v12965_v44  ;;  %vm1018_vm6 = vcmp.eq.s32.totalorder %v953_v9, %v12904_v16 }
 0x3c8   : > { %10120 = vmatpush3.bf16.msra.mxu1 %v12685_v63  ;;  %10141 = vmatprep.subr.bf16.mxu0 %v3212_v35  ;;  %v12936_v22 = vsel %vm1072_vm8, 0.0, %v17247_v28  ;;  %vm1089_vm8 = vmand %vm1018_vm6, %vm12908_vm2 }
 0x3c9   : > { %10169 = vmatprep.subr.bf16.mxu1 %v12881_v41  ;;  %10142 = vmatpush3.bf16.msra.mxu0 %v3212_v35  ;;  %17527 = vst [vmem:[#allocation38_spill] sm:$0xff] %v12936_v22  ;;  %v13014_v9 = vsel %vm1089_vm8, 0.0, %v17247_v28 }
 0x3ca   : > { %10098 = vmatmul.mubr.msk.bf16.gmra.mrb[56].mxu0 %vm1889_vm0, %v12835_v8  ;;  %10143 = vmatprep.subr.bf16.mxu0 %v3214_v18  ;;  %v810_v8 = vadd.s32 40, %v12595_v15  ;;  %17534 = vst [vmem:[#allocation45_spill] sm:$0xff] %v13014_v9 }
 0x3cb   : > { %v3216_v30 = vpop.permute.xlu1 %3215  ;;  %10101 = vmatprep.mubr.msk.bf16.mxu0 %vm1889_vm0, %v2306_v62  ;;  %v824_v62 = vadd.s32 152, %v12595_v15 }
 0x3cc   : > { %v876_v5 = vand.u32 127, %v810_v8 }
 0x3cd   : > { %10144 = vmatpush3.bf16.msra.mxu0 %v3214_v18  ;;  %v12933_v18 = vsel %vm1071_vm7, 0.0, %v17247_v28 }
 0x3ce   : > { %10145 = vmatprep.subr.bf16.mxu0 %v3216_v30  ;;  %17526 = vst [vmem:[#allocation37_spill] sm:$0xff] %v12933_v18 }
 0x3cf   : > { %v3218_v10 = vpop.permute.xlu1 %3217 }
 0x3d1   : > { %10146 = vmatpush3.bf16.msra.mxu0 %v3216_v30  ;;  %v940_v30 = vshra.s32 %v876_v5, 3  ;;  %v828_v5 = vadd.s32 184, %v12595_v15 }
 0x3d2   : > { %10102 = vmatmul.mubr.msk.bf16.gmra.mrb[60].mxu0 %vm1889_vm0, %v2308_v14  ;;  %10147 = vmatprep.subr.bf16.mxu0 %v3218_v10  ;;  %v875_v14 = vand.u32 127, %v809_v53 }
 0x3d3   : > { %v3222_v54 = vpop.permute.xlu1 %3221  ;;  %vm1005_vm15 = vcmp.eq.s32.totalorder %v940_v30, %v12904_v16  ;;  %v879_v30 = vand.u32 127, %v813_v43 }
 0x3d4   : > { %v939_v39 = vshra.s32 %v875_v14, 3  ;;  %vm1076_vm3 = vmand %vm1005_vm15, %vm12908_vm2  ;;  %v945_v14 = vshra.s32 %v881_v4, 3 }
 0x3d5   : > { %10148 = vmatpush3.bf16.msra.mxu0 %v3218_v10  ;;  %v816_v10 = vadd.s32 88, %v12595_v15  ;;  %v943_v37 = vshra.s32 %v879_v30, 3  ;;  %v888_v30 = vand.u32 127, %v822_v29  ;;  %v818_v29 = vadd.s32 104, %v12595_v15 }
 0x3d6   : > { %10149 = vmatprep.subr.bf16.mxu0 %v3220_v55  ;;  %vm1004_vm1 = vcmp.eq.s32.totalorder %v939_v39, %v12904_v16  ;;  %vm1010_vm10 = vcmp.eq.s32.totalorder %v945_v14, %v12904_v16 }
 0x3d7   : > { %v12889_v42 = vpop.permute.xlu1 %3449  ;;  %v882_v7 = vand.u32 127, %v816_v10  ;;  %vm1075_vm4 = vmand %vm1004_vm1, %vm12908_vm2  ;;  %v944_v10 = vshra.s32 %v880_v12, 3 }
 0x3d8   : > { %17521 = vst [vmem:[#allocation35_spill] sm:$0xff] %v12889_v42  ;;  %vm1081_vm12 = vmand %vm1010_vm10, %vm12908_vm2 }
 0x3d9   : > { %10150 = vmatpush3.bf16.msra.mxu0 %v3220_v55  ;;  %v946_v53 = vshra.s32 %v882_v7, 3  ;;  %vm1009_vm13 = vcmp.eq.s32.totalorder %v944_v10, %v12904_v16  ;;  %v13039_v10 = vsel %vm1081_vm12, 0.0, %v17247_v28  ;;  %vm1087_vm1 = vmand %vm1016_vm14, %vm12908_vm2 }
 0x3da   : > { %10151 = vmatprep.subr.bf16.mxu0 %v3222_v54  ;;  %17536 = vst [vmem:[#allocation47_spill] sm:$0xff] %v13039_v10  ;;  %vm1080_vm15 = vmand %vm1009_vm13, %vm12908_vm2 }
 0x3db   : > { %vm1011_vm9 = vcmp.eq.s32.totalorder %v946_v53, %v12904_v16 }
 0x3dc   : > { %vm1082_vm11 = vmand %vm1011_vm9, %vm12908_vm2 }
 0x3dd   : > { %10152 = vmatpush3.bf16.msra.mxu0 %v3222_v54  ;;  %v890_v54 = vand.u32 127, %v824_v62  ;;  %v13036_v47 = vsel %vm1082_vm11, 0.0, %v17247_v28 }
 0x3de   : > { %10201 = vmatprep.subr.bf16.mxu0 %v12889_v42  ;;  %17535 = vst [vmem:[#allocation46_spill] sm:$0xff] %v13036_v47 }
 0x3df   : > { %v954_v24 = vshra.s32 %v890_v54, 3  ;;  %v820_v54 = vadd.s32 120, %v12595_v15 }
 0x3e1   : > { %vm1019_vm5 = vcmp.eq.s32.totalorder %v954_v24, %v12904_v16  ;;  %v886_v12 = vand.u32 127, %v820_v54 }
 0x3e2   : > { %vm1090_vm7 = vmand %vm1019_vm5, %vm12908_vm2 }
 0x3e3   : > { %v13008_v13 = vsel %vm1090_vm7, 0.0, %v17247_v28  ;;  %v950_v56 = vshra.s32 %v886_v12, 3 }
 0x3e4   : > { %17533 = vst [vmem:[#allocation44_spill] sm:$0xff] %v13008_v13 }
 0x3e5   : > { %vm1015_vm7 = vcmp.eq.s32.totalorder %v950_v56, %v12904_v16 }
 0x3e6   : > { %vm1086_vm9 = vmand %vm1015_vm7, %vm12908_vm2 }
 0x45d   : > { %v10031_v36 = vpop.f32.mrb[16].mxu1 }
 0x45e   : > { %v12930_v57 = vadd.f32 %v10031_v36, %v12922_v3  ;;  %v1948_v55 = vpop.f32.mrb[17].mxu1  ;;  %v12986_v36 = vsel %vm1076_vm3, 0.0, %v17247_v28 }
 0x45f   : > { %v10032_v35 = vpop.f32.mrb[18].mxu1  ;;  %v12949_v32 = vadd.f32 %v1948_v55, %v12933_v18  ;;  %17531 = vst [vmem:[#allocation42_spill] sm:$0xff] %v12986_v36  ;;  %v825_v18 = vadd.s32 160, %v12595_v15 }
 0x460   : > { %v1951_v25 = vpop.f32.mrb[19].mxu1  ;;  %2498 = vmax.xlane.f32.xlu0 %v12930_v57  ;;  %v12968_v23 = vadd.f32 %v10032_v35, %v12952_v33  ;;  %v12992_v35 = vsel %vm1075_vm4, 0.0, %v17247_v28  ;;  %vm1008_vm4 = vcmp.eq.s32.totalorder %v943_v37, %v12904_v16  ;;  %v952_v28 = vshra.s32 %v888_v30, 3 }
 0x461   : > { %v12946_v49 = vadd.f32 %v1951_v25, %v12936_v22  ;;  %17532 = vst [vmem:[#allocation43_spill] sm:$0xff] %v12992_v35  ;;  %v894_v25 = vand.u32 127, %v828_v5  ;;  %vm1079_vm6 = vmand %vm1008_vm4, %vm12908_vm2 }
 0x462   : > { %vm1017_vm8 = vcmp.eq.s32.totalorder %v952_v28, %v12904_v16 }
 0x463   : > { %2496 = vmax.xlane.f32.xlu1 %v12946_v49  ;;  %v958_v5 = vshra.s32 %v894_v25, 3  ;;  %v819_v25 = vadd.s32 112, %v12595_v15  ;;  %vm1088_vm10 = vmand %vm1017_vm8, %vm12908_vm2 }
 0x464   : > { %2494 = vmax.xlane.f32.xlu0 %v12949_v32 }
 0x465   : > { %v10035_v38 = vpop.f32.mrb[20].mxu1  ;;  %vm1023_vm3 = vcmp.eq.s32.totalorder %v958_v5, %v12904_v16 }
 0x466   : > { %v1964_v8 = vpop.f32.mrb[21].mxu1  ;;  %v12989_v55 = vadd.f32 %v10035_v38, %v12971_v26  ;;  %vm1094_vm5 = vmand %vm1023_vm3, %vm12908_vm2 }
 0x467   : > { %v10036_v17 = vpop.f32.mrb[22].mxu1  ;;  %v13011_v4 = vadd.f32 %v1964_v8, %v12992_v35 }
 0x468   : > { %v12981_v62 = vadd.f32 %v10036_v17, %v12965_v44  ;;  %v1967_v11 = vpop.f32.mrb[23].mxu1  ;;  %2500 = vmax.xlane.f32.xlu0 %v12968_v23  ;;  %v885_v44 = vand.u32 127, %v819_v25  ;;  %v884_v25 = vand.u32 127, %v818_v29 }
 0x469   : > { %v13002_v39 = vadd.f32 %v1967_v11, %v12986_v36  ;;  %v826_v11 = vadd.s32 168, %v12595_v15 }
 0x46a   : > { %2508 = vmax.xlane.f32.xlu1 %v12981_v62  ;;  %v948_v28 = vshra.s32 %v884_v25, 3 }
 0x46c   : > { %2506 = vmax.xlane.f32.xlu0 %v12989_v55 }
 0x46d   : > { %v10039_v7 = vpop.f32.mrb[24].mxu1  ;;  %v10051_v24 = vpop.f32.mrb[32].mxu0 }
 0x46e   : > { %v13016_v38 = vpop.f32.mrb[25].mxu1  ;;  %v2093_v43 = vpop.f32.mrb[33].mxu0  ;;  %2504 = vmax.xlane.f32.xlu1 %v13002_v39  ;;  %v13042_v54 = vadd.f32 %v10051_v24, %v13014_v9  ;;  %v893_v9 = vand.u32 127, %v827_v6  ;;  %v13065_v26 = vadd.f32 %v10039_v7, %v13039_v10 }
 0x46f   : > { %v10040_v17 = vpop.f32.mrb[26].mxu1  ;;  %v10052_v8 = vpop.f32.mrb[34].mxu0 }
 0x470   : > { %v13029_v14 = vadd.f32 %v10052_v8, %v13008_v13  ;;  %v1983_v19 = vpop.f32.mrb[27].mxu1  ;;  %v13031_v53 = vpop.f32.mrb[35].mxu0  ;;  %2502 = vmax.xlane.f32.xlu0 %v13011_v4  ;;  %v892_v8 = vand.u32 127, %v826_v11  ;;  %v13054_v24 = vadd.f32 %v10040_v17, %v13036_v47  ;;  %v17537_v13 = vmov -1e+09  }
 0x471   : > { %v13058_v35 = vsel %vm1080_vm15, 0.0, %v17537_v13  ;;  %v13068_v11 = vsel %vm1087_vm1, 0.0, %v17537_v13  ;;  %v832_v47 = vadd.s32 216, %v12595_v15  ;;  %v957_v5 = vshra.s32 %v893_v9, 3 }
 0x472   : > { %2532 = vmax.xlane.f32.xlu1 %v13029_v14  ;;  %17538 = vst [vmem:[#allocation48_spill] sm:$0xff] %v13058_v35  ;;  %17539 = vst [vmem:[#allocation49_spill] sm:$0xff] %v13068_v11  ;;  %v956_v10 = vshra.s32 %v892_v8, 3  ;;  %v13086_v33 = vadd.f32 %v1983_v19, %v13058_v35  ;;  %v13094_v3 = vsel %vm1094_vm5, 0.0, %v17537_v13  ;;  %v13097_v29 = vsel %vm1079_vm6, 0.0, %v17537_v13 }
 0x473   : > { %17540 = vst [vmem:[#allocation50_spill] sm:$0xff] %v13094_v3  ;;  %17541 = vst [vmem:[#allocation51_spill] sm:$0xff] %v13097_v29  ;;  %v13100_v8 = vadd.f32 %v2093_v43, %v13068_v11  ;;  %v817_v19 = vadd.s32 96, %v12595_v15  ;;  %v898_v9 = vand.u32 127, %v832_v47  ;;  %v840_v35 = vadd.s32 280, %v12595_v15 }
 0x474   : > { %2530 = vmax.xlane.f32.xlu0 %v13042_v54  ;;  %vm1021_vm11 = vcmp.eq.s32.totalorder %v956_v10, %v12904_v16  ;;  %v949_v43 = vshra.s32 %v885_v44, 3  ;;  %vm1022_vm12 = vcmp.eq.s32.totalorder %v957_v5, %v12904_v16  ;;  %v891_v11 = vand.u32 127, %v825_v18 }
 0x475   : > { %v13060_v36 = vpop.f32.mrb[28].mxu1  ;;  %v13062_v12 = vpop.f32.mrb[36].mxu0  ;;  %v13118_v56 = vsel %vm1086_vm9, 0.0, %v17537_v13  ;;  %v13126_v47 = vadd.f32 %v13016_v38, %v13097_v29  ;;  %v13129_v44 = vsel %vm1088_vm10, 0.0, %v17537_v13  ;;  %v883_v18 = vand.u32 127, %v817_v19  ;;  %vm13133_vm13 = vmand %vm1021_vm11, %vm12908_vm2 }
 0x476   : > { %v13070_v17 = vpop.f32.mrb[29].mxu1  ;;  %v13072_v30 = vpop.f32.mrb[37].mxu0  ;;  %2516 = vmax.xlane.f32.xlu1 %v13054_v24  ;;  %17543 = vst [vmem:[#allocation53_spill] sm:$0xff] %v13118_v56  ;;  %17545 = vst [vmem:[#allocation55_spill] sm:$0xff] %v13129_v44  ;;  %vm1013_vm15 = vcmp.eq.s32.totalorder %v948_v28, %v12904_v16  ;;  %v962_v19 = vshra.s32 %v898_v9, 3  ;;  %vm1014_vm1 = vcmp.eq.s32.totalorder %v949_v43, %v12904_v16  ;;  %v955_v60 = vshra.s32 %v891_v11, 3 }
 0x477   : > { %v10044_v6 = vpop.f32.mrb[30].mxu1  ;;  %v10056_v7 = vpop.f32.mrb[38].mxu0  ;;  %17544 = vst [vmem:[#allocation54_spill] sm:$0xff] %v13126_v47  ;;  %vm13144_vm14 = vmand %vm1022_vm12, %vm12908_vm2  ;;  %v13171_v9 = vadd.f32 %v13031_v53, %v13129_v44  ;;  %v896_v43 = vand.u32 127, %v830_v34  ;;  %v838_v10 = vadd.s32 264, %v12595_v15  ;;  %v897_v38 = vand.u32 127, %v831_v52 }
 0x478   : > { %v13090_v22 = vpop.f32.mrb[31].mxu1  ;;  %v2112_v37 = vpop.f32.mrb[39].mxu0  ;;  %2514 = vmax.xlane.f32.xlu0 %v13065_v26  ;;  %v13114_v45 = vadd.f32 %v10056_v7, %v13094_v3  ;;  %v906_v3 = vand.u32 127, %v840_v35  ;;  %v13156_v59 = vadd.f32 %v10044_v6, %v13118_v56  ;;  %v13167_v35 = vsel %vm13133_vm13, 0.0, %v17537_v13  ;;  %vm1084_vm3 = vmand %vm1013_vm15, %vm12908_vm2 }
 0x479   : > { %17551 = vst [vmem:[#allocation57_spill] sm:$0xff] %v13167_v35  ;;  %17552 = vst [vmem:[#allocation58_spill] sm:$0xff] %v13171_v9  ;;  %v13176_v11 = vsel %vm13144_vm14, 0.0, %v17537_v13  ;;  %v947_v6 = vshra.s32 %v883_v18, 3  ;;  %vm1027_vm5 = vcmp.eq.s32.totalorder %v962_v19, %v12904_v16  ;;  %vm1020_vm6 = vcmp.eq.s32.totalorder %v955_v60, %v12904_v16 }
 0x47a   : > { %2512 = vmax.xlane.f32.xlu1 %v13086_v33  ;;  %17542 = vst [vmem:[#allocation52_spill] sm:$0xff] %v13114_v45  ;;  %17550 = vst [vmem:[#allocation56_spill] sm:$0xff] %v13156_v59  ;;  %v970_v53 = vshra.s32 %v906_v3, 3  ;;  %v13189_v18 = vadd.f32 %v2112_v37, %v13167_v35  ;;  %v839_v28 = vadd.s32 272, %v12595_v15  ;;  %v13194_v44 = vsel %vm1084_vm3, 0.0, %v17537_v13 }
 0x47b   : > { %17553 = vst [vmem:[#allocation59_spill] sm:$0xff] %v13176_v11  ;;  %vm1085_vm4 = vmand %vm1014_vm1, %vm12908_vm2  ;;  %v13205_v3 = vadd.f32 %v13062_v12, %v13176_v11  ;;  %vm1012_vm7 = vcmp.eq.s32.totalorder %v947_v6, %v12904_v16  ;;  %v960_v19 = vshra.s32 %v896_v43, 3  ;;  %v904_v11 = vand.u32 127, %v838_v10 }
 0x47c   : > { %2526 = vmax.xlane.f32.xlu0 %v13100_v8  ;;  %17554 = vst [vmem:[#allocation60_spill] sm:$0xff] %v13189_v18  ;;  %17555 = vst [vmem:[#allocation61_spill] sm:$0xff] %v13194_v44  ;;  %v13201_v34 = vsel %vm1085_vm4, 0.0, %v17537_v13  ;;  %vm1035_vm10 = vcmp.eq.s32.totalorder %v970_v53, %v12904_v16  ;;  %v13237_v20 = vadd.f32 %v13090_v22, %v13194_v44  ;;  %v961_v0 = vshra.s32 %v897_v38, 3 }
 0x47d   : > { %v13120_v2 = vpop.f32.mrb[40].mxu0  ;;  %v13122_v25 = vpop.f32.mrb[32].mxu1  ;;  %17556 = vst [vmem:[#allocation62_spill] sm:$0xff] %v13201_v34  ;;  %17557 = vst [vmem:[#allocation63_spill] sm:$0xff] %v13205_v3  ;;  %v905_v60 = vand.u32 127, %v839_v28  ;;  %v13252_v10 = vadd.f32 %v13060_v36, %v13201_v34  ;;  %v837_v38 = vadd.s32 256, %v12595_v15  ;;  %vm1025_vm13 = vcmp.eq.s32.totalorder %v960_v19, %v12904_v16 }
 0x47e   : > { %v13137_v7 = vpop.f32.mrb[41].mxu0  ;;  %v13139_v5 = vpop.f32.mrb[33].mxu1  ;;  %2540 = vmax.xlane.f32.xlu1 %v13114_v45  ;;  %vm13212_vm8 = vmand %vm1027_vm5, %vm12908_vm2  ;;  %17562 = vst [vmem:[#allocation64_spill] sm:$0xff] %v13237_v20  ;;  %v968_v36 = vshra.s32 %v904_v11, 3  ;;  %v902_v28 = vand.u32 127, %v836_v50  ;;  %v844_v52 = vadd.s32 312, %v12595_v15  ;;  %vm1026_vm14 = vcmp.eq.s32.totalorder %v961_v0, %v12904_v16 }
 0x47f   : > { %v13149_v29 = vpop.f32.mrb[42].mxu0  ;;  %v13151_v1 = vpop.f32.mrb[34].mxu1  ;;  %vm13225_vm9 = vmand %vm1020_vm6, %vm12908_vm2  ;;  %v13248_v43 = vsel %vm13212_vm8, 0.0, %v17537_v13  ;;  %17564 = vst [vmem:[#allocation66_spill] sm:$0xff] %v13252_v10  ;;  %v969_v12 = vshra.s32 %v905_v60, 3  ;;  %v895_v34 = vand.u32 127, %v829_v61 }
 0x480   : > { %v13159_v51 = vpop.f32.mrb[43].mxu0  ;;  %v13161_v58 = vpop.f32.mrb[35].mxu1  ;;  %2510 = vmax.xlane.f32.xlu0 %v13126_v47  ;;  %17563 = vst [vmem:[#allocation65_spill] sm:$0xff] %v13248_v43  ;;  %v13257_v22 = vsel %vm13225_vm9, 0.0, %v17537_v13  ;;  %vm1106_vm11 = vmand %vm1035_vm10, %vm12908_vm2  ;;  %v13274_v53 = vadd.f32 %v13149_v29, %v13248_v43  ;;  %v903_v61 = vand.u32 127, %v837_v38  ;;  %vm1033_vm3 = vcmp.eq.s32.totalorder %v968_v36, %v12904_v16 }
 0x481   : > { %17565 = vst [vmem:[#allocation67_spill] sm:$0xff] %v13257_v22  ;;  %vm1083_vm12 = vmand %vm1012_vm7, %vm12908_vm2  ;;  %v13278_v44 = vsel %vm1106_vm11, 0.0, %v17537_v13  ;;  %v13289_v11 = vadd.f32 %v13072_v30, %v13257_v22  ;;  %v966_v19 = vshra.s32 %v902_v28, 3  ;;  %v910_v38 = vand.u32 127, %v844_v52 }
 0x482   : > { %2524 = vmax.xlane.f32.xlu1 %v13156_v59  ;;  %17566 = vst [vmem:[#allocation68_spill] sm:$0xff] %v13274_v53  ;;  %17567 = vst [vmem:[#allocation69_spill] sm:$0xff] %v13278_v44  ;;  %v13285_v50 = vsel %vm1083_vm12, 0.0, %v17537_v13  ;;  %v834_v22 = vadd.s32 232, %v12595_v15  ;;  %vm1034_vm4 = vcmp.eq.s32.totalorder %v969_v12, %v12904_v16  ;;  %v13321_v0 = vadd.f32 %v13151_v1, %v13278_v44 }
 0x483   : > { %17568 = vst [vmem:[#allocation70_spill] sm:$0xff] %v13285_v50  ;;  %17569 = vst [vmem:[#allocation71_spill] sm:$0xff] %v13289_v11  ;;  %v967_v52 = vshra.s32 %v903_v61, 3  ;;  %vm1031_vm7 = vcmp.eq.s32.totalorder %v966_v19, %v12904_v16  ;;  %v842_v29 = vadd.s32 296, %v12595_v15  ;;  %v843_v36 = vadd.s32 304, %v12595_v15 }
 0x484   : > { %2528 = vmax.xlane.f32.xlu0 %v13171_v9  ;;  %vm13295_vm15 = vmand %vm1025_vm13, %vm12908_vm2  ;;  %17574 = vst [vmem:[#allocation72_spill] sm:$0xff] %v13321_v0  ;;  %v900_v12 = vand.u32 127, %v834_v22 }
 0x485   : > { %v13196_v56 = vpop.f32.mrb[44].mxu0  ;;  %v13198_v40 = vpop.f32.mrb[36].mxu1  ;;  %vm13308_vm1 = vmand %vm1026_vm14, %vm12908_vm2  ;;  %v13332_v28 = vsel %vm13295_vm15, 0.0, %v17537_v13  ;;  %vm1032_vm9 = vcmp.eq.s32.totalorder %v967_v52, %v12904_v16 }
 0x486   : > { %v13216_v37 = vpop.f32.mrb[45].mxu0  ;;  %v13218_v35 = vpop.f32.mrb[37].mxu1  ;;  %2536 = vmax.xlane.f32.xlu1 %v13189_v18  ;;  %17575 = vst [vmem:[#allocation73_spill] sm:$0xff] %v13332_v28  ;;  %v13341_v1 = vsel %vm13308_vm1, 0.0, %v17537_v13  ;;  %vm1104_vm5 = vmand %vm1033_vm3, %vm12908_vm2  ;;  %v13355_v61 = vadd.f32 %v13159_v51, %v13332_v28  ;;  %v964_v19 = vshra.s32 %v900_v12, 3 }
 0x487   : > { %v13231_v31 = vpop.f32.mrb[46].mxu0  ;;  %v13233_v21 = vpop.f32.mrb[38].mxu1  ;;  %17577 = vst [vmem:[#allocation75_spill] sm:$0xff] %v13341_v1  ;;  %vm1105_vm6 = vmand %vm1034_vm4, %vm12908_vm2  ;;  %v13368_v22 = vadd.f32 %v13120_v2, %v13341_v1  ;;  %v908_v1 = vand.u32 127, %v842_v29 }
 0x488   : > { %v13240_v48 = vpop.f32.mrb[47].mxu0  ;;  %v13242_v46 = vpop.f32.mrb[39].mxu1  ;;  %2538 = vmax.xlane.f32.xlu0 %v13205_v3  ;;  %17578 = vst [vmem:[#allocation76_spill] sm:$0xff] %v13355_v61  ;;  %vm13378_vm10 = vmand %vm1031_vm7, %vm12908_vm2  ;;  %v833_v3 = vadd.s32 224, %v12595_v15  ;;  %vm1029_vm15 = vcmp.eq.s32.totalorder %v964_v19, %v12904_v16 }
 0x489   : > { %v13414_v12 = vsel %vm13378_vm10, 0.0, %v17537_v13  ;;  %vm1103_vm14 = vmand %vm1032_vm9, %vm12908_vm2 }
 0x48a   : > { %2520 = vmax.xlane.f32.xlu1 %v13237_v20  ;;  %v835_v20 = vadd.s32 240, %v12595_v15  ;;  %17586 = vst [vmem:[#allocation80_spill] sm:$0xff] %v13414_v12  ;;  %vm1100_vm3 = vmand %vm1029_vm15, %vm12908_vm2 }
 0x48c   : > { %2522 = vmax.xlane.f32.xlu0 %v13252_v10  ;;  %v901_v30 = vand.u32 127, %v835_v20 }
 0x48d   : > { %v13280_v6 = vpop.f32.mrb[40].mxu1  ;;  %v13282_v42 = vpop.f32.mrb[48].mxu0 }
 0x48e   : > { %v13299_v60 = vpop.f32.mrb[41].mxu1  ;;  %v13301_v43 = vpop.f32.mrb[49].mxu0  ;;  %2548 = vmax.xlane.f32.xlu1 %v13274_v53  ;;  %v959_v53 = vshra.s32 %v895_v34, 3  ;;  %v13336_v34 = vadd.f32 %v13070_v17, %v13285_v50  ;;  %v974_v17 = vshra.s32 %v910_v38, 3  ;;  %v13360_v50 = vsel %vm1104_vm5, 0.0, %v17537_v13 }
 0x48f   : > { %v13314_v41 = vpop.f32.mrb[42].mxu1  ;;  %v13316_v63 = vpop.f32.mrb[50].mxu0  ;;  %17579 = vst [vmem:[#allocation77_spill] sm:$0xff] %v13360_v50  ;;  %v965_v10 = vshra.s32 %v901_v30, 3  ;;  %v841_v30 = vadd.s32 288, %v12595_v15 }
 0x490   : > { %v13324_v18 = vpop.f32.mrb[43].mxu1  ;;  %v13326_v59 = vpop.f32.mrb[51].mxu0  ;;  %2534 = vmax.xlane.f32.xlu0 %v13289_v11  ;;  %17576 = vst [vmem:[#allocation74_spill] sm:$0xff] %v13336_v34  ;;  %vm1024_vm8 = vcmp.eq.s32.totalorder %v959_v53, %v12904_v16  ;;  %vm1039_vm12 = vcmp.eq.s32.totalorder %v974_v17, %v12904_v16  ;;  %v909_v53 = vand.u32 127, %v843_v36  ;;  %v848_v36 = vadd.s32 344, %v12595_v15 }
 0x491   : > { %vm13391_vm11 = vmand %vm1024_vm8, %vm12908_vm2  ;;  %vm1030_vm1 = vcmp.eq.s32.totalorder %v965_v10, %v12904_v16  ;;  %v13440_v17 = vadd.f32 %v13231_v31, %v13414_v12  ;;  %v907_v10 = vand.u32 127, %v841_v30  ;;  %v855_v12 = vadd.s32 400, %v12595_v15 }
 0x492   : > { %2564 = vmax.xlane.f32.xlu1 %v13321_v0  ;;  %v13371_v0 = vsel %vm1105_vm6, 0.0, %v17537_v13  ;;  %vm1110_vm13 = vmand %vm1039_vm12, %vm12908_vm2  ;;  %v973_v2 = vshra.s32 %v909_v53, 3 }
 0x493   : > { %17580 = vst [vmem:[#allocation78_spill] sm:$0xff] %v13371_v0  ;;  %v13418_v29 = vadd.f32 %v13122_v25, %v13371_v0  ;;  %v972_v25 = vshra.s32 %v908_v1, 3  ;;  %v899_v0 = vand.u32 127, %v833_v3  ;;  %17589 = vst [vmem:[#allocation83_spill] sm:$0xff] %v13440_v17  ;;  %v914_v3 = vand.u32 127, %v848_v36 }
 0x494   : > { %2518 = vmax.xlane.f32.xlu0 %v13336_v34  ;;  %v856_v34 = vadd.s32 408, %v12595_v15  ;;  %vm1101_vm4 = vmand %vm1030_vm1, %vm12908_vm2  ;;  %vm1038_vm6 = vcmp.eq.s32.totalorder %v973_v2, %v12904_v16  ;;  %v13476_v36 = vsel %vm1100_vm3, 0.0, %v17537_v13 }
 0x495   : > { %v13362_v44 = vpop.f32.mrb[44].mxu1  ;;  %v13364_v38 = vpop.f32.mrb[52].mxu0  ;;  %17587 = vst [vmem:[#allocation81_spill] sm:$0xff] %v13418_v29  ;;  %vm1037_vm5 = vcmp.eq.s32.totalorder %v972_v25, %v12904_v16  ;;  %v963_v30 = vshra.s32 %v899_v0, 3  ;;  %17594 = vst [vmem:[#allocation88_spill] sm:$0xff] %v13476_v36  ;;  %v13483_v2 = vsel %vm1101_vm4, 0.0, %v17537_v13 }
 0x496   : > { %v13382_v51 = vpop.f32.mrb[45].mxu1  ;;  %v13384_v28 = vpop.f32.mrb[53].mxu0  ;;  %2544 = vmax.xlane.f32.xlu1 %v13355_v61  ;;  %v13403_v61 = vadd.f32 %v13161_v58, %v13360_v50  ;;  %v13423_v58 = vsel %vm13391_vm11, 0.0, %v17537_v13  ;;  %v922_v20 = vand.u32 127, %v856_v34  ;;  %v13444_v50 = vsel %vm1110_vm13, 0.0, %v17537_v13  ;;  %17596 = vst [vmem:[#allocation90_spill] sm:$0xff] %v13483_v2  ;;  %vm1108_vm7 = vmand %vm1037_vm5, %vm12908_vm2 }
 0x497   : > { %v13397_v11 = vpop.f32.mrb[46].mxu1  ;;  %v13399_v45 = vpop.f32.mrb[54].mxu0  ;;  %17588 = vst [vmem:[#allocation82_spill] sm:$0xff] %v13423_v58  ;;  %17590 = vst [vmem:[#allocation84_spill] sm:$0xff] %v13444_v50  ;;  %v13450_v1 = vadd.f32 %v13137_v7, %v13423_v58  ;;  %v13453_v34 = vsel %vm1103_vm14, 0.0, %v17537_v13  ;;  %v854_v7 = vadd.s32 392, %v12595_v15  ;;  %v13469_v58 = vadd.f32 %v13233_v21, %v13444_v50 }
 0x498   : > { %17585 = vst [vmem:[#allocation79_spill] sm:$0xff] %v13403_v61  ;;  %v13406_v9 = vpop.f32.mrb[47].mxu1  ;;  %v13408_v47 = vpop.f32.mrb[55].mxu0  ;;  %2546 = vmax.xlane.f32.xlu0 %v13368_v22  ;;  %17592 = vst [vmem:[#allocation86_spill] sm:$0xff] %v13453_v34  ;;  %v986_v19 = vshra.s32 %v922_v20, 3  ;;  %v13480_v20 = vadd.f32 %v13139_v5, %v13453_v34  ;;  %v971_v0 = vshra.s32 %v907_v10, 3  ;;  %vm1028_vm10 = vcmp.eq.s32.totalorder %v963_v30, %v12904_v16 }
 0x499   : > { %17591 = vst [vmem:[#allocation85_spill] sm:$0xff] %v13450_v1  ;;  %17593 = vst [vmem:[#allocation87_spill] sm:$0xff] %v13469_v58  ;;  %v978_v21 = vshra.s32 %v914_v3, 3  ;;  %v846_v5 = vadd.s32 328, %v12595_v15  ;;  %v920_v34 = vand.u32 127, %v854_v7  ;;  %v13497_v10 = vadd.f32 %v13240_v48, %v13476_v36 }
 0x49a   : > { %2560 = vmax.xlane.f32.xlu1 %v13403_v61  ;;  %17595 = vst [vmem:[#allocation89_spill] sm:$0xff] %v13480_v20  ;;  %vm1109_vm8 = vmand %vm1038_vm6, %vm12908_vm2  ;;  %vm1051_vm9 = vcmp.eq.s32.totalorder %v986_v19, %v12904_v16  ;;  %v847_v25 = vadd.s32 336, %v12595_v15  ;;  %v921_v50 = vand.u32 127, %v855_v12  ;;  %v13508_v19 = vadd.f32 %v13196_v56, %v13483_v2 }
 0x49b   : > { %17597 = vst [vmem:[#allocation91_spill] sm:$0xff] %v13497_v10  ;;  %v13511_v7 = vsel %vm1109_vm8, 0.0, %v17537_v13  ;;  %vm1036_vm11 = vcmp.eq.s32.totalorder %v971_v0, %v12904_v16  ;;  %vm1122_vm12 = vmand %vm1051_vm9, %vm12908_vm2  ;;  %vm1043_vm14 = vcmp.eq.s32.totalorder %v978_v21, %v12904_v16  ;;  %v912_v12 = vand.u32 127, %v846_v5 }
 0x49c   : > { %2562 = vmax.xlane.f32.xlu0 %v13418_v29  ;;  %17599 = vst [vmem:[#allocation93_spill] sm:$0xff] %v13511_v7  ;;  %vm1099_vm13 = vmand %vm1028_vm10, %vm12908_vm2  ;;  %v984_v56 = vshra.s32 %v920_v34, 3  ;;  %v860_v30 = vadd.s32 440, %v12595_v15  ;;  %v913_v61 = vand.u32 127, %v847_v25  ;;  %v13534_v29 = vsel %vm1122_vm12, 0.0, %v17537_v13 }
 0x49d   : > { %v13446_v52 = vpop.f32.mrb[56].mxu0  ;;  %17601 = vst [vmem:[#allocation95_spill] sm:$0xff] %v13534_v29  ;;  %v13538_v34 = vadd.f32 %v13198_v40, %v13511_v7  ;;  %v13541_v5 = vsel %vm1099_vm13, 0.0, %v17537_v13  ;;  %vm1114_vm15 = vmand %vm1043_vm14, %vm12908_vm2  ;;  %v852_v40 = vadd.s32 376, %v12595_v15  ;;  %v13558_v21 = vadd.f32 %v13316_v63, %v13534_v29 }
 0x49e   : > { %v13457_v31 = vpop.f32.mrb[57].mxu0  ;;  %2556 = vmax.xlane.f32.xlu1 %v13440_v17  ;;  %17602 = vst [vmem:[#allocation96_spill] sm:$0xff] %v13541_v5  ;;  %vm1107_vm1 = vmand %vm1036_vm11, %vm12908_vm2  ;;  %vm1049_vm3 = vcmp.eq.s32.totalorder %v984_v56, %v12904_v16  ;;  %v926_v25 = vand.u32 127, %v860_v30  ;;  %v977_v7 = vshra.s32 %v913_v61, 3  ;;  %v13566_v0 = vadd.f32 %v13216_v37, %v13541_v5 }
 0x49f   : > { %v13464_v53 = vpop.f32.mrb[58].mxu0  ;;  %vm1120_vm5 = vmand %vm1049_vm3, %vm12908_vm2  ;;  %v918_v63 = vand.u32 127, %v852_v40  ;;  %v859_v30 = vadd.s32 432, %v12595_v15 }
 0x4a0   : > { %v13472_v17 = vpop.f32.mrb[59].mxu0  ;;  %2542 = vmax.xlane.f32.xlu0 %v13450_v1  ;;  %v853_v1 = vadd.s32 384, %v12595_v15  ;;  %vm1042_vm8 = vcmp.eq.s32.totalorder %v977_v7, %v12904_v16 }
 0x4a1   : > { %vm1113_vm10 = vmand %vm1042_vm8, %vm12908_vm2 }
 0x4a2   : > { %2572 = vmax.xlane.f32.xlu1 %v13469_v58  ;;  %v13502_v58 = vsel %vm1108_vm7, 0.0, %v17537_v13 }
 0x4a3   : > { %17598 = vst [vmem:[#allocation92_spill] sm:$0xff] %v13502_v58  ;;  %v13527_v36 = vadd.f32 %v13242_v46, %v13502_v58  ;;  %v845_v46 = vadd.s32 320, %v12595_v15  ;;  %v919_v58 = vand.u32 127, %v853_v1  ;;  %v990_v1 = vshra.s32 %v926_v25, 3 }
 0x4a4   : > { %2558 = vmax.xlane.f32.xlu0 %v13480_v20  ;;  %v985_v20 = vshra.s32 %v921_v50, 3  ;;  %v976_v50 = vshra.s32 %v912_v12, 3  ;;  %v13569_v12 = vsel %vm1107_vm1, 0.0, %v17537_v13 }
 0x4a5   : > { %v13504_v3 = vpop.f32.mrb[60].mxu0  ;;  %17600 = vst [vmem:[#allocation94_spill] sm:$0xff] %v13527_v36  ;;  %17604 = vst [vmem:[#allocation98_spill] sm:$0xff] %v13569_v12  ;;  %v911_v61 = vand.u32 127, %v845_v46  ;;  %v983_v37 = vshra.s32 %v919_v58, 3  ;;  %v13586_v46 = vsel %vm1120_vm5, 0.0, %v17537_v13  ;;  %vm1055_vm11 = vcmp.eq.s32.totalorder %v990_v1, %v12904_v16 }
 0x4a6   : > { %v13516_v48 = vpop.f32.mrb[61].mxu0  ;;  %2552 = vmax.xlane.f32.xlu1 %v13497_v10  ;;  %vm1050_vm4 = vcmp.eq.s32.totalorder %v985_v20, %v12904_v16  ;;  %vm1041_vm7 = vcmp.eq.s32.totalorder %v976_v50, %v12904_v16  ;;  %v858_v20 = vadd.s32 424, %v12595_v15  ;;  %17605 = vst [vmem:[#allocation99_spill] sm:$0xff] %v13586_v46  ;;  %v13590_v50 = vadd.f32 %v13218_v35, %v13569_v12  ;;  %vm1126_vm13 = vmand %vm1055_vm11, %vm12908_vm2 }
 0x4a7   : > { %v13523_v2 = vpop.f32.mrb[62].mxu0  ;;  %vm1121_vm6 = vmand %vm1050_vm4, %vm12908_vm2  ;;  %v850_v58 = vadd.s32 360, %v12595_v15  ;;  %v975_v25 = vshra.s32 %v911_v61, 3  ;;  %vm1048_vm12 = vcmp.eq.s32.totalorder %v983_v37, %v12904_v16  ;;  %v13605_v35 = vadd.f32 %v13326_v59, %v13586_v46 }
 0x4a8   : > { %v13530_v10 = vpop.f32.mrb[63].mxu0  ;;  %2554 = vmax.xlane.f32.xlu0 %v13508_v19  ;;  %v13593_v40 = vsel %vm1121_vm6, 0.0, %v17537_v13  ;;  %vm1112_vm9 = vmand %vm1041_vm7, %vm12908_vm2  ;;  %v924_v7 = vand.u32 127, %v858_v20  ;;  %v925_v12 = vand.u32 127, %v859_v30  ;;  %v13613_v1 = vsel %vm1113_vm10, 0.0, %v17537_v13 }
 0x4a9   : > { %17606 = vst [vmem:[#allocation100_spill] sm:$0xff] %v13593_v40  ;;  %17608 = vst [vmem:[#allocation102_spill] sm:$0xff] %v13613_v1  ;;  %v13617_v61 = vadd.f32 %v13282_v42, %v13593_v40  ;;  %v916_v59 = vand.u32 127, %v850_v58  ;;  %v864_v37 = vadd.s32 472, %v12595_v15  ;;  %vm1040_vm1 = vcmp.eq.s32.totalorder %v975_v25, %v12904_v16 }
 0x4aa   : > { %2568 = vmax.xlane.f32.xlu1 %v13527_v36  ;;  %v13562_v36 = vsel %vm1114_vm15, 0.0, %v17537_v13  ;;  %vm1119_vm14 = vmand %vm1048_vm12, %vm12908_vm2  ;;  %v988_v20 = vshra.s32 %v924_v7, 3  ;;  %v989_v30 = vshra.s32 %v925_v12, 3  ;;  %v857_v46 = vadd.s32 416, %v12595_v15 }
 0x4ab   : > { %17603 = vst [vmem:[#allocation97_spill] sm:$0xff] %v13562_v36  ;;  %v13581_v56 = vadd.f32 %v13314_v41, %v13562_v36  ;;  %v982_v41 = vshra.s32 %v918_v63, 3  ;;  %v13609_v36 = vsel %vm1112_vm9, 0.0, %v17537_v13  ;;  %v851_v63 = vadd.s32 368, %v12595_v15  ;;  %vm1111_vm4 = vmand %vm1040_vm1, %vm12908_vm2 }
 0x4ac   : > { %2570 = vmax.xlane.f32.xlu0 %v13538_v34  ;;  %17607 = vst [vmem:[#allocation101_spill] sm:$0xff] %v13609_v36  ;;  %v13629_v42 = vadd.f32 %v13324_v18, %v13609_v36  ;;  %v13634_v5 = vsel %vm1126_vm13, 0.0, %v17537_v13  ;;  %v13641_v58 = vsel %vm1119_vm14, 0.0, %v17537_v13  ;;  %v980_v18 = vshra.s32 %v916_v59, 3 }
 0x4ad   : > { %vm1047_vm15 = vcmp.eq.s32.totalorder %v982_v41, %v12904_v16  ;;  %v917_v40 = vand.u32 127, %v851_v63  ;;  %17609 = vst [vmem:[#allocation103_spill] sm:$0xff] %v13634_v5  ;;  %v13638_v41 = vadd.f32 %v13280_v6, %v13613_v1  ;;  %17610 = vst [vmem:[#allocation104_spill] sm:$0xff] %v13641_v58  ;;  %vm1053_vm5 = vcmp.eq.s32.totalorder %v988_v20, %v12904_v16 }
 0x4ae   : > { %2596 = vmax.xlane.f32.xlu1 %v13558_v21  ;;  %vm1118_vm3 = vmand %vm1047_vm15, %vm12908_vm2  ;;  %v930_v12 = vand.u32 127, %v864_v37  ;;  %v862_v7 = vadd.s32 456, %v12595_v15  ;;  %vm1054_vm6 = vcmp.eq.s32.totalorder %v989_v30, %v12904_v16  ;;  %v849_v6 = vadd.s32 352, %v12595_v15 }
 0x4af   : > { %v13654_v25 = vadd.f32 %v13399_v45, %v13634_v5  ;;  %v981_v63 = vshra.s32 %v917_v40, 3  ;;  %v923_v1 = vand.u32 127, %v857_v46  ;;  %v13658_v36 = vsel %vm1118_vm3, 0.0, %v17537_v13  ;;  %vm1124_vm7 = vmand %vm1053_vm5, %vm12908_vm2 }
 0x4b0   : > { %2550 = vmax.xlane.f32.xlu0 %v13566_v0  ;;  %17611 = vst [vmem:[#allocation105_spill] sm:$0xff] %v13658_v36  ;;  %v13661_v59 = vsel %vm1111_vm4, 0.0, %v17537_v13  ;;  %v13665_v20 = vadd.f32 %v13301_v43, %v13641_v58  ;;  %vm1125_vm8 = vmand %vm1054_vm6, %vm12908_vm2  ;;  %vm1045_vm9 = vcmp.eq.s32.totalorder %v980_v18, %v12904_v16  ;;  %v994_v45 = vshra.s32 %v930_v12, 3 }
 0x4b1   : > { %17612 = vst [vmem:[#allocation106_spill] sm:$0xff] %v13661_v59  ;;  %v928_v46 = vand.u32 127, %v862_v7  ;;  %v868_v40 = vadd.s32 504, %v12595_v15  ;;  %v915_v37 = vand.u32 127, %v849_v6  ;;  %v13676_v30 = vadd.f32 %v13397_v11, %v13658_v36  ;;  %vm1116_vm11 = vmand %vm1045_vm9, %vm12908_vm2  ;;  %v13696_v6 = vpop.permute.xlu1 %3451 }
 0x4b2   : > { %2580 = vmax.xlane.f32.xlu1 %v13581_v56  ;;  %vm1046_vm10 = vcmp.eq.s32.totalorder %v981_v63, %v12904_v16  ;;  %v987_v43 = vshra.s32 %v923_v1, 3  ;;  %v13681_v58 = vsel %vm1124_vm7, 0.0, %v17537_v13  ;;  %v863_v5 = vadd.s32 464, %v12595_v15  ;;  %17615 = vst [vmem:[#allocation109_spill] sm:$0xff] %v13696_v6 }
 0x4b3   : > { %17613 = vst [vmem:[#allocation107_spill] sm:$0xff] %v13681_v58  ;;  %v13686_v18 = vadd.f32 %v13299_v60, %v13661_v59  ;;  %v13689_v12 = vsel %vm1125_vm8, 0.0, %v17537_v13  ;;  %vm1059_vm12 = vcmp.eq.s32.totalorder %v994_v45, %v12904_v16  ;;  %v992_v11 = vshra.s32 %v928_v46, 3  ;;  %vm1117_vm13 = vmand %vm1046_vm10, %vm12908_vm2 }
 0x4b4   : > { %2566 = vmax.xlane.f32.xlu0 %v13590_v50  ;;  %17614 = vst [vmem:[#allocation108_spill] sm:$0xff] %v13689_v12  ;;  %v934_v1 = vand.u32 127, %v868_v40  ;;  %v866_v7 = vadd.s32 488, %v12595_v15  ;;  %v13702_v60 = vadd.f32 %v13408_v47, %v13681_v58  ;;  %v861_v63 = vadd.s32 448, %v12595_v15  ;;  %vm1130_vm15 = vmand %vm1059_vm12, %vm12908_vm2 }
 0x4b5   : > { %v979_v59 = vshra.s32 %v915_v37, 3  ;;  %vm1052_vm14 = vcmp.eq.s32.totalorder %v987_v43, %v12904_v16  ;;  %v13708_v45 = vsel %vm1116_vm11, 0.0, %v17537_v13  ;;  %v929_v46 = vand.u32 127, %v863_v5 }
 0x4b6   : > { %2592 = vmax.xlane.f32.xlu1 %v13605_v35  ;;  %17616 = vst [vmem:[#allocation110_spill] sm:$0xff] %v13708_v45  ;;  %v13712_v40 = vadd.f32 %v13364_v38, %v13689_v12  ;;  %v13718_v47 = vsel %vm1117_vm13, 0.0, %v17537_v13  ;;  %vm1057_vm1 = vcmp.eq.s32.totalorder %v992_v11, %v12904_v16  ;;  %v998_v37 = vshra.s32 %v934_v1, 3  ;;  %vm1123_vm3 = vmand %vm1052_vm14, %vm12908_vm2  ;;  %v13733_v1 = vpop.permute.xlu1 %3332 }
 0x4b7   : > { %17617 = vst [vmem:[#allocation111_spill] sm:$0xff] %v13718_v47  ;;  %v932_v43 = vand.u32 127, %v866_v7  ;;  %v13725_v5 = vadd.f32 %v13406_v9, %v13708_v45  ;;  %v927_v38 = vand.u32 127, %v861_v63  ;;  %vm1044_vm4 = vcmp.eq.s32.totalorder %v979_v59, %v12904_v16  ;;  %vm1128_vm5 = vmand %vm1057_vm1, %vm12908_vm2 }
 0x4b8   : > { %2594 = vmax.xlane.f32.xlu0 %v13617_v61  ;;  %v993_v12 = vshra.s32 %v929_v46, 3  ;;  %v13730_v58 = vsel %vm1130_vm15, 0.0, %v17537_v13  ;;  %v867_v11 = vadd.s32 496, %v12595_v15  ;;  %v13737_v7 = vadd.f32 %v13362_v44, %v13718_v47  ;;  %vm1115_vm7 = vmand %vm1044_vm4, %vm12908_vm2 }
 0x4b9   : > { %17618 = vst [vmem:[#allocation112_spill] sm:$0xff] %v13730_v58  ;;  %v13743_v9 = vsel %vm1123_vm3, 0.0, %v17537_v13  ;;  %vm1063_vm6 = vcmp.eq.s32.totalorder %v998_v37, %v12904_v16  ;;  %v996_v59 = vshra.s32 %v932_v43, 3  ;;  %v991_v63 = vshra.s32 %v927_v38, 3 }
 0x4ba   : > { %2576 = vmax.xlane.f32.xlu1 %v13629_v42  ;;  %17619 = vst [vmem:[#allocation113_spill] sm:$0xff] %v13743_v9  ;;  %v13750_v46 = vadd.f32 %v13464_v53, %v13730_v58  ;;  %vm1058_vm8 = vcmp.eq.s32.totalorder %v993_v12, %v12904_v16  ;;  %v13755_v44 = vsel %vm1128_vm5, 0.0, %v17537_v13  ;;  %v933_v47 = vand.u32 127, %v867_v11  ;;  %vm1134_vm9 = vmand %vm1063_vm6, %vm12908_vm2  ;;  %v13769_v12 = vpop.permute.xlu1 %3453 }
 0x4bb   : > { %17620 = vst [vmem:[#allocation114_spill] sm:$0xff] %v13755_v44  ;;  %v865_v45 = vadd.s32 480, %v12595_v15  ;;  %v13760_v37 = vadd.f32 %v13384_v28, %v13743_v9  ;;  %v13766_v53 = vsel %vm1115_vm7, 0.0, %v17537_v13  ;;  %vm1061_vm10 = vcmp.eq.s32.totalorder %v996_v59, %v12904_v16  ;;  %17622 = vst [vmem:[#allocation116_spill] sm:$0xff] %v13769_v12 }
 0x4bc   : > { %2578 = vmax.xlane.f32.xlu0 %v13638_v41  ;;  %17621 = vst [vmem:[#allocation115_spill] sm:$0xff] %v13766_v53  ;;  %vm1129_vm11 = vmand %vm1058_vm8, %vm12908_vm2  ;;  %v13775_v43 = vadd.f32 %v13472_v17, %v13755_v44  ;;  %vm1056_vm12 = vcmp.eq.s32.totalorder %v991_v63, %v12904_v16  ;;  %v997_v28 = vshra.s32 %v933_v47, 3  ;;  %v13780_v11 = vsel %vm1134_vm9, 0.0, %v17537_v13  ;;  %v13810_v44 = vpop.permute.xlu0 %3330 }
 0x4bd   : > { %v931_v38 = vand.u32 127, %v865_v45  ;;  %17623 = vst [vmem:[#allocation117_spill] sm:$0xff] %v13780_v11  ;;  %v13784_v59 = vadd.f32 %v13382_v51, %v13766_v53  ;;  %vm1132_vm13 = vmand %vm1061_vm10, %vm12908_vm2  ;;  %v13790_v17 = vsel %vm1129_vm11, 0.0, %v17537_v13  ;;  %v13796_v45 = vadd.f32 %v13523_v2, %v13780_v11 }
 0x4be   : > { %2604 = vmax.xlane.f32.xlu1 %v13654_v25  ;;  %17624 = vst [vmem:[#allocation118_spill] sm:$0xff] %v13790_v17  ;;  %vm1127_vm14 = vmand %vm1056_vm12, %vm12908_vm2  ;;  %vm1062_vm15 = vcmp.eq.s32.totalorder %v997_v28, %v12904_v16  ;;  %v13801_v47 = vsel %vm1132_vm13, 0.0, %v17537_v13  ;;  %v13803_v63 = vpop.permute.xlu1 %3455  ;;  %v13807_v53 = vadd.f32 %v13446_v52, %v13790_v17  ;;  %vm3795_vm5 = vcmask 785408  }
 0x4bf   : > { %v995_v51 = vshra.s32 %v931_v38, 3  ;;  %17625 = vst [vmem:[#allocation119_spill] sm:$0xff] %v13801_v47  ;;  %17626 = vst [vmem:[#allocation120_spill] sm:$0xff] %v13803_v63  ;;  %v13813_v2 = vsel %vm1127_vm14, 0.0, %v17537_v13  ;;  %v13819_v28 = vadd.f32 %v13530_v10, %v13801_v47  ;;  %vm9174_vm6 = vcmask 1042434  }
 0x4c0   : > { %2590 = vmax.xlane.f32.xlu0 %v13665_v20  ;;  %17627 = vst [vmem:[#allocation121_spill] sm:$0xff] %v13813_v2  ;;  %vm1133_vm1 = vmand %vm1062_vm15, %vm12908_vm2  ;;  %v13825_v52 = vadd.f32 %v13457_v31, %v13813_v2  ;;  %v13836_v10 = vpop.permute.xlu0 %3334  ;;  %vm9177_vm7 = vcmask 1043459   ;;  %vm9180_vm8 = vcmask 1044484   ;;  %vm9183_vm9 = vcmask 1045509  }
 0x4c1   : > { %vm1060_vm3 = vcmp.eq.s32.totalorder %v995_v51, %v12904_v16  ;;  %v13829_v38 = vsel %vm1133_vm1, 0.0, %v17537_v13  ;;  %vm9186_vm10 = vcmask 1046534   ;;  %vm9189_vm11 = vcmask 1047559  }
 0x4c2   : > { %2588 = vmax.xlane.f32.xlu1 %v13676_v30  ;;  %17628 = vst [vmem:[#allocation122_spill] sm:$0xff] %v13829_v38  ;;  %v13831_v17 = vpop.permute.xlu1 %3457  ;;  %vm1131_vm4 = vmand %vm1060_vm3, %vm12908_vm2  ;;  %v13840_v16 = vadd.f32 %v13504_v3, %v13829_v38  ;;  %vm3778_vm2 = vcmask 523264   ;;  %vm9220_vm12 = vcmask 7168  }
 0x4c3   : > { %17629 = vst [vmem:[#allocation123_spill] sm:$0xff] %v13831_v17  ;;  %v13843_v31 = vsel %vm1131_vm4, 0.0, %v17537_v13 }
 0x4c4   : > { %2574 = vmax.xlane.f32.xlu0 %v13686_v18  ;;  %17630 = vst [vmem:[#allocation124_spill] sm:$0xff] %v13843_v31  ;;  %v13850_v2 = vadd.f32 %v13516_v48, %v13843_v31  ;;  %v13852_v27 = vpop.permute.xlu0 %3336 }
 0x4c6   : > { %2600 = vmax.xlane.f32.xlu1 %v13702_v60  ;;  %v13846_v51 = vpop.permute.xlu1 %3459 }
 0x4c7   : > { %17631 = vst [vmem:[#allocation125_spill] sm:$0xff] %v13846_v51 }
 0x4c8   : > { %2602 = vmax.xlane.f32.xlu0 %v13712_v40  ;;  %v13857_v11 = vpop.permute.xlu0 %3338 }
 0x4ca   : > { %2584 = vmax.xlane.f32.xlu1 %v13725_v5  ;;  %v13855_v47 = vpop.permute.xlu1 %3340 }
 0x4cb   : > { %17632 = vst [vmem:[#allocation126_spill] sm:$0xff] %v13855_v47 }
 0x4cc   : > { %2586 = vmax.xlane.f32.xlu0 %v13737_v7 }
 0x4ce   : > { %2612 = vmax.xlane.f32.xlu1 %v13750_v46  ;;  %v13859_v38 = vpop.permute.xlu1 %3461 }
 0x4cf   : > { %17633 = vst [vmem:[#allocation127_spill] sm:$0xff] %v13859_v38 }
 0x4d0   : > { %2598 = vmax.xlane.f32.xlu0 %v13760_v37 }
 0x4d2   : > { %2608 = vmax.xlane.f32.xlu1 %v13775_v43 }
 0x4d4   : > { %2582 = vmax.xlane.f32.xlu0 %v13784_v59 }
 0x4d6   : > { %2620 = vmax.xlane.f32.xlu1 %v13796_v45 }
 0x4d8   : > { %2610 = vmax.xlane.f32.xlu0 %v13807_v53 }
 0x4da   : > { %2616 = vmax.xlane.f32.xlu1 %v13819_v28 }
 0x4dc   : > { %2606 = vmax.xlane.f32.xlu0 %v13825_v52 }
 0x4e0   : > { %2618 = vmax.xlane.f32.xlu0 %v13840_v16 }
 0x4e4   : > { %2614 = vmax.xlane.f32.xlu0 %v13850_v2 }
 0x4ed   : > { %v2499_v3 = vpop.xlane.xlu0 %2498 }
 0x4ee   : > { %v2624_v13 = vsub.f32 %v12930_v57, %v2499_v3 }
 0x4f0   : > { %v2690_v9 = vmul.f32 1.442695, %v2624_v13  ;;  %v2497_v36 = vpop.xlane.xlu1 %2496 }
 0x4f1   : > { %v2495_v58 = vpop.xlane.xlu0 %2494  ;;  %v2623_v29 = vsub.f32 %v12946_v49, %v2497_v36 }
 0x4f2   : > { %11065 = vpow2.f32 %v2690_v9  ;;  %v2622_v48 = vsub.f32 %v12949_v32, %v2495_v58 }
 0x4f3   : > { %v2688_v12 = vmul.f32 1.442695, %v2623_v29 }
 0x4f4   : > { %v2686_v31 = vmul.f32 1.442695, %v2622_v48 }
 0x4f5   : > { %v2501_v15 = vpop.xlane.xlu0 %2500 }
 0x4f6   : > { %11067 = vpow2.f32 %v2686_v31  ;;  %v2625_v51 = vsub.f32 %v12968_v23, %v2501_v15 }
 0x4f7   : > { %v2509_v17 = vpop.xlane.xlu1 %2508 }
 0x4f8   : > { %v2692_v63 = vmul.f32 1.442695, %v2625_v51  ;;  %v2629_v38 = vsub.f32 %v12981_v62, %v2509_v17 }
 0x4f9   : > { %v2507_v6 = vpop.xlane.xlu0 %2506 }
 0x4fa   : > { %11069 = vpow2.f32 %v2692_v63  ;;  %v2628_v57 = vsub.f32 %v12989_v55, %v2507_v6  ;;  %v2700_v58 = vmul.f32 1.442695, %v2629_v38 }
 0x4fb   : > { %v2505_v9 = vpop.xlane.xlu1 %2504  ;;  %11071 = vpow2.f32 %v2688_v12 }
 0x4fc   : > { %v13867_v3 = vpop.eup %11065  ;;  %v2698_v32 = vmul.f32 1.442695, %v2628_v57  ;;  %v2627_v15 = vsub.f32 %v13002_v39, %v2505_v9 }
 0x4fd   : > { %2818 = vadd.xlane.f32.xlu1 %v13867_v3  ;;  %v2503_v49 = vpop.xlane.xlu0 %2502 }
 0x4fe   : > { %11073 = vpow2.f32 %v2698_v32  ;;  %v2626_v23 = vsub.f32 %v13011_v4, %v2503_v49  ;;  %v2696_v6 = vmul.f32 1.442695, %v2627_v15 }
 0x4ff   : > { %v2533_v29 = vpop.xlane.xlu1 %2532  ;;  %11075 = vpow2.f32 %v2700_v58 }
 0x500   : > { %v13872_v62 = vpop.eup %11067  ;;  %v2694_v36 = vmul.f32 1.442695, %v2626_v23  ;;  %v2641_v15 = vsub.f32 %v13029_v14, %v2533_v29 }
 0x501   : > { %2814 = vadd.xlane.f32.xlu1 %v13872_v62  ;;  %v2531_v55 = vpop.xlane.xlu0 %2530 }
 0x502   : > { %11077 = vpow2.f32 %v2694_v36  ;;  %v2640_v12 = vsub.f32 %v13042_v54, %v2531_v55  ;;  %v17634_v55 = vld [vmem:[#allocation54_spill] sm:$0xff] }
 0x503   : > { %v2517_v17 = vpop.xlane.xlu1 %2516  ;;  %11079 = vpow2.f32 %v2696_v6 }
 0x504   : > { %v13876_v63 = vpop.eup %11069  ;;  %v2722_v4 = vmul.f32 1.442695, %v2640_v12  ;;  %v2633_v48 = vsub.f32 %v13054_v24, %v2517_v17 }
 0x505   : > { %2820 = vadd.xlane.f32.xlu1 %v13876_v63  ;;  %v2515_v39 = vpop.xlane.xlu0 %2514  ;;  %v13880_v31 = vpop.eup %11071 }
 0x506   : > { %v2632_v38 = vsub.f32 %v13065_v26, %v2515_v39  ;;  %11081 = vpow2.f32 %v2722_v4  ;;  %v2708_v23 = vmul.f32 1.442695, %v2633_v48  ;;  %v2724_v39 = vmul.f32 1.442695, %v2641_v15  ;;  %v17635_v4 = vld [vmem:[#allocation58_spill] sm:$0xff] }
 0x507   : > { %v2513_v51 = vpop.xlane.xlu1 %2512 }
 0x508   : > { %v13882_v13 = vpop.eup %11073  ;;  %v2706_v57 = vmul.f32 1.442695, %v2632_v38  ;;  %v2631_v36 = vsub.f32 %v13086_v33, %v2513_v51 }
 0x509   : > { %2816 = vadd.xlane.f32.xlu1 %v13880_v31  ;;  %2826 = vadd.xlane.f32.xlu0 %v13882_v13  ;;  %v2527_v54 = vpop.xlane.xlu0 %2526  ;;  %v13888_v32 = vpop.eup %11075 }
 0x50a   : > { %v2638_v9 = vsub.f32 %v13100_v8, %v2527_v54  ;;  %11083 = vpow2.f32 %v2706_v57  ;;  %v2704_v29 = vmul.f32 1.442695, %v2631_v36  ;;  %v17637_v54 = vld [vmem:[#allocation63_spill] sm:$0xff] }
 0x50b   : > { %v2541_v58 = vpop.xlane.xlu1 %2540 }
 0x50c   : > { %v13890_v26 = vpop.eup %11077  ;;  %v2718_v49 = vmul.f32 1.442695, %v2638_v9 }
 0x50d   : > { %2828 = vadd.xlane.f32.xlu0 %v13888_v32  ;;  %2822 = vadd.xlane.f32.xlu1 %v13890_v26  ;;  %v2511_v24 = vpop.xlane.xlu0 %2510  ;;  %v13897_v12 = vpop.eup %11079 }
 0x50e   : > { %11085 = vpow2.f32 %v2718_v49  ;;  %v2630_v8 = vsub.f32 %v17634_v55, %v2511_v24  ;;  %v17640_v55 = vld [vmem:[#allocation66_spill] sm:$0xff] }
 0x50f   : > { %v2525_v6 = vpop.xlane.xlu1 %2524  ;;  %11087 = vpow2.f32 %v2708_v23 }
 0x510   : > { %v2702_v17 = vmul.f32 1.442695, %v2630_v8  ;;  %v13901_v57 = vpop.eup %11081 }
 0x511   : > { %2824 = vadd.xlane.f32.xlu0 %v13897_v12  ;;  %v2529_v14 = vpop.xlane.xlu0 %2528  ;;  %17636 = vst [vmem:[#allocation54_spill] sm:$0xff] %v13901_v57 }
 0x512   : > { %11089 = vpow2.f32 %v2702_v17  ;;  %v2639_v38 = vsub.f32 %v17635_v4, %v2529_v14  ;;  %v17643_v4 = vld [vmem:[#allocation52_spill] sm:$0xff] }
 0x513   : > { %v2537_v48 = vpop.xlane.xlu1 %2536  ;;  %11091 = vpow2.f32 %v2724_v39 }
 0x514   : > { %v2720_v33 = vmul.f32 1.442695, %v2639_v38  ;;  %11093 = vpow2.f32 %v2704_v29  ;;  %v13905_v49 = vpop.eup %11083  ;;  %v2645_v38 = vsub.f32 %v17643_v4, %v2541_v58 }
 0x515   : > { %2850 = vadd.xlane.f32.xlu0 %v13901_v57  ;;  %v2539_v51 = vpop.xlane.xlu0 %2538  ;;  %17638 = vst [vmem:[#allocation58_spill] sm:$0xff] %v13905_v49 }
 0x516   : > { %v2644_v9 = vsub.f32 %v17637_v54, %v2539_v51  ;;  %11095 = vpow2.f32 %v2720_v33  ;;  %v17644_v51 = vld [vmem:[#allocation71_spill] sm:$0xff]  ;;  %v2732_v57 = vmul.f32 1.442695, %v2645_v38 }
 0x517   : > { %v2521_v15 = vpop.xlane.xlu1 %2520 }
 0x518   : > { %v13907_v23 = vpop.eup %11085  ;;  %v2730_v24 = vmul.f32 1.442695, %v2644_v9 }
 0x519   : > { %17639 = vst [vmem:[#allocation63_spill] sm:$0xff] %v13907_v23  ;;  %2834 = vadd.xlane.f32.xlu0 %v13905_v49  ;;  %2846 = vadd.xlane.f32.xlu1 %v13907_v23  ;;  %v2523_v36 = vpop.xlane.xlu0 %2522  ;;  %v13912_v17 = vpop.eup %11087  ;;  %v17647_v23 = vld [vmem:[#allocation56_spill] sm:$0xff] }
 0x51a   : > { %11097 = vpow2.f32 %v2730_v24  ;;  %v2636_v8 = vsub.f32 %v17640_v55, %v2523_v36  ;;  %17641 = vst [vmem:[#allocation66_spill] sm:$0xff] %v13912_v17  ;;  %v2637_v47 = vsub.f32 %v17647_v23, %v2525_v6  ;;  %v17651_v23 = vld [vmem:[#allocation60_spill] sm:$0xff] }
 0x51b   : > { %v13914_v39 = vpop.xlane.xlu1 %2548  ;;  %v2643_v38 = vsub.f32 %v17651_v23, %v2537_v48 }
 0x51c   : > { %v13916_v14 = vpop.eup %11089  ;;  %v2714_v29 = vmul.f32 1.442695, %v2636_v8  ;;  %v17648_v8 = vld [vmem:[#allocation74_spill] sm:$0xff] }
 0x51d   : > { %17642 = vst [vmem:[#allocation128_spill] sm:$0xff] %v13916_v14  ;;  %2836 = vadd.xlane.f32.xlu0 %v13912_v17  ;;  %2830 = vadd.xlane.f32.xlu1 %v13916_v14  ;;  %v2535_v33 = vpop.xlane.xlu0 %2534  ;;  %v13922_v9 = vpop.eup %11091  ;;  %v2716_v14 = vmul.f32 1.442695, %v2637_v47 }
 0x51e   : > { %11099 = vpow2.f32 %v2714_v29  ;;  %v2642_v54 = vsub.f32 %v17644_v51, %v2535_v33  ;;  %17645 = vst [vmem:[#allocation52_spill] sm:$0xff] %v13922_v9  ;;  %v13924_v36 = vpop.eup %11093 }
 0x51f   : > { %v2565_v24 = vpop.xlane.xlu1 %2564  ;;  %17646 = vst [vmem:[#allocation71_spill] sm:$0xff] %v13924_v36 }
 0x520   : > { %v2726_v55 = vmul.f32 1.442695, %v2642_v54  ;;  %v13930_v29 = vpop.eup %11095 }
 0x521   : > { %2832 = vadd.xlane.f32.xlu0 %v13924_v36  ;;  %2852 = vadd.xlane.f32.xlu1 %v13922_v9  ;;  %v2519_v58 = vpop.xlane.xlu0 %2518  ;;  %17649 = vst [vmem:[#allocation56_spill] sm:$0xff] %v13930_v29  ;;  %v17653_v9 = vld [vmem:[#allocation64_spill] sm:$0xff] }
 0x522   : > { %11101 = vpow2.f32 %v2726_v55  ;;  %v2634_v4 = vsub.f32 %v17648_v8, %v2519_v58  ;;  %v2635_v36 = vsub.f32 %v17653_v9, %v2521_v15 }
 0x523   : > { %v2545_v33 = vpop.xlane.xlu1 %2544  ;;  %11103 = vpow2.f32 %v2732_v57  ;;  %v2728_v57 = vmul.f32 1.442695, %v2643_v38 }
 0x524   : > { %v13932_v51 = vpop.eup %11097  ;;  %v2710_v49 = vmul.f32 1.442695, %v2634_v4  ;;  %v2712_v48 = vmul.f32 1.442695, %v2635_v36 }
 0x525   : > { %17650 = vst [vmem:[#allocation74_spill] sm:$0xff] %v13932_v51  ;;  %2848 = vadd.xlane.f32.xlu1 %v13930_v29  ;;  %2858 = vadd.xlane.f32.xlu0 %v13932_v51  ;;  %v2547_v6 = vpop.xlane.xlu0 %2546 }
 0x526   : > { %11105 = vpow2.f32 %v2710_v49  ;;  %v2648_v54 = vsub.f32 %v13368_v22, %v2547_v6  ;;  %v17655_v49 = vld [vmem:[#allocation81_spill] sm:$0xff] }
 0x527   : > { %v2561_v55 = vpop.xlane.xlu1 %2560  ;;  %11107 = vpow2.f32 %v2716_v14  ;;  %v17656_v6 = vld [vmem:[#allocation85_spill] sm:$0xff] }
 0x528   : > { %v13938_v58 = vpop.eup %11099  ;;  %v2738_v8 = vmul.f32 1.442695, %v2648_v54 }
 0x529   : > { %17652 = vst [vmem:[#allocation60_spill] sm:$0xff] %v13938_v58  ;;  %2842 = vadd.xlane.f32.xlu1 %v13938_v58  ;;  %v2563_v47 = vpop.xlane.xlu0 %2562 }
 0x52a   : > { %11109 = vpow2.f32 %v2738_v8  ;;  %v2656_v23 = vsub.f32 %v17655_v49, %v2563_v47  ;;  %v17658_v8 = vld [vmem:[#allocation68_spill] sm:$0xff] }
 0x52b   : > { %v13942_v4 = vpop.xlane.xlu1 %2556  ;;  %11111 = vpow2.f32 %v2728_v57  ;;  %v2649_v58 = vsub.f32 %v17658_v8, %v13914_v39  ;;  %v17659_v57 = vld [vmem:[#allocation72_spill] sm:$0xff] }
 0x52c   : > { %v13944_v51 = vpop.eup %11101  ;;  %11113 = vpow2.f32 %v2712_v48  ;;  %v2754_v36 = vmul.f32 1.442695, %v2656_v23  ;;  %v2657_v49 = vsub.f32 %v17659_v57, %v2565_v24  ;;  %v17662_v39 = vld [vmem:[#allocation76_spill] sm:$0xff] }
 0x52d   : > { %17654 = vst [vmem:[#allocation64_spill] sm:$0xff] %v13944_v51  ;;  %2854 = vadd.xlane.f32.xlu0 %v13944_v51  ;;  %v2543_v22 = vpop.xlane.xlu0 %2542  ;;  %v13949_v54 = vpop.eup %11103  ;;  %v2740_v17 = vmul.f32 1.442695, %v2649_v58  ;;  %v2647_v23 = vsub.f32 %v17662_v39, %v2545_v33 }
 0x52e   : > { %v2646_v14 = vsub.f32 %v17656_v6, %v2543_v22  ;;  %v17660_v22 = vld [vmem:[#allocation89_spill] sm:$0xff]  ;;  %v2756_v24 = vmul.f32 1.442695, %v2657_v49 }
 0x52f   : > { %v13951_v15 = vpop.xlane.xlu1 %2572 }
 0x530   : > { %v13953_v9 = vpop.eup %11105  ;;  %v2734_v38 = vmul.f32 1.442695, %v2646_v14 }
 0x531   : > { %17657 = vst [vmem:[#allocation81_spill] sm:$0xff] %v13953_v9  ;;  %2860 = vadd.xlane.f32.xlu0 %v13949_v54  ;;  %2838 = vadd.xlane.f32.xlu1 %v13953_v9  ;;  %v2559_v47 = vpop.xlane.xlu0 %2558  ;;  %v13961_v51 = vpop.eup %11107  ;;  %v17663_v9 = vld [vmem:[#allocation79_spill] sm:$0xff] }
 0x532   : > { %11115 = vpow2.f32 %v2734_v38  ;;  %v2654_v6 = vsub.f32 %v17660_v22, %v2559_v47  ;;  %v2736_v22 = vmul.f32 1.442695, %v2647_v23 }
 0x533   : > { %v13963_v29 = vpop.xlane.xlu1 %2552  ;;  %11117 = vpow2.f32 %v2754_v36 }
 0x534   : > { %v13965_v14 = vpop.eup %11109  ;;  %v2750_v48 = vmul.f32 1.442695, %v2654_v6  ;;  %v2655_v6 = vsub.f32 %v17663_v9, %v2561_v55 }
 0x535   : > { %17661 = vst [vmem:[#allocation85_spill] sm:$0xff] %v13965_v14  ;;  %2844 = vadd.xlane.f32.xlu0 %v13961_v51  ;;  %2866 = vadd.xlane.f32.xlu1 %v13965_v14  ;;  %v2555_v8 = vpop.xlane.xlu0 %2554  ;;  %v13971_v57 = vpop.eup %11111 }
 0x536   : > { %11119 = vpow2.f32 %v2750_v48  ;;  %v2652_v38 = vsub.f32 %v13508_v19, %v2555_v8  ;;  %v13975_v36 = vpop.eup %11113  ;;  %v2752_v49 = vmul.f32 1.442695, %v2655_v6  ;;  %v17665_v19 = vld [vmem:[#allocation94_spill] sm:$0xff] }
 0x537   : > { %v2569_v47 = vpop.xlane.xlu1 %2568  ;;  %11121 = vpow2.f32 %v2740_v17 }
 0x538   : > { %11123 = vpow2.f32 %v2756_v24  ;;  %v2746_v58 = vmul.f32 1.442695, %v2652_v38  ;;  %v2659_v48 = vsub.f32 %v17665_v19, %v2569_v47 }
 0x539   : > { %2856 = vadd.xlane.f32.xlu0 %v13971_v57  ;;  %v2571_v33 = vpop.xlane.xlu0 %2570  ;;  %11125 = vpow2.f32 %v2736_v22 }
 0x53a   : > { %11127 = vpow2.f32 %v2746_v58  ;;  %v2660_v55 = vsub.f32 %v13538_v34, %v2571_v33  ;;  %v2760_v22 = vmul.f32 1.442695, %v2659_v48 }
 0x53b   : > { %v2597_v39 = vpop.xlane.xlu1 %2596  ;;  %11129 = vpow2.f32 %v2752_v49 }
 0x53c   : > { %v13977_v14 = vpop.eup %11115  ;;  %v2673_v47 = vsub.f32 %v13558_v21, %v2597_v39  ;;  %v2762_v58 = vmul.f32 1.442695, %v2660_v55 }
 0x53d   : > { %17664 = vst [vmem:[#allocation68_spill] sm:$0xff] %v13977_v14  ;;  %2840 = vadd.xlane.f32.xlu0 %v13975_v36  ;;  %2862 = vadd.xlane.f32.xlu1 %v13977_v14  ;;  %v2551_v17 = vpop.xlane.xlu0 %2550  ;;  %v13984_v23 = vpop.eup %11117 }
 0x53e   : > { %v2650_v9 = vsub.f32 %v13566_v0, %v2551_v17  ;;  %17666 = vst [vmem:[#allocation72_spill] sm:$0xff] %v13984_v23  ;;  %v17669_v17 = vld [vmem:[#allocation83_spill] sm:$0xff]  ;;  %v2788_v48 = vmul.f32 1.442695, %v2673_v47 }
 0x53f   : > { %v13986_v8 = vpop.xlane.xlu1 %2580  ;;  %v2653_v49 = vsub.f32 %v17669_v17, %v13942_v4  ;;  %v17672_v4 = vld [vmem:[#allocation87_spill] sm:$0xff] }
 0x540   : > { %v13988_v24 = vpop.eup %11119  ;;  %v2742_v38 = vmul.f32 1.442695, %v2650_v9 }
 0x541   : > { %17667 = vst [vmem:[#allocation89_spill] sm:$0xff] %v13988_v24  ;;  %2882 = vadd.xlane.f32.xlu0 %v13984_v23  ;;  %2878 = vadd.xlane.f32.xlu1 %v13988_v24  ;;  %v2567_v6 = vpop.xlane.xlu0 %2566  ;;  %v13994_v0 = vpop.eup %11121 }
 0x542   : > { %11131 = vpow2.f32 %v2742_v38  ;;  %v2658_v34 = vsub.f32 %v13590_v50, %v2567_v6  ;;  %v13996_v19 = vpop.eup %11123  ;;  %v2748_v6 = vmul.f32 1.442695, %v2653_v49 }
 0x543   : > { %v2593_v33 = vpop.xlane.xlu1 %2592  ;;  %17668 = vst [vmem:[#allocation76_spill] sm:$0xff] %v13996_v19  ;;  %11133 = vpow2.f32 %v2760_v22  ;;  %v14003_v55 = vpop.eup %11125  ;;  %v2661_v22 = vsub.f32 %v17672_v4, %v13951_v15  ;;  %v17675_v15 = vld [vmem:[#allocation91_spill] sm:$0xff] }
 0x544   : > { %11135 = vpow2.f32 %v2762_v58  ;;  %v2758_v21 = vmul.f32 1.442695, %v2658_v34  ;;  %v2671_v39 = vsub.f32 %v13605_v35, %v2593_v33  ;;  %17670 = vst [vmem:[#allocation79_spill] sm:$0xff] %v14003_v55  ;;  %v14007_v38 = vpop.eup %11127 }
 0x545   : > { %2868 = vadd.xlane.f32.xlu0 %v13994_v0  ;;  %2884 = vadd.xlane.f32.xlu1 %v13996_v19  ;;  %v2595_v50 = vpop.xlane.xlu0 %2594  ;;  %17671 = vst [vmem:[#allocation94_spill] sm:$0xff] %v14007_v38  ;;  %11137 = vpow2.f32 %v2788_v48  ;;  %v14013_v58 = vpop.eup %11129  ;;  %v2764_v17 = vmul.f32 1.442695, %v2661_v22  ;;  %v2651_v48 = vsub.f32 %v17675_v15, %v13963_v29 }
 0x546   : > { %11139 = vpow2.f32 %v2758_v21  ;;  %v2784_v47 = vmul.f32 1.442695, %v2671_v39  ;;  %17673 = vst [vmem:[#allocation83_spill] sm:$0xff] %v14013_v58 }
 0x547   : > { %v14005_v9 = vpop.xlane.xlu1 %2576  ;;  %11141 = vpow2.f32 %v2748_v6  ;;  %v2672_v6 = vsub.f32 %v13617_v61, %v2595_v50 }
 0x548   : > { %11143 = vpow2.f32 %v2784_v47 }
 0x549   : > { %2864 = vadd.xlane.f32.xlu0 %v14003_v55  ;;  %2874 = vadd.xlane.f32.xlu1 %v14007_v38  ;;  %v14018_v49 = vpop.xlane.xlu0 %2578  ;;  %11145 = vpow2.f32 %v2764_v17  ;;  %v2786_v17 = vmul.f32 1.442695, %v2672_v6 }
 0x54a   : > { %v2664_v14 = vsub.f32 %v13638_v41, %v14018_v49 }
 0x54b   : > { %v2605_v35 = vpop.xlane.xlu1 %2604 }
 0x54c   : > { %v14015_v34 = vpop.eup %11131  ;;  %v2677_v33 = vsub.f32 %v13654_v25, %v2605_v35  ;;  %v2744_v25 = vmul.f32 1.442695, %v2651_v48 }
 0x54d   : > { %17674 = vst [vmem:[#allocation87_spill] sm:$0xff] %v14015_v34  ;;  %2880 = vadd.xlane.f32.xlu0 %v14013_v58  ;;  %2870 = vadd.xlane.f32.xlu1 %v14015_v34  ;;  %v14024_v39 = vpop.eup %11133  ;;  %v2591_v29 = vpop.xlane.xlu0 %2590 }
 0x54e   : > { %v2796_v21 = vmul.f32 1.442695, %v2677_v33  ;;  %17676 = vst [vmem:[#allocation91_spill] sm:$0xff] %v14024_v39  ;;  %v14028_v38 = vpop.eup %11135  ;;  %v2670_v15 = vsub.f32 %v13665_v20, %v2591_v29 }
 0x54f   : > { %v14026_v4 = vpop.xlane.xlu1 %2588  ;;  %17677 = vst [vmem:[#allocation129_spill] sm:$0xff] %v14028_v38  ;;  %v14033_v22 = vpop.eup %11137 }
 0x550   : > { %11147 = vpow2.f32 %v2796_v21  ;;  %17678 = vst [vmem:[#allocation130_spill] sm:$0xff] %v14033_v22  ;;  %v14035_v35 = vpop.eup %11139 }
 0x551   : > { %2890 = vadd.xlane.f32.xlu0 %v14028_v38  ;;  %2888 = vadd.xlane.f32.xlu1 %v14024_v39  ;;  %17679 = vst [vmem:[#allocation131_spill] sm:$0xff] %v14035_v35  ;;  %11149 = vpow2.f32 %v2744_v25  ;;  %v14041_v38 = vpop.eup %11141  ;;  %v2575_v6 = vpop.xlane.xlu0 %2574 }
 0x552   : > { %17680 = vst [vmem:[#allocation132_spill] sm:$0xff] %v14041_v38  ;;  %v14043_v61 = vpop.eup %11143 }
 0x553   : > { %v2601_v47 = vpop.xlane.xlu1 %2600  ;;  %17681 = vst [vmem:[#allocation133_spill] sm:$0xff] %v14043_v61  ;;  %v14047_v50 = vpop.eup %11145 }
 0x554   : > { %v2675_v33 = vsub.f32 %v13702_v60, %v2601_v47  ;;  %v2782_v60 = vmul.f32 1.442695, %v2670_v15  ;;  %17682 = vst [vmem:[#allocation134_spill] sm:$0xff] %v14047_v50 }
 0x555   : > { %2916 = vadd.xlane.f32.xlu1 %v14033_v22  ;;  %2886 = vadd.xlane.f32.xlu0 %v14035_v35 }
 0x556   : > { %v2792_v48 = vmul.f32 1.442695, %v2675_v33  ;;  %v2603_v33 = vpop.xlane.xlu0 %2602 }
 0x557   : > { %v2676_v23 = vsub.f32 %v13712_v40, %v2603_v33 }
 0x558   : > { %11151 = vpow2.f32 %v2792_v48 }
 0x559   : > { %2912 = vadd.xlane.f32.xlu1 %v14043_v61  ;;  %2876 = vadd.xlane.f32.xlu0 %v14041_v38  ;;  %11153 = vpow2.f32 %v2786_v17  ;;  %v2585_v17 = vpop.xlane.xlu1 %2584  ;;  %v2794_v19 = vmul.f32 1.442695, %v2676_v23  ;;  %v2662_v23 = vsub.f32 %v13686_v18, %v2575_v6 }
 0x55a   : > { %v14049_v21 = vpop.eup %11147  ;;  %11155 = vpow2.f32 %v2782_v60  ;;  %v14065_v15 = vpop.xlane.xlu0 %2586  ;;  %v2667_v40 = vsub.f32 %v13725_v5, %v2585_v17 }
 0x55b   : > { %17683 = vst [vmem:[#allocation135_spill] sm:$0xff] %v14049_v21  ;;  %v14053_v20 = vpop.eup %11149 }
 0x55c   : > { %17684 = vst [vmem:[#allocation136_spill] sm:$0xff] %v14053_v20 }
 0x55d   : > { %2924 = vadd.xlane.f32.xlu1 %v14049_v21  ;;  %2892 = vadd.xlane.f32.xlu0 %v14047_v50  ;;  %v2613_v48 = vpop.xlane.xlu1 %2612  ;;  %v17688_v21 = vld [vmem:[#allocation32_spill] sm:$0xff] }
 0x55e   : > { %v2599_v60 = vpop.xlane.xlu0 %2598  ;;  %v2681_v34 = vsub.f32 %v13750_v46, %v2613_v48  ;;  %v2669_v46 = vsub.f32 %v13676_v30, %v14026_v4 }
 0x560   : > { %v2804_v55 = vmul.f32 1.442695, %v2681_v34  ;;  %v2770_v34 = vmul.f32 1.442695, %v2664_v14 }
 0x561   : > { %2872 = vadd.xlane.f32.xlu0 %v14053_v20  ;;  %v2609_v22 = vpop.xlane.xlu1 %2608 }
 0x562   : > { %v14056_v25 = vpop.eup %11151  ;;  %v14069_v61 = vpop.xlane.xlu0 %2582  ;;  %v2679_v20 = vsub.f32 %v13775_v43, %v2609_v22  ;;  %v2776_v22 = vmul.f32 1.442695, %v2667_v40 }
 0x563   : > { %17685 = vst [vmem:[#allocation137_spill] sm:$0xff] %v14056_v25  ;;  %2920 = vadd.xlane.f32.xlu1 %v14056_v25  ;;  %v14059_v29 = vpop.eup %11153 }
 0x564   : > { %17686 = vst [vmem:[#allocation138_spill] sm:$0xff] %v14059_v29  ;;  %v14062_v47 = vpop.eup %11155  ;;  %v2800_v24 = vmul.f32 1.442695, %v2679_v20 }
 0x565   : > { %2914 = vadd.xlane.f32.xlu0 %v14059_v29  ;;  %17687 = vst [vmem:[#allocation139_spill] sm:$0xff] %v14062_v47  ;;  %v14073_v25 = vpop.xlane.xlu1 %2620 }
 0x566   : > { %v14075_v50 = vpop.xlane.xlu0 %2610 }
 0x569   : > { %2910 = vadd.xlane.f32.xlu0 %v14062_v47  ;;  %v2663_v47 = vsub.f32 %v13629_v42, %v14005_v9  ;;  %v2617_v29 = vpop.xlane.xlu1 %2616 }
 0x56a   : > { %v14079_v39 = vpop.xlane.xlu0 %2606  ;;  %v2683_v30 = vsub.f32 %v13819_v28, %v2617_v29  ;;  %v2685_v28 = vsub.f32 %v13796_v45, %v14073_v25  ;;  %v2668_v45 = vsub.f32 %v13737_v7, %v14065_v15  ;;  %v2680_v7 = vsub.f32 %v13807_v53, %v14075_v50 }
 0x56b   : > { %v2768_v35 = vmul.f32 1.442695, %v2663_v47 }
 0x56c   : > { %v2808_v6 = vmul.f32 1.442695, %v2683_v30  ;;  %v2812_v25 = vmul.f32 1.442695, %v2685_v28 }
 0x56d   : > { %11157 = vpow2.f32 %v2768_v35  ;;  %v2780_v35 = vmul.f32 1.442695, %v2669_v46 }
 0x56e   : > { %v14085_v58 = vpop.xlane.xlu0 %2618  ;;  %11159 = vpow2.f32 %v2794_v19 }
 0x56f   : > { %11161 = vpow2.f32 %v2800_v24  ;;  %v2766_v24 = vmul.f32 1.442695, %v2662_v23 }
 0x570   : > { %11163 = vpow2.f32 %v2804_v55 }
 0x574   : > { %3463 = vrot.lane.b32.xlu1 %v17688_v21, %s12033_s22 }
 0x577   : > { %v14095_v5 = vpop.eup %11157 }
 0x578   : > { %v14099_v18 = vpop.eup %11159 }
 0x579   : > { %v14101_v49 = vpop.eup %11161 }
 0x57a   : > { %v14105_v4 = vpop.eup %11163 }
 0x57f   : > { %3342 = vrot.lane.b32.xlu0 %v17688_v21, %s12032_s3  ;;  %v2674_v21 = vsub.f32 %v13760_v37, %v2599_v60  ;;  %v14092_v37 = vpop.xlane.xlu0 %2614 }
 0x581   : > { %v2790_v9 = vmul.f32 1.442695, %v2674_v21 }
 0x583   : > { %11165 = vpow2.f32 %v2790_v9 }
 0x58a   : > { %v2819_v38 = vpop.xlane.xlu1 %2818 }
 0x58d   : > { %v14108_v20 = vpop.eup %11165 }
 0x58e   : > { %v2815_v42 = vpop.xlane.xlu1 %2814 }
 0x592   : > { %v2821_v43 = vpop.xlane.xlu1 %2820 }
 0x593   : > { %11167 = vrcp.f32 %v2821_v43  ;;  %v2778_v43 = vmul.f32 1.442695, %v2668_v45 }
 0x594   : > { %11169 = vrcp.f32 %v2815_v42  ;;  %v2666_v42 = vsub.f32 %v13784_v59, %v14069_v61 }
 0x595   : > { %11171 = vrcp.f32 %v2819_v38  ;;  %v2665_v38 = vsub.f32 %v13581_v56, %v13986_v8  ;;  %v2678_v8 = vsub.f32 %v13825_v52, %v14079_v39 }
 0x596   : > { %v2817_v41 = vpop.xlane.xlu1 %2816  ;;  %v2827_v19 = vpop.xlane.xlu0 %2826  ;;  %v2774_v23 = vmul.f32 1.442695, %v2666_v42  ;;  %v17690_v42 = vld [vmem:[#allocation66_spill] sm:$0xff] }
 0x597   : > { %11173 = vrcp.f32 %v2817_v41  ;;  %v2772_v56 = vmul.f32 1.442695, %v2665_v38 }
 0x598   : > { %11175 = vpow2.f32 %v2770_v34  ;;  %2896 = vadd.xlane.f32.xlu1 %v14095_v5 }
 0x599   : > { %11177 = vpow2.f32 %v2776_v22  ;;  %v2802_v22 = vmul.f32 1.442695, %v2680_v7 }
 0x59a   : > { %11179 = vpow2.f32 %v2780_v35  ;;  %v2823_v14 = vpop.xlane.xlu1 %2822  ;;  %v2829_v55 = vpop.xlane.xlu0 %2828  ;;  %v17689_v35 = vld [vmem:[#allocation34_spill] sm:$0xff] }
 0x59b   : > { %11181 = vpow2.f32 %v2766_v24 }
 0x59c   : > { %11183 = vrcp.f32 %v2829_v55  ;;  %2928 = vadd.xlane.f32.xlu1 %v14101_v49 }
 0x59d   : > { %11185 = vrcp.f32 %v2823_v14  ;;  %v11168_v29 = vpop.eup %11167 }
 0x59e   : > { %11187 = vrcp.f32 %v2827_v19  ;;  %2922 = vadd.xlane.f32.xlu0 %v14099_v18  ;;  %v2825_v47 = vpop.xlane.xlu0 %2824  ;;  %v11170_v33 = vpop.eup %11169  ;;  %v3009_v60 = vmul.f32 %v11168_v29, %v13876_v63  ;;  %v2798_v63 = vmul.f32 1.442695, %v2678_v8 }
 0x59f   : > { %11189 = vrcp.f32 %v2825_v47  ;;  %v11172_v17 = vpop.eup %11171  ;;  %v3006_v39 = vmul.f32 %v11170_v33, %v13872_v62 }
 0x5a0   : > { %2932 = vadd.xlane.f32.xlu1 %v14105_v4  ;;  %11191 = vpow2.f32 %v2808_v6  ;;  %v3008_v15 = vmul.f32 %v11172_v17, %v13867_v3 }
 0x5a1   : > { %v11174_v48 = vpop.eup %11173  ;;  %11193 = vpow2.f32 %v2772_v56 }
 0x5a2   : > { %v14119_v21 = vpop.eup %11175  ;;  %2918 = vadd.xlane.f32.xlu0 %v14108_v20  ;;  %v14124_v52 = vpop.xlane.xlu0 %2850  ;;  %v3007_v9 = vmul.f32 %v11174_v48, %v13880_v31  ;;  %11195 = vpow2.f32 %v2812_v25  ;;  %v3071_v62 = vpack.c.bf16 %v3009_v60, %v3008_v15 }
 0x5a3   : > { %v14128_v40 = vpop.eup %11177  ;;  %11197 = vpow2.f32 %v2798_v63  ;;  %v17692_v63 = vld [vmem:[#allocation71_spill] sm:$0xff] }
 0x5a4   : > { %v14133_v46 = vpop.eup %11179  ;;  %2904 = vadd.xlane.f32.xlu1 %v14128_v40  ;;  %v3070_v59 = vpack.c.bf16 %v3007_v9, %v3006_v39  ;;  %11199 = vpow2.f32 %v2778_v43  ;;  %v17691_v9 = vld [vmem:[#allocation128_spill] sm:$0xff] }
 0x5a5   : > { %v14136_v61 = vpop.eup %11181  ;;  %11201 = vpow2.f32 %v2774_v23  ;;  %v17694_v23 = vld [vmem:[#allocation52_spill] sm:$0xff] }
 0x5a6   : > { %v11184_v31 = vpop.eup %11183  ;;  %10121 = vmatprep.mubr.bf16.mxu1 %v3070_v59  ;;  %v2847_v34 = vpop.xlane.xlu1 %2846  ;;  %2894 = vadd.xlane.f32.xlu0 %v14136_v61  ;;  %11203 = vpow2.f32 %v2802_v22 }
 0x5a7   : > { %v2835_v53 = vpop.xlane.xlu0 %2834  ;;  %v11186_v50 = vpop.eup %11185  ;;  %10122 = vmatmul.mubr.bf16.vlgmr.msra.gmra.mrb[48].mxu1 %v3071_v62  ;;  %v3013_v19 = vmul.f32 %v11184_v31, %v13888_v32 }
 0x5a8   : > { %v11188_v3 = vpop.eup %11187  ;;  %10170 = vmatpush3.bf16.msra.mxu1 %v17689_v35  ;;  %2908 = vadd.xlane.f32.xlu1 %v14133_v46  ;;  %v3010_v14 = vmul.f32 %v11186_v50, %v13890_v26  ;;  %11205 = vrcp.f32 %v2835_v53  ;;  %v17695_v53 = vld [vmem:[#allocation126_spill] sm:$0xff]  ;;  %v17696_v35 = vld [vmem:[#allocation63_spill] sm:$0xff] }
 0x5a9   : > { %v11190_v41 = vpop.eup %11189  ;;  %10171 = vmatprep.subr.bf16.mxu1 %v13810_v44  ;;  %v3012_v28 = vmul.f32 %v11188_v3, %v13882_v13 }
 0x5aa   : > { %v2831_v24 = vpop.xlane.xlu1 %2830  ;;  %2898 = vadd.xlane.f32.xlu0 %v14119_v21  ;;  %v3011_v55 = vmul.f32 %v11190_v41, %v13897_v12  ;;  %v14146_v38 = vpop.eup %11191 }
 0x5ab   : > { %v2837_v30 = vpop.xlane.xlu0 %2836  ;;  %v14151_v6 = vpop.eup %11193  ;;  %v3073_v29 = vpack.c.bf16 %v3013_v19, %v3012_v28  ;;  %v17697_v19 = vld [vmem:[#allocation56_spill] sm:$0xff] }
 0x5ac   : > { %10172 = vmatpush3.bf16.msra.mxu1 %v13810_v44  ;;  %2936 = vadd.xlane.f32.xlu1 %v14146_v38  ;;  %v3072_v32 = vpack.c.bf16 %v3011_v55, %v3010_v14  ;;  %11207 = vrcp.f32 %v2837_v30  ;;  %v14155_v47 = vpop.eup %11195  ;;  %v2682_v44 = vsub.f32 %v13850_v2, %v14092_v37  ;;  %v2684_v2 = vsub.f32 %v13840_v16, %v14085_v58  ;;  %v17698_v30 = vld [vmem:[#allocation54_spill] sm:$0xff] }
 0x5ad   : > { %10173 = vmatprep.subr.bf16.mxu1 %v13733_v1  ;;  %11209 = vrcp.f32 %v2831_v24  ;;  %v14161_v13 = vpop.eup %11197 }
 0x5ae   : > { %v2853_v26 = vpop.xlane.xlu1 %2852  ;;  %2900 = vadd.xlane.f32.xlu0 %v14151_v6  ;;  %10125 = vmatprep.mubr.bf16.mxu1 %v3072_v32  ;;  %v14166_v56 = vpop.eup %11199  ;;  %v2806_v37 = vmul.f32 1.442695, %v2682_v44  ;;  %v2810_v25 = vmul.f32 1.442695, %v2684_v2  ;;  %v17700_v44 = vld [vmem:[#allocation109_spill] sm:$0xff] }
 0x5af   : > { %v2833_v12 = vpop.xlane.xlu0 %2832  ;;  %11211 = vrcp.f32 %v2853_v26  ;;  %10126 = vmatmul.mubr.bf16.gmra.mrb[52].mxu1 %v3073_v29  ;;  %v17699_v26 = vld [vmem:[#allocation35_spill] sm:$0xff] }
 0x5b0   : > { %11213 = vrcp.f32 %v2833_v12  ;;  %10174 = vmatpush3.bf16.msra.mxu1 %v13733_v1  ;;  %2940 = vadd.xlane.f32.xlu1 %v14155_v47  ;;  %v14170_v1 = vpop.eup %11201 }
 0x5b1   : > { %11215 = vrcp.f32 %v2847_v34  ;;  %10175 = vmatprep.subr.bf16.mxu1 %v13836_v10  ;;  %v14173_v8 = vpop.eup %11203 }
 0x5b2   : > { %11217 = vrcp.f32 %v14124_v52  ;;  %v2849_v33 = vpop.xlane.xlu1 %2848  ;;  %2926 = vadd.xlane.f32.xlu0 %v14161_v13  ;;  %v11206_v17 = vpop.eup %11205 }
 0x5b3   : > { %11219 = vrcp.f32 %v2849_v33  ;;  %v2859_v48 = vpop.xlane.xlu0 %2858 }
 0x5b4   : > { %10176 = vmatpush3.bf16.msra.mxu1 %v13836_v10  ;;  %11221 = vpow2.f32 %v2806_v37  ;;  %v17701_v37 = vld [vmem:[#allocation116_spill] sm:$0xff] }
 0x5b5   : > { %10177 = vmatprep.subr.bf16.mxu1 %v13852_v27  ;;  %11223 = vpow2.f32 %v2810_v25  ;;  %v17702_v25 = vld [vmem:[#allocation120_spill] sm:$0xff] }
 0x5b6   : > { %2930 = vadd.xlane.f32.xlu0 %v14173_v8  ;;  %v11208_v45 = vpop.eup %11207  ;;  %v2843_v43 = vpop.xlane.xlu1 %2842 }
 0x5b7   : > { %v11210_v60 = vpop.eup %11209  ;;  %v3017_v52 = vmul.f32 %v11208_v45, %v17690_v42 }
 0x5b8   : > { %10178 = vmatpush3.bf16.msra.mxu1 %v13852_v27  ;;  %v3014_v7 = vmul.f32 %v11210_v60, %v17691_v9  ;;  %v17693_v27 = vld [vmem:[#allocation58_spill] sm:$0xff] }
 0x5b9   : > { %v11212_v16 = vpop.eup %11211  ;;  %10179 = vmatprep.subr.bf16.mxu1 %v13857_v11  ;;  %v3016_v62 = vmul.f32 %v11206_v17, %v17693_v27  ;;  %v17705_v27 = vld [vmem:[#allocation74_spill] sm:$0xff] }
 0x5ba   : > { %v11214_v58 = vpop.eup %11213  ;;  %2902 = vadd.xlane.f32.xlu0 %v14170_v1  ;;  %v2855_v10 = vpop.xlane.xlu0 %2854  ;;  %v3025_v34 = vmul.f32 %v11212_v16, %v17694_v23 }
 0x5bb   : > { %v11216_v39 = vpop.eup %11215  ;;  %v3015_v15 = vmul.f32 %v11214_v58, %v17692_v63  ;;  %v3075_v3 = vpack.c.bf16 %v3017_v52, %v3016_v62  ;;  %v17703_v52 = vld [vmem:[#allocation123_spill] sm:$0xff]  ;;  %v17704_v63 = vld [vmem:[#allocation64_spill] sm:$0xff] }
 0x5bc   : > { %v11218_v59 = vpop.eup %11217  ;;  %10180 = vmatpush3.bf16.msra.mxu1 %v13857_v11  ;;  %v3022_v41 = vmul.f32 %v11216_v39, %v17696_v35 }
 0x5bd   : > { %v11220_v31 = vpop.eup %11219  ;;  %10181 = vmatprep.subr.bf16.mxu1 %v17695_v53  ;;  %v3074_v50 = vpack.c.bf16 %v3015_v15, %v3014_v7  ;;  %v3024_v14 = vmul.f32 %v11218_v59, %v17698_v30 }
 0x5be   : > { %2906 = vadd.xlane.f32.xlu0 %v14166_v56  ;;  %v2861_v22 = vpop.xlane.xlu0 %2860  ;;  %v3023_v24 = vmul.f32 %v11220_v31, %v17697_v19  ;;  %v2839_v11 = vpop.xlane.xlu1 %2838 }
 0x5bf   : > { %10129 = vmatprep.mubr.bf16.mxu1 %v3074_v50  ;;  %v14191_v28 = vpop.eup %11221  ;;  %v3079_v32 = vpack.c.bf16 %v3025_v34, %v3024_v14  ;;  %11225 = vrcp.f32 %v2861_v22  ;;  %v17709_v14 = vld [vmem:[#allocation127_spill] sm:$0xff] }
 0x5c0   : > { %10130 = vmatmul.mubr.bf16.gmra.mrb[56].mxu1 %v3075_v3  ;;  %v3078_v55 = vpack.c.bf16 %v3023_v24, %v3022_v41  ;;  %v14196_v12 = vpop.eup %11223  ;;  %11227 = vrcp.f32 %v2855_v10  ;;  %v17708_v24 = vld [vmem:[#allocation60_spill] sm:$0xff] }
 0x5c1   : > { %10182 = vmatpush3.bf16.msra.mxu1 %v17695_v53  ;;  %11229 = vrcp.f32 %v2859_v48  ;;  %v17706_v53 = vld [vmem:[#allocation125_spill] sm:$0xff] }
 0x5c2   : > { %10153 = vmatprep.mubr.bf16.mxu0 %v3078_v55  ;;  %2934 = vadd.xlane.f32.xlu0 %v14191_v28  ;;  %v2845_v29 = vpop.xlane.xlu0 %2844  ;;  %v2867_v33 = vpop.xlane.xlu1 %2866 }
 0x5c3   : > { %10154 = vmatmul.mubr.bf16.vlgmr.msra.gmra.mrb[64].mxu0 %v3079_v32 }
 0x5c4   : > { %10202 = vmatpush3.bf16.msra.mxu0 %v17699_v26 }
 0x5c5   : > { %10203 = vmatprep.subr.bf16.mxu0 %v17700_v44 }
 0x5c6   : > { %2938 = vadd.xlane.f32.xlu0 %v14196_v12  ;;  %v2857_v2 = vpop.xlane.xlu0 %2856 }
 0x5c7   : > { %11231 = vrcp.f32 %v2857_v2 }
 0x5c8   : > { %10204 = vmatpush3.bf16.msra.mxu0 %v17700_v44  ;;  %11233 = vrcp.f32 %v2845_v29 }
 0x5c9   : > { %10205 = vmatprep.subr.bf16.mxu0 %v17701_v37  ;;  %11235 = vrcp.f32 %v2839_v11  ;;  %v11226_v48 = vpop.eup %11225 }
 0x5ca   : > { %v2863_v17 = vpop.xlane.xlu1 %2862  ;;  %v2841_v45 = vpop.xlane.xlu0 %2840  ;;  %11237 = vrcp.f32 %v2843_v43  ;;  %v3029_v39 = vmul.f32 %v11226_v48, %v13949_v54 }
 0x5cb   : > { %11239 = vrcp.f32 %v2841_v45  ;;  %v11228_v58 = vpop.eup %11227 }
 0x5cc   : > { %10206 = vmatpush3.bf16.msra.mxu0 %v17701_v37  ;;  %v11230_v10 = vpop.eup %11229  ;;  %v3026_v15 = vmul.f32 %v11228_v58, %v17704_v63 }
 0x5cd   : > { %10207 = vmatprep.subr.bf16.mxu0 %v17702_v25  ;;  %v3028_v62 = vmul.f32 %v11230_v10, %v17705_v27 }
 0x5ce   : > { %v2879_v60 = vpop.xlane.xlu1 %2878  ;;  %v14204_v16 = vpop.xlane.xlu0 %2882 }
 0x5cf   : > { %v3081_v50 = vpack.c.bf16 %v3029_v39, %v3028_v62  ;;  %v17714_v62 = vld [vmem:[#allocation83_spill] sm:$0xff] }
 0x5d0   : > { %10208 = vmatpush3.bf16.msra.mxu0 %v17702_v25  ;;  %v17710_v25 = vld [vmem:[#allocation68_spill] sm:$0xff] }
 0x5d1   : > { %v11232_v42 = vpop.eup %11231  ;;  %10209 = vmatprep.subr.bf16.mxu0 %v17703_v52 }
 0x5d2   : > { %v2885_v9 = vpop.xlane.xlu1 %2884  ;;  %v2869_v7 = vpop.xlane.xlu0 %2868  ;;  %v3027_v59 = vmul.f32 %v11232_v42, %v13971_v57  ;;  %v17707_v57 = vld [vmem:[#allocation81_spill] sm:$0xff] }
 0x5d3   : > { %v11234_v43 = vpop.eup %11233  ;;  %11241 = vrcp.f32 %v2869_v7  ;;  %v17712_v42 = vld [vmem:[#allocation85_spill] sm:$0xff] }
 0x5d4   : > { %v11236_v31 = vpop.eup %11235  ;;  %10210 = vmatpush3.bf16.msra.mxu0 %v17703_v52  ;;  %v3080_v23 = vpack.c.bf16 %v3027_v59, %v3026_v15  ;;  %11243 = vrcp.f32 %v2863_v17  ;;  %v3021_v35 = vmul.f32 %v11234_v43, %v13961_v51  ;;  %v17713_v43 = vld [vmem:[#allocation89_spill] sm:$0xff] }
 0x5d5   : > { %v11238_v34 = vpop.eup %11237  ;;  %10211 = vmatprep.subr.bf16.mxu0 %v17706_v53  ;;  %11245 = vrcp.f32 %v2867_v33  ;;  %v3018_v41 = vmul.f32 %v11236_v31, %v17707_v57 }
 0x5d6   : > { %v11240_v22 = vpop.eup %11239  ;;  %v2875_v54 = vpop.xlane.xlu1 %2874  ;;  %10157 = vmatprep.mubr.bf16.mxu0 %v3080_v23  ;;  %v3020_v30 = vmul.f32 %v11238_v34, %v17708_v24 }
 0x5d7   : > { %v2865_v3 = vpop.xlane.xlu0 %2864  ;;  %10158 = vmatmul.mubr.bf16.gmra.mrb[68].mxu0 %v3081_v50  ;;  %v3019_v19 = vmul.f32 %v11240_v22, %v13975_v36 }
 0x5d8   : > { %11247 = vrcp.f32 %v2865_v3  ;;  %10212 = vmatpush3.bf16.msra.mxu0 %v17706_v53  ;;  %v3077_v29 = vpack.c.bf16 %v3021_v35, %v3020_v30 }
 0x5d9   : > { %10213 = vmatprep.subr.bf16.mxu0 %v17709_v14  ;;  %v3076_v11 = vpack.c.bf16 %v3019_v19, %v3018_v41  ;;  %11249 = vrcp.f32 %v2879_v60  ;;  %v17711_v60 = vld [vmem:[#allocation79_spill] sm:$0xff] }
 0x5da   : > { %v2871_v55 = vpop.xlane.xlu1 %2870 }
 0x5db   : > { %v2881_v32 = vpop.xlane.xlu0 %2880  ;;  %10133 = vmatprep.mubr.bf16.mxu1 %v3076_v11 }
 0x5dc   : > { %11251 = vrcp.f32 %v2881_v32  ;;  %10134 = vmatmul.mubr.bf16.gmra.mrb[60].mxu1 %v3077_v29  ;;  %10214 = vmatpush3.bf16.msra.mxu0 %v17709_v14  ;;  %v17715_v14 = vld [vmem:[#allocation76_spill] sm:$0xff] }
 0x5dd   : > { %v11242_v36 = vpop.eup %11241  ;;  %11253 = vrcp.f32 %v14204_v16 }
 0x5de   : > { %v2889_v51 = vpop.xlane.xlu1 %2888  ;;  %v11244_v44 = vpop.eup %11243  ;;  %v3033_v45 = vmul.f32 %v11242_v36, %v13994_v0  ;;  %11255 = vrcp.f32 %v2885_v9  ;;  %v17718_v36 = vld [vmem:[#allocation136_spill] sm:$0xff] }
 0x5df   : > { %v2891_v26 = vpop.xlane.xlu0 %2890  ;;  %v11246_v33 = vpop.eup %11245  ;;  %v3030_v48 = vmul.f32 %v11244_v44, %v17710_v25  ;;  %11257 = vrcp.f32 %v2875_v54 }
 0x5e0   : > { %v3032_v52 = vmul.f32 %v11246_v33, %v17712_v42  ;;  %11259 = vrcp.f32 %v2871_v55  ;;  %v17716_v55 = vld [vmem:[#allocation132_spill] sm:$0xff]  ;;  %v17719_v33 = vld [vmem:[#allocation131_spill] sm:$0xff] }
 0x5e2   : > { %v11248_v2 = vpop.eup %11247  ;;  %v2917_v37 = vpop.xlane.xlu1 %2916  ;;  %v3083_v59 = vpack.c.bf16 %v3033_v45, %v3032_v52 }
 0x5e3   : > { %v2887_v17 = vpop.xlane.xlu0 %2886  ;;  %v3031_v58 = vmul.f32 %v11248_v2, %v17711_v60  ;;  %v11250_v10 = vpop.eup %11249 }
 0x5e4   : > { %v3038_v27 = vmul.f32 %v11250_v10, %v17713_v43 }
 0x5e5   : > { %v3082_v39 = vpack.c.bf16 %v3031_v58, %v3030_v48  ;;  %v17722_v58 = vld [vmem:[#allocation91_spill] sm:$0xff] }
 0x5e6   : > { %v11252_v7 = vpop.eup %11251  ;;  %v2913_v63 = vpop.xlane.xlu1 %2912 }
 0x5e7   : > { %v2877_v15 = vpop.xlane.xlu0 %2876  ;;  %10161 = vmatprep.mubr.bf16.mxu0 %v3082_v39  ;;  %v3039_v31 = vmul.f32 %v11252_v7, %v17714_v62  ;;  %v11254_v22 = vpop.eup %11253 }
 0x5e8   : > { %10162 = vmatmul.mubr.bf16.gmra.mrb[72].mxu0 %v3083_v59  ;;  %11261 = vrcp.f32 %v2877_v15  ;;  %v11256_v35 = vpop.eup %11255 }
 0x5e9   : > { %v3086_v0 = vpack.c.bf16 %v3039_v31, %v3038_v27  ;;  %11263 = vrcp.f32 %v2887_v17  ;;  %v11258_v16 = vpop.eup %11257  ;;  %v3041_v11 = vmul.f32 %v11256_v35, %v17715_v14  ;;  %v17720_v17 = vld [vmem:[#allocation72_spill] sm:$0xff]  ;;  %v17723_v27 = vld [vmem:[#allocation138_spill] sm:$0xff] }
 0x5ea   : > { %v14228_v34 = vpop.xlane.xlu1 %2924  ;;  %11265 = vrcp.f32 %v2889_v51  ;;  %v11260_v54 = vpop.eup %11259  ;;  %v17717_v51 = vld [vmem:[#allocation87_spill] sm:$0xff]  ;;  %v3040_v45 = vmul.f32 %v11254_v22, %v17720_v17  ;;  %v17724_v31 = vld [vmem:[#allocation134_spill] sm:$0xff]  ;;  %v17726_v22 = vld [vmem:[#allocation133_spill] sm:$0xff] }
 0x5eb   : > { %v2893_v23 = vpop.xlane.xlu0 %2892  ;;  %10185 = vmatprep.mubr.bf16.mxu1 %v3086_v0  ;;  %v17727_v35 = vld [vmem:[#allocation130_spill] sm:$0xff]  ;;  %v17729_v17 = vld [vmem:[#allocation137_spill] sm:$0xff] }
 0x5ec   : > { %v3087_v39 = vpack.c.bf16 %v3041_v11, %v3040_v45 }
 0x5ef   : > { %v2873_v53 = vpop.xlane.xlu0 %2872 }
 0x5f0   : > { %11267 = vrcp.f32 %v2873_v53  ;;  %v2921_v50 = vpop.xlane.xlu1 %2920 }
 0x5f1   : > { %11269 = vrcp.f32 %v2891_v26  ;;  %v3034_v26 = vmul.f32 %v11260_v54, %v17717_v51 }
 0x5f2   : > { %11271 = vrcp.f32 %v2893_v23  ;;  %v11262_v57 = vpop.eup %11261  ;;  %v17725_v23 = vld [vmem:[#allocation139_spill] sm:$0xff] }
 0x5f3   : > { %v2915_v3 = vpop.xlane.xlu0 %2914  ;;  %v11264_v19 = vpop.eup %11263  ;;  %v3037_v32 = vmul.f32 %v11262_v57, %v17716_v55 }
 0x5f4   : > { %11273 = vrcp.f32 %v2915_v3  ;;  %v3464_v9 = vpop.permute.xlu1 %3463  ;;  %v11266_v24 = vpop.eup %11265  ;;  %v3042_v2 = vmul.f32 %v11264_v19, %v17719_v33 }
 0x5f5   : > { %11275 = vrcp.f32 %v2913_v63  ;;  %10215 = vmatprep.subr.bf16.mxu0 %v3464_v9  ;;  %v3043_v10 = vmul.f32 %v11266_v24, %v17722_v58 }
 0x5f6   : > { %11277 = vrcp.f32 %v2917_v37  ;;  %10216 = vmatpush3.bf16.msra.mxu0 %v3464_v9  ;;  %v17721_v37 = vld [vmem:[#allocation94_spill] sm:$0xff]  ;;  %v17728_v9 = vld [vmem:[#allocation129_spill] sm:$0xff] }
 0x5f7   : > { %v2911_v41 = vpop.xlane.xlu0 %2910  ;;  %v3036_v25 = vmul.f32 %v11258_v16, %v17721_v37  ;;  %v3088_v63 = vpack.c.bf16 %v3043_v10, %v3042_v2  ;;  %v17730_v37 = vld [vmem:[#allocation135_spill] sm:$0xff] }
 0x5f8   : > { %11279 = vrcp.f32 %v2911_v41 }
 0x5f9   : > { %v3085_v52 = vpack.c.bf16 %v3037_v32, %v3036_v25 }
 0x5fa   : > { %v11268_v30 = vpop.eup %11267 }
 0x5fb   : > { %v3343_v29 = vpop.permute.xlu0 %3342  ;;  %v3035_v44 = vmul.f32 %v11268_v30, %v17718_v36  ;;  %v11270_v48 = vpop.eup %11269 }
 0x5fc   : > { %10183 = vmatprep.subr.bf16.mxu1 %v3343_v29  ;;  %v11272_v42 = vpop.eup %11271  ;;  %v3044_v54 = vmul.f32 %v11270_v48, %v17728_v9 }
 0x5fd   : > { %10184 = vmatpush3.bf16.msra.mxu1 %v3343_v29  ;;  %v3084_v60 = vpack.c.bf16 %v3035_v44, %v3034_v26  ;;  %v3045_v0 = vmul.f32 %v11272_v42, %v17724_v31 }
 0x5fe   : > { %v11274_v7 = vpop.eup %11273 }
 0x5ff   : > { %10165 = vmatprep.mubr.bf16.mxu0 %v3084_v60  ;;  %v11276_v15 = vpop.eup %11275  ;;  %v3056_v62 = vmul.f32 %v11274_v7, %v17723_v27  ;;  %v3089_v41 = vpack.c.bf16 %v3045_v0, %v3044_v54 }
 0x600   : > { %10166 = vmatmul.mubr.bf16.gmra.mrb[76].mxu0 %v3085_v52  ;;  %10186 = vmatmul.mubr.bf16.vlgmr.msra.gmra.mrb[64].mxu1 %v3087_v39  ;;  %v11278_v59 = vpop.eup %11277  ;;  %v3055_v3 = vmul.f32 %v11276_v15, %v17726_v22 }
 0x601   : > { %10189 = vmatprep.mubr.bf16.mxu1 %v3088_v63  ;;  %v3057_v16 = vmul.f32 %v11278_v59, %v17727_v35 }
 0x602   : > { %v11280_v43 = vpop.eup %11279 }
 0x603   : > { %v3054_v53 = vmul.f32 %v11280_v43, %v17725_v23  ;;  %v3095_v19 = vpack.c.bf16 %v3057_v16, %v3056_v62 }
 0x605   : > { %v3094_v57 = vpack.c.bf16 %v3055_v3, %v3054_v53 }
 0x607   : > { %10217 = vmatprep.mubr.bf16.mxu0 %v3094_v57 }
 0x608   : > { %10190 = vmatmul.mubr.bf16.gmra.mrb[68].mxu1 %v3089_v41  ;;  %10218 = vmatmul.mubr.bf16.vlgmr.msra.gmra.mrb[80].mxu0 %v3095_v19 }
 0x625   : > { %v2897_v24 = vpop.xlane.xlu1 %2896 }
 0x629   : > { %v2929_v11 = vpop.xlane.xlu1 %2928 }
 0x62b   : > { %v2923_v30 = vpop.xlane.xlu0 %2922 }
 0x62c   : > { %11281 = vrcp.f32 %v2923_v30 }
 0x62d   : > { %11283 = vrcp.f32 %v2921_v50  ;;  %v2933_v29 = vpop.xlane.xlu1 %2932 }
 0x62e   : > { %11285 = vrcp.f32 %v14228_v34 }
 0x62f   : > { %v2919_v14 = vpop.xlane.xlu0 %2918 }
 0x630   : > { %11287 = vrcp.f32 %v2919_v14 }
 0x631   : > { %11289 = vrcp.f32 %v2897_v24  ;;  %v2905_v48 = vpop.xlane.xlu1 %2904 }
 0x633   : > { %v2895_v55 = vpop.xlane.xlu0 %2894 }
 0x634   : > { %11291 = vrcp.f32 %v2895_v55 }
 0x635   : > { %v2909_v39 = vpop.xlane.xlu1 %2908 }
 0x636   : > { %v11282_v32 = vpop.eup %11281 }
 0x637   : > { %v2899_v51 = vpop.xlane.xlu0 %2898  ;;  %v11284_v26 = vpop.eup %11283  ;;  %v3060_v33 = vmul.f32 %v11282_v32, %v14099_v18 }
 0x638   : > { %v11286_v36 = vpop.eup %11285  ;;  %11293 = vrcp.f32 %v2899_v51  ;;  %v3059_v34 = vmul.f32 %v11284_v26, %v17729_v17 }
 0x639   : > { %v3061_v25 = vmul.f32 %v11286_v36, %v17730_v37 }
 0x63a   : > { %v11288_v44 = vpop.eup %11287 }
 0x63b   : > { %v2901_v2 = vpop.xlane.xlu0 %2900  ;;  %v3058_v50 = vmul.f32 %v11288_v44, %v14108_v20  ;;  %v11290_v45 = vpop.eup %11289  ;;  %v3097_v10 = vpack.c.bf16 %v3061_v25, %v3060_v33 }
 0x63c   : > { %11295 = vrcp.f32 %v2901_v2  ;;  %v3047_v18 = vmul.f32 %v11290_v45, %v14095_v5 }
 0x63d   : > { %v3096_v60 = vpack.c.bf16 %v3059_v34, %v3058_v50  ;;  %11297 = vrcp.f32 %v2929_v11 }
 0x63e   : > { %v11292_v58 = vpop.eup %11291 }
 0x63f   : > { %10221 = vmatprep.mubr.bf16.mxu0 %v3096_v60  ;;  %v2927_v42 = vpop.xlane.xlu0 %2926  ;;  %v3046_v52 = vmul.f32 %v11292_v58, %v14136_v61  ;;  %v2937_v61 = vpop.xlane.xlu1 %2936 }
 0x640   : > { %11299 = vrcp.f32 %v2927_v42  ;;  %10222 = vmatmul.mubr.bf16.gmra.mrb[84].mxu0 %v3097_v10 }
 0x641   : > { %v3090_v20 = vpack.c.bf16 %v3047_v18, %v3046_v52  ;;  %11301 = vrcp.f32 %v2933_v29 }
 0x642   : > { %v11294_v63 = vpop.eup %11293 }
 0x643   : > { %10193 = vmatprep.mubr.bf16.mxu1 %v3090_v20  ;;  %v2931_v7 = vpop.xlane.xlu0 %2930  ;;  %v3048_v43 = vmul.f32 %v11294_v63, %v14119_v21  ;;  %v2941_v21 = vpop.xlane.xlu1 %2940 }
 0x644   : > { %11303 = vrcp.f32 %v2931_v7 }
 0x645   : > { %11305 = vrcp.f32 %v2905_v48 }
 0x646   : > { %v11296_v15 = vpop.eup %11295 }
 0x647   : > { %v2903_v59 = vpop.xlane.xlu0 %2902  ;;  %v3049_v27 = vmul.f32 %v11296_v15, %v14151_v6  ;;  %v11298_v62 = vpop.eup %11297 }
 0x648   : > { %11307 = vrcp.f32 %v2903_v59  ;;  %v3063_v53 = vmul.f32 %v11298_v62, %v14101_v49 }
 0x649   : > { %v3091_v5 = vpack.c.bf16 %v3049_v27, %v3048_v43  ;;  %11309 = vrcp.f32 %v2909_v39 }
 0x64a   : > { %v11300_v31 = vpop.eup %11299 }
 0x64b   : > { %10194 = vmatmul.mubr.bf16.gmra.mrb[72].mxu1 %v3091_v5  ;;  %v2907_v0 = vpop.xlane.xlu0 %2906  ;;  %v3062_v23 = vmul.f32 %v11300_v31, %v14161_v13  ;;  %v11302_v22 = vpop.eup %11301 }
 0x64c   : > { %11311 = vrcp.f32 %v2907_v0  ;;  %v3065_v9 = vmul.f32 %v11302_v22, %v14105_v4  ;;  %v10906_v0 = vld [vmem:[#allocation7 + $0x8] sm:$0xff]  }
 0x64d   : > { %v3098_v3 = vpack.c.bf16 %v3063_v53, %v3062_v23  ;;  %11313 = vrcp.f32 %v2937_v61  ;;  %v10905_v61 = vld [vmem:[#allocation7] sm:$0xff]   ;;  %v10907_v53 = vld [vmem:[#allocation7 + $0x10] sm:$0xff]  }
 0x64e   : > { %v11304_v35 = vpop.eup %11303  ;;  %10233 = vmatprep.subr.bf16.mxu1 %v10905_v61 }
 0x64f   : > { %10225 = vmatprep.mubr.bf16.mxu0 %v3098_v3  ;;  %v2935_v6 = vpop.xlane.xlu0 %2934  ;;  %v3064_v16 = vmul.f32 %v11304_v35, %v14173_v8  ;;  %v11306_v54 = vpop.eup %11305  ;;  %10234 = vmatpush3.bf16.msra.mxu1 %v10905_v61 }
 0x650   : > { %11315 = vrcp.f32 %v2935_v6  ;;  %v3051_v19 = vmul.f32 %v11306_v54, %v14128_v40  ;;  %10235 = vmatprep.subr.bf16.mxu1 %v10906_v0  ;;  %v10909_v6 = vld [vmem:[#allocation7 + $0x20] sm:$0xff]  }
 0x651   : > { %v3099_v57 = vpack.c.bf16 %v3065_v9, %v3064_v16  ;;  %11317 = vrcp.f32 %v2941_v21  ;;  %v10908_v21 = vld [vmem:[#allocation7 + $0x18] sm:$0xff]   ;;  %v10910_v16 = vld [vmem:[#allocation7 + $0x28] sm:$0xff]   ;;  %v10911_v9 = vld [vmem:[#allocation7 + $0x30] sm:$0xff]  }
 0x652   : > { %v11308_v41 = vpop.eup %11307 }
 0x653   : > { %10226 = vmatmul.mubr.bf16.gmra.mrb[88].mxu0 %v3099_v57  ;;  %v2939_v13 = vpop.xlane.xlu0 %2938  ;;  %v3050_v49 = vmul.f32 %v11308_v41, %v14170_v1  ;;  %v11310_v24 = vpop.eup %11309  ;;  %10236 = vmatpush3.bf16.msra.mxu1 %v10906_v0 }
 0x654   : > { %11319 = vrcp.f32 %v2939_v13  ;;  %v3053_v4 = vmul.f32 %v11310_v24, %v14133_v46  ;;  %10237 = vmatprep.subr.bf16.mxu1 %v10907_v53 }
 0x655   : > { %v3092_v30 = vpack.c.bf16 %v3051_v19, %v3050_v49 }
 0x656   : > { %v11312_v14 = vpop.eup %11311 }
 0x657   : > { %10197 = vmatprep.mubr.bf16.mxu1 %v3092_v30  ;;  %v3052_v8 = vmul.f32 %v11312_v14, %v14166_v56  ;;  %v11314_v11 = vpop.eup %11313  ;;  %v17731_v56 = vmov 0   ;;  %10238 = vmatpush3.bf16.msra.mxu1 %v10907_v53 }
 0x658   : > { %v3067_v51 = vmul.f32 %v11314_v11, %v14146_v38  ;;  %10239 = vmatprep.subr.bf16.mxu1 %v10908_v21 }
 0x659   : > { %v3093_v55 = vpack.c.bf16 %v3053_v4, %v3052_v8  ;;  %v10912_v4 = vld [vmem:[#allocation7 + $0x38] sm:$0xff]  }
 0x65a   : > { %v11316_v32 = vpop.eup %11315 }
 0x65b   : > { %10198 = vmatmul.mubr.bf16.gmra.mrb[76].mxu1 %v3093_v55  ;;  %v3066_v29 = vmul.f32 %v11316_v32, %v14191_v28  ;;  %v11318_v1 = vpop.eup %11317 }
 0x65c   : > { %v3069_v44 = vmul.f32 %v11318_v1, %v14155_v47  ;;  %10240 = vmatpush3.bf16.msra.mxu1 %v10908_v21 }
 0x65d   : > { %v3100_v26 = vpack.c.bf16 %v3067_v51, %v3066_v29  ;;  %10241 = vmatprep.subr.bf16.mxu1 %v10909_v6 }
 0x65e   : > { %v11320_v40 = vpop.eup %11319 }
 0x65f   : > { %10229 = vmatprep.mubr.bf16.mxu0 %v3100_v26  ;;  %v3068_v36 = vmul.f32 %v11320_v40, %v14196_v12 }
 0x660   : > { %10242 = vmatpush3.bf16.msra.mxu1 %v10909_v6 }
 0x661   : > { %v3101_v33 = vpack.c.bf16 %v3069_v44, %v3068_v36  ;;  %10243 = vmatprep.subr.bf16.mxu1 %v10910_v16 }
 0x663   : > { %10230 = vmatmul.mubr.bf16.gmra.mrb[92].mxu0 %v3101_v33 }
 0x664   : > { %4374 = vmatprep.mubr.bf16.mxu0 %v17731_v56  ;;  %10244 = vmatpush3.bf16.msra.mxu1 %v10910_v16 }
 0x665   : > { %10245 = vmatprep.subr.bf16.mxu1 %v10911_v9 }
 0x668   : > { %10246 = vmatpush3.bf16.msra.mxu1 %v10911_v9 }
 0x669   : > { %10247 = vmatprep.subr.bf16.mxu1 %v10912_v4 }
 0x66c   : > { %10248 = vmatpush3.bf16.msra.mxu1 %v10912_v4 }
 0x67a   : > { %v14266_v46 = vpop.f32.mrb[48].mxu1 }
 0x67b   : > { %v14268_v2 = vpop.f32.mrb[49].mxu1 }
 0x67c   : > { %v14270_v50 = vpop.f32.mrb[50].mxu1 }
 0x67d   : > { %v14272_v28 = vpop.f32.mrb[51].mxu1 }
 0x682   : > { %v14274_v38 = vpop.f32.mrb[52].mxu1 }
 0x683   : > { %v14276_v17 = vpop.f32.mrb[53].mxu1 }
 0x684   : > { %v14278_v34 = vpop.f32.mrb[54].mxu1 }
 0x685   : > { %v14280_v12 = vpop.f32.mrb[55].mxu1 }
 0x693   : > { %v14282_v47 = vpop.f32.mrb[56].mxu1 }
 0x694   : > { %v14284_v45 = vpop.f32.mrb[57].mxu1 }
 0x695   : > { %v14286_v37 = vpop.f32.mrb[58].mxu1 }
 0x696   : > { %v14288_v25 = vpop.f32.mrb[59].mxu1  ;;  %v10155_v48 = vpop.f32.mrb[64].mxu0 }
 0x697   : > { %v3265_v60 = vpop.f32.mrb[65].mxu0 }
 0x698   : > { %v10156_v58 = vpop.f32.mrb[66].mxu0 }
 0x699   : > { %v10629_v10 = vpack.i.bf16 %v10156_v58, %v10155_v48  ;;  %v3268_v42 = vpop.f32.mrb[67].mxu0 }
 0x69a   : > { %v10634_v52 = vpack.i.bf16 %v3268_v42, %v3265_v60 }
 0x69b   : > { %10630 = vrot.lane.b32.xlu1 %v10629_v10, %s12033_s22 }
 0x69c   : > { %10635 = vrot.lane.b32.xlu0 %v10634_v52, %s12033_s22 }
 0x6aa   : > { %v14292_v18 = vpop.f32.mrb[68].mxu0 }
 0x6ab   : > { %v14294_v20 = vpop.f32.mrb[69].mxu0 }
 0x6ac   : > { %v14296_v39 = vpop.f32.mrb[70].mxu0 }
 0x6ad   : > { %v10664_v7 = vpack.i.bf16 %v14296_v39, %v14292_v18  ;;  %v14300_v63 = vpop.f32.mrb[71].mxu0 }
 0x6ae   : > { %v10659_v15 = vpack.i.bf16 %v14300_v63, %v14294_v20 }
 0x6af   : > { %v14304_v59 = vpop.f32.mrb[60].mxu1 }
 0x6b0   : > { %v14306_v43 = vpop.f32.mrb[61].mxu1 }
 0x6b1   : > { %v14308_v27 = vpop.f32.mrb[62].mxu1 }
 0x6b2   : > { %v14310_v62 = vpop.f32.mrb[63].mxu1 }
 0x6bb   : > { %v14312_v5 = vpop.f32.mrb[72].mxu0 }
 0x6bc   : > { %v14314_v31 = vpop.f32.mrb[73].mxu0 }
 0x6bd   : > { %v14316_v23 = vpop.f32.mrb[74].mxu0 }
 0x6be   : > { %v10694_v22 = vpack.i.bf16 %v14316_v23, %v14312_v5  ;;  %v3300_v3 = vpop.f32.mrb[75].mxu0 }
 0x6bf   : > { %v10689_v35 = vpack.i.bf16 %v3300_v3, %v14314_v31 }
 0x6d3   : > { %v14321_v54 = vpop.f32.mrb[76].mxu0  ;;  %v10187_v57 = vpop.f32.mrb[64].mxu1 }
 0x6d4   : > { %v14323_v41 = vpop.f32.mrb[77].mxu0  ;;  %v3386_v13 = vpop.f32.mrb[65].mxu1 }
 0x6d5   : > { %v10168_v49 = vpop.f32.mrb[78].mxu0  ;;  %v10188_v19 = vpop.f32.mrb[66].mxu1 }
 0x6d6   : > { %v10724_v24 = vpack.i.bf16 %v10168_v49, %v14321_v54  ;;  %v10639_v30 = vpack.i.bf16 %v10188_v19, %v10187_v57  ;;  %v3316_v14 = vpop.f32.mrb[79].mxu0  ;;  %v3389_v8 = vpop.f32.mrb[67].mxu1 }
 0x6d7   : > { %v10719_v11 = vpack.i.bf16 %v3316_v14, %v14323_v41  ;;  %v10644_v55 = vpack.i.bf16 %v3389_v8, %v3386_v13 }
 0x6d8   : > { %10640 = vrot.lane.b32.xlu1 %v10639_v30, %s12032_s3 }
 0x6db   : > { %v10191_v32 = vpop.f32.mrb[68].mxu1  ;;  %v10219_v29 = vpop.f32.mrb[80].mxu0 }
 0x6dc   : > { %v3507_v51 = vpop.f32.mrb[81].mxu0  ;;  %10645 = vrot.lane.b32.xlu1 %v10644_v55, %s12032_s3  ;;  %v3402_v1 = vpop.f32.mrb[69].mxu1 }
 0x6dd   : > { %v10192_v26 = vpop.f32.mrb[70].mxu1  ;;  %v10220_v40 = vpop.f32.mrb[82].mxu0 }
 0x6de   : > { %v10674_v36 = vpack.i.bf16 %v10192_v26, %v10191_v32  ;;  %v10654_v44 = vpack.i.bf16 %v10220_v40, %v10219_v29  ;;  %v3405_v33 = vpop.f32.mrb[71].mxu1  ;;  %v3510_v48 = vpop.f32.mrb[83].mxu0 }
 0x6df   : > { %v10669_v60 = vpack.i.bf16 %v3405_v33, %v3402_v1  ;;  %v10649_v58 = vpack.i.bf16 %v3510_v48, %v3507_v51 }
 0x6e0   : > { %10655 = vrot.lane.b32.xlu1 %v10654_v44, %s12031_s18 }
 0x6e1   : > { %10650 = vrot.lane.b32.xlu0 %v10649_v58, %s12031_s18 }
 0x6e4   : > { %10665 = vrot.lane.b32.xlu1 %v10664_v7, %s12033_s22 }
 0x6e5   : > { %10660 = vrot.lane.b32.xlu0 %v10659_v15, %s12033_s22 }
 0x6e8   : > { %10675 = vrot.lane.b32.xlu1 %v10674_v36, %s12032_s3 }
 0x6e9   : > { %10670 = vrot.lane.b32.xlu0 %v10669_v60, %s12032_s3 }
 0x70e   : > { %v10636_v4 = vpop.permute.xlu0 %10635 }
 0x70f   : > { %v10638_v29 = vunpack.i.h.bf16 %v10636_v4  ;;  %v10637_v51 = vunpack.i.l.bf16 %v10636_v4 }
 0x711   : > { %v3763_v60 = vsel %vm1889_vm0, %v14272_v28, %v10638_v29  ;;  %v3762_v58 = vsel %vm1889_vm0, %v14268_v2, %v10637_v51 }
 0x713   : > { %v10223_v10 = vpop.f32.mrb[84].mxu0 }
 0x714   : > { %v3523_v42 = vpop.f32.mrb[85].mxu0 }
 0x715   : > { %v10224_v52 = vpop.f32.mrb[86].mxu0 }
 0x716   : > { %v10684_v61 = vpack.i.bf16 %v10224_v52, %v10223_v10  ;;  %v3526_v5 = vpop.f32.mrb[87].mxu0 }
 0x717   : > { %v10679_v31 = vpack.i.bf16 %v3526_v5, %v3523_v42 }
 0x718   : > { %10685 = vrot.lane.b32.xlu1 %v10684_v61, %s12031_s18 }
 0x719   : > { %10680 = vrot.lane.b32.xlu0 %v10679_v31, %s12031_s18 }
 0x71c   : > { %10695 = vrot.lane.b32.xlu1 %v10694_v22, %s12033_s22 }
 0x71d   : > { %10690 = vrot.lane.b32.xlu0 %v10689_v35, %s12033_s22 }
 0x71e   : > { %v10195_v18 = vpop.f32.mrb[72].mxu1 }
 0x71f   : > { %v3418_v20 = vpop.f32.mrb[73].mxu1 }
 0x720   : > { %v10196_v39 = vpop.f32.mrb[74].mxu1 }
 0x721   : > { %v10704_v7 = vpack.i.bf16 %v10196_v39, %v10195_v18  ;;  %v3421_v63 = vpop.f32.mrb[75].mxu1 }
 0x722   : > { %v10699_v15 = vpack.i.bf16 %v3421_v63, %v3418_v20 }
 0x723   : > { %10705 = vrot.lane.b32.xlu1 %v10704_v7, %s12032_s3 }
 0x724   : > { %10700 = vrot.lane.b32.xlu0 %v10699_v15, %s12032_s3 }
 0x726   : > { %v10227_v0 = vpop.f32.mrb[88].mxu0 }
 0x727   : > { %v3539_v23 = vpop.f32.mrb[89].mxu0 }
 0x728   : > { %v10228_v53 = vpop.f32.mrb[90].mxu0 }
 0x729   : > { %v10714_v3 = vpack.i.bf16 %v10228_v53, %v10227_v0  ;;  %v3542_v21 = vpop.f32.mrb[91].mxu0 }
 0x72a   : > { %v10709_v6 = vpack.i.bf16 %v3542_v21, %v3539_v23 }
 0x72b   : > { %10715 = vrot.lane.b32.xlu1 %v10714_v3, %s12031_s18 }
 0x72c   : > { %10710 = vrot.lane.b32.xlu0 %v10709_v6, %s12031_s18 }
 0x72e   : > { %v10199_v22 = vpop.f32.mrb[76].mxu1 }
 0x72f   : > { %10725 = vrot.lane.b32.xlu1 %v10724_v24, %s12033_s22  ;;  %v3434_v35 = vpop.f32.mrb[77].mxu1  ;;  %v10631_v24 = vpop.permute.xlu1 %10630 }
 0x730   : > { %10720 = vrot.lane.b32.xlu0 %v10719_v11, %s12033_s22  ;;  %v10200_v16 = vpop.f32.mrb[78].mxu1  ;;  %v10633_v11 = vunpack.i.h.bf16 %v10631_v24  ;;  %v10632_v55 = vunpack.i.l.bf16 %v10631_v24 }
 0x731   : > { %v10734_v9 = vpack.i.bf16 %v10200_v16, %v10199_v22  ;;  %v3437_v54 = vpop.f32.mrb[79].mxu1 }
 0x732   : > { %v10729_v57 = vpack.i.bf16 %v3437_v54, %v3434_v35  ;;  %v3765_v44 = vsel %vm1889_vm0, %v14270_v50, %v10633_v11  ;;  %v3764_v33 = vsel %vm1889_vm0, %v14266_v46, %v10632_v55 }
 0x733   : > { %10735 = vrot.lane.b32.xlu1 %v10734_v9, %s12032_s3 }
 0x734   : > { %10730 = vrot.lane.b32.xlu0 %v10729_v57, %s12032_s3 }
 0x736   : > { %v10231_v41 = vpop.f32.mrb[92].mxu0 }
 0x737   : > { %v3555_v13 = vpop.f32.mrb[93].mxu0 }
 0x738   : > { %v10232_v49 = vpop.f32.mrb[94].mxu0 }
 0x739   : > { %v10744_v19 = vpack.i.bf16 %v10232_v49, %v10231_v41  ;;  %v3558_v30 = vpop.f32.mrb[95].mxu0 }
 0x73a   : > { %v10739_v14 = vpack.i.bf16 %v3558_v30, %v3555_v13 }
 0x73b   : > { %10745 = vrot.lane.b32.xlu1 %v10744_v19, %s12031_s18 }
 0x73c   : > { %10740 = vrot.lane.b32.xlu0 %v10739_v14, %s12031_s18 }
 0x74a   : > { %v10641_v8 = vpop.permute.xlu1 %10640 }
 0x74b   : > { %v10643_v1 = vunpack.i.h.bf16 %v10641_v8  ;;  %v10642_v26 = vunpack.i.l.bf16 %v10641_v8 }
 0x74d   : > { %v3782_v61 = vsel %vm3778_vm2, %v3765_v44, %v10643_v1  ;;  %v3781_v5 = vsel %vm3778_vm2, %v3764_v33, %v10642_v26 }
 0x74e   : > { %v10646_v32 = vpop.permute.xlu1 %10645 }
 0x74f   : > { %v10648_v40 = vunpack.i.h.bf16 %v10646_v32  ;;  %v10647_v36 = vunpack.i.l.bf16 %v10646_v32 }
 0x751   : > { %v3779_v18 = vsel %vm3778_vm2, %v3762_v58, %v10647_v36  ;;  %v3780_v46 = vsel %vm3778_vm2, %v3763_v60, %v10648_v40 }
 0x752   : > { %v10656_v48 = vpop.permute.xlu1 %10655 }
 0x753   : > { %v10658_v10 = vunpack.i.h.bf16 %v10656_v48  ;;  %v10657_v42 = vunpack.i.l.bf16 %v10656_v48  ;;  %v10651_v52 = vpop.permute.xlu0 %10650 }
 0x754   : > { %v10653_v31 = vunpack.i.h.bf16 %v10651_v52  ;;  %v10652_v50 = vunpack.i.l.bf16 %v10651_v52 }
 0x755   : > { %v3799_v20 = vsel %vm3795_vm5, %v3782_v61, %v10658_v10  ;;  %v3798_v28 = vsel %vm3795_vm5, %v3781_v5, %v10657_v42 }
 0x756   : > { %v3813_v39 = vpack.c.bf16 %v3799_v20, %v3798_v28  ;;  %v3796_v2 = vsel %vm3795_vm5, %v3779_v18, %v10652_v50  ;;  %v3797_v7 = vsel %vm3795_vm5, %v3780_v46, %v10653_v31  ;;  %v10666_v15 = vpop.permute.xlu1 %10665 }
 0x757   : > { %v3812_v63 = vpack.c.bf16 %v3797_v7, %v3796_v2  ;;  %v10661_v0 = vpop.permute.xlu0 %10660  ;;  %v10668_v53 = vunpack.i.h.bf16 %v10666_v15  ;;  %v10667_v3 = vunpack.i.l.bf16 %v10666_v15 }
 0x758   : > { %v10663_v6 = vunpack.i.h.bf16 %v10661_v0  ;;  %v10662_v22 = vunpack.i.l.bf16 %v10661_v0 }
 0x759   : > { %10249 = vmatprep.mubr.bf16.mxu1 %v3812_v63  ;;  %v3769_v57 = vsel %vm1889_vm0, %v14278_v34, %v10668_v53  ;;  %v3768_v41 = vsel %vm1889_vm0, %v14274_v38, %v10667_v3 }
 0x75a   : > { %10250 = vmatmul.mubr.bf16.vlgmr.msra.gmra.mrb[80].mxu1 %v3813_v39  ;;  %v10676_v23 = vpop.permute.xlu1 %10675  ;;  %v3767_v49 = vsel %vm1889_vm0, %v14280_v12, %v10663_v6  ;;  %v3766_v19 = vsel %vm1889_vm0, %v14276_v17, %v10662_v22 }
 0x75b   : > { %v10671_v21 = vpop.permute.xlu0 %10670  ;;  %v10678_v35 = vunpack.i.h.bf16 %v10676_v23  ;;  %v10677_v16 = vunpack.i.l.bf16 %v10676_v23 }
 0x75c   : > { %v10673_v9 = vunpack.i.h.bf16 %v10671_v21  ;;  %v10672_v54 = vunpack.i.l.bf16 %v10671_v21 }
 0x75d   : > { %v3786_v8 = vsel %vm3778_vm2, %v3769_v57, %v10678_v35  ;;  %v3785_v4 = vsel %vm3778_vm2, %v3768_v41, %v10677_v16 }
 0x75e   : > { %v3783_v34 = vsel %vm3778_vm2, %v3766_v19, %v10672_v54  ;;  %v3784_v38 = vsel %vm3778_vm2, %v3767_v49, %v10673_v9 }
 0x78a   : > { %v10686_v13 = vpop.permute.xlu1 %10685 }
 0x78b   : > { %v10688_v30 = vunpack.i.h.bf16 %v10686_v13  ;;  %v10687_v14 = vunpack.i.l.bf16 %v10686_v13  ;;  %v10681_v24 = vpop.permute.xlu0 %10680 }
 0x78c   : > { %v10683_v11 = vunpack.i.h.bf16 %v10681_v24  ;;  %v10682_v55 = vunpack.i.l.bf16 %v10681_v24 }
 0x78d   : > { %v3802_v32 = vsel %vm3795_vm5, %v3785_v4, %v10687_v14  ;;  %v3803_v12 = vsel %vm3795_vm5, %v3786_v8, %v10688_v30 }
 0x78e   : > { %v3800_v29 = vsel %vm3795_vm5, %v3783_v34, %v10682_v55  ;;  %v3801_v17 = vsel %vm3795_vm5, %v3784_v38, %v10683_v11  ;;  %v3815_v51 = vpack.c.bf16 %v3803_v12, %v3802_v32  ;;  %v10696_v26 = vpop.permute.xlu1 %10695 }
 0x78f   : > { %v3814_v1 = vpack.c.bf16 %v3801_v17, %v3800_v29  ;;  %v10691_v40 = vpop.permute.xlu0 %10690  ;;  %v10698_v44 = vunpack.i.h.bf16 %v10696_v26  ;;  %v10697_v33 = vunpack.i.l.bf16 %v10696_v26 }
 0x790   : > { %v10693_v60 = vunpack.i.h.bf16 %v10691_v40  ;;  %v10692_v58 = vunpack.i.l.bf16 %v10691_v40  ;;  %v9428_v40 = vld [vmem:[%s17218_s8] ss:$0 sm:$0xff] }
 0x791   : > { %10253 = vmatprep.mubr.bf16.mxu1 %v3814_v1  ;;  %v3773_v5 = vsel %vm1889_vm0, %v14286_v37, %v10698_v44  ;;  %v3772_v31 = vsel %vm1889_vm0, %v14282_v47, %v10697_v33 }
 0x792   : > { %10254 = vmatmul.mubr.bf16.gmra.mrb[84].mxu1 %v3815_v51  ;;  %v3771_v18 = vsel %vm1889_vm0, %v14288_v25, %v10693_v60  ;;  %v3770_v46 = vsel %vm1889_vm0, %v14284_v45, %v10692_v58 }
 0x795   : > { %v10706_v36 = vpop.permute.xlu1 %10705 }
 0x796   : > { %v10701_v48 = vpop.permute.xlu0 %10700  ;;  %v10708_v10 = vunpack.i.h.bf16 %v10706_v36  ;;  %v10707_v42 = vunpack.i.l.bf16 %v10706_v36 }
 0x797   : > { %v10703_v52 = vunpack.i.h.bf16 %v10701_v48  ;;  %v10702_v61 = vunpack.i.l.bf16 %v10701_v48 }
 0x798   : > { %v3790_v2 = vsel %vm3778_vm2, %v3773_v5, %v10708_v10  ;;  %v3789_v7 = vsel %vm3778_vm2, %v3772_v31, %v10707_v42  ;;  %v17732_v10 = vld [vmem:[#allocation14_spill] sm:$0xff]  ;;  %v17734_v31 = vld [vmem:[#allocation16_spill] sm:$0xff] }
 0x799   : > { %v3787_v37 = vsel %vm3778_vm2, %v3770_v46, %v10702_v61  ;;  %v3788_v47 = vsel %vm3778_vm2, %v3771_v18, %v10703_v52  ;;  %v17733_v61 = vld [vmem:[#allocation15_spill] sm:$0xff]  ;;  %v17735_v46 = vld [vmem:[#allocation17_spill] sm:$0xff] }
 0x79d   : > { %v10716_v50 = vpop.permute.xlu1 %10715 }
 0x79e   : > { %v10718_v20 = vunpack.i.h.bf16 %v10716_v50  ;;  %v10717_v28 = vunpack.i.l.bf16 %v10716_v50  ;;  %v10711_v39 = vpop.permute.xlu0 %10710 }
 0x79f   : > { %v10713_v63 = vunpack.i.h.bf16 %v10711_v39  ;;  %v10712_v15 = vunpack.i.l.bf16 %v10711_v39 }
 0x7a0   : > { %v3806_v0 = vsel %vm3795_vm5, %v3789_v7, %v10717_v28  ;;  %v3807_v25 = vsel %vm3795_vm5, %v3790_v2, %v10718_v20 }
 0x7a1   : > { %v3804_v23 = vsel %vm3795_vm5, %v3787_v37, %v10712_v15  ;;  %v3805_v45 = vsel %vm3795_vm5, %v3788_v47, %v10713_v63  ;;  %v3817_v53 = vpack.c.bf16 %v3807_v25, %v3806_v0  ;;  %v10726_v3 = vpop.permute.xlu1 %10725  ;;  %v17736_v37 = vld [vmem:[#allocation18_spill] sm:$0xff] }
 0x7a2   : > { %v3816_v21 = vpack.c.bf16 %v3805_v45, %v3804_v23  ;;  %v10721_v6 = vpop.permute.xlu0 %10720  ;;  %v10728_v35 = vunpack.i.h.bf16 %v10726_v3  ;;  %v10727_v16 = vunpack.i.l.bf16 %v10726_v3  ;;  %v17737_v23 = vld [vmem:[#allocation19_spill] sm:$0xff] }
 0x7a3   : > { %v10723_v54 = vunpack.i.h.bf16 %v10721_v6  ;;  %v10722_v57 = vunpack.i.l.bf16 %v10721_v6 }
 0x7a4   : > { %10257 = vmatprep.mubr.bf16.mxu1 %v3816_v21  ;;  %v3777_v30 = vsel %vm1889_vm0, %v14308_v27, %v10728_v35  ;;  %v3776_v14 = vsel %vm1889_vm0, %v14304_v59, %v10727_v16  ;;  %v17739_v21 = vld [vmem:[#allocation21_spill] sm:$0xff] }
 0x7a5   : > { %10258 = vmatmul.mubr.bf16.gmra.mrb[88].mxu1 %v3817_v53  ;;  %v10736_v22 = vpop.permute.xlu1 %10735  ;;  %v3775_v8 = vsel %vm1889_vm0, %v14310_v62, %v10723_v54  ;;  %v3774_v4 = vsel %vm1889_vm0, %v14306_v43, %v10722_v57  ;;  %v17738_v53 = vld [vmem:[#allocation20_spill] sm:$0xff] }
 0x7a6   : > { %v10731_v9 = vpop.permute.xlu0 %10730  ;;  %v10738_v41 = vunpack.i.h.bf16 %v10736_v22  ;;  %v10737_v13 = vunpack.i.l.bf16 %v10736_v22 }
 0x7a7   : > { %v10733_v49 = vunpack.i.h.bf16 %v10731_v9  ;;  %v10732_v19 = vunpack.i.l.bf16 %v10731_v9 }
 0x7a8   : > { %v3793_v12 = vsel %vm3778_vm2, %v3776_v14, %v10737_v13  ;;  %v3794_v29 = vsel %vm3778_vm2, %v3777_v30, %v10738_v41  ;;  %v17740_v41 = vld [vmem:[#allocation22_spill] sm:$0xff]  ;;  %v17741_v30 = vld [vmem:[#allocation23_spill] sm:$0xff] }
 0x7a9   : > { %v3791_v27 = vsel %vm3778_vm2, %v3774_v4, %v10732_v19  ;;  %v3792_v59 = vsel %vm3778_vm2, %v3775_v8, %v10733_v49  ;;  %v17743_v4 = vld [vmem:[#allocation25_spill] sm:$0xff] }
 0x7ad   : > { %v10746_v24 = vpop.permute.xlu1 %10745 }
 0x7ae   : > { %v10748_v11 = vunpack.i.h.bf16 %v10746_v24  ;;  %v10747_v55 = vunpack.i.l.bf16 %v10746_v24  ;;  %v10741_v34 = vpop.permute.xlu0 %10740  ;;  %v17742_v24 = vld [vmem:[#allocation24_spill] sm:$0xff] }
 0x7af   : > { %v10743_v38 = vunpack.i.h.bf16 %v10741_v34  ;;  %v10742_v32 = vunpack.i.l.bf16 %v10741_v34 }
 0x7b0   : > { %v3810_v17 = vsel %vm3795_vm5, %v3793_v12, %v10747_v55  ;;  %v3811_v62 = vsel %vm3795_vm5, %v3794_v29, %v10748_v11 }
 0x7b1   : > { %v3808_v51 = vsel %vm3795_vm5, %v3791_v27, %v10742_v32  ;;  %v3809_v43 = vsel %vm3795_vm5, %v3792_v59, %v10743_v38  ;;  %v3819_v1 = vpack.c.bf16 %v3811_v62, %v3810_v17  ;;  %v17744_v27 = vld [vmem:[#allocation26_spill] sm:$0xff] }
 0x7b2   : > { %v3818_v26 = vpack.c.bf16 %v3809_v43, %v3808_v51  ;;  %v17745_v51 = vld [vmem:[#allocation27_spill] sm:$0xff] }
 0x7b4   : > { %10261 = vmatprep.mubr.bf16.mxu1 %v3818_v26 }
 0x7b5   : > { %10262 = vmatmul.mubr.bf16.gmra.mrb[92].mxu1 %v3819_v1  ;;  %v17746_v1 = vld [vmem:[#allocation28_spill] sm:$0xff] }
 0x82d   : > { %v10251_v36 = vpop.f32.mrb[80].mxu1 }
 0x82e   : > { %v3925_v44 = vpop.f32.mrb[81].mxu1  ;;  %v3934_v58 = vadd.f32 %v10251_v36, %v9428_v40  ;;  %v17747_v36 = vld [vmem:[#allocation29_spill] sm:$0xff] }
 0x82f   : > { %v3926_v33 = vadd.f32 %v9428_v40, %v3925_v44  ;;  %v10252_v48 = vpop.f32.mrb[82].mxu1 }
 0x830   : > { %v3928_v60 = vpop.f32.mrb[83].mxu1  ;;  %v14430_v50 = vadd.f32 %v3934_v58, %v17734_v31  ;;  %v3937_v18 = vadd.f32 %v10252_v48, %v9428_v40  ;;  %v10915_v48 = vld [vmem:[#allocation8 + $0x4] ss:$8 sps:$4 sm:$0xff]  }
 0x831   : > { %v14423_v42 = vadd.f32 %v3926_v33, %v17732_v10  ;;  %v3929_v52 = vadd.f32 %v9428_v40, %v3928_v60  ;;  %v10913_v33 = vld [vmem:[#allocation8] ss:$8 sps:$4 sm:$0xff]   ;;  %4342 = vmatprep.subr.bf16.mxu0 %v10915_v48  ;;  %v10916_v60 = vld [vmem:[#allocation8 + $0x10] ss:$8 sps:$4 sm:$0xff]  }
 0x832   : > { %v14435_v20 = vadd.f32 %v3937_v18, %v17735_v46  ;;  %4343 = vmatpush1.bf16.msra.mxu0 %v10913_v33 }
 0x833   : > { %v14426_v5 = vadd.f32 %v3929_v52, %v17733_v61  ;;  %4006 = vadd.xlane.f32.xlu0 %v14423_v42 }
 0x835   : > { %4008 = vadd.xlane.f32.xlu1 %v14426_v5 }
 0x837   : > { %4010 = vadd.xlane.f32.xlu0 %v14430_v50 }
 0x83b   : > { %4012 = vadd.xlane.f32.xlu0 %v14435_v20 }
 0x865   : > { %v10255_v28 = vpop.f32.mrb[84].mxu1 }
 0x866   : > { %v3941_v39 = vpop.f32.mrb[85].mxu1  ;;  %v3950_v15 = vadd.f32 %v10255_v28, %v9428_v40 }
 0x867   : > { %v3942_v2 = vadd.f32 %v9428_v40, %v3941_v39  ;;  %v10256_v7 = vpop.f32.mrb[86].mxu1 }
 0x868   : > { %v3944_v63 = vpop.f32.mrb[87].mxu1  ;;  %v3953_v25 = vadd.f32 %v10256_v7, %v9428_v40  ;;  %v14446_v3 = vadd.f32 %v3950_v15, %v17738_v53  ;;  %v10927_v53 = vld [vmem:[#allocation8 + $0x44] ss:$8 sps:$4 sm:$0xff]  }
 0x869   : > { %v14439_v47 = vadd.f32 %v3942_v2, %v17736_v37  ;;  %v3945_v0 = vadd.f32 %v9428_v40, %v3944_v63 }
 0x86a   : > { %v14450_v6 = vadd.f32 %v3953_v25, %v17739_v21  ;;  %v10924_v25 = vld [vmem:[#allocation8 + $0x34] ss:$8 sps:$4 sm:$0xff]   ;;  %v10925_v21 = vld [vmem:[#allocation8 + $0x40] ss:$8 sps:$4 sm:$0xff]  }
 0x86b   : > { %v14442_v45 = vadd.f32 %v3945_v0, %v17737_v23  ;;  %4014 = vadd.xlane.f32.xlu0 %v14439_v47  ;;  %v10919_v0 = vld [vmem:[#allocation8 + $0x20] ss:$8 sps:$4 sm:$0xff]   ;;  %v10922_v23 = vld [vmem:[#allocation8 + $0x30] ss:$8 sps:$4 sm:$0xff]  }
 0x86d   : > { %4016 = vadd.xlane.f32.xlu1 %v14442_v45 }
 0x86f   : > { %4018 = vadd.xlane.f32.xlu0 %v14446_v3 }
 0x871   : > { %4020 = vadd.xlane.f32.xlu1 %v14450_v6 }
 0x878   : > { %v10259_v22 = vpop.f32.mrb[88].mxu1 }
 0x879   : > { %v3957_v35 = vpop.f32.mrb[89].mxu1  ;;  %v3966_v57 = vadd.f32 %v10259_v22, %v9428_v40  ;;  %v10930_v22 = vld [vmem:[#allocation8 + $0x54] ss:$8 sps:$4 sm:$0xff]  }
 0x87a   : > { %v3958_v16 = vadd.f32 %v9428_v40, %v3957_v35  ;;  %v10260_v9 = vpop.f32.mrb[90].mxu1  ;;  %v10933_v35 = vld [vmem:[#allocation8 + $0x64] ss:$8 sps:$4 sm:$0xff]  }
 0x87b   : > { %v3960_v54 = vpop.f32.mrb[91].mxu1  ;;  %v3969_v19 = vadd.f32 %v10260_v9, %v9428_v40  ;;  %v14462_v8 = vadd.f32 %v3966_v57, %v17742_v24  ;;  %v10936_v9 = vld [vmem:[#allocation8 + $0x74] ss:$8 sps:$4 sm:$0xff]  }
 0x87c   : > { %v14455_v13 = vadd.f32 %v3958_v16, %v17740_v41  ;;  %v3961_v49 = vadd.f32 %v9428_v40, %v3960_v54  ;;  %v10931_v16 = vld [vmem:[#allocation8 + $0x60] ss:$8 sps:$4 sm:$0xff]   ;;  %v10934_v54 = vld [vmem:[#allocation8 + $0x70] ss:$8 sps:$4 sm:$0xff]  }
 0x87d   : > { %v14466_v11 = vadd.f32 %v3969_v19, %v17743_v4 }
 0x87e   : > { %v14458_v14 = vadd.f32 %v3961_v49, %v17741_v30  ;;  %4022 = vadd.xlane.f32.xlu0 %v14455_v13 }
 0x880   : > { %4024 = vadd.xlane.f32.xlu1 %v14458_v14 }
 0x882   : > { %4026 = vadd.xlane.f32.xlu0 %v14462_v8 }
 0x884   : > { %4028 = vadd.xlane.f32.xlu1 %v14466_v11 }
 0x888   : > { %v10263_v55 = vpop.f32.mrb[92].mxu1 }
 0x889   : > { %v3973_v34 = vpop.f32.mrb[93].mxu1  ;;  %v3982_v29 = vadd.f32 %v10263_v55, %v9428_v40 }
 0x88a   : > { %v3974_v38 = vadd.f32 %v9428_v40, %v3973_v34  ;;  %v10264_v32 = vpop.f32.mrb[94].mxu1 }
 0x88b   : > { %v3976_v12 = vpop.f32.mrb[95].mxu1  ;;  %v3985_v62 = vadd.f32 %v10264_v32, %v9428_v40  ;;  %v14478_v26 = vadd.f32 %v3982_v29, %v17746_v1 }
 0x88c   : > { %v14471_v59 = vadd.f32 %v3974_v38, %v17744_v27  ;;  %v3977_v17 = vadd.f32 %v9428_v40, %v3976_v12  ;;  %v10918_v40 = vld [vmem:[#allocation8 + $0x14] ss:$8 sps:$4 sm:$0xff]  }
 0x88d   : > { %v14482_v44 = vadd.f32 %v3985_v62, %v17747_v36  ;;  %4344 = vmatprep.subr.bf16.mxu0 %v10918_v40 }
 0x88e   : > { %v14474_v43 = vadd.f32 %v3977_v17, %v17745_v51  ;;  %4030 = vadd.xlane.f32.xlu0 %v14471_v59  ;;  %4345 = vmatpush1.bf16.msra.mxu0 %v10916_v60 }
 0x890   : > { %4032 = vadd.xlane.f32.xlu1 %v14474_v43 }
 0x892   : > { %4034 = vadd.xlane.f32.xlu0 %v14478_v26 }
 0x894   : > { %4036 = vadd.xlane.f32.xlu1 %v14482_v44 }
 0x8c0   : > { %v4007_v58 = vpop.xlane.xlu0 %4006 }
 0x8c1   : > { %v4038_v10 = vmul.f32 0.0078125, %v4007_v58 }
 0x8c2   : > { %v4009_v52 = vpop.xlane.xlu1 %4008 }
 0x8c3   : > { %v14487_v61 = vsub.f32 %v14423_v42, %v4038_v10  ;;  %v4039_v31 = vmul.f32 0.0078125, %v4009_v52 }
 0x8c4   : > { %v4011_v18 = vpop.xlane.xlu0 %4010 }
 0x8c5   : > { %v14490_v46 = vsub.f32 %v14426_v5, %v4039_v31  ;;  %v4040_v28 = vmul.f32 0.0078125, %v4011_v18  ;;  %v4070_v39 = vmul.f32 %v14487_v61, %v14487_v61 }
 0x8c7   : > { %v14495_v2 = vsub.f32 %v14430_v50, %v4040_v28  ;;  %4086 = vadd.xlane.f32.xlu0 %v4070_v39  ;;  %v4071_v7 = vmul.f32 %v14490_v46, %v14490_v46  ;;  %v10921_v50 = vld [vmem:[#allocation8 + $0x24] ss:$8 sps:$4 sm:$0xff]  }
 0x8c8   : > { %v4013_v63 = vpop.xlane.xlu0 %4012  ;;  %4346 = vmatprep.subr.bf16.mxu0 %v10921_v50 }
 0x8c9   : > { %v4041_v15 = vmul.f32 0.0078125, %v4013_v63  ;;  %4088 = vadd.xlane.f32.xlu1 %v4071_v7  ;;  %v4072_v42 = vmul.f32 %v14495_v2, %v14495_v2  ;;  %4347 = vmatpush1.bf16.msra.mxu0 %v10919_v0 }
 0x8ca   : > { %4348 = vmatprep.subr.bf16.mxu0 %v10924_v25 }
 0x8cb   : > { %v14502_v5 = vsub.f32 %v14435_v20, %v4041_v15  ;;  %4090 = vadd.xlane.f32.xlu0 %v4072_v42  ;;  %v10928_v20 = vld [vmem:[#allocation8 + $0x50] ss:$8 sps:$4 sm:$0xff]  }
 0x8cd   : > { %v4073_v37 = vmul.f32 %v14502_v5, %v14502_v5  ;;  %4349 = vmatpush1.bf16.msra.mxu0 %v10922_v23 }
 0x8ce   : > { %4350 = vmatprep.subr.bf16.mxu0 %v10927_v53 }
 0x8cf   : > { %4092 = vadd.xlane.f32.xlu1 %v4073_v37 }
 0x8d1   : > { %4351 = vmatpush1.bf16.msra.mxu0 %v10925_v21 }
 0x8d2   : > { %4352 = vmatprep.subr.bf16.mxu0 %v10930_v22 }
 0x8d5   : > { %4353 = vmatpush1.bf16.msra.mxu0 %v10928_v20 }
 0x8d6   : > { %4354 = vmatprep.subr.bf16.mxu0 %v10933_v35 }
 0x8d9   : > { %4355 = vmatpush1.bf16.msra.mxu0 %v10931_v16 }
 0x8da   : > { %4356 = vmatprep.subr.bf16.mxu0 %v10936_v9 }
 0x8dd   : > { %4357 = vmatpush1.bf16.msra.mxu0 %v10934_v54 }
 0x8f8   : > { %v4015_v57 = vpop.xlane.xlu0 %4014 }
 0x8f9   : > { %v4042_v41 = vmul.f32 0.0078125, %v4015_v57 }
 0x8fa   : > { %v4017_v49 = vpop.xlane.xlu1 %4016 }
 0x8fb   : > { %v14507_v19 = vsub.f32 %v14439_v47, %v4042_v41  ;;  %v4043_v30 = vmul.f32 0.0078125, %v4017_v49  ;;  %v14569_v49 = vld [vmem:[%s17219_s9] ss:$0 sm:$0xff] }
 0x8fc   : > { %v4019_v24 = vpop.xlane.xlu0 %4018 }
 0x8fd   : > { %v14510_v4 = vsub.f32 %v14442_v45, %v4043_v30  ;;  %v4044_v55 = vmul.f32 0.0078125, %v4019_v24  ;;  %v4074_v34 = vmul.f32 %v14507_v19, %v14507_v19 }
 0x8fe   : > { %v4021_v38 = vpop.xlane.xlu1 %4020 }
 0x8ff   : > { %v14515_v32 = vsub.f32 %v14446_v3, %v4044_v55  ;;  %v4045_v12 = vmul.f32 0.0078125, %v4021_v38  ;;  %4094 = vadd.xlane.f32.xlu0 %v4074_v34  ;;  %v4075_v29 = vmul.f32 %v14510_v4, %v14510_v4 }
 0x901   : > { %v14520_v47 = vsub.f32 %v14450_v6, %v4045_v12  ;;  %4096 = vadd.xlane.f32.xlu1 %v4075_v29  ;;  %v4076_v45 = vmul.f32 %v14515_v32, %v14515_v32  ;;  %v14577_v12 = vld [vmem:[%s17220_s10] ss:$0 sm:$0xff] }
 0x903   : > { %4098 = vadd.xlane.f32.xlu0 %v4076_v45  ;;  %v4077_v27 = vmul.f32 %v14520_v47, %v14520_v47 }
 0x905   : > { %4100 = vadd.xlane.f32.xlu1 %v4077_v27 }
 0x90b   : > { %v4023_v17 = vpop.xlane.xlu0 %4022 }
 0x90c   : > { %v4046_v3 = vmul.f32 0.0078125, %v4023_v17 }
 0x90d   : > { %v4025_v62 = vpop.xlane.xlu1 %4024 }
 0x90e   : > { %v14527_v51 = vsub.f32 %v14455_v13, %v4046_v3  ;;  %v4047_v1 = vmul.f32 0.0078125, %v4025_v62 }
 0x90f   : > { %v4027_v36 = vpop.xlane.xlu0 %4026 }
 0x910   : > { %v14530_v6 = vsub.f32 %v14458_v14, %v4047_v1  ;;  %v4048_v33 = vmul.f32 0.0078125, %v4027_v36  ;;  %v4078_v48 = vmul.f32 %v14527_v51, %v14527_v51 }
 0x911   : > { %v4029_v40 = vpop.xlane.xlu1 %4028 }
 0x912   : > { %v14535_v60 = vsub.f32 %v14462_v8, %v4048_v33  ;;  %v4049_v58 = vmul.f32 0.0078125, %v4029_v40  ;;  %4102 = vadd.xlane.f32.xlu0 %v4078_v48  ;;  %v4079_v10 = vmul.f32 %v14530_v6, %v14530_v6 }
 0x914   : > { %v14540_v13 = vsub.f32 %v14466_v11, %v4049_v58  ;;  %4104 = vadd.xlane.f32.xlu1 %v4079_v10  ;;  %v4080_v14 = vmul.f32 %v14535_v60, %v14535_v60 }
 0x916   : > { %4106 = vadd.xlane.f32.xlu0 %v4080_v14  ;;  %v4081_v52 = vmul.f32 %v14540_v13, %v14540_v13 }
 0x918   : > { %4108 = vadd.xlane.f32.xlu1 %v4081_v52 }
 0x91b   : > { %v4031_v31 = vpop.xlane.xlu0 %4030 }
 0x91c   : > { %v4050_v8 = vmul.f32 0.0078125, %v4031_v31 }
 0x91d   : > { %v4033_v18 = vpop.xlane.xlu1 %4032 }
 0x91e   : > { %v14547_v28 = vsub.f32 %v14471_v59, %v4050_v8  ;;  %v4051_v39 = vmul.f32 0.0078125, %v4033_v18 }
 0x91f   : > { %v4035_v7 = vpop.xlane.xlu0 %4034 }
 0x920   : > { %v14550_v11 = vsub.f32 %v14474_v43, %v4051_v39  ;;  %v4052_v63 = vmul.f32 0.0078125, %v4035_v7  ;;  %v4082_v15 = vmul.f32 %v14547_v28, %v14547_v28 }
 0x921   : > { %v4037_v42 = vpop.xlane.xlu1 %4036 }
 0x922   : > { %v14555_v37 = vsub.f32 %v14478_v26, %v4052_v63  ;;  %v4053_v50 = vmul.f32 0.0078125, %v4037_v42  ;;  %4110 = vadd.xlane.f32.xlu0 %v4082_v15  ;;  %v4083_v0 = vmul.f32 %v14550_v11, %v14550_v11 }
 0x924   : > { %v14560_v59 = vsub.f32 %v14482_v44, %v4053_v50  ;;  %4112 = vadd.xlane.f32.xlu1 %v4083_v0  ;;  %v4084_v43 = vmul.f32 %v14555_v37, %v14555_v37 }
 0x926   : > { %4114 = vadd.xlane.f32.xlu0 %v4084_v43  ;;  %v4085_v25 = vmul.f32 %v14560_v59, %v14560_v59 }
 0x928   : > { %4116 = vadd.xlane.f32.xlu1 %v4085_v25 }
 0x954   : > { %v4087_v23 = vpop.xlane.xlu0 %4086 }
 0x955   : > { %v4118_v26 = vmul.f32 0.0078125, %v4087_v23 }
 0x956   : > { %v4089_v53 = vpop.xlane.xlu1 %4088 }
 0x957   : > { %v4134_v21 = vadd.f32 1e-12, %v4118_v26  ;;  %v4119_v22 = vmul.f32 0.0078125, %v4089_v53 }
 0x958   : > { %v4091_v20 = vpop.xlane.xlu0 %4090 }
 0x959   : > { %11321 = vrsqrt.f32 %v4134_v21  ;;  %v4135_v35 = vadd.f32 1e-12, %v4119_v22  ;;  %v4120_v16 = vmul.f32 0.0078125, %v4091_v20 }
 0x95b   : > { %11323 = vrsqrt.f32 %v4135_v35  ;;  %v4136_v44 = vadd.f32 1e-12, %v4120_v16 }
 0x95c   : > { %v4093_v9 = vpop.xlane.xlu1 %4092 }
 0x95d   : > { %11325 = vrsqrt.f32 %v4136_v44  ;;  %v4121_v54 = vmul.f32 0.0078125, %v4093_v9 }
 0x95f   : > { %v4137_v57 = vadd.f32 1e-12, %v4121_v54 }
 0x961   : > { %11327 = vrsqrt.f32 %v4137_v57 }
 0x963   : > { %v11322_v41 = vpop.eup %11321 }
 0x964   : > { %v4166_v30 = vmul.f32 %v11322_v41, %v14487_v61 }
 0x965   : > { %v11324_v24 = vpop.eup %11323 }
 0x966   : > { %v4188_v55 = vmul.f32 %v14569_v49, %v4166_v30  ;;  %v4167_v34 = vmul.f32 %v11324_v24, %v14490_v46 }
 0x967   : > { %v11326_v38 = vpop.eup %11325 }
 0x968   : > { %v4189_v29 = vmul.f32 %v14569_v49, %v4167_v34  ;;  %v14581_v45 = vadd.f32 %v14577_v12, %v4188_v55  ;;  %v4168_v61 = vmul.f32 %v11326_v38, %v14495_v2 }
 0x96a   : > { %v14584_v27 = vadd.f32 %v14577_v12, %v4189_v29  ;;  %v4190_v62 = vmul.f32 %v14569_v49, %v4168_v61 }
 0x96b   : > { %v11328_v17 = vpop.eup %11327 }
 0x96c   : > { %v4226_v46 = vpack.c.bf16 %v14584_v27, %v14581_v45  ;;  %v4169_v3 = vmul.f32 %v11328_v17, %v14502_v5  ;;  %v14597_v33 = vadd.f32 %v14577_v12, %v4190_v62 }
 0x96e   : > { %4375 = vmatmul.mubr.bf16.vlgmr.msra.gmra.mrb[96].mxu0 %v4226_v46  ;;  %v4191_v1 = vmul.f32 %v14569_v49, %v4169_v3 }
 0x96f   : > { %4384 = vmatprep.mubr.bf16.mxu0 %v17731_v56 }
 0x970   : > { %v14594_v36 = vadd.f32 %v14577_v12, %v4191_v1 }
 0x972   : > { %v4227_v2 = vpack.c.bf16 %v14594_v36, %v14597_v33 }
 0x976   : > { %4385 = vmatmul.mubr.bf16.gmra.mrb[100].mxu0 %v4227_v2 }
 0x977   : > { %4394 = vmatprep.mubr.bf16.mxu0 %v17731_v56 }
 0x98c   : > { %v4095_v5 = vpop.xlane.xlu0 %4094 }
 0x98d   : > { %v4122_v48 = vmul.f32 0.0078125, %v4095_v5 }
 0x98e   : > { %v4097_v40 = vpop.xlane.xlu1 %4096 }
 0x98f   : > { %v4138_v58 = vadd.f32 1e-12, %v4122_v48  ;;  %v4123_v10 = vmul.f32 0.0078125, %v4097_v40 }
 0x990   : > { %v4099_v14 = vpop.xlane.xlu0 %4098 }
 0x991   : > { %11329 = vrsqrt.f32 %v4138_v58  ;;  %v4139_v52 = vadd.f32 1e-12, %v4123_v10  ;;  %v4124_v31 = vmul.f32 0.0078125, %v4099_v14 }
 0x992   : > { %v4101_v8 = vpop.xlane.xlu1 %4100 }
 0x993   : > { %11331 = vrsqrt.f32 %v4139_v52  ;;  %v4140_v18 = vadd.f32 1e-12, %v4124_v31  ;;  %v4125_v39 = vmul.f32 0.0078125, %v4101_v8 }
 0x995   : > { %11333 = vrsqrt.f32 %v4140_v18  ;;  %v4141_v7 = vadd.f32 1e-12, %v4125_v39 }
 0x997   : > { %11335 = vrsqrt.f32 %v4141_v7 }
 0x99b   : > { %v11330_v63 = vpop.eup %11329 }
 0x99c   : > { %v4170_v15 = vmul.f32 %v11330_v63, %v14507_v19 }
 0x99d   : > { %v11332_v42 = vpop.eup %11331 }
 0x99e   : > { %v4171_v50 = vmul.f32 %v11332_v42, %v14510_v4  ;;  %v4192_v0 = vmul.f32 %v14569_v49, %v4170_v15 }
 0x99f   : > { %v11334_v43 = vpop.eup %11333  ;;  %v4103_v25 = vpop.xlane.xlu0 %4102 }
 0x9a0   : > { %v4126_v23 = vmul.f32 0.0078125, %v4103_v25  ;;  %v4193_v26 = vmul.f32 %v14569_v49, %v4171_v50  ;;  %v14607_v22 = vadd.f32 %v14577_v12, %v4192_v0  ;;  %v4172_v20 = vmul.f32 %v11334_v43, %v14515_v32 }
 0x9a1   : > { %v11336_v53 = vpop.eup %11335  ;;  %v4105_v21 = vpop.xlane.xlu1 %4104 }
 0x9a2   : > { %v4142_v35 = vadd.f32 1e-12, %v4126_v23  ;;  %v4127_v16 = vmul.f32 0.0078125, %v4105_v21  ;;  %v14611_v19 = vadd.f32 %v14577_v12, %v4193_v26  ;;  %v4173_v4 = vmul.f32 %v11336_v53, %v14520_v47 }
 0x9a3   : > { %v4107_v44 = vpop.xlane.xlu0 %4106  ;;  %v4194_v55 = vmul.f32 %v14569_v49, %v4172_v20 }
 0x9a4   : > { %11337 = vrsqrt.f32 %v4142_v35  ;;  %v4143_v9 = vadd.f32 1e-12, %v4127_v16  ;;  %v4128_v54 = vmul.f32 0.0078125, %v4107_v44  ;;  %v4228_v57 = vpack.c.bf16 %v14611_v19, %v14607_v22  ;;  %v10937_v44 = vld [vmem:[#allocation10 + $0x40] sm:$0xff]  }
 0x9a5   : > { %v4109_v41 = vpop.xlane.xlu1 %4108  ;;  %v4195_v30 = vmul.f32 %v14569_v49, %v4173_v4  ;;  %v14623_v38 = vadd.f32 %v14577_v12, %v4194_v55  ;;  %9729 = vmatprep.subr.bf16.mxu1 %v10937_v44  ;;  %v10940_v55 = vld [vmem:[#allocation10 + $0x8] sm:$0xff]  }
 0x9a6   : > { %11339 = vrsqrt.f32 %v4143_v9  ;;  %v4144_v24 = vadd.f32 1e-12, %v4128_v54  ;;  %v4129_v32 = vmul.f32 0.0078125, %v4109_v41  ;;  %4395 = vmatmul.mubr.bf16.gmra.mrb[104].mxu0 %v4228_v57 }
 0x9a7   : > { %4404 = vmatprep.mubr.bf16.mxu0 %v17731_v56  ;;  %v14620_v34 = vadd.f32 %v14577_v12, %v4195_v30 }
 0x9a8   : > { %11341 = vrsqrt.f32 %v4144_v24  ;;  %v4145_v47 = vadd.f32 1e-12, %v4129_v32  ;;  %v10939_v24 = vld [vmem:[#allocation10 + $0x48] sm:$0xff]  }
 0x9a9   : > { %v4229_v29 = vpack.c.bf16 %v14620_v34, %v14623_v38 }
 0x9aa   : > { %11343 = vrsqrt.f32 %v4145_v47 }
 0x9ae   : > { %v11338_v61 = vpop.eup %11337  ;;  %4405 = vmatmul.mubr.bf16.gmra.mrb[108].mxu0 %v4229_v29  ;;  %v10942_v29 = vld [vmem:[#allocation10 + $0x10] sm:$0xff]  }
 0x9af   : > { %v4111_v17 = vpop.xlane.xlu0 %4110  ;;  %4414 = vmatprep.mubr.bf16.mxu0 %v17731_v56  ;;  %v4174_v46 = vmul.f32 %v11338_v61, %v14527_v51 }
 0x9b0   : > { %v11340_v3 = vpop.eup %11339  ;;  %v4130_v62 = vmul.f32 0.0078125, %v4111_v17  ;;  %v10943_v17 = vld [vmem:[#allocation10 + $0x58] sm:$0xff]  }
 0x9b1   : > { %v4113_v1 = vpop.xlane.xlu1 %4112  ;;  %v4175_v2 = vmul.f32 %v11340_v3, %v14530_v6  ;;  %v4196_v5 = vmul.f32 %v14569_v49, %v4174_v46  ;;  %v10945_v46 = vld [vmem:[#allocation10 + $0x60] sm:$0xff]  }
 0x9b2   : > { %v11342_v48 = vpop.eup %11341  ;;  %v4146_v40 = vadd.f32 1e-12, %v4130_v62  ;;  %v4131_v58 = vmul.f32 0.0078125, %v4113_v1  ;;  %v10946_v3 = vld [vmem:[#allocation10 + $0x20] sm:$0xff]   ;;  %v10947_v62 = vld [vmem:[#allocation10 + $0x68] sm:$0xff]   ;;  %v10949_v1 = vld [vmem:[#allocation10 + $0x70] sm:$0xff]  }
 0x9b3   : > { %v4115_v10 = vpop.xlane.xlu0 %4114  ;;  %v4197_v14 = vmul.f32 %v14569_v49, %v4175_v2  ;;  %v14633_v51 = vadd.f32 %v14577_v12, %v4196_v5  ;;  %v4176_v6 = vmul.f32 %v11342_v48, %v14535_v60  ;;  %v10950_v2 = vld [vmem:[#allocation10 + $0x30] sm:$0xff]   ;;  %v10951_v5 = vld [vmem:[#allocation10 + $0x78] sm:$0xff]  }
 0x9b4   : > { %v11344_v52 = vpop.eup %11343  ;;  %11345 = vrsqrt.f32 %v4146_v40  ;;  %v4147_v31 = vadd.f32 1e-12, %v4131_v58  ;;  %v4132_v8 = vmul.f32 0.0078125, %v4115_v10  ;;  %v10952_v48 = vld [vmem:[#allocation10 + $0x38] sm:$0xff]   ;;  %v17748_v58 = vld [vmem:[#allocation31_spill] sm:$0xff] }
 0x9b5   : > { %v4117_v18 = vpop.xlane.xlu1 %4116  ;;  %v14636_v39 = vadd.f32 %v14577_v12, %v4197_v14  ;;  %v4177_v7 = vmul.f32 %v11344_v52, %v14540_v13  ;;  %v4198_v43 = vmul.f32 %v14569_v49, %v4176_v6  ;;  %v4250_v40 = vld [vmem:[%s17222_s12] sm:$0x3] }
 0x9b6   : > { %11347 = vrsqrt.f32 %v4147_v31  ;;  %v4148_v63 = vadd.f32 1e-12, %v4132_v8  ;;  %v4133_v15 = vmul.f32 0.0078125, %v4117_v18  ;;  %v14684_v10 = vrot.slane %v4250_v40, %v17748_v58  ;;  %v17749_v14 = vld [vmem:[#allocation33_spill] sm:$0xff] }
 0x9b7   : > { %v4230_v42 = vpack.c.bf16 %v14636_v39, %v14633_v51  ;;  %v4199_v50 = vmul.f32 %v14569_v49, %v4177_v7  ;;  %v14649_v13 = vadd.f32 %v14577_v12, %v4198_v43  ;;  %v14687_v52 = vrot.slane %v4250_v40, %v17749_v14 }
 0x9b8   : > { %11349 = vrsqrt.f32 %v4148_v63  ;;  %v4149_v0 = vadd.f32 1e-12, %v4133_v15 }
 0x9b9   : > { %4415 = vmatmul.mubr.bf16.gmra.mrb[112].mxu0 %v4230_v42  ;;  %v14646_v60 = vadd.f32 %v14577_v12, %v4199_v50 }
 0x9ba   : > { %11351 = vrsqrt.f32 %v4149_v0  ;;  %4424 = vmatprep.mubr.bf16.mxu0 %v17731_v56 }
 0x9bb   : > { %v4231_v23 = vpack.c.bf16 %v14646_v60, %v14649_v13 }
 0x9be   : > { %v11346_v25 = vpop.eup %11345 }
 0x9bf   : > { %v4178_v26 = vmul.f32 %v11346_v25, %v14547_v28 }
 0x9c0   : > { %v11348_v53 = vpop.eup %11347 }
 0x9c1   : > { %4425 = vmatmul.mubr.bf16.gmra.mrb[116].mxu0 %v4231_v23  ;;  %v4179_v21 = vmul.f32 %v11348_v53, %v14550_v11  ;;  %v4200_v20 = vmul.f32 %v14569_v49, %v4178_v26  ;;  %v10938_v11 = vld [vmem:[#allocation10] sm:$0xff]  }
 0x9c2   : > { %v11350_v35 = vpop.eup %11349  ;;  %4434 = vmatprep.mubr.bf16.mxu0 %v17731_v56  ;;  %9730 = vmatpush3.bf16.msra.mxu1 %v10938_v11 }
 0x9c3   : > { %v4201_v16 = vmul.f32 %v14569_v49, %v4179_v21  ;;  %v14659_v9 = vadd.f32 %v14577_v12, %v4200_v20  ;;  %v4180_v28 = vmul.f32 %v11350_v35, %v14555_v37  ;;  %9731 = vmatprep.subr.bf16.mxu1 %v10939_v24 }
 0x9c4   : > { %v11352_v4 = vpop.eup %11351 }
 0x9c5   : > { %v14662_v54 = vadd.f32 %v14577_v12, %v4201_v16  ;;  %v4181_v57 = vmul.f32 %v11352_v4, %v14560_v59  ;;  %v4202_v32 = vmul.f32 %v14569_v49, %v4180_v28  ;;  %v10941_v59 = vld [vmem:[#allocation10 + $0x50] sm:$0xff]  }
 0x9c6   : > { %9732 = vmatpush3.bf16.msra.mxu1 %v10940_v55 }
 0x9c7   : > { %v4232_v41 = vpack.c.bf16 %v14662_v54, %v14659_v9  ;;  %v4203_v30 = vmul.f32 %v14569_v49, %v4181_v57  ;;  %v14675_v47 = vadd.f32 %v14577_v12, %v4202_v32  ;;  %9733 = vmatprep.subr.bf16.mxu1 %v10941_v59  ;;  %v10944_v49 = vld [vmem:[#allocation10 + $0x18] sm:$0xff]  }
 0x9c9   : > { %4435 = vmatmul.mubr.bf16.gmra.mrb[120].mxu0 %v4232_v41  ;;  %v14672_v37 = vadd.f32 %v14577_v12, %v4203_v30  ;;  %v10948_v12 = vld [vmem:[#allocation10 + $0x28] sm:$0xff]  }
 0x9ca   : > { %4444 = vmatprep.mubr.bf16.mxu0 %v17731_v56  ;;  %9734 = vmatpush3.bf16.msra.mxu1 %v10942_v29 }
 0x9cb   : > { %v4233_v61 = vpack.c.bf16 %v14672_v37, %v14675_v47  ;;  %9735 = vmatprep.subr.bf16.mxu1 %v10943_v17 }
 0x9ce   : > { %9736 = vmatpush3.bf16.msra.mxu1 %v10944_v49 }
 0x9cf   : > { %9737 = vmatprep.subr.bf16.mxu1 %v10945_v46 }
 0x9d1   : > { %4445 = vmatmul.mubr.bf16.gmra.mrb[124].mxu0 %v4233_v61 }
 0x9d2   : > { %5448 = vmatprep.mubr.bf16.mxu0 %v17731_v56  ;;  %9738 = vmatpush3.bf16.msra.mxu1 %v10946_v3 }
 0x9d3   : > { %9739 = vmatprep.subr.bf16.mxu1 %v10947_v62 }
 0x9d6   : > { %9740 = vmatpush3.bf16.msra.mxu1 %v10948_v12 }
 0x9d7   : > { %9741 = vmatprep.subr.bf16.mxu1 %v10949_v1 }
 0x9da   : > { %9742 = vmatpush3.bf16.msra.mxu1 %v10950_v2 }
 0x9db   : > { %9743 = vmatprep.subr.bf16.mxu1 %v10951_v5 }
 0x9de   : > { %9744 = vmatpush3.bf16.msra.mxu1 %v10952_v48 }
 0xa41   : > { %v4376_v31 = vpop.f32.mrb[96].mxu0 }
 0xa42   : > { %v14690_v8 = vadd.f32 %v4376_v31, %v14684_v10  ;;  %v4378_v18 = vpop.f32.mrb[97].mxu0 }
 0xa43   : > { %v14693_v6 = vadd.f32 %v4378_v18, %v14687_v52  ;;  %v4380_v7 = vpop.f32.mrb[98].mxu0 }
 0xa44   : > { %v4455_v63 = vmul.f32 %v14690_v8, %v14690_v8  ;;  %v14698_v15 = vadd.f32 %v4380_v7, %v14684_v10  ;;  %v4382_v42 = vpop.f32.mrb[99].mxu0 }
 0xa45   : > { %v4456_v50 = vmul.f32 %v14693_v6, %v14693_v6  ;;  %v14703_v0 = vadd.f32 %v4382_v42, %v14687_v52 }
 0xa46   : > { %v4487_v43 = vmul.f32 %v4455_v63, %v14690_v8  ;;  %v4457_v25 = vmul.f32 %v14698_v15, %v14698_v15 }
 0xa47   : > { %v4488_v23 = vmul.f32 %v4456_v50, %v14693_v6  ;;  %v4458_v26 = vmul.f32 %v14703_v0, %v14703_v0 }
 0xa48   : > { %v4519_v53 = vmul.f32 0.044715, %v4487_v43  ;;  %v4489_v21 = vmul.f32 %v4457_v25, %v14698_v15 }
 0xa49   : > { %v4520_v20 = vmul.f32 0.044715, %v4488_v23  ;;  %v4490_v35 = vmul.f32 %v4458_v26, %v14703_v0  ;;  %v4386_v16 = vpop.f32.mrb[100].mxu0 }
 0xa4a   : > { %v4551_v4 = vadd.f32 %v4519_v53, %v14690_v8  ;;  %v4521_v44 = vmul.f32 0.044715, %v4489_v21  ;;  %v14715_v28 = vadd.f32 %v4386_v16, %v14684_v10  ;;  %v4388_v57 = vpop.f32.mrb[101].mxu0 }
 0xa4b   : > { %v4552_v11 = vadd.f32 %v4520_v20, %v14693_v6  ;;  %v4522_v41 = vmul.f32 0.044715, %v4490_v35  ;;  %v14719_v30 = vadd.f32 %v4388_v57, %v14687_v52  ;;  %v4390_v24 = vpop.f32.mrb[102].mxu0 }
 0xa4c   : > { %v4583_v32 = vmul.f32 0.7978846, %v4551_v4  ;;  %v4553_v55 = vadd.f32 %v4521_v44, %v14698_v15  ;;  %v4459_v59 = vmul.f32 %v14715_v28, %v14715_v28  ;;  %v14725_v29 = vadd.f32 %v4390_v24, %v14684_v10  ;;  %v4392_v61 = vpop.f32.mrb[103].mxu0 }
 0xa4d   : > { %v4584_v17 = vmul.f32 0.7978846, %v4552_v11  ;;  %v4554_v49 = vadd.f32 %v4522_v41, %v14703_v0  ;;  %v4460_v46 = vmul.f32 %v14719_v30, %v14719_v30  ;;  %v14731_v3 = vadd.f32 %v4392_v61, %v14687_v52 }
 0xa4e   : > { %11353 = vtanh.f32 %v4583_v32  ;;  %v4585_v62 = vmul.f32 0.7978846, %v4553_v55  ;;  %v4491_v12 = vmul.f32 %v4459_v59, %v14715_v28  ;;  %v4461_v1 = vmul.f32 %v14725_v29, %v14725_v29 }
 0xa4f   : > { %11355 = vtanh.f32 %v4584_v17  ;;  %v4586_v2 = vmul.f32 0.7978846, %v4554_v49  ;;  %v4492_v5 = vmul.f32 %v4460_v46, %v14719_v30  ;;  %v4462_v48 = vmul.f32 %v14731_v3, %v14731_v3 }
 0xa50   : > { %11357 = vtanh.f32 %v4585_v62  ;;  %v4523_v40 = vmul.f32 0.044715, %v4491_v12  ;;  %v4493_v31 = vmul.f32 %v4461_v1, %v14725_v29 }
 0xa51   : > { %11359 = vtanh.f32 %v4586_v2  ;;  %v4524_v18 = vmul.f32 0.044715, %v4492_v5  ;;  %v4494_v7 = vmul.f32 %v4462_v48, %v14731_v3 }
 0xa52   : > { %v4555_v63 = vadd.f32 %v4523_v40, %v14715_v28  ;;  %v4525_v42 = vmul.f32 0.044715, %v4493_v31 }
 0xa53   : > { %v4556_v50 = vadd.f32 %v4524_v18, %v14719_v30  ;;  %v4526_v43 = vmul.f32 0.044715, %v4494_v7 }
 0xa54   : > { %v4587_v25 = vmul.f32 0.7978846, %v4555_v63  ;;  %v4557_v23 = vadd.f32 %v4525_v42, %v14725_v29 }
 0xa55   : > { %v4588_v26 = vmul.f32 0.7978846, %v4556_v50  ;;  %v4558_v53 = vadd.f32 %v4526_v43, %v14731_v3 }
 0xa56   : > { %11361 = vtanh.f32 %v4587_v25  ;;  %v4589_v21 = vmul.f32 0.7978846, %v4557_v23 }
 0xa57   : > { %11363 = vtanh.f32 %v4588_v26  ;;  %v4590_v20 = vmul.f32 0.7978846, %v4558_v53 }
 0xa58   : > { %v11354_v35 = vpop.eup %11353  ;;  %11365 = vtanh.f32 %v4589_v21 }
 0xa59   : > { %v11356_v16 = vpop.eup %11355  ;;  %v4647_v4 = vadd.f32 1.0, %v11354_v35  ;;  %11367 = vtanh.f32 %v4590_v20 }
 0xa5a   : > { %v11358_v44 = vpop.eup %11357  ;;  %v4648_v57 = vadd.f32 1.0, %v11356_v16 }
 0xa5b   : > { %v11360_v11 = vpop.eup %11359  ;;  %v4679_v41 = vmul.f32 0.5, %v4647_v4  ;;  %v4649_v24 = vadd.f32 1.0, %v11358_v44 }
 0xa5c   : > { %v4650_v32 = vadd.f32 1.0, %v11360_v11  ;;  %v4680_v55 = vmul.f32 0.5, %v4648_v57 }
 0xa5d   : > { %v4681_v59 = vmul.f32 0.5, %v4649_v24  ;;  %v4711_v17 = vmul.f32 %v4679_v41, %v14690_v8 }
 0xa5e   : > { %v4682_v61 = vmul.f32 0.5, %v4650_v32  ;;  %v4712_v62 = vmul.f32 %v4680_v55, %v14693_v6 }
 0xa5f   : > { %v4713_v49 = vmul.f32 %v4681_v59, %v14698_v15 }
 0xa60   : > { %v11362_v46 = vpop.eup %11361  ;;  %v4714_v12 = vmul.f32 %v4682_v61, %v14703_v0 }
 0xa61   : > { %v11364_v1 = vpop.eup %11363  ;;  %v4743_v2 = vpack.c.bf16 %v4713_v49, %v4711_v17  ;;  %v4651_v5 = vadd.f32 1.0, %v11362_v46 }
 0xa62   : > { %v11366_v48 = vpop.eup %11365  ;;  %v4744_v40 = vpack.c.bf16 %v4714_v12, %v4712_v62  ;;  %v4652_v31 = vadd.f32 1.0, %v11364_v1 }
 0xa63   : > { %v11368_v18 = vpop.eup %11367  ;;  %v4653_v7 = vadd.f32 1.0, %v11366_v48  ;;  %v4683_v63 = vmul.f32 0.5, %v4651_v5 }
 0xa64   : > { %4926 = vmatprep.mubr.bf16.mxu1 %v4744_v40  ;;  %v4654_v42 = vadd.f32 1.0, %v11368_v18  ;;  %v4684_v50 = vmul.f32 0.5, %v4652_v31 }
 0xa65   : > { %4927 = vmatmul.mubr.bf16.vlgmr.msra.gmra.mrb[96].mxu1 %v4743_v2  ;;  %v4685_v8 = vmul.f32 0.5, %v4653_v7  ;;  %v4715_v43 = vmul.f32 %v4683_v63, %v14715_v28 }
 0xa66   : > { %v4686_v15 = vmul.f32 0.5, %v4654_v42  ;;  %v4716_v0 = vmul.f32 %v4684_v50, %v14719_v30 }
 0xa67   : > { %v4717_v6 = vmul.f32 %v4685_v8, %v14725_v29 }
 0xa68   : > { %v4718_v25 = vmul.f32 %v4686_v15, %v14731_v3 }
 0xa69   : > { %v4745_v23 = vpack.c.bf16 %v4717_v6, %v4715_v43 }
 0xa6a   : > { %v4746_v26 = vpack.c.bf16 %v4718_v25, %v4716_v0 }
 0xa6c   : > { %4934 = vmatprep.mubr.bf16.mxu1 %v4746_v26 }
 0xa6d   : > { %4935 = vmatmul.mubr.bf16.gmra.mrb[100].mxu1 %v4745_v23 }
 0xa79   : > { %v4396_v53 = vpop.f32.mrb[104].mxu0 }
 0xa7a   : > { %v14754_v21 = vadd.f32 %v4396_v53, %v14684_v10  ;;  %v4398_v20 = vpop.f32.mrb[105].mxu0 }
 0xa7b   : > { %v14757_v35 = vadd.f32 %v4398_v20, %v14687_v52  ;;  %v4400_v16 = vpop.f32.mrb[106].mxu0 }
 0xa7c   : > { %v4463_v28 = vmul.f32 %v14754_v21, %v14754_v21  ;;  %v14762_v30 = vadd.f32 %v4400_v16, %v14684_v10  ;;  %v4402_v29 = vpop.f32.mrb[107].mxu0 }
 0xa7d   : > { %v4464_v3 = vmul.f32 %v14757_v35, %v14757_v35  ;;  %v14767_v4 = vadd.f32 %v4402_v29, %v14687_v52 }
 0xa7e   : > { %v4495_v44 = vmul.f32 %v4463_v28, %v14754_v21  ;;  %v4465_v57 = vmul.f32 %v14762_v30, %v14762_v30 }
 0xa7f   : > { %v4496_v11 = vmul.f32 %v4464_v3, %v14757_v35  ;;  %v4466_v41 = vmul.f32 %v14767_v4, %v14767_v4 }
 0xa80   : > { %v4527_v24 = vmul.f32 0.044715, %v4495_v44  ;;  %v4497_v32 = vmul.f32 %v4465_v57, %v14762_v30 }
 0xa81   : > { %v4528_v55 = vmul.f32 0.044715, %v4496_v11  ;;  %v4498_v59 = vmul.f32 %v4466_v41, %v14767_v4  ;;  %v4406_v61 = vpop.f32.mrb[108].mxu0 }
 0xa82   : > { %v4559_v17 = vadd.f32 %v4527_v24, %v14754_v21  ;;  %v4529_v49 = vmul.f32 0.044715, %v4497_v32  ;;  %v14779_v46 = vadd.f32 %v4406_v61, %v14684_v10  ;;  %v4408_v62 = vpop.f32.mrb[109].mxu0 }
 0xa83   : > { %v4560_v12 = vadd.f32 %v4528_v55, %v14757_v35  ;;  %v4530_v1 = vmul.f32 0.044715, %v4498_v59  ;;  %v14783_v2 = vadd.f32 %v4408_v62, %v14687_v52  ;;  %v4410_v5 = vpop.f32.mrb[110].mxu0 }
 0xa84   : > { %v4591_v48 = vmul.f32 0.7978846, %v4559_v17  ;;  %v4561_v40 = vadd.f32 %v4529_v49, %v14762_v30  ;;  %v4467_v31 = vmul.f32 %v14779_v46, %v14779_v46  ;;  %v14789_v18 = vadd.f32 %v4410_v5, %v14684_v10  ;;  %v4412_v7 = vpop.f32.mrb[111].mxu0 }
 0xa85   : > { %v4592_v63 = vmul.f32 0.7978846, %v4560_v12  ;;  %v4562_v42 = vadd.f32 %v4530_v1, %v14767_v4  ;;  %v4468_v50 = vmul.f32 %v14783_v2, %v14783_v2  ;;  %v14795_v8 = vadd.f32 %v4412_v7, %v14687_v52 }
 0xa86   : > { %11369 = vtanh.f32 %v4591_v48  ;;  %v4593_v15 = vmul.f32 0.7978846, %v4561_v40  ;;  %v4499_v43 = vmul.f32 %v4467_v31, %v14779_v46  ;;  %v4469_v6 = vmul.f32 %v14789_v18, %v14789_v18 }
 0xa87   : > { %11371 = vtanh.f32 %v4592_v63  ;;  %v4594_v0 = vmul.f32 0.7978846, %v4562_v42  ;;  %v4500_v25 = vmul.f32 %v4468_v50, %v14783_v2  ;;  %v4470_v23 = vmul.f32 %v14795_v8, %v14795_v8 }
 0xa88   : > { %11373 = vtanh.f32 %v4593_v15  ;;  %v4531_v26 = vmul.f32 0.044715, %v4499_v43  ;;  %v4501_v53 = vmul.f32 %v4469_v6, %v14789_v18 }
 0xa89   : > { %11375 = vtanh.f32 %v4594_v0  ;;  %v4532_v20 = vmul.f32 0.044715, %v4500_v25  ;;  %v4502_v16 = vmul.f32 %v4470_v23, %v14795_v8 }
 0xa8a   : > { %v4563_v28 = vadd.f32 %v4531_v26, %v14779_v46  ;;  %v4533_v29 = vmul.f32 0.044715, %v4501_v53 }
 0xa8b   : > { %v4564_v3 = vadd.f32 %v4532_v20, %v14783_v2  ;;  %v4534_v44 = vmul.f32 0.044715, %v4502_v16 }
 0xa8c   : > { %v4595_v57 = vmul.f32 0.7978846, %v4563_v28  ;;  %v4565_v11 = vadd.f32 %v4533_v29, %v14789_v18  ;;  %v4416_v41 = vpop.f32.mrb[112].mxu0 }
 0xa8d   : > { %v4596_v24 = vmul.f32 0.7978846, %v4564_v3  ;;  %v4566_v32 = vadd.f32 %v4534_v44, %v14795_v8  ;;  %v14810_v55 = vadd.f32 %v4416_v41, %v14684_v10  ;;  %v4418_v59 = vpop.f32.mrb[113].mxu0 }
 0xa8e   : > { %v4597_v61 = vmul.f32 0.7978846, %v4565_v11  ;;  %v14813_v17 = vadd.f32 %v4418_v59, %v14687_v52  ;;  %v4420_v49 = vpop.f32.mrb[114].mxu0  ;;  %11377 = vtanh.f32 %v4595_v57 }
 0xa8f   : > { %v4598_v62 = vmul.f32 0.7978846, %v4566_v32  ;;  %v4471_v12 = vmul.f32 %v14810_v55, %v14810_v55  ;;  %v14818_v1 = vadd.f32 %v4420_v49, %v14684_v10  ;;  %v4422_v5 = vpop.f32.mrb[115].mxu0  ;;  %11379 = vtanh.f32 %v4596_v24 }
 0xa90   : > { %v11370_v48 = vpop.eup %11369  ;;  %v4472_v40 = vmul.f32 %v14813_v17, %v14813_v17  ;;  %v14823_v31 = vadd.f32 %v4422_v5, %v14687_v52  ;;  %11381 = vtanh.f32 %v4597_v61 }
 0xa91   : > { %v11372_v7 = vpop.eup %11371  ;;  %v4503_v63 = vmul.f32 %v4471_v12, %v14810_v55  ;;  %v4473_v42 = vmul.f32 %v14818_v1, %v14818_v1  ;;  %v4655_v50 = vadd.f32 1.0, %v11370_v48  ;;  %11383 = vtanh.f32 %v4598_v62 }
 0xa92   : > { %v11374_v15 = vpop.eup %11373  ;;  %v4504_v43 = vmul.f32 %v4472_v40, %v14813_v17  ;;  %v4474_v6 = vmul.f32 %v14823_v31, %v14823_v31  ;;  %v4656_v0 = vadd.f32 1.0, %v11372_v7 }
 0xa93   : > { %v11376_v25 = vpop.eup %11375  ;;  %v4535_v23 = vmul.f32 0.044715, %v4503_v63  ;;  %v4505_v26 = vmul.f32 %v4473_v42, %v14818_v1  ;;  %v4657_v53 = vadd.f32 1.0, %v11374_v15  ;;  %v4687_v20 = vmul.f32 0.5, %v4655_v50 }
 0xa94   : > { %v4536_v16 = vmul.f32 0.044715, %v4504_v43  ;;  %v4506_v28 = vmul.f32 %v4474_v6, %v14823_v31  ;;  %v4426_v29 = vpop.f32.mrb[116].mxu0  ;;  %v4658_v3 = vadd.f32 1.0, %v11376_v25  ;;  %v4688_v44 = vmul.f32 0.5, %v4656_v0 }
 0xa95   : > { %v4567_v57 = vadd.f32 %v4535_v23, %v14810_v55  ;;  %v4537_v11 = vmul.f32 0.044715, %v4505_v26  ;;  %v14835_v41 = vadd.f32 %v4426_v29, %v14684_v10  ;;  %v4428_v24 = vpop.f32.mrb[117].mxu0  ;;  %v4689_v32 = vmul.f32 0.5, %v4657_v53 }
 0xa96   : > { %v4568_v59 = vadd.f32 %v4536_v16, %v14813_v17  ;;  %v4538_v61 = vmul.f32 0.044715, %v4506_v28  ;;  %v14839_v49 = vadd.f32 %v4428_v24, %v14687_v52  ;;  %v4430_v62 = vpop.f32.mrb[118].mxu0  ;;  %v4690_v12 = vmul.f32 0.5, %v4658_v3 }
 0xa97   : > { %v4599_v5 = vmul.f32 0.7978846, %v4567_v57  ;;  %v4569_v48 = vadd.f32 %v4537_v11, %v14818_v1  ;;  %v4475_v40 = vmul.f32 %v14835_v41, %v14835_v41  ;;  %v14845_v7 = vadd.f32 %v4430_v62, %v14684_v10  ;;  %v4432_v63 = vpop.f32.mrb[119].mxu0 }
 0xa98   : > { %v4600_v42 = vmul.f32 0.7978846, %v4568_v59  ;;  %v4570_v50 = vadd.f32 %v4538_v61, %v14823_v31  ;;  %v4476_v15 = vmul.f32 %v14839_v49, %v14839_v49  ;;  %v14851_v43 = vadd.f32 %v4432_v63, %v14687_v52  ;;  %v14853_v6 = vpop.eup %11377 }
 0xa99   : > { %11385 = vtanh.f32 %v4599_v5  ;;  %v4601_v0 = vmul.f32 0.7978846, %v4569_v48  ;;  %v4507_v25 = vmul.f32 %v4475_v40, %v14835_v41  ;;  %v4477_v23 = vmul.f32 %v14845_v7, %v14845_v7  ;;  %v11380_v26 = vpop.eup %11379 }
 0xa9a   : > { %11387 = vtanh.f32 %v4600_v42  ;;  %v4602_v53 = vmul.f32 0.7978846, %v4570_v50  ;;  %v4508_v16 = vmul.f32 %v4476_v15, %v14839_v49  ;;  %v4478_v28 = vmul.f32 %v14851_v43, %v14851_v43  ;;  %v14861_v29 = vpop.eup %11381 }
 0xa9b   : > { %11389 = vtanh.f32 %v4601_v0  ;;  %v4539_v3 = vmul.f32 0.044715, %v4507_v25  ;;  %v4509_v57 = vmul.f32 %v4477_v23, %v14845_v7  ;;  %v4720_v11 = vmul.f32 %v4688_v44, %v14757_v35  ;;  %v11384_v24 = vpop.eup %11383 }
 0xa9c   : > { %11391 = vtanh.f32 %v4602_v53  ;;  %v4540_v59 = vmul.f32 0.044715, %v4508_v16  ;;  %v4510_v61 = vmul.f32 %v4478_v28, %v14851_v43  ;;  %v4436_v62 = vpop.f32.mrb[120].mxu0  ;;  %v4722_v5 = vmul.f32 %v4690_v12, %v14767_v4 }
 0xa9d   : > { %v4571_v48 = vadd.f32 %v4539_v3, %v14835_v41  ;;  %v4541_v40 = vmul.f32 0.044715, %v4509_v57  ;;  %v14869_v63 = vadd.f32 %v4436_v62, %v14684_v10  ;;  %v4438_v42 = vpop.f32.mrb[121].mxu0  ;;  %v4719_v50 = vmul.f32 %v4687_v20, %v14754_v21 }
 0xa9e   : > { %v4572_v15 = vadd.f32 %v4540_v59, %v14839_v49  ;;  %v4542_v35 = vmul.f32 0.044715, %v4510_v61  ;;  %v4748_v44 = vpack.c.bf16 %v4722_v5, %v4720_v11  ;;  %v14874_v0 = vadd.f32 %v4438_v42, %v14687_v52  ;;  %v4440_v25 = vpop.f32.mrb[122].mxu0 }
 0xa9f   : > { %v4603_v23 = vmul.f32 0.7978846, %v4571_v48  ;;  %v4573_v4 = vadd.f32 %v4541_v40, %v14845_v7  ;;  %v4479_v12 = vmul.f32 %v14869_v63, %v14869_v63  ;;  %v4721_v53 = vmul.f32 %v4689_v32, %v14762_v30  ;;  %v4442_v16 = vpop.f32.mrb[123].mxu0 }
 0xaa0   : > { %v4604_v28 = vmul.f32 0.7978846, %v4572_v15  ;;  %v4574_v21 = vadd.f32 %v4542_v35, %v14851_v43  ;;  %4942 = vmatprep.mubr.bf16.mxu1 %v4748_v44  ;;  %v4480_v20 = vmul.f32 %v14874_v0, %v14874_v0  ;;  %v14884_v3 = vadd.f32 %v4440_v25, %v14684_v10 }
 0xaa1   : > { %11393 = vtanh.f32 %v4603_v23  ;;  %v4605_v57 = vmul.f32 0.7978846, %v4573_v4  ;;  %v4511_v11 = vmul.f32 %v4479_v12, %v14869_v63  ;;  %v4747_v59 = vpack.c.bf16 %v4721_v53, %v4719_v50 }
 0xaa2   : > { %11395 = vtanh.f32 %v4604_v28  ;;  %v4606_v61 = vmul.f32 0.7978846, %v4574_v21  ;;  %v4512_v30 = vmul.f32 %v4480_v20, %v14874_v0  ;;  %v4481_v32 = vmul.f32 %v14884_v3, %v14884_v3 }
 0xaa3   : > { %v14890_v62 = vpop.eup %11385  ;;  %11397 = vtanh.f32 %v4605_v57  ;;  %v4543_v5 = vmul.f32 0.044715, %v4511_v11  ;;  %4943 = vmatmul.mubr.bf16.gmra.mrb[104].mxu1 %v4747_v59  ;;  %v14893_v48 = vadd.f32 %v4442_v16, %v14687_v52  ;;  %v4660_v40 = vadd.f32 1.0, %v11380_v26 }
 0xaa4   : > { %v11388_v42 = vpop.eup %11387  ;;  %11399 = vtanh.f32 %v4606_v61  ;;  %v4544_v15 = vmul.f32 0.044715, %v4512_v30  ;;  %v4513_v50 = vmul.f32 %v4481_v32, %v14884_v3  ;;  %v4446_v35 = vpop.f32.mrb[124].mxu0  ;;  %v4662_v44 = vadd.f32 1.0, %v11384_v24 }
 0xaa5   : > { %v14896_v25 = vpop.eup %11389  ;;  %v4575_v23 = vadd.f32 %v4543_v5, %v14869_v63  ;;  %v4482_v4 = vmul.f32 %v14893_v48, %v14893_v48  ;;  %v14902_v12 = vadd.f32 %v4446_v35, %v14684_v10  ;;  %v4692_v53 = vmul.f32 0.5, %v4660_v40  ;;  %v4448_v16 = vpop.f32.mrb[125].mxu0 }
 0xaa6   : > { %v11392_v26 = vpop.eup %11391  ;;  %v4576_v28 = vadd.f32 %v4544_v15, %v14874_v0  ;;  %v4545_v21 = vmul.f32 0.044715, %v4513_v50  ;;  %v4694_v20 = vmul.f32 0.5, %v4662_v44  ;;  %v14906_v57 = vadd.f32 %v4448_v16, %v14687_v52  ;;  %v4450_v24 = vpop.f32.mrb[126].mxu0 }
 0xaa7   : > { %v4607_v11 = vmul.f32 0.7978846, %v4575_v23  ;;  %v4514_v59 = vmul.f32 %v4482_v4, %v14893_v48  ;;  %v4483_v61 = vmul.f32 %v14902_v12, %v14902_v12  ;;  %v4724_v30 = vmul.f32 %v4692_v53, %v14783_v2  ;;  %v4452_v32 = vpop.f32.mrb[127].mxu0 }
 0xaa8   : > { %v4608_v5 = vmul.f32 0.7978846, %v4576_v28  ;;  %v4577_v40 = vadd.f32 %v4545_v21, %v14884_v3  ;;  %v4726_v15 = vmul.f32 %v4694_v20, %v14795_v8  ;;  %v4484_v50 = vmul.f32 %v14906_v57, %v14906_v57 }
 0xaa9   : > { %11401 = vtanh.f32 %v4607_v11  ;;  %v4546_v35 = vmul.f32 0.044715, %v4514_v59  ;;  %v4515_v44 = vmul.f32 %v4483_v61, %v14902_v12  ;;  %v4659_v23 = vadd.f32 1.0, %v14853_v6 }
 0xaaa   : > { %11403 = vtanh.f32 %v4608_v5  ;;  %v4609_v4 = vmul.f32 0.7978846, %v4577_v40  ;;  %v4750_v16 = vpack.c.bf16 %v4726_v15, %v4724_v30  ;;  %v4516_v2 = vmul.f32 %v4484_v50, %v14906_v57 }
 0xaab   : > { %v11394_v53 = vpop.eup %11393  ;;  %v4578_v28 = vadd.f32 %v4546_v35, %v14893_v48  ;;  %v4547_v21 = vmul.f32 0.044715, %v4515_v44  ;;  %v4661_v8 = vadd.f32 1.0, %v14861_v29  ;;  %v4691_v20 = vmul.f32 0.5, %v4659_v23 }
 0xaac   : > { %v11396_v14 = vpop.eup %11395  ;;  %11405 = vtanh.f32 %v4609_v4  ;;  %4950 = vmatprep.mubr.bf16.mxu1 %v4750_v16  ;;  %v4548_v11 = vmul.f32 0.044715, %v4516_v2  ;;  %v14922_v59 = vadd.f32 %v4450_v24, %v14684_v10  ;;  %v14925_v6 = vadd.f32 %v4452_v32, %v14687_v52 }
 0xaad   : > { %v11398_v61 = vpop.eup %11397  ;;  %v4610_v30 = vmul.f32 0.7978846, %v4578_v28  ;;  %v4579_v5 = vadd.f32 %v4547_v21, %v14902_v12  ;;  %v4693_v40 = vmul.f32 0.5, %v4661_v8  ;;  %v4723_v15 = vmul.f32 %v4691_v20, %v14779_v46 }
 0xaae   : > { %v11400_v50 = vpop.eup %11399  ;;  %v4580_v29 = vadd.f32 %v4548_v11, %v14906_v57  ;;  %v4485_v35 = vmul.f32 %v14922_v59, %v14922_v59  ;;  %v4486_v10 = vmul.f32 %v14925_v6, %v14925_v6  ;;  %v4664_v24 = vadd.f32 1.0, %v11388_v42 }
 0xaaf   : > { %11407 = vtanh.f32 %v4610_v30  ;;  %v4611_v52 = vmul.f32 0.7978846, %v4579_v5  ;;  %v4725_v32 = vmul.f32 %v4693_v40, %v14789_v18  ;;  %v4666_v44 = vadd.f32 1.0, %v11392_v26 }
 0xab0   : > { %v4612_v23 = vmul.f32 0.7978846, %v4580_v29  ;;  %v4517_v4 = vmul.f32 %v4485_v35, %v14922_v59  ;;  %v4518_v46 = vmul.f32 %v4486_v10, %v14925_v6  ;;  %v4696_v16 = vmul.f32 0.5, %v4664_v24 }
 0xab1   : > { %11409 = vtanh.f32 %v4611_v52  ;;  %v4749_v2 = vpack.c.bf16 %v4725_v32, %v4723_v15  ;;  %v4698_v28 = vmul.f32 0.5, %v4666_v44  ;;  %v4663_v21 = vadd.f32 1.0, %v14890_v62 }
 0xab2   : > { %11411 = vtanh.f32 %v4612_v23  ;;  %v4549_v8 = vmul.f32 0.044715, %v4517_v4  ;;  %v4550_v20 = vmul.f32 0.044715, %v4518_v46  ;;  %v4728_v42 = vmul.f32 %v4696_v16, %v14813_v17 }
 0xab3   : > { %v11402_v11 = vpop.eup %11401  ;;  %4951 = vmatmul.mubr.bf16.gmra.mrb[108].mxu1 %v4749_v2  ;;  %v4730_v18 = vmul.f32 %v4698_v28, %v14823_v31  ;;  %v4665_v26 = vadd.f32 1.0, %v14896_v25  ;;  %v4695_v30 = vmul.f32 0.5, %v4663_v21  ;;  %v4668_v5 = vadd.f32 1.0, %v11396_v14 }
 0xab4   : > { %v11404_v40 = vpop.eup %11403  ;;  %v4581_v29 = vadd.f32 %v4549_v8, %v14922_v59  ;;  %v4582_v15 = vadd.f32 %v4550_v20, %v14925_v6  ;;  %v4670_v35 = vadd.f32 1.0, %v11400_v50  ;;  %v4667_v62 = vadd.f32 1.0, %v11394_v53 }
 0xab5   : > { %v4752_v10 = vpack.c.bf16 %v4730_v18, %v4728_v42  ;;  %v4697_v24 = vmul.f32 0.5, %v4665_v26  ;;  %v4727_v52 = vmul.f32 %v4695_v30, %v14810_v55  ;;  %v4700_v17 = vmul.f32 0.5, %v4668_v5 }
 0xab6   : > { %v11406_v32 = vpop.eup %11405  ;;  %v4613_v44 = vmul.f32 0.7978846, %v4581_v29  ;;  %v4614_v23 = vmul.f32 0.7978846, %v4582_v15  ;;  %v4702_v31 = vmul.f32 0.5, %v4670_v35  ;;  %v4669_v4 = vadd.f32 1.0, %v11398_v61 }
 0xab7   : > { %4958 = vmatprep.mubr.bf16.mxu1 %v4752_v10  ;;  %v4729_v14 = vmul.f32 %v4697_v24, %v14818_v1  ;;  %v4732_v25 = vmul.f32 %v4700_v17, %v14839_v49  ;;  %v4699_v46 = vmul.f32 0.5, %v4667_v62  ;;  %v4672_v16 = vadd.f32 1.0, %v11404_v40 }
 0xab8   : > { %11413 = vtanh.f32 %v4613_v44  ;;  %v4734_v53 = vmul.f32 %v4702_v31, %v14851_v43  ;;  %v4701_v50 = vmul.f32 0.5, %v4669_v4  ;;  %v4671_v2 = vadd.f32 1.0, %v11402_v11 }
 0xab9   : > { %v11408_v28 = vpop.eup %11407  ;;  %11415 = vtanh.f32 %v4614_v23  ;;  %v4751_v55 = vpack.c.bf16 %v4729_v14, %v4727_v52  ;;  %v4731_v21 = vmul.f32 %v4699_v46, %v14835_v41  ;;  %v4704_v8 = vmul.f32 0.5, %v4672_v16  ;;  %v14960_v46 = vld [vmem:[%s17224_s14] ss:$0 sm:$0xff] }
 0xaba   : > { %v4754_v20 = vpack.c.bf16 %v4734_v53, %v4732_v25  ;;  %v4733_v61 = vmul.f32 %v4701_v50, %v14845_v7  ;;  %v4674_v42 = vadd.f32 1.0, %v11408_v28  ;;  %v4673_v1 = vadd.f32 1.0, %v11406_v32 }
 0xabb   : > { %v11410_v18 = vpop.eup %11409  ;;  %4959 = vmatmul.mubr.bf16.gmra.mrb[112].mxu1 %v4751_v55  ;;  %v4703_v49 = vmul.f32 0.5, %v4671_v2  ;;  %v4736_v11 = vmul.f32 %v4704_v8, %v14874_v0 }
 0xabc   : > { %v11412_v26 = vpop.eup %11411  ;;  %4966 = vmatprep.mubr.bf16.mxu1 %v4754_v20  ;;  %v4753_v30 = vpack.c.bf16 %v4733_v61, %v4731_v21  ;;  %v4706_v43 = vmul.f32 0.5, %v4674_v42  ;;  %v4705_v5 = vmul.f32 0.5, %v4673_v1  ;;  %v4675_v15 = vadd.f32 1.0, %v11410_v18 }
 0xabd   : > { %v4735_v41 = vmul.f32 %v4703_v49, %v14869_v63  ;;  %v4676_v62 = vadd.f32 1.0, %v11412_v26 }
 0xabe   : > { %v4738_v40 = vmul.f32 %v4706_v43, %v14893_v48  ;;  %v4737_v29 = vmul.f32 %v4705_v5, %v14884_v3  ;;  %v4707_v17 = vmul.f32 0.5, %v4675_v15 }
 0xabf   : > { %v4708_v44 = vmul.f32 0.5, %v4676_v62 }
 0xac0   : > { %v4756_v7 = vpack.c.bf16 %v4738_v40, %v4736_v11  ;;  %v4755_v35 = vpack.c.bf16 %v4737_v29, %v4735_v41  ;;  %v4739_v48 = vmul.f32 %v4707_v17, %v14902_v12 }
 0xac1   : > { %v4740_v3 = vmul.f32 %v4708_v44, %v14906_v57 }
 0xac2   : > { %v11414_v10 = vpop.eup %11413 }
 0xac3   : > { %v11416_v24 = vpop.eup %11415  ;;  %4967 = vmatmul.mubr.bf16.gmra.mrb[116].mxu1 %v4753_v30  ;;  %v4677_v52 = vadd.f32 1.0, %v11414_v10 }
 0xac4   : > { %4974 = vmatprep.mubr.bf16.mxu1 %v4756_v7  ;;  %v4678_v32 = vadd.f32 1.0, %v11416_v24 }
 0xac5   : > { %v4709_v23 = vmul.f32 0.5, %v4677_v52 }
 0xac6   : > { %v4710_v0 = vmul.f32 0.5, %v4678_v32 }
 0xac7   : > { %v4741_v63 = vmul.f32 %v4709_v23, %v14922_v59 }
 0xac8   : > { %v4742_v31 = vmul.f32 %v4710_v0, %v14925_v6 }
 0xac9   : > { %v4757_v4 = vpack.c.bf16 %v4741_v63, %v4739_v48 }
 0xaca   : > { %v4758_v14 = vpack.c.bf16 %v4742_v31, %v4740_v3 }
 0xacb   : > { %4975 = vmatmul.mubr.bf16.gmra.mrb[120].mxu1 %v4755_v35 }
 0xacc   : > { %4982 = vmatprep.mubr.bf16.mxu1 %v4758_v14 }
 0xad3   : > { %4983 = vmatmul.mubr.bf16.gmra.mrb[124].mxu1 %v4757_v4 }
 0xb38   : > { %v9745_v25 = vpop.f32.mrb[96].mxu1 }
 0xb39   : > { %v9746_v16 = vpop.f32.mrb[97].mxu1 }
 0xb3a   : > { %v9747_v53 = vadd.f32 %v9746_v16, %v9745_v25  ;;  %v9748_v12 = vpop.f32.mrb[98].mxu1 }
 0xb3b   : > { %v9749_v50 = vpop.f32.mrb[99].mxu1 }
 0xb3c   : > { %v4929_v59 = vadd.f32 %v9747_v53, %v14960_v46  ;;  %v9750_v57 = vadd.f32 %v9749_v50, %v9748_v12 }
 0xb3e   : > { %v4932_v6 = vadd.f32 %v9750_v57, %v14960_v46  ;;  %v14965_v2 = vadd.f32 %v4929_v59, %v14581_v45 }
 0xb40   : > { %5009 = vadd.xlane.f32.xlu0 %v14965_v2  ;;  %v9751_v28 = vpop.f32.mrb[100].mxu1  ;;  %v14969_v55 = vadd.f32 %v4932_v6, %v14584_v27 }
 0xb41   : > { %v9752_v21 = vpop.f32.mrb[101].mxu1 }
 0xb42   : > { %v9753_v8 = vadd.f32 %v9752_v21, %v9751_v28  ;;  %5011 = vadd.xlane.f32.xlu1 %v14969_v55  ;;  %v9754_v20 = vpop.f32.mrb[102].mxu1 }
 0xb43   : > { %v9755_v61 = vpop.f32.mrb[103].mxu1 }
 0xb44   : > { %v4937_v42 = vadd.f32 %v9753_v8, %v14960_v46  ;;  %v9756_v1 = vadd.f32 %v9755_v61, %v9754_v20 }
 0xb46   : > { %v4940_v18 = vadd.f32 %v9756_v1, %v14960_v46  ;;  %v14975_v45 = vadd.f32 %v4937_v42, %v14597_v33 }
 0xb48   : > { %5013 = vadd.xlane.f32.xlu0 %v14975_v45  ;;  %v14979_v49 = vadd.f32 %v4940_v18, %v14594_v36 }
 0xb4a   : > { %5015 = vadd.xlane.f32.xlu1 %v14979_v49 }
 0xb76   : > { %v9757_v27 = vpop.f32.mrb[104].mxu1 }
 0xb77   : > { %v9758_v26 = vpop.f32.mrb[105].mxu1 }
 0xb78   : > { %v9759_v30 = vadd.f32 %v9758_v26, %v9757_v27  ;;  %v9760_v43 = vpop.f32.mrb[106].mxu1 }
 0xb79   : > { %v9761_v5 = vpop.f32.mrb[107].mxu1 }
 0xb7a   : > { %v4945_v11 = vadd.f32 %v9759_v30, %v14960_v46  ;;  %v9762_v40 = vadd.f32 %v9761_v5, %v9760_v43 }
 0xb7c   : > { %v4948_v41 = vadd.f32 %v9762_v40, %v14960_v46  ;;  %v14985_v33 = vadd.f32 %v4945_v11, %v14607_v22  ;;  %v10955_v40 = vld [vmem:[#allocation5 + $0xc4] ss:$12 sps:$4 sm:$0xff]  }
 0xb7d   : > { %5416 = vmatprep.subr.bf16.mxu0 %v10955_v40 }
 0xb7e   : > { %5017 = vadd.xlane.f32.xlu0 %v14985_v33  ;;  %v14989_v36 = vadd.f32 %v4948_v41, %v14611_v19  ;;  %v10958_v41 = vld [vmem:[#allocation5 + $0xdc] ss:$12 sps:$4 sm:$0xff]  }
 0xb80   : > { %5019 = vadd.xlane.f32.xlu1 %v14989_v36 }
 0xb86   : > { %v9763_v29 = vpop.f32.mrb[108].mxu1 }
 0xb87   : > { %v9764_v15 = vpop.f32.mrb[109].mxu1 }
 0xb88   : > { %v9765_v7 = vadd.f32 %v9764_v15, %v9763_v29  ;;  %v9766_v35 = vpop.f32.mrb[110].mxu1  ;;  %v10956_v29 = vld [vmem:[#allocation5 + $0xd8] ss:$12 sps:$4 sm:$0xff]  }
 0xb89   : > { %v9767_v62 = vpop.f32.mrb[111].mxu1 }
 0xb8a   : > { %v4953_v10 = vadd.f32 %v9765_v7, %v14960_v46  ;;  %v9768_v24 = vadd.f32 %v9767_v62, %v9766_v35 }
 0xb8c   : > { %v4956_v52 = vadd.f32 %v9768_v24, %v14960_v46  ;;  %v14995_v22 = vadd.f32 %v4953_v10, %v14623_v38 }
 0xb8e   : > { %5021 = vadd.xlane.f32.xlu0 %v14995_v22  ;;  %v14999_v19 = vadd.f32 %v4956_v52, %v14620_v34  ;;  %v9769_v17 = vpop.f32.mrb[112].mxu1 }
 0xb8f   : > { %v9770_v32 = vpop.f32.mrb[113].mxu1 }
 0xb90   : > { %5023 = vadd.xlane.f32.xlu1 %v14999_v19  ;;  %v9771_v44 = vadd.f32 %v9770_v32, %v9769_v17  ;;  %v9772_v23 = vpop.f32.mrb[114].mxu1 }
 0xb91   : > { %v9773_v0 = vpop.f32.mrb[115].mxu1 }
 0xb92   : > { %v4961_v48 = vadd.f32 %v9771_v44, %v14960_v46  ;;  %v9774_v63 = vadd.f32 %v9773_v0, %v9772_v23  ;;  %v10961_v0 = vld [vmem:[#allocation5 + $0xf4] ss:$12 sps:$4 sm:$0xff]  }
 0xb94   : > { %v4964_v3 = vadd.f32 %v9774_v63, %v14960_v46  ;;  %v15005_v38 = vadd.f32 %v4961_v48, %v14633_v51  ;;  %v10962_v48 = vld [vmem:[#allocation5 + $0xc8] ss:$12 sps:$4 sm:$0xff]   ;;  %v10959_v63 = vld [vmem:[#allocation5 + $0xf0] ss:$12 sps:$4 sm:$0xff]  }
 0xb95   : > { %10265 = vmatprep.subr.bf16.mxu1 %v10962_v48 }
 0xb96   : > { %5025 = vadd.xlane.f32.xlu0 %v15005_v38  ;;  %v9775_v31 = vpop.f32.mrb[116].mxu1  ;;  %v15009_v34 = vadd.f32 %v4964_v3, %v14636_v39  ;;  %10266 = vmatpush3.bf16.msra.mxu1 %v10962_v48  ;;  %v10965_v3 = vld [vmem:[#allocation5 + $0x10c] ss:$12 sps:$4 sm:$0xff]  }
 0xb97   : > { %v9776_v4 = vpop.f32.mrb[117].mxu1 }
 0xb98   : > { %v9777_v14 = vadd.f32 %v9776_v4, %v9775_v31  ;;  %5027 = vadd.xlane.f32.xlu1 %v15009_v34  ;;  %v9778_v25 = vpop.f32.mrb[118].mxu1  ;;  %v10966_v31 = vld [vmem:[#allocation5 + $0xe0] ss:$12 sps:$4 sm:$0xff]   ;;  %v10970_v4 = vld [vmem:[#allocation5 + $0xf8] ss:$12 sps:$4 sm:$0xff]  }
 0xb99   : > { %v9779_v16 = vpop.f32.mrb[119].mxu1  ;;  %10267 = vmatprep.subr.bf16.mxu1 %v10966_v31 }
 0xb9a   : > { %v4969_v53 = vadd.f32 %v9777_v14, %v14960_v46  ;;  %v9780_v12 = vadd.f32 %v9779_v16, %v9778_v25  ;;  %10268 = vmatpush3.bf16.msra.mxu1 %v10966_v31  ;;  %v10967_v14 = vld [vmem:[#allocation5 + $0x120] ss:$12 sps:$4 sm:$0xff]   ;;  %v10973_v25 = vld [vmem:[#allocation5 + $0x13c] ss:$12 sps:$4 sm:$0xff]  }
 0xb9b   : > { %10269 = vmatprep.subr.bf16.mxu1 %v10970_v4  ;;  %v10974_v16 = vld [vmem:[#allocation5 + $0x110] ss:$12 sps:$4 sm:$0xff]  }
 0xb9c   : > { %v4972_v50 = vadd.f32 %v9780_v12, %v14960_v46  ;;  %v15015_v51 = vadd.f32 %v4969_v53, %v14649_v13  ;;  %v10971_v53 = vld [vmem:[#allocation5 + $0x138] ss:$12 sps:$4 sm:$0xff]   ;;  %v10977_v12 = vld [vmem:[#allocation5 + $0x154] ss:$12 sps:$4 sm:$0xff]  }
 0xb9e   : > { %5029 = vadd.xlane.f32.xlu0 %v15015_v51  ;;  %v9781_v59 = vpop.f32.mrb[120].mxu1  ;;  %v15019_v39 = vadd.f32 %v4972_v50, %v14646_v60  ;;  %10270 = vmatpush3.bf16.msra.mxu1 %v10970_v4  ;;  %v10978_v50 = vld [vmem:[#allocation5 + $0x128] ss:$12 sps:$4 sm:$0xff]  }
 0xb9f   : > { %v9782_v57 = vpop.f32.mrb[121].mxu1  ;;  %10271 = vmatprep.subr.bf16.mxu1 %v10974_v16 }
 0xba0   : > { %v9783_v6 = vadd.f32 %v9782_v57, %v9781_v59  ;;  %5031 = vadd.xlane.f32.xlu1 %v15019_v39  ;;  %v9784_v28 = vpop.f32.mrb[122].mxu1  ;;  %v10975_v59 = vld [vmem:[#allocation5 + $0x150] ss:$12 sps:$4 sm:$0xff]   ;;  %v10981_v57 = vld [vmem:[#allocation5 + $0x16c] ss:$12 sps:$4 sm:$0xff]  }
 0xba1   : > { %v9785_v21 = vpop.f32.mrb[123].mxu1 }
 0xba2   : > { %v4977_v8 = vadd.f32 %v9783_v6, %v14960_v46  ;;  %v9786_v20 = vadd.f32 %v9785_v21, %v9784_v28  ;;  %10272 = vmatpush3.bf16.msra.mxu1 %v10974_v16  ;;  %v10982_v6 = vld [vmem:[#allocation5 + $0x140] ss:$12 sps:$4 sm:$0xff]   ;;  %v10979_v28 = vld [vmem:[#allocation5 + $0x168] ss:$12 sps:$4 sm:$0xff]   ;;  %v10983_v21 = vld [vmem:[#allocation5 + $0x158] ss:$12 sps:$4 sm:$0xff]  }
 0xba3   : > { %10273 = vmatprep.subr.bf16.mxu1 %v10978_v50 }
 0xba4   : > { %v4980_v61 = vadd.f32 %v9786_v20, %v14960_v46  ;;  %v15025_v13 = vadd.f32 %v4977_v8, %v14659_v9  ;;  %v10984_v8 = vld [vmem:[#allocation5 + $0x170] ss:$12 sps:$4 sm:$0xff]  }
 0xba6   : > { %5033 = vadd.xlane.f32.xlu0 %v15025_v13  ;;  %v9787_v42 = vpop.f32.mrb[124].mxu1  ;;  %v15029_v60 = vadd.f32 %v4980_v61, %v14662_v54  ;;  %v10953_v54 = vld [vmem:[#allocation5 + $0xc0] ss:$12 sps:$4 sm:$0xff]   ;;  %10274 = vmatpush3.bf16.msra.mxu1 %v10978_v50 }
 0xba7   : > { %v9788_v1 = vpop.f32.mrb[125].mxu1  ;;  %5417 = vmatpush1.bf16.msra.mxu0 %v10953_v54  ;;  %10275 = vmatprep.subr.bf16.mxu1 %v10982_v6 }
 0xba8   : > { %v9789_v18 = vadd.f32 %v9788_v1, %v9787_v42  ;;  %5035 = vadd.xlane.f32.xlu1 %v15029_v60  ;;  %v9790_v27 = vpop.f32.mrb[126].mxu1  ;;  %5418 = vmatprep.subr.bf16.mxu0 %v10958_v41 }
 0xba9   : > { %v9791_v26 = vpop.f32.mrb[127].mxu1 }
 0xbaa   : > { %v4985_v30 = vadd.f32 %v9789_v18, %v14960_v46  ;;  %v9792_v43 = vadd.f32 %v9791_v26, %v9790_v27  ;;  %10276 = vmatpush3.bf16.msra.mxu1 %v10982_v6 }
 0xbab   : > { %5419 = vmatpush1.bf16.msra.mxu0 %v10956_v29  ;;  %10277 = vmatprep.subr.bf16.mxu1 %v10983_v21 }
 0xbac   : > { %v4988_v5 = vadd.f32 %v9792_v43, %v14960_v46  ;;  %v15035_v9 = vadd.f32 %v4985_v30, %v14675_v47  ;;  %5420 = vmatprep.subr.bf16.mxu0 %v10961_v0 }
 0xbae   : > { %5037 = vadd.xlane.f32.xlu0 %v15035_v9  ;;  %v15039_v11 = vadd.f32 %v4988_v5, %v14672_v37  ;;  %10278 = vmatpush3.bf16.msra.mxu1 %v10983_v21 }
 0xbaf   : > { %5421 = vmatpush1.bf16.msra.mxu0 %v10959_v63  ;;  %10279 = vmatprep.subr.bf16.mxu1 %v10984_v8 }
 0xbb0   : > { %5039 = vadd.xlane.f32.xlu1 %v15039_v11  ;;  %5422 = vmatprep.subr.bf16.mxu0 %v10965_v3 }
 0xbb2   : > { %10280 = vmatpush3.bf16.msra.mxu1 %v10984_v8 }
 0xbcd   : > { %v5010_v15 = vpop.xlane.xlu0 %5009 }
 0xbce   : > { %v5041_v46 = vmul.f32 0.0078125, %v5010_v15 }
 0xbcf   : > { %v5012_v7 = vpop.xlane.xlu1 %5011 }
 0xbd0   : > { %v15043_v47 = vsub.f32 %v14965_v2, %v5041_v46  ;;  %v5042_v35 = vmul.f32 0.0078125, %v5012_v7 }
 0xbd2   : > { %v15046_v37 = vsub.f32 %v14969_v55, %v5042_v35  ;;  %v5073_v62 = vmul.f32 %v15043_v47, %v15043_v47 }
 0xbd4   : > { %5089 = vadd.xlane.f32.xlu0 %v5073_v62  ;;  %v5074_v10 = vmul.f32 %v15046_v37, %v15046_v37 }
 0xbd5   : > { %v5014_v24 = vpop.xlane.xlu0 %5013 }
 0xbd6   : > { %v5043_v52 = vmul.f32 0.0078125, %v5014_v24  ;;  %5091 = vadd.xlane.f32.xlu1 %v5074_v10 }
 0xbd7   : > { %v5016_v17 = vpop.xlane.xlu1 %5015 }
 0xbd8   : > { %v15053_v32 = vsub.f32 %v14975_v45, %v5043_v52  ;;  %v5044_v2 = vmul.f32 0.0078125, %v5016_v17  ;;  %v10963_v45 = vld [vmem:[#allocation5 + $0x108] ss:$12 sps:$4 sm:$0xff]  }
 0xbd9   : > { %5423 = vmatpush1.bf16.msra.mxu0 %v10963_v45 }
 0xbda   : > { %v15056_v44 = vsub.f32 %v14979_v49, %v5044_v2  ;;  %v5075_v55 = vmul.f32 %v15053_v32, %v15053_v32  ;;  %v10969_v49 = vld [vmem:[#allocation5 + $0x124] ss:$12 sps:$4 sm:$0xff]  }
 0xbdb   : > { %5424 = vmatprep.subr.bf16.mxu0 %v10969_v49 }
 0xbdc   : > { %5093 = vadd.xlane.f32.xlu0 %v5075_v55  ;;  %v5076_v23 = vmul.f32 %v15056_v44, %v15056_v44 }
 0xbdd   : > { %5425 = vmatpush1.bf16.msra.mxu0 %v10967_v14 }
 0xbde   : > { %5095 = vadd.xlane.f32.xlu1 %v5076_v23  ;;  %5426 = vmatprep.subr.bf16.mxu0 %v10973_v25 }
 0xbe1   : > { %5427 = vmatpush1.bf16.msra.mxu0 %v10971_v53 }
 0xbe2   : > { %5428 = vmatprep.subr.bf16.mxu0 %v10977_v12 }
 0xbe5   : > { %5429 = vmatpush1.bf16.msra.mxu0 %v10975_v59 }
 0xbe6   : > { %5430 = vmatprep.subr.bf16.mxu0 %v10981_v57 }
 0xbe9   : > { %5431 = vmatpush1.bf16.msra.mxu0 %v10979_v28 }
 0xc0b   : > { %v5018_v20 = vpop.xlane.xlu0 %5017 }
 0xc0c   : > { %v5045_v61 = vmul.f32 0.0078125, %v5018_v20 }
 0xc0d   : > { %v5020_v42 = vpop.xlane.xlu1 %5019 }
 0xc0e   : > { %v15063_v1 = vsub.f32 %v14985_v33, %v5045_v61  ;;  %v5046_v18 = vmul.f32 0.0078125, %v5020_v42 }
 0xc10   : > { %v15066_v27 = vsub.f32 %v14989_v36, %v5046_v18  ;;  %v5077_v26 = vmul.f32 %v15063_v1, %v15063_v1  ;;  %v15125_v18 = vld [vmem:[%s17225_s15] ss:$0 sm:$0xff] }
 0xc12   : > { %5097 = vadd.xlane.f32.xlu0 %v5077_v26  ;;  %v5078_v30 = vmul.f32 %v15066_v27, %v15066_v27 }
 0xc14   : > { %5099 = vadd.xlane.f32.xlu1 %v5078_v30 }
 0xc1b   : > { %v5022_v43 = vpop.xlane.xlu0 %5021 }
 0xc1c   : > { %v5047_v5 = vmul.f32 0.0078125, %v5022_v43 }
 0xc1d   : > { %v5024_v54 = vpop.xlane.xlu1 %5023 }
 0xc1e   : > { %v15073_v40 = vsub.f32 %v14995_v22, %v5047_v5  ;;  %v5048_v33 = vmul.f32 0.0078125, %v5024_v54  ;;  %v15133_v54 = vld [vmem:[%s17750_s19] ss:$0 sm:$0xff] }
 0xc20   : > { %v15076_v41 = vsub.f32 %v14999_v19, %v5048_v33  ;;  %v5079_v36 = vmul.f32 %v15073_v40, %v15073_v40 }
 0xc22   : > { %5101 = vadd.xlane.f32.xlu0 %v5079_v36  ;;  %v5080_v29 = vmul.f32 %v15076_v41, %v15076_v41 }
 0xc23   : > { %v5026_v15 = vpop.xlane.xlu0 %5025 }
 0xc24   : > { %5103 = vadd.xlane.f32.xlu1 %v5080_v29  ;;  %v5049_v46 = vmul.f32 0.0078125, %v5026_v15 }
 0xc25   : > { %v5028_v7 = vpop.xlane.xlu1 %5027 }
 0xc26   : > { %v15083_v35 = vsub.f32 %v15005_v38, %v5049_v46  ;;  %v5050_v22 = vmul.f32 0.0078125, %v5028_v7 }
 0xc28   : > { %v15086_v62 = vsub.f32 %v15009_v34, %v5050_v22  ;;  %v5081_v19 = vmul.f32 %v15083_v35, %v15083_v35 }
 0xc2a   : > { %5105 = vadd.xlane.f32.xlu0 %v5081_v19  ;;  %v5082_v10 = vmul.f32 %v15086_v62, %v15086_v62 }
 0xc2b   : > { %v5030_v24 = vpop.xlane.xlu0 %5029 }
 0xc2c   : > { %v5051_v52 = vmul.f32 0.0078125, %v5030_v24  ;;  %5107 = vadd.xlane.f32.xlu1 %v5082_v10 }
 0xc2d   : > { %v5032_v17 = vpop.xlane.xlu1 %5031 }
 0xc2e   : > { %v15093_v2 = vsub.f32 %v15015_v51, %v5051_v52  ;;  %v5052_v38 = vmul.f32 0.0078125, %v5032_v17 }
 0xc30   : > { %v15096_v55 = vsub.f32 %v15019_v39, %v5052_v38  ;;  %v5083_v34 = vmul.f32 %v15093_v2, %v15093_v2 }
 0xc32   : > { %5109 = vadd.xlane.f32.xlu0 %v5083_v34  ;;  %v5084_v23 = vmul.f32 %v15096_v55, %v15096_v55 }
 0xc33   : > { %v5034_v0 = vpop.xlane.xlu0 %5033 }
 0xc34   : > { %v5053_v48 = vmul.f32 0.0078125, %v5034_v0  ;;  %5111 = vadd.xlane.f32.xlu1 %v5084_v23 }
 0xc35   : > { %v5036_v63 = vpop.xlane.xlu1 %5035 }
 0xc36   : > { %v15103_v45 = vsub.f32 %v15025_v13, %v5053_v48  ;;  %v5054_v51 = vmul.f32 0.0078125, %v5036_v63 }
 0xc38   : > { %v15106_v3 = vsub.f32 %v15029_v60, %v5054_v51  ;;  %v5085_v39 = vmul.f32 %v15103_v45, %v15103_v45 }
 0xc3a   : > { %5113 = vadd.xlane.f32.xlu0 %v5085_v39  ;;  %v5086_v31 = vmul.f32 %v15106_v3, %v15106_v3 }
 0xc3b   : > { %v5038_v49 = vpop.xlane.xlu0 %5037 }
 0xc3c   : > { %v5055_v4 = vmul.f32 0.0078125, %v5038_v49  ;;  %5115 = vadd.xlane.f32.xlu1 %v5086_v31 }
 0xc3d   : > { %v5040_v14 = vpop.xlane.xlu1 %5039 }
 0xc3e   : > { %v15113_v25 = vsub.f32 %v15035_v9, %v5055_v4  ;;  %v5056_v13 = vmul.f32 0.0078125, %v5040_v14 }
 0xc40   : > { %v15116_v16 = vsub.f32 %v15039_v11, %v5056_v13  ;;  %v5087_v60 = vmul.f32 %v15113_v25, %v15113_v25 }
 0xc42   : > { %5117 = vadd.xlane.f32.xlu0 %v5087_v60  ;;  %v5088_v53 = vmul.f32 %v15116_v16, %v15116_v16 }
 0xc44   : > { %5119 = vadd.xlane.f32.xlu1 %v5088_v53 }
 0xc61   : > { %v5090_v12 = vpop.xlane.xlu0 %5089 }
 0xc62   : > { %v5121_v50 = vmul.f32 0.0078125, %v5090_v12 }
 0xc63   : > { %v5092_v59 = vpop.xlane.xlu1 %5091 }
 0xc64   : > { %v5137_v57 = vadd.f32 1e-12, %v5121_v50  ;;  %v5122_v6 = vmul.f32 0.0078125, %v5092_v59 }
 0xc66   : > { %11417 = vrsqrt.f32 %v5137_v57  ;;  %v5138_v9 = vadd.f32 1e-12, %v5122_v6 }
 0xc68   : > { %11419 = vrsqrt.f32 %v5138_v9 }
 0xc69   : > { %v5094_v28 = vpop.xlane.xlu0 %5093 }
 0xc6a   : > { %v5123_v21 = vmul.f32 0.0078125, %v5094_v28 }
 0xc6b   : > { %v5096_v11 = vpop.xlane.xlu1 %5095 }
 0xc6c   : > { %v5139_v8 = vadd.f32 1e-12, %v5123_v21  ;;  %v5124_v20 = vmul.f32 0.0078125, %v5096_v11 }
 0xc6e   : > { %11421 = vrsqrt.f32 %v5139_v8  ;;  %v5140_v61 = vadd.f32 1e-12, %v5124_v20 }
 0xc70   : > { %v11418_v42 = vpop.eup %11417  ;;  %11423 = vrsqrt.f32 %v5140_v61 }
 0xc71   : > { %v5169_v26 = vmul.f32 %v11418_v42, %v15043_v47 }
 0xc72   : > { %v11420_v30 = vpop.eup %11419 }
 0xc73   : > { %v5191_v43 = vmul.f32 %v15125_v18, %v5169_v26  ;;  %v5170_v5 = vmul.f32 %v11420_v30, %v15046_v37 }
 0xc75   : > { %v5192_v33 = vmul.f32 %v15125_v18, %v5170_v5  ;;  %v15137_v36 = vadd.f32 %v15133_v54, %v5191_v43 }
 0xc77   : > { %17751 = vst [vmem:[#allocation32_spill] sm:$0xff] %v15137_v36  ;;  %v15140_v29 = vadd.f32 %v15133_v54, %v5192_v33 }
 0xc78   : > { %v11422_v15 = vpop.eup %11421 }
 0xc79   : > { %17752 = vst [vmem:[#allocation34_spill] sm:$0xff] %v15140_v29  ;;  %v5229_v47 = vpack.c.bf16 %v15140_v29, %v15137_v36  ;;  %v5171_v46 = vmul.f32 %v11422_v15, %v15053_v32  ;;  %v17810_v29 = vld [vmem:[#allocation84_spill] sm:$0xff] }
 0xc7a   : > { %v11424_v37 = vpop.eup %11423 }
 0xc7b   : > { %5449 = vmatmul.mubr.bf16.vlgmr.msra.gmra.mrb[128].mxu0 %v5229_v47  ;;  %10281 = vmatprep.mubr.bf16.mxu1 %v5229_v47  ;;  %v5172_v7 = vmul.f32 %v11424_v37, %v15056_v44  ;;  %v5193_v22 = vmul.f32 %v15125_v18, %v5171_v46 }
 0xc7c   : > { %5458 = vmatprep.mubr.bf16.mxu0 %v17731_v56 }
 0xc7d   : > { %v5194_v19 = vmul.f32 %v15125_v18, %v5172_v7  ;;  %v15150_v10 = vadd.f32 %v15133_v54, %v5193_v22 }
 0xc7f   : > { %17753 = vst [vmem:[#allocation66_spill] sm:$0xff] %v15150_v10  ;;  %v15153_v24 = vadd.f32 %v15133_v54, %v5194_v19 }
 0xc81   : > { %17754 = vst [vmem:[#allocation128_spill] sm:$0xff] %v15153_v24  ;;  %v5230_v32 = vpack.c.bf16 %v15153_v24, %v15150_v10 }
 0xc83   : > { %5459 = vmatmul.mubr.bf16.gmra.mrb[132].mxu0 %v5230_v32  ;;  %10282 = vmatmul.mubr.bf16.vlgmr.msra.gmra.mrb[128].mxu1 %v5230_v32 }
 0xc84   : > { %5468 = vmatprep.mubr.bf16.mxu0 %v17731_v56 }
 0xc9f   : > { %v5098_v44 = vpop.xlane.xlu0 %5097 }
 0xca0   : > { %v5125_v52 = vmul.f32 0.0078125, %v5098_v44 }
 0xca1   : > { %v5100_v17 = vpop.xlane.xlu1 %5099 }
 0xca2   : > { %v5141_v38 = vadd.f32 1e-12, %v5125_v52  ;;  %v5126_v34 = vmul.f32 0.0078125, %v5100_v17 }
 0xca4   : > { %11425 = vrsqrt.f32 %v5141_v38  ;;  %v5142_v23 = vadd.f32 1e-12, %v5126_v34 }
 0xca6   : > { %11427 = vrsqrt.f32 %v5142_v23 }
 0xcae   : > { %v11426_v0 = vpop.eup %11425 }
 0xcaf   : > { %v5102_v48 = vpop.xlane.xlu0 %5101  ;;  %v5173_v63 = vmul.f32 %v11426_v0, %v15063_v1 }
 0xcb0   : > { %v11428_v51 = vpop.eup %11427  ;;  %v5127_v39 = vmul.f32 0.0078125, %v5102_v48 }
 0xcb1   : > { %v5104_v31 = vpop.xlane.xlu1 %5103  ;;  %v5174_v49 = vmul.f32 %v11428_v51, %v15066_v27  ;;  %v5195_v4 = vmul.f32 %v15125_v18, %v5173_v63 }
 0xcb2   : > { %v5143_v14 = vadd.f32 1e-12, %v5127_v39  ;;  %v5128_v13 = vmul.f32 0.0078125, %v5104_v31 }
 0xcb3   : > { %v5196_v60 = vmul.f32 %v15125_v18, %v5174_v49  ;;  %v15163_v12 = vadd.f32 %v15133_v54, %v5195_v4 }
 0xcb4   : > { %11429 = vrsqrt.f32 %v5143_v14  ;;  %v5144_v53 = vadd.f32 1e-12, %v5128_v13 }
 0xcb5   : > { %17755 = vst [vmem:[#allocation71_spill] sm:$0xff] %v15163_v12  ;;  %v15166_v50 = vadd.f32 %v15133_v54, %v5196_v60 }
 0xcb6   : > { %11431 = vrsqrt.f32 %v5144_v53 }
 0xcb7   : > { %17756 = vst [vmem:[#allocation58_spill] sm:$0xff] %v15166_v50  ;;  %v5106_v1 = vpop.xlane.xlu0 %5105  ;;  %v5231_v59 = vpack.c.bf16 %v15166_v50, %v15163_v12  ;;  %v17804_v50 = vld [vmem:[#allocation75_spill] sm:$0xff] }
 0xcb8   : > { %v5129_v27 = vmul.f32 0.0078125, %v5106_v1 }
 0xcb9   : > { %v5108_v57 = vpop.xlane.xlu1 %5107  ;;  %5469 = vmatmul.mubr.bf16.gmra.mrb[136].mxu0 %v5231_v59  ;;  %10285 = vmatprep.mubr.bf16.mxu1 %v5231_v59 }
 0xcba   : > { %v5145_v6 = vadd.f32 1e-12, %v5129_v27  ;;  %v5130_v9 = vmul.f32 0.0078125, %v5108_v57  ;;  %5478 = vmatprep.mubr.bf16.mxu0 %v17731_v56 }
 0xcbc   : > { %11433 = vrsqrt.f32 %v5145_v6  ;;  %v5146_v28 = vadd.f32 1e-12, %v5130_v9 }
 0xcbe   : > { %v11430_v21 = vpop.eup %11429  ;;  %11435 = vrsqrt.f32 %v5146_v28 }
 0xcbf   : > { %v5110_v11 = vpop.xlane.xlu0 %5109  ;;  %v5175_v8 = vmul.f32 %v11430_v21, %v15073_v40 }
 0xcc0   : > { %v11432_v20 = vpop.eup %11431  ;;  %v5131_v61 = vmul.f32 0.0078125, %v5110_v11 }
 0xcc1   : > { %v5112_v42 = vpop.xlane.xlu1 %5111  ;;  %v5176_v26 = vmul.f32 %v11432_v20, %v15076_v41  ;;  %v5197_v30 = vmul.f32 %v15125_v18, %v5175_v8 }
 0xcc2   : > { %v5147_v43 = vadd.f32 1e-12, %v5131_v61  ;;  %v5132_v5 = vmul.f32 0.0078125, %v5112_v42 }
 0xcc3   : > { %v5198_v33 = vmul.f32 %v15125_v18, %v5176_v26  ;;  %v15176_v47 = vadd.f32 %v15133_v54, %v5197_v30 }
 0xcc4   : > { %11437 = vrsqrt.f32 %v5147_v43  ;;  %v5148_v15 = vadd.f32 1e-12, %v5132_v5 }
 0xcc5   : > { %17757 = vst [vmem:[#allocation52_spill] sm:$0xff] %v15176_v47  ;;  %v15179_v46 = vadd.f32 %v15133_v54, %v5198_v33 }
 0xcc6   : > { %v11434_v40 = vpop.eup %11433  ;;  %11439 = vrsqrt.f32 %v5148_v15 }
 0xcc7   : > { %17758 = vst [vmem:[#allocation126_spill] sm:$0xff] %v15179_v46  ;;  %v5232_v37 = vpack.c.bf16 %v15179_v46, %v15176_v47  ;;  %v5114_v41 = vpop.xlane.xlu0 %5113  ;;  %v5177_v7 = vmul.f32 %v11434_v40, %v15083_v35 }
 0xcc8   : > { %v11436_v22 = vpop.eup %11435  ;;  %v5133_v19 = vmul.f32 0.0078125, %v5114_v41 }
 0xcc9   : > { %5479 = vmatmul.mubr.bf16.gmra.mrb[140].mxu0 %v5232_v37  ;;  %10286 = vmatmul.mubr.bf16.gmra.mrb[132].mxu1 %v5232_v37  ;;  %v5116_v32 = vpop.xlane.xlu1 %5115  ;;  %v5178_v44 = vmul.f32 %v11436_v22, %v15086_v62  ;;  %v5199_v52 = vmul.f32 %v15125_v18, %v5177_v7  ;;  %v17767_v22 = vld [vmem:[#allocation30_spill] sm:$0xff] }
 0xcca   : > { %v5149_v17 = vadd.f32 1e-12, %v5133_v19  ;;  %v5134_v38 = vmul.f32 0.0078125, %v5116_v32  ;;  %5488 = vmatprep.mubr.bf16.mxu0 %v17731_v56  ;;  %v17768_v19 = vsub.s32 2, %v17767_v22 }
 0xccb   : > { %v5200_v34 = vmul.f32 %v15125_v18, %v5178_v44  ;;  %v15189_v0 = vadd.f32 %v15133_v54, %v5199_v52 }
 0xccc   : > { %11441 = vrsqrt.f32 %v5149_v17  ;;  %v5150_v23 = vadd.f32 1e-12, %v5134_v38 }
 0xccd   : > { %17759 = vst [vmem:[#allocation63_spill] sm:$0xff] %v15189_v0  ;;  %v15192_v35 = vadd.f32 %v15133_v54, %v5200_v34 }
 0xcce   : > { %v11438_v48 = vpop.eup %11437  ;;  %11443 = vrsqrt.f32 %v5150_v23 }
 0xccf   : > { %17760 = vst [vmem:[#allocation56_spill] sm:$0xff] %v15192_v35  ;;  %v5118_v63 = vpop.xlane.xlu0 %5117  ;;  %v5233_v62 = vpack.c.bf16 %v15192_v35, %v15189_v0  ;;  %v5179_v51 = vmul.f32 %v11438_v48, %v15093_v2  ;;  %v17802_v35 = vld [vmem:[#allocation70_spill] sm:$0xff] }
 0xcd0   : > { %v11440_v39 = vpop.eup %11439  ;;  %v5135_v31 = vmul.f32 0.0078125, %v5118_v63 }
 0xcd1   : > { %v5120_v49 = vpop.xlane.xlu1 %5119  ;;  %5489 = vmatmul.mubr.bf16.gmra.mrb[144].mxu0 %v5233_v62  ;;  %10289 = vmatprep.mubr.bf16.mxu1 %v5233_v62  ;;  %v5180_v4 = vmul.f32 %v11440_v39, %v15096_v55  ;;  %v5201_v14 = vmul.f32 %v15125_v18, %v5179_v51 }
 0xcd2   : > { %v5151_v13 = vadd.f32 1e-12, %v5135_v31  ;;  %v5136_v60 = vmul.f32 0.0078125, %v5120_v49  ;;  %5498 = vmatprep.mubr.bf16.mxu0 %v17731_v56 }
 0xcd3   : > { %v5202_v53 = vmul.f32 %v15125_v18, %v5180_v4  ;;  %v15202_v59 = vadd.f32 %v15133_v54, %v5201_v14 }
 0xcd4   : > { %11445 = vrsqrt.f32 %v5151_v13  ;;  %v5152_v1 = vadd.f32 1e-12, %v5136_v60 }
 0xcd5   : > { %17761 = vst [vmem:[#allocation54_spill] sm:$0xff] %v15202_v59  ;;  %v15205_v2 = vadd.f32 %v15133_v54, %v5202_v53  ;;  %v17769_v53 = vld [vmem:[#allocation33_spill] sm:$0xff] }
 0xcd6   : > { %v11442_v27 = vpop.eup %11441  ;;  %11447 = vrsqrt.f32 %v5152_v1 }
 0xcd7   : > { %17762 = vst [vmem:[#allocation35_spill] sm:$0xff] %v15205_v2  ;;  %v5234_v55 = vpack.c.bf16 %v15205_v2, %v15202_v59  ;;  %v5181_v57 = vmul.f32 %v11442_v27, %v15103_v45  ;;  %v17801_v59 = vld [vmem:[#allocation69_spill] sm:$0xff] }
 0xcd8   : > { %v11444_v6 = vpop.eup %11443 }
 0xcd9   : > { %5499 = vmatmul.mubr.bf16.gmra.mrb[148].mxu0 %v5234_v55  ;;  %10290 = vmatmul.mubr.bf16.gmra.mrb[136].mxu1 %v5234_v55  ;;  %v5182_v9 = vmul.f32 %v11444_v6, %v15106_v3  ;;  %v5203_v28 = vmul.f32 %v15125_v18, %v5181_v57 }
 0xcda   : > { %5508 = vmatprep.mubr.bf16.mxu0 %v17731_v56 }
 0xcdb   : > { %v5204_v21 = vmul.f32 %v15125_v18, %v5182_v9  ;;  %v15215_v11 = vadd.f32 %v15133_v54, %v5203_v28 }
 0xcdd   : > { %17763 = vst [vmem:[#allocation109_spill] sm:$0xff] %v15215_v11  ;;  %v15218_v8 = vadd.f32 %v15133_v54, %v5204_v21 }
 0xcde   : > { %v11446_v20 = vpop.eup %11445 }
 0xcdf   : > { %17764 = vst [vmem:[#allocation116_spill] sm:$0xff] %v15218_v8  ;;  %v5235_v45 = vpack.c.bf16 %v15218_v8, %v15215_v11  ;;  %v5183_v61 = vmul.f32 %v11446_v20, %v15113_v25  ;;  %v17798_v8 = vld [vmem:[#allocation62_spill] sm:$0xff] }
 0xce0   : > { %v11448_v42 = vpop.eup %11447 }
 0xce1   : > { %5509 = vmatmul.mubr.bf16.gmra.mrb[152].mxu0 %v5235_v45  ;;  %10293 = vmatprep.mubr.bf16.mxu1 %v5235_v45  ;;  %v5184_v3 = vmul.f32 %v11448_v42, %v15116_v16  ;;  %v5205_v26 = vmul.f32 %v15125_v18, %v5183_v61  ;;  %v9474_v16 = vld [vmem:[%s17517_s24 + $0x3] sm:$0x7] }
 0xce2   : > { %5518 = vmatprep.mubr.bf16.mxu0 %v17731_v56  ;;  %v15239_v33 = vrot.slane %v9474_v16, %v17748_v58  ;;  %v15251_v32 = vrot.slane %v9474_v16, %v17768_v19  ;;  %v15268_v1 = vrot.slane %v9474_v16, %v17769_v53 }
 0xce3   : > { %v5206_v30 = vmul.f32 %v15125_v18, %v5184_v3  ;;  %v15228_v43 = vadd.f32 %v15133_v54, %v5205_v26 }
 0xce5   : > { %17765 = vst [vmem:[#allocation120_spill] sm:$0xff] %v15228_v43  ;;  %v15231_v5 = vadd.f32 %v15133_v54, %v5206_v30 }
 0xce7   : > { %17766 = vst [vmem:[#allocation123_spill] sm:$0xff] %v15231_v5  ;;  %v5236_v25 = vpack.c.bf16 %v15231_v5, %v15228_v43  ;;  %v17797_v43 = vld [vmem:[#allocation61_spill] sm:$0xff] }
 0xce9   : > { %5519 = vmatmul.mubr.bf16.gmra.mrb[156].mxu0 %v5236_v25  ;;  %10294 = vmatmul.mubr.bf16.gmra.mrb[140].mxu1 %v5236_v25 }
 0xd4e   : > { %v5450_v15 = vpop.f32.mrb[128].mxu0 }
 0xd4f   : > { %v5452_v18 = vpop.f32.mrb[129].mxu0  ;;  %v5451_v37 = vadd.f32 %v5450_v15, %v15239_v33 }
 0xd50   : > { %v5454_v40 = vpop.f32.mrb[130].mxu0  ;;  %v5453_v27 = vadd.f32 %v5452_v18, %v15268_v1 }
 0xd51   : > { %v5455_v54 = vadd.f32 %v5454_v40, %v15239_v33  ;;  %v5456_v41 = vpop.f32.mrb[131].mxu0 }
 0xd52   : > { %v5457_v55 = vadd.f32 %v5456_v41, %v15268_v1 }
 0xd53   : > { %v15243_v7 = vpack.c.bf16 %v5455_v54, %v5451_v37 }
 0xd55   : > { %5811 = vrot.lane.b32.xlu0 %v15243_v7, %s12031_s18  ;;  %10301 = vmatprep.mubr.msk.bf16.mxu1 %vm1889_vm0, %v15243_v7 }
 0xd56   : > { %v5460_v44 = vpop.f32.mrb[132].mxu0  ;;  %v10283_v52 = vpop.f32.mrb[128].mxu1 }
 0xd57   : > { %v5462_v17 = vpop.f32.mrb[133].mxu0  ;;  %v5563_v38 = vpop.f32.mrb[129].mxu1  ;;  %v5461_v48 = vadd.f32 %v5460_v44, %v15239_v33  ;;  %v5572_v63 = vadd.f32 %v10283_v52, %v15251_v32 }
 0xd58   : > { %v5464_v34 = vpop.f32.mrb[134].mxu0  ;;  %v10284_v23 = vpop.f32.mrb[130].mxu1  ;;  %v5564_v49 = vadd.f32 %v5563_v38, %v15251_v32  ;;  %v5463_v57 = vadd.f32 %v5462_v17, %v15268_v1 }
 0xd59   : > { %v5465_v62 = vadd.f32 %v5464_v34, %v15239_v33  ;;  %v5575_v51 = vadd.f32 %v10284_v23, %v15251_v32  ;;  %v5466_v39 = vpop.f32.mrb[135].mxu0  ;;  %v5566_v31 = vpop.f32.mrb[131].mxu1 }
 0xd5a   : > { %v5567_v4 = vadd.f32 %v5566_v31, %v15251_v32  ;;  %v5467_v21 = vadd.f32 %v5466_v39, %v15268_v1 }
 0xd5b   : > { %v15259_v14 = vpack.c.bf16 %v5465_v62, %v5461_v48  ;;  %v15261_v13 = vpack.c.bf16 %v5575_v51, %v5572_v63 }
 0xd5c   : > { %v15263_v60 = vpack.c.bf16 %v5567_v4, %v5564_v49 }
 0xd5d   : > { %5813 = vrot.lane.b32.xlu1 %v15259_v14, %s12031_s18 }
 0xd86   : > { %5634 = vxpose.xlu1.b32.start [1/16] %v5453_v27, 128 }
 0xd8a   : > { %5635 = vxpose.xlu1.b32.cont [2/16] %v5457_v55, 128 }
 0xd8c   : > { %v5470_v6 = vpop.f32.mrb[136].mxu0 }
 0xd8d   : > { %v5472_v9 = vpop.f32.mrb[137].mxu0  ;;  %v5471_v20 = vadd.f32 %v5470_v6, %v15239_v33 }
 0xd8e   : > { %5636 = vxpose.xlu1.b32.cont [3/16] %v5463_v57, 128  ;;  %v5474_v28 = vpop.f32.mrb[138].mxu0  ;;  %v5473_v3 = vadd.f32 %v5472_v9, %v15268_v1 }
 0xd8f   : > { %v5475_v45 = vadd.f32 %v5474_v28, %v15239_v33  ;;  %v5476_v61 = vpop.f32.mrb[139].mxu0 }
 0xd90   : > { %v5477_v26 = vadd.f32 %v5476_v61, %v15268_v1 }
 0xd91   : > { %v15276_v42 = vpack.c.bf16 %v5475_v45, %v5471_v20 }
 0xd92   : > { %5637 = vxpose.xlu1.b32.cont [4/16] %v5467_v21, 128 }
 0xd93   : > { %5815 = vrot.lane.b32.xlu0 %v15276_v42, %s12031_s18 }
 0xd96   : > { %5638 = vxpose.xlu1.b32.cont [5/16] %v5473_v3, 128 }
 0xd9a   : > { %5639 = vxpose.xlu1.b32.cont [6/16] %v5477_v26, 128 }
 0xd9c   : > { %v5480_v30 = vpop.f32.mrb[140].mxu0  ;;  %v10287_v25 = vpop.f32.mrb[132].mxu1 }
 0xd9d   : > { %v5482_v16 = vpop.f32.mrb[141].mxu0  ;;  %v5579_v15 = vpop.f32.mrb[133].mxu1  ;;  %v5481_v54 = vadd.f32 %v5480_v30, %v15239_v33  ;;  %v5588_v41 = vadd.f32 %v10287_v25, %v15251_v32 }
 0xd9e   : > { %v5483_v18 = vadd.f32 %v5482_v16, %v15268_v1  ;;  %v5484_v40 = vpop.f32.mrb[142].mxu0  ;;  %v10288_v37 = vpop.f32.mrb[134].mxu1  ;;  %v5580_v17 = vadd.f32 %v5579_v15, %v15251_v32 }
 0xd9f   : > { %v5485_v22 = vadd.f32 %v5484_v40, %v15239_v33  ;;  %v5591_v19 = vadd.f32 %v10288_v37, %v15251_v32  ;;  %v5486_v44 = vpop.f32.mrb[143].mxu0  ;;  %v5582_v52 = vpop.f32.mrb[135].mxu1 }
 0xda0   : > { %v5583_v38 = vadd.f32 %v5582_v52, %v15251_v32  ;;  %5640 = vxpose.xlu1.b32.cont [7/16] %v5483_v18, 128  ;;  %v5487_v48 = vadd.f32 %v5486_v44, %v15268_v1 }
 0xda1   : > { %v15289_v34 = vpack.c.bf16 %v5485_v22, %v5481_v54  ;;  %v15291_v23 = vpack.c.bf16 %v5591_v19, %v5588_v41 }
 0xda2   : > { %v15294_v63 = vpack.c.bf16 %v5583_v38, %v5580_v17 }
 0xda3   : > { %5817 = vrot.lane.b32.xlu0 %v15289_v34, %s12031_s18 }
 0xda4   : > { %v5490_v62 = vpop.f32.mrb[144].mxu0  ;;  %5641 = vxpose.xlu1.b32.cont [8/16] %v5487_v48, 128 }
 0xda5   : > { %v5492_v51 = vpop.f32.mrb[145].mxu0  ;;  %v5491_v49 = vadd.f32 %v5490_v62, %v15239_v33 }
 0xda6   : > { %v5493_v39 = vadd.f32 %v5492_v51, %v15268_v1  ;;  %v5494_v31 = vpop.f32.mrb[146].mxu0 }
 0xda7   : > { %v5495_v4 = vadd.f32 %v5494_v31, %v15239_v33  ;;  %v5496_v27 = vpop.f32.mrb[147].mxu0 }
 0xda8   : > { %5642 = vxpose.xlu1.b32.cont [9/16] %v5493_v39, 128  ;;  %v5497_v57 = vadd.f32 %v5496_v27, %v15268_v1 }
 0xda9   : > { %v15301_v55 = vpack.c.bf16 %v5495_v4, %v5491_v49 }
 0xdab   : > { %5819 = vrot.lane.b32.xlu0 %v15301_v55, %s12031_s18 }
 0xdac   : > { %v5500_v6 = vpop.f32.mrb[148].mxu0  ;;  %v10291_v9 = vpop.f32.mrb[136].mxu1  ;;  %5643 = vxpose.xlu1.b32.cont [10/16] %v5497_v57, 128 }
 0xdad   : > { %v5502_v28 = vpop.f32.mrb[149].mxu0  ;;  %v5595_v21 = vpop.f32.mrb[137].mxu1  ;;  %v5501_v3 = vadd.f32 %v5500_v6, %v15239_v33  ;;  %v5604_v26 = vadd.f32 %v10291_v9, %v15251_v32 }
 0xdae   : > { %v5503_v20 = vadd.f32 %v5502_v28, %v15268_v1  ;;  %v5504_v45 = vpop.f32.mrb[150].mxu0  ;;  %v10292_v61 = vpop.f32.mrb[138].mxu1  ;;  %v5596_v18 = vadd.f32 %v5595_v21, %v15251_v32 }
 0xdaf   : > { %v5505_v30 = vadd.f32 %v5504_v45, %v15239_v33  ;;  %v5607_v25 = vadd.f32 %v10292_v61, %v15251_v32  ;;  %v5506_v16 = vpop.f32.mrb[151].mxu0  ;;  %v5598_v15 = vpop.f32.mrb[139].mxu1 }
 0xdb0   : > { %v5599_v40 = vadd.f32 %v5598_v15, %v15251_v32  ;;  %5644 = vxpose.xlu1.b32.cont [11/16] %v5503_v20, 128  ;;  %v5507_v41 = vadd.f32 %v5506_v16, %v15268_v1 }
 0xdb1   : > { %v15313_v37 = vpack.c.bf16 %v5505_v30, %v5501_v3  ;;  %v15315_v54 = vpack.c.bf16 %v5607_v25, %v5604_v26 }
 0xdb2   : > { %v15318_v22 = vpack.c.bf16 %v5599_v40, %v5596_v18 }
 0xdb3   : > { %5821 = vrot.lane.b32.xlu0 %v15313_v37, %s12031_s18 }
 0xdb4   : > { %v5510_v19 = vpop.f32.mrb[152].mxu0  ;;  %5645 = vxpose.xlu1.b32.cont [12/16] %v5507_v41, 128 }
 0xdb5   : > { %v5512_v44 = vpop.f32.mrb[153].mxu0  ;;  %v5511_v38 = vadd.f32 %v5510_v19, %v15239_v33 }
 0xdb6   : > { %v5513_v52 = vadd.f32 %v5512_v44, %v15268_v1  ;;  %v5514_v17 = vpop.f32.mrb[154].mxu0 }
 0xdb7   : > { %v5515_v48 = vadd.f32 %v5514_v17, %v15239_v33  ;;  %v5516_v62 = vpop.f32.mrb[155].mxu0 }
 0xdb8   : > { %5646 = vxpose.xlu1.b32.cont [13/16] %v5513_v52, 128  ;;  %v5517_v39 = vadd.f32 %v5516_v62, %v15268_v1 }
 0xdb9   : > { %v15325_v51 = vpack.c.bf16 %v5515_v48, %v5511_v38 }
 0xdbb   : > { %5823 = vrot.lane.b32.xlu0 %v15325_v51, %s12031_s18 }
 0xdbc   : > { %v5520_v31 = vpop.f32.mrb[156].mxu0  ;;  %v10295_v49 = vpop.f32.mrb[140].mxu1  ;;  %5647 = vxpose.xlu1.b32.cont [14/16] %v5517_v39, 128 }
 0xdbd   : > { %v5522_v4 = vpop.f32.mrb[157].mxu0  ;;  %v5611_v27 = vpop.f32.mrb[141].mxu1  ;;  %v5521_v28 = vadd.f32 %v5520_v31, %v15239_v33  ;;  %v5620_v21 = vadd.f32 %v10295_v49, %v15251_v32 }
 0xdbe   : > { %v5523_v57 = vadd.f32 %v5522_v4, %v15268_v1  ;;  %v5524_v6 = vpop.f32.mrb[158].mxu0  ;;  %v10296_v9 = vpop.f32.mrb[142].mxu1  ;;  %v5612_v26 = vadd.f32 %v5611_v27, %v15251_v32 }
 0xdbf   : > { %v5525_v20 = vadd.f32 %v5524_v6, %v15239_v33  ;;  %v5623_v45 = vadd.f32 %v10296_v9, %v15251_v32  ;;  %v5526_v61 = vpop.f32.mrb[159].mxu0  ;;  %v5614_v3 = vpop.f32.mrb[143].mxu1 }
 0xdc0   : > { %v5527_v30 = vadd.f32 %v5526_v61, %v15268_v1  ;;  %v5615_v25 = vadd.f32 %v5614_v3, %v15251_v32  ;;  %5648 = vxpose.xlu1.b32.cont [15/16] %v5523_v57, 128 }
 0xdc1   : > { %v15338_v16 = vpack.c.bf16 %v5525_v20, %v5521_v28  ;;  %v15340_v15 = vpack.c.bf16 %v5623_v45, %v5620_v21 }
 0xdc2   : > { %v15342_v18 = vpack.c.bf16 %v5615_v25, %v5612_v26 }
 0xdc3   : > { %17770 = vst [vmem:[#allocation64_spill] sm:$0xff] %v15340_v15  ;;  %5825 = vrot.lane.b32.xlu0 %v15338_v16, %s12031_s18 }
 0xdc4   : > { %5649 = vxpose.xlu1.b32.end [16/16] %v5527_v30, 128 }
 0xdc7   : > { %v5812_v33 = vpop.permute.xlu0 %5811  ;;  %5948 = vrot.lane.b32.xlu0 %v15243_v7, %s12032_s3 }
 0xdc8   : > { %10321 = vmatprep.mubr.msk.bf16.mxu0 %vm1889_vm0, %v5812_v33 }
 0xdcb   : > { %5950 = vrot.lane.b32.xlu0 %v15259_v14, %s12032_s3 }
 0xdcf   : > { %6085 = vrot.lane.b32.xlu0 %v15243_v7, %s12033_s22  ;;  %v5814_v7 = vpop.permute.xlu1 %5813 }
 0xdd3   : > { %6087 = vrot.lane.b32.xlu0 %v15259_v14, %s12033_s22 }
 0xdd7   : > { %5952 = vrot.lane.b32.xlu0 %v15276_v42, %s12032_s3 }
 0xddb   : > { %5954 = vrot.lane.b32.xlu0 %v15289_v34, %s12032_s3 }
 0xddf   : > { %6089 = vrot.lane.b32.xlu0 %v15276_v42, %s12033_s22 }
 0xde2   : > { %7001 = vrot.lane.b32.xlu1 %v15261_v13, %s12031_s18 }
 0xde3   : > { %6091 = vrot.lane.b32.xlu0 %v15289_v34, %s12033_s22  ;;  %10870 = vset.pattern.permute.xlu1 %v17731_v56 }
 0xde6   : > { %7003 = vrot.lane.b32.xlu1 %v15294_v63, %s12031_s18 }
 0xde7   : > { %5956 = vrot.lane.b32.xlu0 %v15301_v55, %s12032_s3 }
 0xdea   : > { %7007 = vrot.lane.b32.xlu1 %v15318_v22, %s12031_s18 }
 0xdeb   : > { %5958 = vrot.lane.b32.xlu0 %v15313_v37, %s12032_s3 }
 0xdee   : > { %7009 = vrot.lane.b32.xlu1 %v15315_v54, %s12031_s18 }
 0xdef   : > { %6093 = vrot.lane.b32.xlu0 %v15301_v55, %s12033_s22 }
 0xdf2   : > { %7013 = vrot.lane.b32.xlu1 %v15340_v15, %s12031_s18 }
 0xdf3   : > { %6095 = vrot.lane.b32.xlu0 %v15313_v37, %s12033_s22 }
 0xdf6   : > { %7241 = vrot.lane.b32.xlu1 %v15263_v60, %s12033_s22 }
 0xdf7   : > { %5960 = vrot.lane.b32.xlu0 %v15325_v51, %s12032_s3 }
 0xdfa   : > { %7243 = vrot.lane.b32.xlu1 %v15261_v13, %s12033_s22 }
 0xdfb   : > { %5962 = vrot.lane.b32.xlu0 %v15338_v16, %s12032_s3 }
 0xdfe   : > { %7124 = vrot.lane.b32.xlu1 %v15294_v63, %s12032_s3 }
 0xdff   : > { %6097 = vrot.lane.b32.xlu0 %v15325_v51, %s12033_s22 }
 0xe02   : > { %7245 = vrot.lane.b32.xlu1 %v15294_v63, %s12033_s22 }
 0xe03   : > { %6099 = vrot.lane.b32.xlu0 %v15338_v16, %s12033_s22 }
 0xe05   : > { %v5816_v62 = vpop.permute.xlu0 %5815 }
 0xe06   : > { %7247 = vrot.lane.b32.xlu1 %v15291_v23, %s12033_s22 }
 0xe07   : > { %6999 = vrot.lane.b32.xlu0 %v15263_v60, %s12031_s18 }
 0xe08   : > { %v5650_v32 = vpop.trf.xlu1 }
 0xe0a   : > { %7249 = vrot.lane.b32.xlu1 %v15318_v22, %s12033_s22 }
 0xe0b   : > { %7005 = vrot.lane.b32.xlu0 %v15291_v23, %s12031_s18 }
 0xe0c   : > { %v5651_v1 = vpop.trf.xlu1 }
 0xe0d   : > { %v5666_v40 = vpack.c.bf16 %v5651_v1, %v5650_v32 }
 0xe0e   : > { %7251 = vrot.lane.b32.xlu1 %v15315_v54, %s12033_s22 }
 0xe0f   : > { %7120 = vrot.lane.b32.xlu0 %v15263_v60, %s12032_s3  ;;  %10297 = vmatprep.subr.bf16.mxu1 %v5666_v40 }
 0xe10   : > { %10298 = vmatpush3.bf16.msra.mxu1 %v5666_v40  ;;  %v5652_v41 = vpop.trf.xlu1 }
 0xe12   : > { %7132 = vrot.lane.b32.xlu1 %v15342_v18, %s12032_s3 }
 0xe13   : > { %7122 = vrot.lane.b32.xlu0 %v15261_v13, %s12032_s3 }
 0xe14   : > { %v5653_v19 = vpop.trf.xlu1 }
 0xe15   : > { %v5667_v44 = vpack.c.bf16 %v5653_v19, %v5652_v41 }
 0xe16   : > { %7253 = vrot.lane.b32.xlu1 %v15342_v18, %s12033_s22 }
 0xe17   : > { %7126 = vrot.lane.b32.xlu0 %v15291_v23, %s12032_s3  ;;  %10299 = vmatprep.subr.bf16.mxu1 %v5667_v44 }
 0xe18   : > { %10300 = vmatpush3.bf16.msra.mxu1 %v5667_v44  ;;  %v5654_v52 = vpop.trf.xlu1 }
 0xe1b   : > { %7128 = vrot.lane.b32.xlu0 %v15318_v22, %s12032_s3  ;;  %10302 = vmatmul.mubr.msk.bf16.vlgmr.msra.gmra.mrb[144].mxu1 %vm1889_vm0, %v15259_v14 }
 0xe1c   : > { %10305 = vmatprep.mubr.msk.bf16.mxu1 %vm1889_vm0, %v15276_v42  ;;  %v5655_v17 = vpop.trf.xlu1  ;;  %v5818_v42 = vpop.permute.xlu0 %5817 }
 0xe1d   : > { %v5668_v38 = vpack.c.bf16 %v5655_v17, %v5654_v52 }
 0xe1f   : > { %7130 = vrot.lane.b32.xlu0 %v15315_v54, %s12032_s3  ;;  %10317 = vmatprep.subr.bf16.mxu0 %v5668_v38 }
 0xe20   : > { %10318 = vmatpush3.bf16.msra.mxu0 %v5668_v38  ;;  %v5656_v48 = vpop.trf.xlu1  ;;  %v5820_v49 = vpop.permute.xlu0 %5819 }
 0xe23   : > { %7011 = vrot.lane.b32.xlu0 %v15342_v18, %s12031_s18  ;;  %10306 = vmatmul.mubr.msk.bf16.gmra.mrb[148].mxu1 %vm1889_vm0, %v15289_v34 }
 0xe24   : > { %10309 = vmatprep.mubr.msk.bf16.mxu1 %vm1889_vm0, %v15301_v55  ;;  %v5657_v14 = vpop.trf.xlu1 }
 0xe25   : > { %v5669_v39 = vpack.c.bf16 %v5657_v14, %v5656_v48  ;;  %v5822_v34 = vpop.permute.xlu0 %5821 }
 0xe27   : > { %10319 = vmatprep.subr.bf16.mxu0 %v5669_v39 }
 0xe28   : > { %10320 = vmatpush3.bf16.msra.mxu0 %v5669_v39  ;;  %v5658_v31 = vpop.trf.xlu1 }
 0xe2b   : > { %10310 = vmatmul.mubr.msk.bf16.gmra.mrb[152].mxu1 %vm1889_vm0, %v15313_v37  ;;  %10322 = vmatmul.mubr.msk.bf16.vlgmr.msra.gmra.mrb[160].mxu0 %vm1889_vm0, %v5814_v7 }
 0xe2c   : > { %10313 = vmatprep.mubr.msk.bf16.mxu1 %vm1889_vm0, %v15325_v51  ;;  %v5659_v4 = vpop.trf.xlu1  ;;  %10325 = vmatprep.mubr.msk.bf16.mxu0 %vm1889_vm0, %v5816_v62 }
 0xe2d   : > { %v5670_v55 = vpack.c.bf16 %v5659_v4, %v5658_v31  ;;  %v5824_v57 = vpop.permute.xlu0 %5823 }
 0xe2f   : > { %10337 = vmatprep.subr.bf16.mxu1 %v5670_v55 }
 0xe30   : > { %v5660_v27 = vpop.trf.xlu1  ;;  %10338 = vmatpush3.bf16.msra.mxu1 %v5670_v55 }
 0xe33   : > { %10314 = vmatmul.mubr.msk.bf16.gmra.mrb[156].mxu1 %vm1889_vm0, %v15338_v16  ;;  %10326 = vmatmul.mubr.msk.bf16.gmra.mrb[164].mxu0 %vm1889_vm0, %v5818_v42 }
 0xe34   : > { %v5661_v37 = vpop.trf.xlu1  ;;  %10329 = vmatprep.mubr.msk.bf16.mxu0 %vm1889_vm0, %v5820_v49 }
 0xe35   : > { %v5826_v6 = vpop.permute.xlu0 %5825  ;;  %v5671_v9 = vpack.c.bf16 %v5661_v37, %v5660_v27 }
 0xe37   : > { %10339 = vmatprep.subr.bf16.mxu1 %v5671_v9 }
 0xe38   : > { %10340 = vmatpush3.bf16.msra.mxu1 %v5671_v9  ;;  %v5662_v51 = vpop.trf.xlu1 }
 0xe39   : > { %v5949_v28 = vpop.permute.xlu0 %5948  ;;  %10377 = vmatprep.subr.bf16.mxu1 %v15263_v60 }
 0xe3a   : > { %10341 = vmatprep.mubr.msk.bf16.mxu1 %vm1889_vm0, %v5949_v28 }
 0xe3b   : > { %10330 = vmatmul.mubr.msk.bf16.gmra.mrb[168].mxu0 %vm1889_vm0, %v5822_v34  ;;  %v17777_v34 = vld [vmem:[#allocation36_spill] sm:$0xff] }
 0xe3c   : > { %v5663_v21 = vpop.trf.xlu1  ;;  %10333 = vmatprep.mubr.msk.bf16.mxu0 %vm1889_vm0, %v5824_v57 }
 0xe3d   : > { %v5951_v20 = vpop.permute.xlu0 %5950  ;;  %v5672_v45 = vpack.c.bf16 %v5663_v21, %v5662_v51  ;;  %v17779_v51 = vld [vmem:[#allocation37_spill] sm:$0xff] }
 0xe3e   : > { %10342 = vmatmul.mubr.msk.bf16.vlgmr.msra.gmra.mrb[160].mxu1 %vm1889_vm0, %v5951_v20  ;;  %v17780_v20 = vld [vmem:[#allocation39_spill] sm:$0xff] }
 0xe3f   : > { %10378 = vmatpush3.bf16.msra.mxu1 %v15263_v60  ;;  %10357 = vmatprep.subr.bf16.mxu0 %v5672_v45 }
 0xe40   : > { %10379 = vmatprep.subr.bf16.mxu1 %v15261_v13  ;;  %v5664_v61 = vpop.trf.xlu1  ;;  %10358 = vmatpush3.bf16.msra.mxu0 %v5672_v45 }
 0xe41   : > { %v6086_v3 = vpop.permute.xlu0 %6085 }
 0xe43   : > { %10380 = vmatpush3.bf16.msra.mxu1 %v15261_v13  ;;  %10334 = vmatmul.mubr.msk.bf16.gmra.mrb[172].mxu0 %vm1889_vm0, %v5826_v6  ;;  %v17778_v6 = vld [vmem:[#allocation38_spill] sm:$0xff] }
 0xe44   : > { %10381 = vmatprep.subr.bf16.mxu1 %v15294_v63  ;;  %v5665_v26 = vpop.trf.xlu1  ;;  %10361 = vmatprep.mubr.msk.bf16.mxu0 %vm1889_vm0, %v6086_v3 }
 0xe45   : > { %v6088_v30 = vpop.permute.xlu0 %6087  ;;  %v5673_v25 = vpack.c.bf16 %v5665_v26, %v5664_v61  ;;  %v17781_v26 = vld [vmem:[#allocation40_spill] sm:$0xff] }
 0xe47   : > { %10382 = vmatpush3.bf16.msra.mxu1 %v15294_v63  ;;  %10359 = vmatprep.subr.bf16.mxu0 %v5673_v25 }
 0xe48   : > { %10383 = vmatprep.subr.bf16.mxu1 %v15291_v23  ;;  %10360 = vmatpush3.bf16.msra.mxu0 %v5673_v25 }
 0xe49   : > { %v5953_v60 = vpop.permute.xlu0 %5952 }
 0xe4a   : > { %10345 = vmatprep.mubr.msk.bf16.mxu1 %vm1889_vm0, %v5953_v60  ;;  %v17782_v60 = vld [vmem:[#allocation41_spill] sm:$0xff] }
 0xe4b   : > { %10384 = vmatpush3.bf16.msra.mxu1 %v15291_v23  ;;  %10362 = vmatmul.mubr.msk.bf16.vlgmr.msra.gmra.mrb[176].mxu0 %vm1889_vm0, %v6088_v30 }
 0xe4c   : > { %10385 = vmatprep.subr.bf16.mxu1 %v15318_v22 }
 0xe4d   : > { %v5955_v13 = vpop.permute.xlu0 %5954 }
 0xe4e   : > { %10346 = vmatmul.mubr.msk.bf16.gmra.mrb[164].mxu1 %vm1889_vm0, %v5955_v13 }
 0xe4f   : > { %10386 = vmatpush3.bf16.msra.mxu1 %v15318_v22 }
 0xe50   : > { %10387 = vmatprep.subr.bf16.mxu1 %v15315_v54 }
 0xe51   : > { %v6090_v63 = vpop.permute.xlu0 %6089 }
 0xe52   : > { %10365 = vmatprep.mubr.msk.bf16.mxu0 %vm1889_vm0, %v6090_v63  ;;  %v17783_v63 = vld [vmem:[#allocation42_spill] sm:$0xff] }
 0xe53   : > { %10388 = vmatpush3.bf16.msra.mxu1 %v15315_v54 }
 0xe54   : > { %10389 = vmatprep.subr.bf16.mxu1 %v15342_v18  ;;  %v7002_v40 = vpop.permute.xlu1 %7001 }
 0xe55   : > { %v6092_v16 = vpop.permute.xlu0 %6091 }
 0xe56   : > { %10366 = vmatmul.mubr.msk.bf16.gmra.mrb[180].mxu0 %vm1889_vm0, %v6092_v16 }
 0xe57   : > { %10390 = vmatpush3.bf16.msra.mxu1 %v15342_v18 }
 0xe58   : > { %10391 = vmatprep.subr.bf16.mxu1 %v15340_v15  ;;  %v7004_v44 = vpop.permute.xlu1 %7003 }
 0xe59   : > { %v5957_v23 = vpop.permute.xlu0 %5956 }
 0xe5a   : > { %10349 = vmatprep.mubr.msk.bf16.mxu1 %vm1889_vm0, %v5957_v23 }
 0xe5b   : > { %10392 = vmatpush3.bf16.msra.mxu1 %v15340_v15 }
 0xe5c   : > { %v7008_v17 = vpop.permute.xlu1 %7007 }
 0xe5d   : > { %v5959_v22 = vpop.permute.xlu0 %5958 }
 0xe5e   : > { %10350 = vmatmul.mubr.msk.bf16.gmra.mrb[168].mxu1 %vm1889_vm0, %v5959_v22 }
 0xe60   : > { %v7010_v62 = vpop.permute.xlu1 %7009 }
 0xe61   : > { %v6094_v33 = vpop.permute.xlu0 %6093 }
 0xe62   : > { %10369 = vmatprep.mubr.msk.bf16.mxu0 %vm1889_vm0, %v6094_v33  ;;  %v17784_v33 = vld [vmem:[#allocation43_spill] sm:$0xff] }
 0xe64   : > { %v7014_v39 = vpop.permute.xlu1 %7013 }
 0xe65   : > { %v6096_v54 = vpop.permute.xlu0 %6095 }
 0xe66   : > { %10370 = vmatmul.mubr.msk.bf16.gmra.mrb[184].mxu0 %vm1889_vm0, %v6096_v54 }
 0xe68   : > { %v15488_v49 = vpop.permute.xlu1 %7241 }
 0xe69   : > { %v5961_v7 = vpop.permute.xlu0 %5960  ;;  %17776 = vst [vmem:[#allocation68_spill] sm:$0xff] %v15488_v49 }
 0xe6a   : > { %10353 = vmatprep.mubr.msk.bf16.mxu1 %vm1889_vm0, %v5961_v7 }
 0xe6d   : > { %v5963_v18 = vpop.permute.xlu0 %5962 }
 0xe6e   : > { %10354 = vmatmul.mubr.msk.bf16.gmra.mrb[172].mxu1 %vm1889_vm0, %v5963_v18 }
 0xe71   : > { %v6098_v32 = vpop.permute.xlu0 %6097 }
 0xe72   : > { %10373 = vmatprep.mubr.msk.bf16.mxu0 %vm1889_vm0, %v6098_v32 }
 0xe75   : > { %v6100_v1 = vpop.permute.xlu0 %6099 }
 0xe76   : > { %10374 = vmatmul.mubr.msk.bf16.gmra.mrb[188].mxu0 %vm1889_vm0, %v6100_v1 }
 0xe79   : > { %v7000_v41 = vpop.permute.xlu0 %6999 }
 0xe7a   : > { %10409 = vmatprep.subr.bf16.mxu0 %v7000_v41 }
 0xe7b   : > { %10410 = vmatpush3.bf16.msra.mxu0 %v7000_v41 }
 0xe7c   : > { %10411 = vmatprep.subr.bf16.mxu0 %v7002_v40 }
 0xe7d   : > { %v7006_v19 = vpop.permute.xlu0 %7005 }
 0xe7f   : > { %10412 = vmatpush3.bf16.msra.mxu0 %v7002_v40  ;;  %v17785_v40 = vld [vmem:[#allocation44_spill] sm:$0xff] }
 0xe80   : > { %10413 = vmatprep.subr.bf16.mxu0 %v7004_v44 }
 0xe81   : > { %v15477_v52 = vpop.permute.xlu0 %7120 }
 0xe82   : > { %17771 = vst [vmem:[#allocation74_spill] sm:$0xff] %v15477_v52  ;;  %10441 = vmatprep.subr.bf16.mxu1 %v15477_v52  ;;  %v17819_v52 = vld [vmem:[#allocation95_spill] sm:$0xff] }
 0xe83   : > { %10414 = vmatpush3.bf16.msra.mxu0 %v7004_v44 }
 0xe84   : > { %10415 = vmatprep.subr.bf16.mxu0 %v7006_v19 }
 0xe85   : > { %v15480_v38 = vpop.permute.xlu0 %7122 }
 0xe86   : > { %17772 = vst [vmem:[#allocation125_spill] sm:$0xff] %v15480_v38 }
 0xe87   : > { %10416 = vmatpush3.bf16.msra.mxu0 %v7006_v19 }
 0xe88   : > { %10417 = vmatprep.subr.bf16.mxu0 %v7008_v17 }
 0xe89   : > { %v15482_v48 = vpop.permute.xlu0 %7126 }
 0xe8a   : > { %17773 = vst [vmem:[#allocation81_spill] sm:$0xff] %v15482_v48 }
 0xe8b   : > { %10418 = vmatpush3.bf16.msra.mxu0 %v7008_v17  ;;  %v17786_v17 = vld [vmem:[#allocation45_spill] sm:$0xff] }
 0xe8c   : > { %10419 = vmatprep.subr.bf16.mxu0 %v7010_v62 }
 0xe8d   : > { %v15484_v14 = vpop.permute.xlu0 %7128 }
 0xe8e   : > { %17774 = vst [vmem:[#allocation60_spill] sm:$0xff] %v15484_v14 }
 0xe8f   : > { %10420 = vmatpush3.bf16.msra.mxu0 %v7010_v62 }
 0xe91   : > { %v15486_v42 = vpop.permute.xlu0 %7130 }
 0xe92   : > { %17775 = vst [vmem:[#allocation127_spill] sm:$0xff] %v15486_v42 }
 0xe95   : > { %v7012_v31 = vpop.permute.xlu0 %7011 }
 0xe96   : > { %10421 = vmatprep.subr.bf16.mxu0 %v7012_v31 }
 0xe97   : > { %10422 = vmatpush3.bf16.msra.mxu0 %v7012_v31 }
 0xe98   : > { %10423 = vmatprep.subr.bf16.mxu0 %v7014_v39 }
 0xe9b   : > { %10424 = vmatpush3.bf16.msra.mxu0 %v7014_v39  ;;  %v17787_v39 = vld [vmem:[#allocation46_spill] sm:$0xff] }
 0xe9c   : > { %10473 = vmatprep.subr.bf16.mxu0 %v15488_v49 }
 0xeee   : > { %v10303_v4 = vpop.f32.mrb[144].mxu1 }
 0xeef   : > { %v15492_v55 = vadd.f32 %v10303_v4, %v17777_v34  ;;  %v5740_v27 = vpop.f32.mrb[145].mxu1 }
 0xef0   : > { %v10304_v57 = vpop.f32.mrb[146].mxu1  ;;  %v15499_v28 = vadd.f32 %v5740_v27, %v17779_v51  ;;  %v17788_v27 = vld [vmem:[#allocation47_spill] sm:$0xff] }
 0xef1   : > { %v5743_v37 = vpop.f32.mrb[147].mxu1  ;;  %6290 = vmax.xlane.f32.xlu0 %v15492_v55  ;;  %v15504_v45 = vadd.f32 %v10304_v57, %v17780_v20  ;;  %v17789_v20 = vld [vmem:[#allocation48_spill] sm:$0xff] }
 0xef2   : > { %v15496_v9 = vadd.f32 %v5743_v37, %v17778_v6 }
 0xef4   : > { %6288 = vmax.xlane.f32.xlu1 %v15496_v9 }
 0xef5   : > { %6286 = vmax.xlane.f32.xlu0 %v15499_v28 }
 0xef6   : > { %v10307_v21 = vpop.f32.mrb[148].mxu1 }
 0xef7   : > { %v5756_v61 = vpop.f32.mrb[149].mxu1  ;;  %v15511_v13 = vadd.f32 %v10307_v21, %v17782_v60 }
 0xef8   : > { %v10308_v3 = vpop.f32.mrb[150].mxu1  ;;  %v15519_v54 = vadd.f32 %v5756_v61, %v17784_v33  ;;  %v17792_v33 = vld [vmem:[#allocation51_spill] sm:$0xff] }
 0xef9   : > { %v15507_v30 = vadd.f32 %v10308_v3, %v17781_v26  ;;  %v5759_v25 = vpop.f32.mrb[151].mxu1  ;;  %6292 = vmax.xlane.f32.xlu0 %v15504_v45 }
 0xefa   : > { %v15515_v16 = vadd.f32 %v5759_v25, %v17783_v63  ;;  %v17790_v25 = vld [vmem:[#allocation49_spill] sm:$0xff]  ;;  %v17791_v63 = vld [vmem:[#allocation50_spill] sm:$0xff] }
 0xefb   : > { %6300 = vmax.xlane.f32.xlu1 %v15507_v30 }
 0xefd   : > { %6298 = vmax.xlane.f32.xlu0 %v15511_v13 }
 0xefe   : > { %v10311_v23 = vpop.f32.mrb[152].mxu1  ;;  %v10323_v22 = vpop.f32.mrb[160].mxu0 }
 0xeff   : > { %6296 = vmax.xlane.f32.xlu1 %v15515_v16  ;;  %v5772_v7 = vpop.f32.mrb[153].mxu1  ;;  %v5885_v18 = vpop.f32.mrb[161].mxu0  ;;  %v15527_v62 = vadd.f32 %v10323_v22, %v17786_v17  ;;  %v15535_v57 = vadd.f32 %v10311_v23, %v17788_v27 }
 0xf00   : > { %v10312_v32 = vpop.f32.mrb[154].mxu1  ;;  %v10324_v1 = vpop.f32.mrb[162].mxu0  ;;  %v15543_v60 = vadd.f32 %v5885_v18, %v17790_v25 }
 0xf01   : > { %v15523_v41 = vadd.f32 %v10324_v1, %v17785_v40  ;;  %v5775_v19 = vpop.f32.mrb[155].mxu1  ;;  %6294 = vmax.xlane.f32.xlu0 %v15519_v54  ;;  %v5888_v44 = vpop.f32.mrb[163].mxu0  ;;  %v15531_v31 = vadd.f32 %v10312_v32, %v17787_v39  ;;  %v15551_v32 = vadd.f32 %v5772_v7, %v17792_v33 }
 0xf02   : > { %v15539_v61 = vadd.f32 %v5775_v19, %v17789_v20  ;;  %v17793_v19 = vld [vmem:[#allocation53_spill] sm:$0xff] }
 0xf03   : > { %6324 = vmax.xlane.f32.xlu1 %v15523_v41 }
 0xf05   : > { %6322 = vmax.xlane.f32.xlu0 %v15527_v62 }
 0xf06   : > { %v10315_v4 = vpop.f32.mrb[156].mxu1  ;;  %v10327_v34 = vpop.f32.mrb[164].mxu0 }
 0xf07   : > { %v5788_v37 = vpop.f32.mrb[157].mxu1  ;;  %6308 = vmax.xlane.f32.xlu1 %v15531_v31  ;;  %v5901_v6 = vpop.f32.mrb[165].mxu0  ;;  %v15575_v11 = vadd.f32 %v10315_v4, %v17798_v8 }
 0xf08   : > { %v10316_v51 = vpop.f32.mrb[158].mxu1  ;;  %v10328_v21 = vpop.f32.mrb[166].mxu0  ;;  %v15595_v0 = vadd.f32 %v5788_v37, %v17802_v35  ;;  %v17806_v37 = vld [vmem:[#allocation78_spill] sm:$0xff] }
 0xf09   : > { %v5791_v3 = vpop.f32.mrb[159].mxu1  ;;  %6306 = vmax.xlane.f32.xlu0 %v15535_v57  ;;  %v5904_v26 = vpop.f32.mrb[167].mxu0  ;;  %v15547_v23 = vadd.f32 %v10328_v21, %v17791_v63  ;;  %v15555_v17 = vadd.f32 %v10316_v51, %v17793_v19  ;;  %v17794_v21 = vld [vmem:[#allocation55_spill] sm:$0xff]  ;;  %v17795_v63 = vld [vmem:[#allocation57_spill] sm:$0xff] }
 0xf0a   : > { %v15559_v20 = vadd.f32 %v5888_v44, %v17794_v21  ;;  %v15563_v33 = vadd.f32 %v5904_v26, %v17795_v63  ;;  %v17796_v51 = vld [vmem:[#allocation59_spill] sm:$0xff]  ;;  %v15571_v44 = vadd.f32 %v5791_v3, %v17797_v43  ;;  %v17799_v26 = vld [vmem:[#allocation65_spill] sm:$0xff] }
 0xf0b   : > { %6304 = vmax.xlane.f32.xlu1 %v15539_v61  ;;  %v15567_v19 = vadd.f32 %v10327_v34, %v17796_v51  ;;  %v17800_v51 = vld [vmem:[#allocation67_spill] sm:$0xff] }
 0xf0c   : > { %v15585_v2 = vadd.f32 %v5901_v6, %v17800_v51  ;;  %v17803_v51 = vld [vmem:[#allocation73_spill] sm:$0xff] }
 0xf0d   : > { %6318 = vmax.xlane.f32.xlu0 %v15543_v60 }
 0xf0e   : > { %v10331_v22 = vpop.f32.mrb[168].mxu0 }
 0xf0f   : > { %6332 = vmax.xlane.f32.xlu1 %v15547_v23  ;;  %v5917_v1 = vpop.f32.mrb[169].mxu0 }
 0xf10   : > { %v10332_v40 = vpop.f32.mrb[170].mxu0 }
 0xf11   : > { %v10343_v18 = vpop.f32.mrb[160].mxu1  ;;  %6302 = vmax.xlane.f32.xlu0 %v15551_v32  ;;  %v5920_v39 = vpop.f32.mrb[171].mxu0  ;;  %v15579_v63 = vadd.f32 %v10332_v40, %v17799_v26 }
 0xf12   : > { %v6022_v27 = vpop.f32.mrb[161].mxu1  ;;  %v15599_v47 = vadd.f32 %v5920_v39, %v17803_v51  ;;  %v15615_v10 = vadd.f32 %v10343_v18, %v17806_v37  ;;  %v17812_v37 = vld [vmem:[#allocation86_spill] sm:$0xff] }
 0xf13   : > { %v10344_v25 = vpop.f32.mrb[162].mxu1  ;;  %6316 = vmax.xlane.f32.xlu1 %v15555_v17  ;;  %v15631_v49 = vadd.f32 %v6022_v27, %v17812_v37  ;;  %v17817_v37 = vld [vmem:[#allocation93_spill] sm:$0xff] }
 0xf14   : > { %v6025_v7 = vpop.f32.mrb[163].mxu1  ;;  %v15591_v8 = vadd.f32 %v10344_v25, %v17801_v59  ;;  %v15603_v59 = vadd.f32 %v10331_v22, %v17804_v50  ;;  %v17805_v25 = vld [vmem:[#allocation77_spill] sm:$0xff]  ;;  %v17807_v50 = vld [vmem:[#allocation80_spill] sm:$0xff] }
 0xf15   : > { %6320 = vmax.xlane.f32.xlu0 %v15559_v20  ;;  %v15607_v12 = vadd.f32 %v6025_v7, %v17805_v25  ;;  %v17809_v7 = vld [vmem:[#allocation82_spill] sm:$0xff] }
 0xf16   : > { %v10335_v53 = vpop.f32.mrb[172].mxu0  ;;  %v15623_v25 = vadd.f32 %v5917_v1, %v17809_v7  ;;  %v17815_v1 = vld [vmem:[#allocation90_spill] sm:$0xff] }
 0xf17   : > { %6328 = vmax.xlane.f32.xlu1 %v15563_v33  ;;  %v5933_v58 = vpop.f32.mrb[173].mxu0  ;;  %v15639_v7 = vadd.f32 %v10335_v53, %v17815_v1  ;;  %v17821_v1 = vld [vmem:[#allocation96_spill] sm:$0xff] }
 0xf18   : > { %v10336_v5 = vpop.f32.mrb[174].mxu0 }
 0xf19   : > { %6330 = vmax.xlane.f32.xlu0 %v15567_v19  ;;  %v5936_v21 = vpop.f32.mrb[175].mxu0  ;;  %v15619_v22 = vadd.f32 %v10336_v5, %v17807_v50  ;;  %v17813_v50 = vld [vmem:[#allocation88_spill] sm:$0xff] }
 0xf1a   : > { %v15635_v14 = vadd.f32 %v5936_v21, %v17813_v50 }
 0xf1b   : > { %6312 = vmax.xlane.f32.xlu1 %v15571_v44  ;;  %17808 = vst [vmem:[#allocation79_spill] sm:$0xff] %v15619_v22 }
 0xf1c   : > { %17814 = vst [vmem:[#allocation89_spill] sm:$0xff] %v15635_v14 }
 0xf1d   : > { %6314 = vmax.xlane.f32.xlu0 %v15575_v11 }
 0xf1e   : > { %v15582_v34 = vpop.f32.mrb[176].mxu0 }
 0xf1f   : > { %6340 = vmax.xlane.f32.xlu1 %v15579_v63  ;;  %v15588_v43 = vpop.f32.mrb[177].mxu0 }
 0xf20   : > { %v10364_v3 = vpop.f32.mrb[178].mxu0 }
 0xf21   : > { %v10347_v4 = vpop.f32.mrb[164].mxu1  ;;  %6326 = vmax.xlane.f32.xlu0 %v15585_v2  ;;  %v6162_v40 = vpop.f32.mrb[179].mxu0  ;;  %v15653_v53 = vadd.f32 %v10364_v3, %v17819_v52  ;;  %v17827_v3 = vld [vmem:[#allocation99_spill] sm:$0xff] }
 0xf22   : > { %v6038_v26 = vpop.f32.mrb[165].mxu1  ;;  %v15649_v38 = vadd.f32 %v10347_v4, %v17817_v37  ;;  %v17825_v37 = vld [vmem:[#allocation98_spill] sm:$0xff] }
 0xf23   : > { %v10348_v46 = vpop.f32.mrb[166].mxu1  ;;  %6356 = vmax.xlane.f32.xlu1 %v15591_v8  ;;  %17820 = vst [vmem:[#allocation76_spill] sm:$0xff] %v15653_v53 }
 0xf24   : > { %v6041_v6 = vpop.f32.mrb[167].mxu1  ;;  %v15627_v36 = vadd.f32 %v10348_v46, %v17810_v29  ;;  %v17816_v29 = vld [vmem:[#allocation92_spill] sm:$0xff]  ;;  %17818 = vst [vmem:[#allocation83_spill] sm:$0xff] %v15649_v38 }
 0xf25   : > { %6310 = vmax.xlane.f32.xlu0 %v15595_v0  ;;  %v15643_v46 = vadd.f32 %v6041_v6, %v17816_v29  ;;  %v15657_v6 = vadd.f32 %v5933_v58, %v17821_v1  ;;  %v17823_v29 = vld [vmem:[#allocation97_spill] sm:$0xff]  ;;  %v17828_v58 = vld [vmem:[#allocation100_spill] sm:$0xff] }
 0xf26   : > { %17811 = vst [vmem:[#allocation85_spill] sm:$0xff] %v15627_v36  ;;  %v17829_v1 = vld [vmem:[#allocation101_spill] sm:$0xff] }
 0xf27   : > { %6336 = vmax.xlane.f32.xlu1 %v15599_v47  ;;  %17822 = vst [vmem:[#allocation132_spill] sm:$0xff] %v15657_v6 }
 0xf29   : > { %v15609_v24 = vpop.f32.mrb[180].mxu0  ;;  %6338 = vmax.xlane.f32.xlu0 %v15603_v59 }
 0xf2a   : > { %v15612_v35 = vpop.f32.mrb[181].mxu0 }
 0xf2b   : > { %v10368_v39 = vpop.f32.mrb[182].mxu0  ;;  %6352 = vmax.xlane.f32.xlu1 %v15607_v12 }
 0xf2c   : > { %v6178_v51 = vpop.f32.mrb[183].mxu0 }
 0xf2d   : > { %6354 = vmax.xlane.f32.xlu0 %v15615_v10 }
 0xf2f   : > { %6348 = vmax.xlane.f32.xlu1 %v15619_v22 }
 0xf31   : > { %v10351_v56 = vpop.f32.mrb[168].mxu1  ;;  %6334 = vmax.xlane.f32.xlu0 %v15623_v25 }
 0xf32   : > { %v6054_v18 = vpop.f32.mrb[169].mxu1 }
 0xf33   : > { %v10352_v42 = vpop.f32.mrb[170].mxu1  ;;  %6364 = vmax.xlane.f32.xlu1 %v15627_v36  ;;  %v15665_v36 = vadd.f32 %v6038_v26, %v17825_v37 }
 0xf34   : > { %v6057_v5 = vpop.f32.mrb[171].mxu1  ;;  %v15661_v15 = vadd.f32 %v10352_v42, %v17823_v29  ;;  %v15674_v42 = vadd.f32 %v15582_v34, %v17828_v58  ;;  %v17833_v34 = vld [vmem:[#allocation104_spill] sm:$0xff]  ;;  %v17834_v58 = vld [vmem:[#allocation105_spill] sm:$0xff] }
 0xf35   : > { %6350 = vmax.xlane.f32.xlu0 %v15631_v49  ;;  %17826 = vst [vmem:[#allocation136_spill] sm:$0xff] %v15665_v36  ;;  %v15678_v29 = vadd.f32 %v6057_v5, %v17829_v1  ;;  %v15691_v5 = vadd.f32 %v15588_v43, %v17833_v34  ;;  %v17838_v43 = vld [vmem:[#allocation108_spill] sm:$0xff] }
 0xf36   : > { %17824 = vst [vmem:[#allocation87_spill] sm:$0xff] %v15661_v15  ;;  %v15710_v34 = vadd.f32 %v15609_v24, %v17838_v43  ;;  %v17844_v24 = vld [vmem:[#allocation113_spill] sm:$0xff] }
 0xf37   : > { %6344 = vmax.xlane.f32.xlu1 %v15635_v14  ;;  %v15729_v43 = vadd.f32 %v15612_v35, %v17844_v24  ;;  %v17851_v24 = vld [vmem:[#allocation118_spill] sm:$0xff] }
 0xf39   : > { %v10371_v48 = vpop.f32.mrb[184].mxu0  ;;  %6346 = vmax.xlane.f32.xlu0 %v15639_v7 }
 0xf3a   : > { %v15646_v27 = vpop.f32.mrb[185].mxu0 }
 0xf3b   : > { %v10372_v21 = vpop.f32.mrb[186].mxu0  ;;  %6360 = vmax.xlane.f32.xlu1 %v15643_v46 }
 0xf3c   : > { %v6194_v50 = vpop.f32.mrb[187].mxu0 }
 0xf3d   : > { %6362 = vmax.xlane.f32.xlu0 %v15649_v38  ;;  %v15669_v38 = vadd.f32 %v6162_v40, %v17827_v3 }
 0xf3f   : > { %6388 = vmax.xlane.f32.xlu1 %v15653_v53 }
 0xf41   : > { %v10355_v14 = vpop.f32.mrb[172].mxu1  ;;  %6342 = vmax.xlane.f32.xlu0 %v15657_v6 }
 0xf42   : > { %v6070_v4 = vpop.f32.mrb[173].mxu1 }
 0xf43   : > { %v10356_v22 = vpop.f32.mrb[174].mxu1  ;;  %6372 = vmax.xlane.f32.xlu1 %v15661_v15  ;;  %v17830_v15 = vld [vmem:[#allocation102_spill] sm:$0xff] }
 0xf44   : > { %v6073_v52 = vpop.f32.mrb[175].mxu1  ;;  %v15682_v53 = vadd.f32 %v10351_v56, %v17830_v15  ;;  %v15695_v1 = vadd.f32 %v10356_v22, %v17834_v58  ;;  %v17835_v56 = vld [vmem:[#allocation106_spill] sm:$0xff] }
 0xf45   : > { %6358 = vmax.xlane.f32.xlu0 %v15665_v36  ;;  %v17832_v36 = vld [vmem:[#allocation103_spill] sm:$0xff]  ;;  %v15699_v15 = vadd.f32 %v6054_v18, %v17835_v56  ;;  %v17839_v22 = vld [vmem:[#allocation110_spill] sm:$0xff] }
 0xf46   : > { %17831 = vst [vmem:[#allocation131_spill] sm:$0xff] %v15682_v53  ;;  %v15686_v6 = vadd.f32 %v10368_v39, %v17832_v36  ;;  %v15702_v36 = vpop.permute.xlu1 %7243  ;;  %v17837_v39 = vld [vmem:[#allocation107_spill] sm:$0xff]  ;;  %v15714_v58 = vadd.f32 %v6073_v52, %v17839_v22  ;;  %v17846_v22 = vld [vmem:[#allocation114_spill] sm:$0xff] }
 0xf47   : > { %6384 = vmax.xlane.f32.xlu1 %v15669_v38  ;;  %17836 = vst [vmem:[#allocation72_spill] sm:$0xff] %v15702_v36  ;;  %v17841_v56 = vld [vmem:[#allocation111_spill] sm:$0xff] }
 0xf48   : > { %v15720_v36 = vadd.f32 %v10355_v14, %v17841_v56  ;;  %v17847_v14 = vld [vmem:[#allocation115_spill] sm:$0xff] }
 0xf49   : > { %v10375_v26 = vpop.f32.mrb[188].mxu0  ;;  %6386 = vmax.xlane.f32.xlu0 %v15674_v42  ;;  %v15739_v56 = vadd.f32 %v6070_v4, %v17847_v14  ;;  %v17854_v4 = vld [vmem:[#allocation121_spill] sm:$0xff] }
 0xf4a   : > { %v6207_v37 = vpop.f32.mrb[189].mxu0  ;;  %v15717_v18 = vpop.permute.xlu1 %7124  ;;  %17842 = vst [vmem:[#allocation91_spill] sm:$0xff] %v15720_v36  ;;  %v15758_v14 = vadd.f32 %v15646_v27, %v17854_v4 }
 0xf4b   : > { %v10376_v40 = vpop.f32.mrb[190].mxu0  ;;  %6368 = vmax.xlane.f32.xlu1 %v15678_v29  ;;  %17840 = vst [vmem:[#allocation94_spill] sm:$0xff] %v15717_v18  ;;  %v15735_v18 = vadd.f32 %v6194_v50, %v17846_v22  ;;  %17848 = vst [vmem:[#allocation134_spill] sm:$0xff] %v15739_v56  ;;  %v17853_v50 = vld [vmem:[#allocation119_spill] sm:$0xff] }
 0xf4c   : > { %v6210_v3 = vpop.f32.mrb[191].mxu0  ;;  %17855 = vst [vmem:[#allocation130_spill] sm:$0xff] %v15758_v14 }
 0xf4d   : > { %6370 = vmax.xlane.f32.xlu0 %v15682_v53  ;;  %v15705_v53 = vadd.f32 %v6178_v51, %v17837_v39  ;;  %v17843_v51 = vld [vmem:[#allocation112_spill] sm:$0xff]  ;;  %v15753_v22 = vadd.f32 %v6210_v3, %v17853_v50 }
 0xf4e   : > { %v15724_v39 = vadd.f32 %v10372_v21, %v17843_v51  ;;  %v15732_v52 = vpop.permute.xlu1 %7245  ;;  %v17849_v21 = vld [vmem:[#allocation117_spill] sm:$0xff]  ;;  %v17860_v3 = vld [vmem:[#allocation124_spill] sm:$0xff] }
 0xf4f   : > { %6396 = vmax.xlane.f32.xlu1 %v15686_v6  ;;  %17845 = vst [vmem:[#allocation138_spill] sm:$0xff] %v15732_v52  ;;  %v15743_v51 = vadd.f32 %v10376_v40, %v17849_v21  ;;  %v17857_v21 = vld [vmem:[#allocation122_spill] sm:$0xff]  ;;  %v15771_v50 = vadd.f32 %v6207_v37, %v17860_v3 }
 0xf51   : > { %6382 = vmax.xlane.f32.xlu0 %v15691_v5  ;;  %17861 = vst [vmem:[#allocation14_spill] sm:$0xff] %v15771_v50 }
 0xf52   : > { %v15746_v35 = vpop.permute.xlu1 %7247 }
 0xf53   : > { %6380 = vmax.xlane.f32.xlu1 %v15695_v1  ;;  %17850 = vst [vmem:[#allocation139_spill] sm:$0xff] %v15746_v35 }
 0xf55   : > { %6366 = vmax.xlane.f32.xlu0 %v15699_v15 }
 0xf56   : > { %v15761_v40 = vpop.permute.xlu1 %7249 }
 0xf57   : > { %6392 = vmax.xlane.f32.xlu1 %v15705_v53  ;;  %17856 = vst [vmem:[#allocation129_spill] sm:$0xff] %v15761_v40 }
 0xf59   : > { %6394 = vmax.xlane.f32.xlu0 %v15710_v34 }
 0xf5b   : > { %6376 = vmax.xlane.f32.xlu1 %v15714_v58 }
 0xf5d   : > { %6378 = vmax.xlane.f32.xlu0 %v15720_v36  ;;  %v15749_v36 = vadd.f32 %v10371_v48, %v17851_v24  ;;  %v15765_v48 = vadd.f32 %v10375_v26, %v17857_v21  ;;  %v15768_v24 = vpop.permute.xlu1 %7251 }
 0xf5e   : > { %17859 = vst [vmem:[#allocation135_spill] sm:$0xff] %v15768_v24 }
 0xf5f   : > { %6404 = vmax.xlane.f32.xlu1 %v15724_v39  ;;  %17852 = vst [vmem:[#allocation133_spill] sm:$0xff] %v15749_v36  ;;  %17858 = vst [vmem:[#allocation137_spill] sm:$0xff] %v15765_v48 }
 0xf61   : > { %6390 = vmax.xlane.f32.xlu0 %v15729_v43  ;;  %v15774_v27 = vpop.permute.xlu1 %7132 }
 0xf62   : > { %17862 = vst [vmem:[#allocation15_spill] sm:$0xff] %v15774_v27 }
 0xf63   : > { %6400 = vmax.xlane.f32.xlu1 %v15735_v18 }
 0xf65   : > { %6374 = vmax.xlane.f32.xlu0 %v15739_v56  ;;  %v15776_v35 = vpop.permute.xlu1 %7253 }
 0xf66   : > { %17863 = vst [vmem:[#allocation16_spill] sm:$0xff] %v15776_v35 }
 0xf67   : > { %6412 = vmax.xlane.f32.xlu1 %v15743_v51 }
 0xf69   : > { %6402 = vmax.xlane.f32.xlu0 %v15749_v36 }
 0xf6b   : > { %6408 = vmax.xlane.f32.xlu1 %v15753_v22 }
 0xf6d   : > { %6398 = vmax.xlane.f32.xlu0 %v15758_v14 }
 0xf71   : > { %6410 = vmax.xlane.f32.xlu0 %v15765_v48 }
 0xf75   : > { %6406 = vmax.xlane.f32.xlu0 %v15771_v50 }
 0xf7e   : > { %v6291_v4 = vpop.xlane.xlu0 %6290 }
 0xf7f   : > { %v6416_v40 = vsub.f32 %v15492_v55, %v6291_v4 }
 0xf81   : > { %v6482_v52 = vmul.f32 1.442695, %v6416_v40  ;;  %v6289_v26 = vpop.xlane.xlu1 %6288 }
 0xf82   : > { %v6287_v36 = vpop.xlane.xlu0 %6286  ;;  %v6415_v24 = vsub.f32 %v15496_v9, %v6289_v26 }
 0xf83   : > { %11449 = vpow2.f32 %v6482_v52  ;;  %v6414_v21 = vsub.f32 %v15499_v28, %v6287_v36 }
 0xf84   : > { %v6480_v56 = vmul.f32 1.442695, %v6415_v24 }
 0xf85   : > { %v6478_v48 = vmul.f32 1.442695, %v6414_v21 }
 0xf86   : > { %v6293_v37 = vpop.xlane.xlu0 %6292 }
 0xf87   : > { %11451 = vpow2.f32 %v6478_v48  ;;  %v6417_v3 = vsub.f32 %v15504_v45, %v6293_v37 }
 0xf88   : > { %v6301_v50 = vpop.xlane.xlu1 %6300 }
 0xf89   : > { %v6484_v27 = vmul.f32 1.442695, %v6417_v3  ;;  %v6421_v35 = vsub.f32 %v15507_v30, %v6301_v50 }
 0xf8a   : > { %v6299_v14 = vpop.xlane.xlu0 %6298 }
 0xf8b   : > { %11453 = vpow2.f32 %v6484_v27  ;;  %v6420_v55 = vsub.f32 %v15511_v13, %v6299_v14  ;;  %v6492_v36 = vmul.f32 1.442695, %v6421_v35 }
 0xf8c   : > { %v6297_v52 = vpop.xlane.xlu1 %6296  ;;  %11455 = vpow2.f32 %v6480_v56 }
 0xf8d   : > { %v15784_v40 = vpop.eup %11449  ;;  %v6490_v28 = vmul.f32 1.442695, %v6420_v55  ;;  %v6419_v45 = vsub.f32 %v15515_v16, %v6297_v52 }
 0xf8e   : > { %6610 = vadd.xlane.f32.xlu1 %v15784_v40  ;;  %v6295_v9 = vpop.xlane.xlu0 %6294 }
 0xf8f   : > { %11457 = vpow2.f32 %v6490_v28  ;;  %v6418_v48 = vsub.f32 %v15519_v54, %v6295_v9  ;;  %v6488_v14 = vmul.f32 1.442695, %v6419_v45 }
 0xf90   : > { %v6325_v24 = vpop.xlane.xlu1 %6324  ;;  %11459 = vpow2.f32 %v6492_v36 }
 0xf91   : > { %v15789_v30 = vpop.eup %11451  ;;  %v6486_v50 = vmul.f32 1.442695, %v6418_v48  ;;  %v6433_v45 = vsub.f32 %v15523_v41, %v6325_v24 }
 0xf92   : > { %6606 = vadd.xlane.f32.xlu1 %v15789_v30  ;;  %v6323_v13 = vpop.xlane.xlu0 %6322 }
 0xf93   : > { %11461 = vpow2.f32 %v6486_v50  ;;  %v6432_v56 = vsub.f32 %v15527_v62, %v6323_v13 }
 0xf94   : > { %v6309_v35 = vpop.xlane.xlu1 %6308  ;;  %11463 = vpow2.f32 %v6488_v14 }
 0xf95   : > { %v15793_v27 = vpop.eup %11453  ;;  %v6514_v54 = vmul.f32 1.442695, %v6432_v56  ;;  %v6425_v3 = vsub.f32 %v15531_v31, %v6309_v35  ;;  %v6516_v35 = vmul.f32 1.442695, %v6433_v45 }
 0xf96   : > { %6612 = vadd.xlane.f32.xlu1 %v15793_v27  ;;  %v6307_v16 = vpop.xlane.xlu0 %6306  ;;  %v15797_v26 = vpop.eup %11455 }
 0xf97   : > { %v6424_v4 = vsub.f32 %v15535_v57, %v6307_v16  ;;  %11465 = vpow2.f32 %v6514_v54  ;;  %v6500_v48 = vmul.f32 1.442695, %v6425_v3 }
 0xf98   : > { %v6305_v21 = vpop.xlane.xlu1 %6304 }
 0xf99   : > { %v15799_v37 = vpop.eup %11457  ;;  %v6498_v55 = vmul.f32 1.442695, %v6424_v4  ;;  %v6423_v50 = vsub.f32 %v15539_v61, %v6305_v21 }
 0xf9a   : > { %6608 = vadd.xlane.f32.xlu1 %v15797_v26  ;;  %6618 = vadd.xlane.f32.xlu0 %v15799_v37  ;;  %v6319_v62 = vpop.xlane.xlu0 %6318  ;;  %v15805_v28 = vpop.eup %11459 }
 0xf9b   : > { %v6430_v52 = vsub.f32 %v15543_v60, %v6319_v62  ;;  %11467 = vpow2.f32 %v6498_v55  ;;  %v6496_v24 = vmul.f32 1.442695, %v6423_v50 }
 0xf9c   : > { %v6333_v36 = vpop.xlane.xlu1 %6332 }
 0xf9d   : > { %v15807_v57 = vpop.eup %11461  ;;  %v6510_v9 = vmul.f32 1.442695, %v6430_v52  ;;  %v6437_v50 = vsub.f32 %v15547_v23, %v6333_v36 }
 0xf9e   : > { %6620 = vadd.xlane.f32.xlu0 %v15805_v28  ;;  %6614 = vadd.xlane.f32.xlu1 %v15807_v57  ;;  %v6303_v31 = vpop.xlane.xlu0 %6302  ;;  %v15814_v14 = vpop.eup %11463 }
 0xf9f   : > { %11469 = vpow2.f32 %v6510_v9  ;;  %v6422_v60 = vsub.f32 %v15551_v32, %v6303_v31 }
 0xfa0   : > { %v6317_v13 = vpop.xlane.xlu1 %6316  ;;  %11471 = vpow2.f32 %v6500_v48 }
 0xfa1   : > { %v6494_v56 = vmul.f32 1.442695, %v6422_v60  ;;  %v15818_v4 = vpop.eup %11465 }
 0xfa2   : > { %6616 = vadd.xlane.f32.xlu0 %v15814_v14  ;;  %v6321_v41 = vpop.xlane.xlu0 %6320 }
 0xfa3   : > { %11473 = vpow2.f32 %v6494_v56  ;;  %v6431_v16 = vsub.f32 %v15559_v20, %v6321_v41 }
 0xfa4   : > { %v6329_v54 = vpop.xlane.xlu1 %6328  ;;  %11475 = vpow2.f32 %v6516_v35 }
 0xfa5   : > { %v6512_v61 = vmul.f32 1.442695, %v6431_v16  ;;  %11477 = vpow2.f32 %v6496_v24  ;;  %v15822_v3 = vpop.eup %11467  ;;  %v6524_v16 = vmul.f32 1.442695, %v6437_v50 }
 0xfa6   : > { %6642 = vadd.xlane.f32.xlu0 %v15818_v4  ;;  %v6331_v32 = vpop.xlane.xlu0 %6330 }
 0xfa7   : > { %v6436_v21 = vsub.f32 %v15567_v19, %v6331_v32  ;;  %11479 = vpow2.f32 %v6512_v61  ;;  %v6429_v61 = vsub.f32 %v15555_v17, %v6317_v13  ;;  %v6435_v13 = vsub.f32 %v15563_v33, %v6329_v54 }
 0xfa8   : > { %v6313_v55 = vpop.xlane.xlu1 %6312 }
 0xfa9   : > { %v15824_v62 = vpop.eup %11469  ;;  %v6522_v52 = vmul.f32 1.442695, %v6436_v21 }
 0xfaa   : > { %6626 = vadd.xlane.f32.xlu0 %v15822_v3  ;;  %6638 = vadd.xlane.f32.xlu1 %v15824_v62  ;;  %v6315_v20 = vpop.xlane.xlu0 %6314  ;;  %v15829_v45 = vpop.eup %11471 }
 0xfab   : > { %11481 = vpow2.f32 %v6522_v52  ;;  %v6428_v9 = vsub.f32 %v15575_v11, %v6315_v20  ;;  %v6508_v20 = vmul.f32 1.442695, %v6429_v61 }
 0xfac   : > { %v15831_v48 = vpop.xlane.xlu1 %6340 }
 0xfad   : > { %v15833_v19 = vpop.eup %11473  ;;  %v6506_v31 = vmul.f32 1.442695, %v6428_v9 }
 0xfae   : > { %6628 = vadd.xlane.f32.xlu0 %v15829_v45  ;;  %6622 = vadd.xlane.f32.xlu1 %v15833_v19  ;;  %v6327_v60 = vpop.xlane.xlu0 %6326  ;;  %v15839_v35 = vpop.eup %11475 }
 0xfaf   : > { %11483 = vpow2.f32 %v6506_v31  ;;  %v6434_v56 = vsub.f32 %v15585_v2, %v6327_v60  ;;  %v15841_v41 = vpop.eup %11477  ;;  %v6427_v60 = vsub.f32 %v15571_v44, %v6313_v55 }
 0xfb0   : > { %v6357_v11 = vpop.xlane.xlu1 %6356 }
 0xfb1   : > { %v6518_v24 = vmul.f32 1.442695, %v6434_v56  ;;  %v15847_v32 = vpop.eup %11479  ;;  %v6504_v33 = vmul.f32 1.442695, %v6427_v60 }
 0xfb2   : > { %6624 = vadd.xlane.f32.xlu0 %v15841_v41  ;;  %6644 = vadd.xlane.f32.xlu1 %v15839_v35  ;;  %v6311_v23 = vpop.xlane.xlu0 %6310 }
 0xfb3   : > { %11485 = vpow2.f32 %v6518_v24  ;;  %v6426_v36 = vsub.f32 %v15595_v0, %v6311_v23  ;;  %v6520_v24 = vmul.f32 1.442695, %v6435_v13  ;;  %v6449_v13 = vsub.f32 %v15591_v8, %v6357_v11 }
 0xfb4   : > { %v6337_v2 = vpop.xlane.xlu1 %6336  ;;  %11487 = vpow2.f32 %v6524_v16 }
 0xfb5   : > { %v15849_v21 = vpop.eup %11481  ;;  %v6502_v52 = vmul.f32 1.442695, %v6426_v36  ;;  %v6548_v8 = vmul.f32 1.442695, %v6449_v13  ;;  %v17867_v13 = vld [vmem:[#allocation132_spill] sm:$0xff] }
 0xfb6   : > { %6640 = vadd.xlane.f32.xlu1 %v15847_v32  ;;  %6650 = vadd.xlane.f32.xlu0 %v15849_v21  ;;  %v6339_v17 = vpop.xlane.xlu0 %6338 }
 0xfb7   : > { %11489 = vpow2.f32 %v6502_v52  ;;  %v6440_v9 = vsub.f32 %v15603_v59, %v6339_v17 }
 0xfb8   : > { %v6353_v31 = vpop.xlane.xlu1 %6352  ;;  %11491 = vpow2.f32 %v6508_v20  ;;  %v6441_v20 = vsub.f32 %v15579_v63, %v15831_v48  ;;  %v6439_v63 = vsub.f32 %v15599_v47, %v6337_v2 }
 0xfb9   : > { %v15855_v0 = vpop.eup %11483  ;;  %v6530_v50 = vmul.f32 1.442695, %v6440_v9 }
 0xfba   : > { %6634 = vadd.xlane.f32.xlu1 %v15855_v0  ;;  %v6355_v56 = vpop.xlane.xlu0 %6354 }
 0xfbb   : > { %11493 = vpow2.f32 %v6530_v50  ;;  %v6448_v54 = vsub.f32 %v15615_v10, %v6355_v56 }
 0xfbc   : > { %v15859_v16 = vpop.xlane.xlu1 %6348  ;;  %11495 = vpow2.f32 %v6520_v24  ;;  %v6532_v24 = vmul.f32 1.442695, %v6441_v20 }
 0xfbd   : > { %v15861_v61 = vpop.eup %11485  ;;  %11497 = vpow2.f32 %v6504_v33  ;;  %v6546_v17 = vmul.f32 1.442695, %v6448_v54  ;;  %v6528_v54 = vmul.f32 1.442695, %v6439_v63 }
 0xfbe   : > { %6646 = vadd.xlane.f32.xlu0 %v15861_v61  ;;  %v6335_v59 = vpop.xlane.xlu0 %6334  ;;  %v15866_v36 = vpop.eup %11487 }
 0xfbf   : > { %v6438_v23 = vsub.f32 %v15623_v25, %v6335_v59  ;;  %v6447_v59 = vsub.f32 %v15607_v12, %v6353_v31  ;;  %v17866_v12 = vld [vmem:[#allocation83_spill] sm:$0xff] }
 0xfc0   : > { %v15868_v44 = vpop.xlane.xlu1 %6364 }
 0xfc1   : > { %v15870_v55 = vpop.eup %11489  ;;  %v6526_v52 = vmul.f32 1.442695, %v6438_v23 }
 0xfc2   : > { %6652 = vadd.xlane.f32.xlu0 %v15866_v36  ;;  %6630 = vadd.xlane.f32.xlu1 %v15870_v55  ;;  %v6351_v10 = vpop.xlane.xlu0 %6350  ;;  %v15878_v9 = vpop.eup %11491 }
 0xfc3   : > { %11499 = vpow2.f32 %v6526_v52  ;;  %v6446_v25 = vsub.f32 %v15631_v49, %v6351_v10 }
 0xfc4   : > { %v15880_v50 = vpop.xlane.xlu1 %6344  ;;  %11501 = vpow2.f32 %v6546_v17  ;;  %v6544_v17 = vmul.f32 1.442695, %v6447_v59  ;;  %v17871_v59 = vld [vmem:[#allocation136_spill] sm:$0xff] }
 0xfc5   : > { %v15882_v60 = vpop.eup %11493  ;;  %v6542_v56 = vmul.f32 1.442695, %v6446_v25 }
 0xfc6   : > { %17864 = vst [vmem:[#allocation17_spill] sm:$0xff] %v15882_v60  ;;  %6636 = vadd.xlane.f32.xlu0 %v15878_v9  ;;  %6658 = vadd.xlane.f32.xlu1 %v15882_v60  ;;  %v6347_v48 = vpop.xlane.xlu0 %6346  ;;  %v15888_v33 = vpop.eup %11495 }
 0xfc7   : > { %11503 = vpow2.f32 %v6542_v56  ;;  %v6444_v49 = vsub.f32 %v15639_v7, %v6347_v48  ;;  %v15892_v23 = vpop.eup %11497 }
 0xfc8   : > { %v6361_v11 = vpop.xlane.xlu1 %6360  ;;  %11505 = vpow2.f32 %v6532_v24 }
 0xfc9   : > { %11507 = vpow2.f32 %v6548_v8  ;;  %v6538_v2 = vmul.f32 1.442695, %v6444_v49  ;;  %v6451_v7 = vsub.f32 %v15643_v46, %v6361_v11  ;;  %v17870_v46 = vld [vmem:[#allocation76_spill] sm:$0xff] }
 0xfca   : > { %6648 = vadd.xlane.f32.xlu0 %v15888_v33  ;;  %v6363_v47 = vpop.xlane.xlu0 %6362  ;;  %11509 = vpow2.f32 %v6528_v54 }
 0xfcb   : > { %11511 = vpow2.f32 %v6538_v2  ;;  %v6452_v31 = vsub.f32 %v17866_v12, %v6363_v47  ;;  %v6552_v8 = vmul.f32 1.442695, %v6451_v7 }
 0xfcc   : > { %v6389_v52 = vpop.xlane.xlu1 %6388  ;;  %11513 = vpow2.f32 %v6544_v17 }
 0xfcd   : > { %v15894_v20 = vpop.eup %11499  ;;  %v6465_v49 = vsub.f32 %v17870_v46, %v6389_v52  ;;  %v6554_v54 = vmul.f32 1.442695, %v6452_v31 }
 0xfce   : > { %17865 = vst [vmem:[#allocation18_spill] sm:$0xff] %v15894_v20  ;;  %6632 = vadd.xlane.f32.xlu0 %v15892_v23  ;;  %6654 = vadd.xlane.f32.xlu1 %v15894_v20  ;;  %v6343_v10 = vpop.xlane.xlu0 %6342  ;;  %v15901_v56 = vpop.eup %11501 }
 0xfcf   : > { %v6442_v25 = vsub.f32 %v17867_v13, %v6343_v10  ;;  %17868 = vst [vmem:[#allocation19_spill] sm:$0xff] %v15901_v56  ;;  %v17873_v13 = vld [vmem:[#allocation79_spill] sm:$0xff]  ;;  %v6580_v7 = vmul.f32 1.442695, %v6465_v49 }
 0xfd0   : > { %v15903_v24 = vpop.xlane.xlu1 %6372  ;;  %v6445_v17 = vsub.f32 %v17873_v13, %v15859_v16  ;;  %v17876_v16 = vld [vmem:[#allocation85_spill] sm:$0xff] }
 0xfd1   : > { %v15905_v63 = vpop.eup %11503  ;;  %v6534_v48 = vmul.f32 1.442695, %v6442_v25 }
 0xfd2   : > { %17869 = vst [vmem:[#allocation20_spill] sm:$0xff] %v15905_v63  ;;  %6674 = vadd.xlane.f32.xlu0 %v15901_v56  ;;  %6670 = vadd.xlane.f32.xlu1 %v15905_v63  ;;  %v6359_v11 = vpop.xlane.xlu0 %6358  ;;  %v15911_v2 = vpop.eup %11505 }
 0xfd3   : > { %11515 = vpow2.f32 %v6534_v48  ;;  %v6450_v47 = vsub.f32 %v17871_v59, %v6359_v11  ;;  %v15913_v12 = vpop.eup %11507  ;;  %v6540_v59 = vmul.f32 1.442695, %v6445_v17 }
 0xfd4   : > { %v6385_v10 = vpop.xlane.xlu1 %6384  ;;  %17872 = vst [vmem:[#allocation21_spill] sm:$0xff] %v15913_v12  ;;  %11517 = vpow2.f32 %v6552_v8  ;;  %v15920_v25 = vpop.eup %11509  ;;  %v6453_v8 = vsub.f32 %v17876_v16, %v15868_v44  ;;  %v17879_v44 = vld [vmem:[#allocation89_spill] sm:$0xff] }
 0xfd5   : > { %11519 = vpow2.f32 %v6554_v54  ;;  %v6550_v52 = vmul.f32 1.442695, %v6450_v47  ;;  %v6463_v31 = vsub.f32 %v15669_v38, %v6385_v10  ;;  %17874 = vst [vmem:[#allocation22_spill] sm:$0xff] %v15920_v25  ;;  %v15924_v11 = vpop.eup %11511 }
 0xfd6   : > { %6660 = vadd.xlane.f32.xlu0 %v15911_v2  ;;  %6676 = vadd.xlane.f32.xlu1 %v15913_v12  ;;  %v6387_v48 = vpop.xlane.xlu0 %6386  ;;  %17875 = vst [vmem:[#allocation23_spill] sm:$0xff] %v15924_v11  ;;  %11521 = vpow2.f32 %v6580_v7  ;;  %v15930_v54 = vpop.eup %11513  ;;  %v6556_v13 = vmul.f32 1.442695, %v6453_v8  ;;  %v6443_v7 = vsub.f32 %v17879_v44, %v15880_v50 }
 0xfd7   : > { %11523 = vpow2.f32 %v6550_v52  ;;  %v6576_v49 = vmul.f32 1.442695, %v6463_v31  ;;  %17877 = vst [vmem:[#allocation24_spill] sm:$0xff] %v15930_v54 }
 0xfd8   : > { %v15922_v46 = vpop.xlane.xlu1 %6368  ;;  %11525 = vpow2.f32 %v6540_v59  ;;  %v6464_v59 = vsub.f32 %v15674_v42, %v6387_v48 }
 0xfd9   : > { %11527 = vpow2.f32 %v6576_v49 }
 0xfda   : > { %6656 = vadd.xlane.f32.xlu0 %v15920_v25  ;;  %6666 = vadd.xlane.f32.xlu1 %v15924_v11  ;;  %v15935_v17 = vpop.xlane.xlu0 %6370  ;;  %11529 = vpow2.f32 %v6556_v13  ;;  %v6578_v13 = vmul.f32 1.442695, %v6464_v59  ;;  %v17893_v25 = vld [vmem:[#allocation131_spill] sm:$0xff] }
 0xfdb   : > { %v6456_v20 = vsub.f32 %v17893_v25, %v15935_v17 }
 0xfdc   : > { %v6397_v38 = vpop.xlane.xlu1 %6396 }
 0xfdd   : > { %v15932_v47 = vpop.eup %11515  ;;  %v6469_v10 = vsub.f32 %v15686_v6, %v6397_v38  ;;  %v6536_v6 = vmul.f32 1.442695, %v6443_v7 }
 0xfde   : > { %17878 = vst [vmem:[#allocation25_spill] sm:$0xff] %v15932_v47  ;;  %6672 = vadd.xlane.f32.xlu0 %v15930_v54  ;;  %6662 = vadd.xlane.f32.xlu1 %v15932_v47  ;;  %v15941_v31 = vpop.eup %11517  ;;  %v6383_v50 = vpop.xlane.xlu0 %6382 }
 0xfdf   : > { %v6588_v52 = vmul.f32 1.442695, %v6469_v10  ;;  %17880 = vst [vmem:[#allocation26_spill] sm:$0xff] %v15941_v31  ;;  %v15945_v11 = vpop.eup %11519  ;;  %v6462_v44 = vsub.f32 %v15691_v5, %v6383_v50 }
 0xfe0   : > { %v15943_v16 = vpop.xlane.xlu1 %6380  ;;  %17881 = vst [vmem:[#allocation27_spill] sm:$0xff] %v15945_v11  ;;  %v15950_v8 = vpop.eup %11521 }
 0xfe1   : > { %11531 = vpow2.f32 %v6588_v52  ;;  %17882 = vst [vmem:[#allocation28_spill] sm:$0xff] %v15950_v8  ;;  %v15952_v38 = vpop.eup %11523 }
 0xfe2   : > { %6682 = vadd.xlane.f32.xlu0 %v15945_v11  ;;  %6680 = vadd.xlane.f32.xlu1 %v15941_v31  ;;  %17883 = vst [vmem:[#allocation29_spill] sm:$0xff] %v15952_v38  ;;  %11533 = vpow2.f32 %v6536_v6  ;;  %v15958_v11 = vpop.eup %11525  ;;  %v6367_v59 = vpop.xlane.xlu0 %6366 }
 0xfe3   : > { %17884 = vst [vmem:[#allocation30_spill] sm:$0xff] %v15958_v11  ;;  %v15960_v42 = vpop.eup %11527 }
 0xfe4   : > { %v6393_v49 = vpop.xlane.xlu1 %6392  ;;  %17885 = vst [vmem:[#allocation36_spill] sm:$0xff] %v15960_v42  ;;  %v15964_v48 = vpop.eup %11529 }
 0xfe5   : > { %v6467_v10 = vsub.f32 %v15705_v53, %v6393_v49  ;;  %v6574_v53 = vmul.f32 1.442695, %v6462_v44  ;;  %17886 = vst [vmem:[#allocation38_spill] sm:$0xff] %v15964_v48 }
 0xfe6   : > { %6708 = vadd.xlane.f32.xlu1 %v15950_v8  ;;  %6678 = vadd.xlane.f32.xlu0 %v15952_v38 }
 0xfe7   : > { %v6584_v7 = vmul.f32 1.442695, %v6467_v10  ;;  %v6395_v10 = vpop.xlane.xlu0 %6394 }
 0xfe8   : > { %v6468_v56 = vsub.f32 %v15710_v34, %v6395_v10 }
 0xfe9   : > { %11535 = vpow2.f32 %v6584_v7 }
 0xfea   : > { %6704 = vadd.xlane.f32.xlu1 %v15960_v42  ;;  %6668 = vadd.xlane.f32.xlu0 %v15958_v11  ;;  %11537 = vpow2.f32 %v6578_v13  ;;  %v6377_v13 = vpop.xlane.xlu1 %6376  ;;  %v6586_v12 = vmul.f32 1.442695, %v6468_v56  ;;  %v6454_v56 = vsub.f32 %v15699_v15, %v6367_v59 }
 0xfeb   : > { %v15966_v52 = vpop.eup %11531  ;;  %11539 = vpow2.f32 %v6574_v53  ;;  %v15982_v44 = vpop.xlane.xlu0 %6378  ;;  %v6459_v34 = vsub.f32 %v15714_v58, %v6377_v13 }
 0xfec   : > { %17887 = vst [vmem:[#allocation37_spill] sm:$0xff] %v15966_v52  ;;  %v15970_v5 = vpop.eup %11533 }
 0xfed   : > { %17888 = vst [vmem:[#allocation39_spill] sm:$0xff] %v15970_v5 }
 0xfee   : > { %6716 = vadd.xlane.f32.xlu1 %v15966_v52  ;;  %6684 = vadd.xlane.f32.xlu0 %v15964_v48  ;;  %v6405_v7 = vpop.xlane.xlu1 %6404  ;;  %v17892_v52 = vld [vmem:[#allocation64_spill] sm:$0xff] }
 0xfef   : > { %v6391_v53 = vpop.xlane.xlu0 %6390  ;;  %v6473_v47 = vsub.f32 %v15724_v39, %v6405_v7  ;;  %v17895_v7 = vld [vmem:[#allocation130_spill] sm:$0xff] }
 0xff1   : > { %v6596_v60 = vmul.f32 1.442695, %v6473_v47  ;;  %v6562_v47 = vmul.f32 1.442695, %v6456_v20 }
 0xff2   : > { %6664 = vadd.xlane.f32.xlu0 %v15970_v5  ;;  %v6401_v8 = vpop.xlane.xlu1 %6400 }
 0xff3   : > { %v15973_v6 = vpop.eup %11535  ;;  %v15986_v42 = vpop.xlane.xlu0 %6374  ;;  %v6471_v5 = vsub.f32 %v15735_v18, %v6401_v8  ;;  %v6461_v18 = vsub.f32 %v15695_v1, %v15943_v16  ;;  %v6568_v8 = vmul.f32 1.442695, %v6459_v34 }
 0xff4   : > { %17889 = vst [vmem:[#allocation40_spill] sm:$0xff] %v15973_v6  ;;  %6712 = vadd.xlane.f32.xlu1 %v15973_v6  ;;  %v15976_v50 = vpop.eup %11537 }
 0xff5   : > { %17890 = vst [vmem:[#allocation41_spill] sm:$0xff] %v15976_v50  ;;  %v15979_v49 = vpop.eup %11539  ;;  %v6592_v63 = vmul.f32 1.442695, %v6471_v5 }
 0xff6   : > { %6706 = vadd.xlane.f32.xlu0 %v15976_v50  ;;  %17891 = vst [vmem:[#allocation42_spill] sm:$0xff] %v15979_v49  ;;  %v15990_v6 = vpop.xlane.xlu1 %6412 }
 0xff7   : > { %v15992_v48 = vpop.xlane.xlu0 %6402 }
 0xffa   : > { %6702 = vadd.xlane.f32.xlu0 %v15979_v49  ;;  %v6455_v49 = vsub.f32 %v15678_v29, %v15922_v46  ;;  %v6409_v50 = vpop.xlane.xlu1 %6408 }
 0xffb   : > { %v15996_v31 = vpop.xlane.xlu0 %6398  ;;  %v6475_v1 = vsub.f32 %v15753_v22, %v6409_v50  ;;  %v6477_v22 = vsub.f32 %v15743_v51, %v15990_v6 }
 0xffc   : > { %v6560_v38 = vmul.f32 1.442695, %v6455_v49 }
 0xffd   : > { %v6600_v50 = vmul.f32 1.442695, %v6475_v1  ;;  %v6604_v6 = vmul.f32 1.442695, %v6477_v22 }
 0xffe   : > { %11541 = vpow2.f32 %v6560_v38  ;;  %v6572_v38 = vmul.f32 1.442695, %v6461_v18 }
 0xfff   : > { %v16002_v54 = vpop.xlane.xlu0 %6410  ;;  %11543 = vpow2.f32 %v6586_v12 }
0x1000   : > { %11545 = vpow2.f32 %v6592_v63  ;;  %v6558_v63 = vmul.f32 1.442695, %v6454_v56 }
0x1001   : > { %11547 = vpow2.f32 %v6596_v60 }
0x1003   : > { %v16009_v39 = vpop.xlane.xlu0 %6406 }
0x1005   : > { %7255 = vrot.lane.b32.xlu1 %v17892_v52, %s12033_s22 }
0x1008   : > { %v16012_v58 = vpop.eup %11541 }
0x1009   : > { %v16016_v15 = vpop.eup %11543 }
0x100a   : > { %v16018_v17 = vpop.eup %11545 }
0x100b   : > { %v16022_v5 = vpop.eup %11547 }
0x1010   : > { %7134 = vrot.lane.b32.xlu0 %v17892_v52, %s12032_s3  ;;  %v6466_v52 = vsub.f32 %v15729_v43, %v6391_v53  ;;  %v6470_v53 = vsub.f32 %v17895_v7, %v15996_v31 }
0x1012   : > { %v6582_v46 = vmul.f32 1.442695, %v6466_v52 }
0x1014   : > { %11549 = vpow2.f32 %v6582_v46  ;;  %v17896_v46 = vld [vmem:[#allocation91_spill] sm:$0xff] }
0x1015   : > { %v6460_v51 = vsub.f32 %v17896_v46, %v15982_v44  ;;  %v17898_v44 = vld [vmem:[#allocation133_spill] sm:$0xff] }
0x101b   : > { %v6611_v11 = vpop.xlane.xlu1 %6610 }
0x101e   : > { %v16025_v59 = vpop.eup %11549 }
0x101f   : > { %v6607_v29 = vpop.xlane.xlu1 %6606 }
0x1023   : > { %v6613_v43 = vpop.xlane.xlu1 %6612 }
0x1024   : > { %11551 = vrcp.f32 %v6613_v43  ;;  %v17897_v43 = vld [vmem:[#allocation134_spill] sm:$0xff] }
0x1025   : > { %11553 = vrcp.f32 %v6607_v29  ;;  %v6458_v56 = vsub.f32 %v17897_v43, %v15986_v42 }
0x1026   : > { %11555 = vrcp.f32 %v6611_v11  ;;  %v17894_v11 = vld [vmem:[#allocation87_spill] sm:$0xff] }
0x1027   : > { %v6609_v12 = vpop.xlane.xlu1 %6608  ;;  %v6619_v25 = vpop.xlane.xlu0 %6618  ;;  %v6457_v16 = vsub.f32 %v17894_v11, %v15903_v24 }
0x1028   : > { %11557 = vrcp.f32 %v6609_v12  ;;  %v6472_v12 = vsub.f32 %v17898_v44, %v15992_v48 }
0x1029   : > { %11559 = vpow2.f32 %v6562_v47  ;;  %6688 = vadd.xlane.f32.xlu1 %v16012_v58  ;;  %v6564_v24 = vmul.f32 1.442695, %v6457_v16 }
0x102a   : > { %11561 = vpow2.f32 %v6568_v8  ;;  %v6594_v22 = vmul.f32 1.442695, %v6472_v12 }
0x102b   : > { %11563 = vpow2.f32 %v6572_v38  ;;  %v6615_v60 = vpop.xlane.xlu1 %6614  ;;  %v6621_v20 = vpop.xlane.xlu0 %6620 }
0x102c   : > { %11565 = vpow2.f32 %v6558_v63 }
0x102d   : > { %11567 = vrcp.f32 %v6621_v20  ;;  %6720 = vadd.xlane.f32.xlu1 %v16018_v17  ;;  %v6566_v20 = vmul.f32 1.442695, %v6458_v56 }
0x102e   : > { %11569 = vrcp.f32 %v6615_v60  ;;  %v11552_v49 = vpop.eup %11551  ;;  %v6570_v60 = vmul.f32 1.442695, %v6460_v51 }
0x102f   : > { %11571 = vrcp.f32 %v6619_v25  ;;  %6714 = vadd.xlane.f32.xlu0 %v16016_v15  ;;  %v6617_v10 = vpop.xlane.xlu0 %6616  ;;  %v11554_v13 = vpop.eup %11553  ;;  %v6801_v34 = vmul.f32 %v11552_v49, %v15793_v27  ;;  %v6590_v27 = vmul.f32 1.442695, %v6470_v53 }
0x1030   : > { %11573 = vrcp.f32 %v6617_v10  ;;  %v11556_v52 = vpop.eup %11555  ;;  %v6798_v47 = vmul.f32 %v11554_v13, %v15789_v30  ;;  %v17900_v10 = vld [vmem:[#allocation125_spill] sm:$0xff] }
0x1031   : > { %6724 = vadd.xlane.f32.xlu1 %v16022_v5  ;;  %11575 = vpow2.f32 %v6600_v50  ;;  %v6800_v25 = vmul.f32 %v11556_v52, %v15784_v40  ;;  %v17899_v50 = vld [vmem:[#allocation74_spill] sm:$0xff] }
0x1032   : > { %v11558_v29 = vpop.eup %11557  ;;  %11577 = vpow2.f32 %v6564_v24 }
0x1033   : > { %v16036_v18 = vpop.eup %11559  ;;  %6710 = vadd.xlane.f32.xlu0 %v16025_v59  ;;  %v16041_v31 = vpop.xlane.xlu0 %6642  ;;  %v6799_v8 = vmul.f32 %v11558_v29, %v15797_v26  ;;  %11579 = vpow2.f32 %v6604_v6  ;;  %v6863_v30 = vpack.c.bf16 %v6801_v34, %v6800_v25  ;;  %v17901_v6 = vld [vmem:[#allocation94_spill] sm:$0xff] }
0x1034   : > { %v16045_v38 = vpop.eup %11561  ;;  %11581 = vpow2.f32 %v6590_v27 }
0x1035   : > { %v16050_v63 = vpop.eup %11563  ;;  %6696 = vadd.xlane.f32.xlu1 %v16045_v38  ;;  %v6862_v42 = vpack.c.bf16 %v6799_v8, %v6798_v47  ;;  %11583 = vpow2.f32 %v6570_v60  ;;  %v17903_v8 = vld [vmem:[#allocation81_spill] sm:$0xff] }
0x1036   : > { %v16053_v1 = vpop.eup %11565  ;;  %11585 = vpow2.f32 %v6566_v20 }
0x1037   : > { %v11568_v26 = vpop.eup %11567  ;;  %10393 = vmatprep.mubr.bf16.mxu1 %v6862_v42  ;;  %v6639_v11 = vpop.xlane.xlu1 %6638  ;;  %6686 = vadd.xlane.f32.xlu0 %v16053_v1  ;;  %11587 = vpow2.f32 %v6594_v22 }
0x1038   : > { %v6627_v48 = vpop.xlane.xlu0 %6626  ;;  %v11570_v16 = vpop.eup %11569  ;;  %10394 = vmatmul.mubr.bf16.vlgmr.msra.gmra.mrb[176].mxu1 %v6863_v30  ;;  %v6805_v13 = vmul.f32 %v11568_v26, %v15805_v28  ;;  %v17905_v30 = vld [vmem:[#allocation60_spill] sm:$0xff] }
0x1039   : > { %v11572_v40 = vpop.eup %11571  ;;  %10442 = vmatpush3.bf16.msra.mxu1 %v17899_v50  ;;  %6700 = vadd.xlane.f32.xlu1 %v16050_v63  ;;  %v6802_v53 = vmul.f32 %v11570_v16, %v15807_v57  ;;  %11589 = vrcp.f32 %v6627_v48  ;;  %v17906_v16 = vld [vmem:[#allocation127_spill] sm:$0xff] }
0x103a   : > { %v11574_v49 = vpop.eup %11573  ;;  %10443 = vmatprep.subr.bf16.mxu1 %v17900_v10  ;;  %v6804_v46 = vmul.f32 %v11572_v40, %v15799_v37  ;;  %v17902_v37 = vld [vmem:[#allocation14_spill] sm:$0xff] }
0x103b   : > { %v6623_v24 = vpop.xlane.xlu1 %6622  ;;  %6690 = vadd.xlane.f32.xlu0 %v16036_v18  ;;  %v6803_v52 = vmul.f32 %v11574_v49, %v15814_v14  ;;  %v16063_v29 = vpop.eup %11575  ;;  %v6474_v56 = vsub.f32 %v17902_v37, %v16009_v39  ;;  %v17904_v39 = vld [vmem:[#allocation137_spill] sm:$0xff] }
0x103c   : > { %v6629_v7 = vpop.xlane.xlu0 %6628  ;;  %v16068_v51 = vpop.eup %11577  ;;  %v6865_v34 = vpack.c.bf16 %v6805_v13, %v6804_v46  ;;  %v6476_v27 = vsub.f32 %v17904_v39, %v16002_v54  ;;  %v17910_v39 = vld [vmem:[#allocation138_spill] sm:$0xff] }
0x103d   : > { %10444 = vmatpush3.bf16.msra.mxu1 %v17900_v10  ;;  %6728 = vadd.xlane.f32.xlu1 %v16063_v29  ;;  %v6864_v28 = vpack.c.bf16 %v6803_v52, %v6802_v53  ;;  %11591 = vrcp.f32 %v6629_v7  ;;  %v16072_v43 = vpop.eup %11579  ;;  %v6598_v25 = vmul.f32 1.442695, %v6474_v56 }
0x103e   : > { %10445 = vmatprep.subr.bf16.mxu1 %v17901_v6  ;;  %11593 = vrcp.f32 %v6623_v24  ;;  %v16078_v47 = vpop.eup %11581 }
0x103f   : > { %v6645_v57 = vpop.xlane.xlu1 %6644  ;;  %6692 = vadd.xlane.f32.xlu0 %v16068_v51  ;;  %10397 = vmatprep.mubr.bf16.mxu1 %v6864_v28  ;;  %v16083_v12 = vpop.eup %11583  ;;  %v17907_v28 = vld [vmem:[#allocation15_spill] sm:$0xff] }
0x1040   : > { %v6625_v14 = vpop.xlane.xlu0 %6624  ;;  %11595 = vrcp.f32 %v6645_v57  ;;  %10398 = vmatmul.mubr.bf16.gmra.mrb[180].mxu1 %v6865_v34  ;;  %v16087_v42 = vpop.eup %11585 }
0x1041   : > { %11597 = vrcp.f32 %v6625_v14  ;;  %10446 = vmatpush3.bf16.msra.mxu1 %v17901_v6  ;;  %6732 = vadd.xlane.f32.xlu1 %v16072_v43  ;;  %v16090_v60 = vpop.eup %11587 }
0x1042   : > { %11599 = vrcp.f32 %v6639_v11  ;;  %10447 = vmatprep.subr.bf16.mxu1 %v17903_v8  ;;  %v6602_v11 = vmul.f32 1.442695, %v6476_v27 }
0x1043   : > { %11601 = vrcp.f32 %v16041_v31  ;;  %v6641_v44 = vpop.xlane.xlu1 %6640  ;;  %6718 = vadd.xlane.f32.xlu0 %v16078_v47  ;;  %v11590_v26 = vpop.eup %11589 }
0x1044   : > { %11603 = vrcp.f32 %v6641_v44  ;;  %v6651_v31 = vpop.xlane.xlu0 %6650  ;;  %v6808_v53 = vmul.f32 %v11590_v26, %v15822_v3 }
0x1045   : > { %10448 = vmatpush3.bf16.msra.mxu1 %v17903_v8  ;;  %11605 = vpow2.f32 %v6598_v25 }
0x1046   : > { %10449 = vmatprep.subr.bf16.mxu1 %v17905_v30  ;;  %11607 = vpow2.f32 %v6602_v11 }
0x1047   : > { %6722 = vadd.xlane.f32.xlu0 %v16090_v60  ;;  %v11592_v20 = vpop.eup %11591  ;;  %v6635_v7 = vpop.xlane.xlu1 %6634 }
0x1048   : > { %v11594_v48 = vpop.eup %11593  ;;  %v6809_v50 = vmul.f32 %v11592_v20, %v15829_v45 }
0x1049   : > { %10450 = vmatpush3.bf16.msra.mxu1 %v17905_v30  ;;  %v6806_v10 = vmul.f32 %v11594_v48, %v15833_v19  ;;  %v17911_v30 = vld [vmem:[#allocation139_spill] sm:$0xff] }
0x104a   : > { %v11596_v54 = vpop.eup %11595  ;;  %10451 = vmatprep.subr.bf16.mxu1 %v17906_v16  ;;  %v6867_v34 = vpack.c.bf16 %v6809_v50, %v6808_v53 }
0x104b   : > { %v11598_v22 = vpop.eup %11597  ;;  %6694 = vadd.xlane.f32.xlu0 %v16087_v42  ;;  %v6647_v40 = vpop.xlane.xlu0 %6646  ;;  %v6817_v46 = vmul.f32 %v11596_v54, %v15839_v35 }
0x104c   : > { %v11600_v49 = vpop.eup %11599  ;;  %v6807_v13 = vmul.f32 %v11598_v22, %v15841_v41 }
0x104d   : > { %v11602_v24 = vpop.eup %11601  ;;  %10452 = vmatpush3.bf16.msra.mxu1 %v17906_v16  ;;  %v6814_v19 = vmul.f32 %v11600_v49, %v15824_v62  ;;  %v17908_v62 = vld [vmem:[#allocation68_spill] sm:$0xff]  ;;  %v17912_v16 = vld [vmem:[#allocation129_spill] sm:$0xff] }
0x104e   : > { %v11604_v52 = vpop.eup %11603  ;;  %10453 = vmatprep.subr.bf16.mxu1 %v17907_v28  ;;  %v6866_v6 = vpack.c.bf16 %v6807_v13, %v6806_v10  ;;  %v6816_v57 = vmul.f32 %v11602_v24, %v15818_v4  ;;  %v17909_v4 = vld [vmem:[#allocation72_spill] sm:$0xff] }
0x104f   : > { %6698 = vadd.xlane.f32.xlu0 %v16083_v12  ;;  %v6653_v45 = vpop.xlane.xlu0 %6652  ;;  %v6815_v41 = vmul.f32 %v11604_v52, %v15847_v32  ;;  %v6631_v14 = vpop.xlane.xlu1 %6630 }
0x1050   : > { %10401 = vmatprep.mubr.bf16.mxu1 %v6866_v6  ;;  %v16108_v37 = vpop.eup %11605  ;;  %v6871_v35 = vpack.c.bf16 %v6817_v46, %v6816_v57  ;;  %11609 = vrcp.f32 %v6653_v45  ;;  %v17913_v46 = vld [vmem:[#allocation135_spill] sm:$0xff] }
0x1051   : > { %10402 = vmatmul.mubr.bf16.gmra.mrb[184].mxu1 %v6867_v34  ;;  %v6870_v3 = vpack.c.bf16 %v6815_v41, %v6814_v19  ;;  %v16113_v32 = vpop.eup %11607  ;;  %11611 = vrcp.f32 %v6647_v40  ;;  %v17914_v19 = vld [vmem:[#allocation16_spill] sm:$0xff] }
0x1052   : > { %10454 = vmatpush3.bf16.msra.mxu1 %v17907_v28  ;;  %11613 = vrcp.f32 %v6651_v31 }
0x1053   : > { %10425 = vmatprep.mubr.bf16.mxu0 %v6870_v3  ;;  %6726 = vadd.xlane.f32.xlu0 %v16108_v37  ;;  %v6637_v56 = vpop.xlane.xlu0 %6636  ;;  %v6659_v8 = vpop.xlane.xlu1 %6658 }
0x1054   : > { %10426 = vmatmul.mubr.bf16.vlgmr.msra.gmra.mrb[192].mxu0 %v6871_v35 }
0x1055   : > { %10474 = vmatpush3.bf16.msra.mxu0 %v17908_v62 }
0x1056   : > { %10475 = vmatprep.subr.bf16.mxu0 %v17909_v4 }
0x1057   : > { %6730 = vadd.xlane.f32.xlu0 %v16113_v32  ;;  %v6649_v44 = vpop.xlane.xlu0 %6648 }
0x1058   : > { %11615 = vrcp.f32 %v6649_v44  ;;  %v17915_v44 = vld [vmem:[#allocation18_spill] sm:$0xff] }
0x1059   : > { %10476 = vmatpush3.bf16.msra.mxu0 %v17909_v4  ;;  %11617 = vrcp.f32 %v6637_v56 }
0x105a   : > { %10477 = vmatprep.subr.bf16.mxu0 %v17910_v39  ;;  %11619 = vrcp.f32 %v6631_v14  ;;  %v11610_v26 = vpop.eup %11609 }
0x105b   : > { %v6655_v27 = vpop.xlane.xlu1 %6654  ;;  %v6633_v25 = vpop.xlane.xlu0 %6632  ;;  %11621 = vrcp.f32 %v6635_v7  ;;  %v6821_v22 = vmul.f32 %v11610_v26, %v15866_v36  ;;  %v17917_v26 = vld [vmem:[#allocation17_spill] sm:$0xff] }
0x105c   : > { %11623 = vrcp.f32 %v6633_v25  ;;  %v11612_v11 = vpop.eup %11611 }
0x105d   : > { %10478 = vmatpush3.bf16.msra.mxu0 %v17910_v39  ;;  %v11614_v48 = vpop.eup %11613  ;;  %v6818_v49 = vmul.f32 %v11612_v11, %v15861_v61 }
0x105e   : > { %10479 = vmatprep.subr.bf16.mxu0 %v17911_v30  ;;  %v6820_v24 = vmul.f32 %v11614_v48, %v15849_v21 }
0x105f   : > { %v6671_v31 = vpop.xlane.xlu1 %6670  ;;  %v16121_v20 = vpop.xlane.xlu0 %6674 }
0x1060   : > { %v6873_v28 = vpack.c.bf16 %v6821_v22, %v6820_v24 }
0x1061   : > { %10480 = vmatpush3.bf16.msra.mxu0 %v17911_v30 }
0x1062   : > { %v11616_v54 = vpop.eup %11615  ;;  %10481 = vmatprep.subr.bf16.mxu0 %v17912_v16 }
0x1063   : > { %v6677_v40 = vpop.xlane.xlu1 %6676  ;;  %v6661_v50 = vpop.xlane.xlu0 %6660  ;;  %v6819_v10 = vmul.f32 %v11616_v54, %v15888_v33 }
0x1064   : > { %v11618_v13 = vpop.eup %11617  ;;  %11625 = vrcp.f32 %v6661_v50  ;;  %v17918_v50 = vld [vmem:[#allocation20_spill] sm:$0xff] }
0x1065   : > { %v11620_v7 = vpop.eup %11619  ;;  %10482 = vmatpush3.bf16.msra.mxu0 %v17912_v16  ;;  %v6872_v53 = vpack.c.bf16 %v6819_v10, %v6818_v49  ;;  %11627 = vrcp.f32 %v6655_v27  ;;  %v6813_v61 = vmul.f32 %v11618_v13, %v15878_v9  ;;  %v17916_v27 = vld [vmem:[#allocation22_spill] sm:$0xff]  ;;  %v17919_v10 = vld [vmem:[#allocation24_spill] sm:$0xff] }
0x1066   : > { %v11622_v52 = vpop.eup %11621  ;;  %10483 = vmatprep.subr.bf16.mxu0 %v17913_v46  ;;  %11629 = vrcp.f32 %v6659_v8  ;;  %v6810_v21 = vmul.f32 %v11620_v7, %v15870_v55 }
0x1067   : > { %v11624_v6 = vpop.eup %11623  ;;  %v6667_v36 = vpop.xlane.xlu1 %6666  ;;  %10429 = vmatprep.mubr.bf16.mxu0 %v6872_v53  ;;  %v6812_v34 = vmul.f32 %v11622_v52, %v15855_v0 }
0x1068   : > { %v6657_v45 = vpop.xlane.xlu0 %6656  ;;  %10430 = vmatmul.mubr.bf16.gmra.mrb[196].mxu0 %v6873_v28  ;;  %v6811_v33 = vmul.f32 %v11624_v6, %v15892_v23 }
0x1069   : > { %11631 = vrcp.f32 %v6657_v45  ;;  %10484 = vmatpush3.bf16.msra.mxu0 %v17913_v46  ;;  %v6869_v3 = vpack.c.bf16 %v6813_v61, %v6812_v34 }
0x106a   : > { %10485 = vmatprep.subr.bf16.mxu0 %v17914_v19  ;;  %v6868_v41 = vpack.c.bf16 %v6811_v33, %v6810_v21  ;;  %11633 = vrcp.f32 %v6671_v31 }
0x106b   : > { %v6663_v57 = vpop.xlane.xlu1 %6662 }
0x106c   : > { %v6673_v14 = vpop.xlane.xlu0 %6672  ;;  %10405 = vmatprep.mubr.bf16.mxu1 %v6868_v41 }
0x106d   : > { %11635 = vrcp.f32 %v6673_v14  ;;  %10406 = vmatmul.mubr.bf16.gmra.mrb[188].mxu1 %v6869_v3  ;;  %10486 = vmatpush3.bf16.msra.mxu0 %v17914_v19  ;;  %v17920_v19 = vld [vmem:[#allocation21_spill] sm:$0xff] }
0x106e   : > { %v11626_v23 = vpop.eup %11625  ;;  %11637 = vrcp.f32 %v16121_v20 }
0x106f   : > { %v6681_v55 = vpop.xlane.xlu1 %6680  ;;  %v11628_v35 = vpop.eup %11627  ;;  %v6825_v8 = vmul.f32 %v11626_v23, %v15911_v2  ;;  %11639 = vrcp.f32 %v6677_v40  ;;  %v17923_v23 = vld [vmem:[#allocation39_spill] sm:$0xff] }
0x1070   : > { %v6683_v9 = vpop.xlane.xlu0 %6682  ;;  %v11630_v56 = vpop.eup %11629  ;;  %v6822_v39 = vmul.f32 %v11628_v35, %v17915_v44  ;;  %11641 = vrcp.f32 %v6667_v36 }
0x1071   : > { %v6824_v31 = vmul.f32 %v11630_v56, %v17917_v26  ;;  %11643 = vrcp.f32 %v6663_v57  ;;  %v17921_v57 = vld [vmem:[#allocation30_spill] sm:$0xff]  ;;  %v17924_v56 = vld [vmem:[#allocation29_spill] sm:$0xff] }
0x1073   : > { %v11632_v62 = vpop.eup %11631  ;;  %v6709_v4 = vpop.xlane.xlu1 %6708  ;;  %v6875_v22 = vpack.c.bf16 %v6825_v8, %v6824_v31 }
0x1074   : > { %v6679_v0 = vpop.xlane.xlu0 %6678  ;;  %v6823_v25 = vmul.f32 %v11632_v62, %v17916_v27  ;;  %v11634_v30 = vpop.eup %11633 }
0x1075   : > { %v6830_v49 = vmul.f32 %v11634_v30, %v17918_v50 }
0x1076   : > { %v6874_v11 = vpack.c.bf16 %v6823_v25, %v6822_v39  ;;  %v17927_v25 = vld [vmem:[#allocation26_spill] sm:$0xff] }
0x1077   : > { %v11636_v48 = vpop.eup %11635  ;;  %v6705_v54 = vpop.xlane.xlu1 %6704 }
0x1078   : > { %v6669_v16 = vpop.xlane.xlu0 %6668  ;;  %10433 = vmatprep.mubr.bf16.mxu0 %v6874_v11  ;;  %v6831_v13 = vmul.f32 %v11636_v48, %v17919_v10  ;;  %v11638_v46 = vpop.eup %11637 }
0x1079   : > { %10434 = vmatmul.mubr.bf16.gmra.mrb[200].mxu0 %v6875_v22  ;;  %11645 = vrcp.f32 %v6669_v16  ;;  %v11640_v6 = vpop.eup %11639 }
0x107a   : > { %v6878_v2 = vpack.c.bf16 %v6831_v13, %v6830_v49  ;;  %11647 = vrcp.f32 %v6679_v0  ;;  %v11642_v20 = vpop.eup %11641  ;;  %v6833_v41 = vmul.f32 %v11640_v6, %v17920_v19  ;;  %v17925_v0 = vld [vmem:[#allocation19_spill] sm:$0xff]  ;;  %v17928_v49 = vld [vmem:[#allocation41_spill] sm:$0xff]  ;;  %v17929_v13 = vld [vmem:[#allocation38_spill] sm:$0xff] }
0x107b   : > { %v16145_v7 = vpop.xlane.xlu1 %6716  ;;  %11649 = vrcp.f32 %v6681_v55  ;;  %v11644_v36 = vpop.eup %11643  ;;  %v17922_v55 = vld [vmem:[#allocation25_spill] sm:$0xff]  ;;  %v6832_v8 = vmul.f32 %v11638_v46, %v17925_v0  ;;  %v17931_v46 = vld [vmem:[#allocation36_spill] sm:$0xff] }
0x107c   : > { %v6685_v24 = vpop.xlane.xlu0 %6684  ;;  %10457 = vmatprep.mubr.bf16.mxu1 %v6878_v2  ;;  %v17932_v6 = vld [vmem:[#allocation28_spill] sm:$0xff] }
0x107d   : > { %v6879_v11 = vpack.c.bf16 %v6833_v41, %v6832_v8  ;;  %v17934_v0 = vld [vmem:[#allocation40_spill] sm:$0xff] }
0x1080   : > { %v6665_v53 = vpop.xlane.xlu0 %6664 }
0x1081   : > { %11651 = vrcp.f32 %v6665_v53  ;;  %v6713_v52 = vpop.xlane.xlu1 %6712 }
0x1082   : > { %11653 = vrcp.f32 %v6683_v9  ;;  %v6826_v9 = vmul.f32 %v11644_v36, %v17922_v55 }
0x1083   : > { %11655 = vrcp.f32 %v6685_v24  ;;  %v11646_v45 = vpop.eup %11645  ;;  %v17930_v24 = vld [vmem:[#allocation42_spill] sm:$0xff] }
0x1084   : > { %v6707_v28 = vpop.xlane.xlu0 %6706  ;;  %v11648_v21 = vpop.eup %11647  ;;  %v6829_v14 = vmul.f32 %v11646_v45, %v17921_v57 }
0x1085   : > { %11657 = vrcp.f32 %v6707_v28  ;;  %v7256_v40 = vpop.permute.xlu1 %7255  ;;  %v11650_v33 = vpop.eup %11649  ;;  %v6834_v62 = vmul.f32 %v11648_v21, %v17924_v56 }
0x1086   : > { %11659 = vrcp.f32 %v6705_v54  ;;  %10487 = vmatprep.subr.bf16.mxu0 %v7256_v40  ;;  %v6835_v30 = vmul.f32 %v11650_v33, %v17927_v25 }
0x1087   : > { %11661 = vrcp.f32 %v6709_v4  ;;  %10488 = vmatpush3.bf16.msra.mxu0 %v7256_v40  ;;  %v17926_v4 = vld [vmem:[#allocation23_spill] sm:$0xff] }
0x1088   : > { %v6703_v61 = vpop.xlane.xlu0 %6702  ;;  %v6828_v44 = vmul.f32 %v11642_v20, %v17926_v4  ;;  %v6880_v54 = vpack.c.bf16 %v6835_v30, %v6834_v62  ;;  %v17933_v40 = vld [vmem:[#allocation27_spill] sm:$0xff]  ;;  %v17935_v4 = vld [vmem:[#allocation37_spill] sm:$0xff] }
0x1089   : > { %11663 = vrcp.f32 %v6703_v61 }
0x108a   : > { %v6877_v31 = vpack.c.bf16 %v6829_v14, %v6828_v44 }
0x108b   : > { %v11652_v34 = vpop.eup %11651 }
0x108c   : > { %v7135_v3 = vpop.permute.xlu0 %7134  ;;  %v6827_v35 = vmul.f32 %v11652_v34, %v17923_v23  ;;  %v11654_v39 = vpop.eup %11653 }
0x108d   : > { %10455 = vmatprep.subr.bf16.mxu1 %v7135_v3  ;;  %v11656_v26 = vpop.eup %11655  ;;  %v6836_v36 = vmul.f32 %v11654_v39, %v17933_v40 }
0x108e   : > { %10456 = vmatpush3.bf16.msra.mxu1 %v7135_v3  ;;  %v6876_v27 = vpack.c.bf16 %v6827_v35, %v6826_v9  ;;  %v6837_v2 = vmul.f32 %v11656_v26, %v17929_v13 }
0x108f   : > { %v11658_v48 = vpop.eup %11657 }
0x1090   : > { %10437 = vmatprep.mubr.bf16.mxu0 %v6876_v27  ;;  %v11660_v16 = vpop.eup %11659  ;;  %v6848_v10 = vmul.f32 %v11658_v48, %v17928_v49  ;;  %v6881_v61 = vpack.c.bf16 %v6837_v2, %v6836_v36 }
0x1091   : > { %10438 = vmatmul.mubr.bf16.gmra.mrb[204].mxu0 %v6877_v31  ;;  %10458 = vmatmul.mubr.bf16.vlgmr.msra.gmra.mrb[192].mxu1 %v6879_v11  ;;  %v11662_v22 = vpop.eup %11661  ;;  %v6847_v28 = vmul.f32 %v11660_v16, %v17931_v46 }
0x1092   : > { %10461 = vmatprep.mubr.bf16.mxu1 %v6880_v54  ;;  %v6849_v20 = vmul.f32 %v11662_v22, %v17932_v6 }
0x1093   : > { %v11664_v50 = vpop.eup %11663 }
0x1094   : > { %v6846_v53 = vmul.f32 %v11664_v50, %v17930_v24  ;;  %v6887_v21 = vpack.c.bf16 %v6849_v20, %v6848_v10 }
0x1096   : > { %v6886_v45 = vpack.c.bf16 %v6847_v28, %v6846_v53 }
0x1098   : > { %10489 = vmatprep.mubr.bf16.mxu0 %v6886_v45 }
0x1099   : > { %10462 = vmatmul.mubr.bf16.gmra.mrb[196].mxu1 %v6881_v61  ;;  %10490 = vmatmul.mubr.bf16.vlgmr.msra.gmra.mrb[208].mxu0 %v6887_v21 }
0x10b6   : > { %v6689_v33 = vpop.xlane.xlu1 %6688 }
0x10ba   : > { %v6721_v41 = vpop.xlane.xlu1 %6720 }
0x10bc   : > { %v6715_v34 = vpop.xlane.xlu0 %6714 }
0x10bd   : > { %11665 = vrcp.f32 %v6715_v34 }
0x10be   : > { %11667 = vrcp.f32 %v6713_v52  ;;  %v6725_v3 = vpop.xlane.xlu1 %6724 }
0x10bf   : > { %11669 = vrcp.f32 %v16145_v7 }
0x10c0   : > { %v6711_v19 = vpop.xlane.xlu0 %6710 }
0x10c1   : > { %11671 = vrcp.f32 %v6711_v19 }
0x10c2   : > { %11673 = vrcp.f32 %v6689_v33  ;;  %v6697_v39 = vpop.xlane.xlu1 %6696 }
0x10c4   : > { %v6687_v57 = vpop.xlane.xlu0 %6686 }
0x10c5   : > { %11675 = vrcp.f32 %v6687_v57 }
0x10c6   : > { %v6701_v11 = vpop.xlane.xlu1 %6700 }
0x10c7   : > { %v11666_v14 = vpop.eup %11665 }
0x10c8   : > { %v6691_v55 = vpop.xlane.xlu0 %6690  ;;  %v11668_v9 = vpop.eup %11667  ;;  %v6852_v56 = vmul.f32 %v11666_v14, %v16016_v15 }
0x10c9   : > { %v11670_v23 = vpop.eup %11669  ;;  %11677 = vrcp.f32 %v6691_v55  ;;  %v6851_v7 = vmul.f32 %v11668_v9, %v17934_v0 }
0x10ca   : > { %v6853_v44 = vmul.f32 %v11670_v23, %v17935_v4 }
0x10cb   : > { %v11672_v35 = vpop.eup %11671 }
0x10cc   : > { %v6693_v62 = vpop.xlane.xlu0 %6692  ;;  %v6850_v52 = vmul.f32 %v11672_v35, %v16025_v59  ;;  %v11674_v8 = vpop.eup %11673  ;;  %v6889_v30 = vpack.c.bf16 %v6853_v44, %v6852_v56 }
0x10cd   : > { %11679 = vrcp.f32 %v6693_v62  ;;  %v6839_v15 = vmul.f32 %v11674_v8, %v16012_v58 }
0x10ce   : > { %v6888_v27 = vpack.c.bf16 %v6851_v7, %v6850_v52  ;;  %11681 = vrcp.f32 %v6721_v41 }
0x10cf   : > { %v11676_v25 = vpop.eup %11675 }
0x10d0   : > { %10493 = vmatprep.mubr.bf16.mxu0 %v6888_v27  ;;  %v6719_v26 = vpop.xlane.xlu0 %6718  ;;  %v6838_v31 = vmul.f32 %v11676_v25, %v16053_v1  ;;  %v6729_v1 = vpop.xlane.xlu1 %6728 }
0x10d1   : > { %11683 = vrcp.f32 %v6719_v26  ;;  %10494 = vmatmul.mubr.bf16.gmra.mrb[212].mxu0 %v6889_v30 }
0x10d2   : > { %v6882_v59 = vpack.c.bf16 %v6839_v15, %v6838_v31  ;;  %11685 = vrcp.f32 %v6725_v3 }
0x10d3   : > { %v11678_v54 = vpop.eup %11677 }
0x10d4   : > { %10465 = vmatprep.mubr.bf16.mxu1 %v6882_v59  ;;  %v6723_v48 = vpop.xlane.xlu0 %6722  ;;  %v6840_v50 = vmul.f32 %v11678_v54, %v16036_v18  ;;  %v6733_v18 = vpop.xlane.xlu1 %6732 }
0x10d5   : > { %11687 = vrcp.f32 %v6723_v48 }
0x10d6   : > { %11689 = vrcp.f32 %v6697_v39 }
0x10d7   : > { %v11680_v16 = vpop.eup %11679 }
0x10d8   : > { %v6695_v22 = vpop.xlane.xlu0 %6694  ;;  %v6841_v49 = vmul.f32 %v11680_v16, %v16068_v51  ;;  %v11682_v10 = vpop.eup %11681 }
0x10d9   : > { %11691 = vrcp.f32 %v6695_v22  ;;  %v6855_v53 = vmul.f32 %v11682_v10, %v16018_v17 }
0x10da   : > { %v6883_v58 = vpack.c.bf16 %v6841_v49, %v6840_v50  ;;  %11693 = vrcp.f32 %v6701_v11 }
0x10db   : > { %v11684_v13 = vpop.eup %11683 }
0x10dc   : > { %10466 = vmatmul.mubr.bf16.gmra.mrb[200].mxu1 %v6883_v58  ;;  %v6699_v2 = vpop.xlane.xlu0 %6698  ;;  %v6854_v24 = vmul.f32 %v11684_v13, %v16078_v47  ;;  %v11686_v46 = vpop.eup %11685 }
0x10dd   : > { %11695 = vrcp.f32 %v6699_v2  ;;  %v6857_v40 = vmul.f32 %v11686_v46, %v16022_v5  ;;  %v10986_v2 = vld [vmem:[#allocation7 + $0x48] sm:$0xff]  }
0x10de   : > { %v6890_v28 = vpack.c.bf16 %v6855_v53, %v6854_v24  ;;  %11697 = vrcp.f32 %v6729_v1  ;;  %v10985_v1 = vld [vmem:[#allocation7 + $0x40] sm:$0xff]  }
0x10df   : > { %v11688_v6 = vpop.eup %11687  ;;  %10505 = vmatprep.subr.bf16.mxu1 %v10985_v1 }
0x10e0   : > { %10497 = vmatprep.mubr.bf16.mxu0 %v6890_v28  ;;  %v6727_v51 = vpop.xlane.xlu0 %6726  ;;  %v6856_v20 = vmul.f32 %v11688_v6, %v16090_v60  ;;  %v11690_v36 = vpop.eup %11689  ;;  %10506 = vmatpush3.bf16.msra.mxu1 %v10985_v1  ;;  %v10987_v28 = vld [vmem:[#allocation7 + $0x50] sm:$0xff]  }
0x10e1   : > { %11699 = vrcp.f32 %v6727_v51  ;;  %v6843_v21 = vmul.f32 %v11690_v36, %v16045_v38  ;;  %10507 = vmatprep.subr.bf16.mxu1 %v10986_v2  ;;  %v10989_v51 = vld [vmem:[#allocation7 + $0x60] sm:$0xff]  }
0x10e2   : > { %v6891_v45 = vpack.c.bf16 %v6857_v40, %v6856_v20  ;;  %11701 = vrcp.f32 %v6733_v18  ;;  %v10988_v18 = vld [vmem:[#allocation7 + $0x58] sm:$0xff]   ;;  %v10990_v20 = vld [vmem:[#allocation7 + $0x68] sm:$0xff]   ;;  %v10991_v40 = vld [vmem:[#allocation7 + $0x70] sm:$0xff]  }
0x10e3   : > { %v11692_v61 = vpop.eup %11691 }
0x10e4   : > { %10498 = vmatmul.mubr.bf16.gmra.mrb[216].mxu0 %v6891_v45  ;;  %v6731_v47 = vpop.xlane.xlu0 %6730  ;;  %v6842_v17 = vmul.f32 %v11692_v61, %v16087_v42  ;;  %v11694_v33 = vpop.eup %11693  ;;  %10508 = vmatpush3.bf16.msra.mxu1 %v10986_v2 }
0x10e5   : > { %11703 = vrcp.f32 %v6731_v47  ;;  %v6845_v5 = vmul.f32 %v11694_v33, %v16050_v63  ;;  %10509 = vmatprep.subr.bf16.mxu1 %v10987_v28 }
0x10e6   : > { %v6884_v34 = vpack.c.bf16 %v6843_v21, %v6842_v17 }
0x10e7   : > { %v11696_v19 = vpop.eup %11695 }
0x10e8   : > { %10469 = vmatprep.mubr.bf16.mxu1 %v6884_v34  ;;  %v6844_v60 = vmul.f32 %v11696_v19, %v16083_v12  ;;  %v11698_v41 = vpop.eup %11697  ;;  %v17936_v12 = vmov 0   ;;  %10510 = vmatpush3.bf16.msra.mxu1 %v10987_v28 }
0x10e9   : > { %v6859_v55 = vmul.f32 %v11698_v41, %v16063_v29  ;;  %10511 = vmatprep.subr.bf16.mxu1 %v10988_v18 }
0x10ea   : > { %v6885_v57 = vpack.c.bf16 %v6845_v5, %v6844_v60  ;;  %v10992_v5 = vld [vmem:[#allocation7 + $0x78] sm:$0xff]  }
0x10eb   : > { %v11700_v14 = vpop.eup %11699 }
0x10ec   : > { %10470 = vmatmul.mubr.bf16.gmra.mrb[204].mxu1 %v6885_v57  ;;  %v6858_v3 = vmul.f32 %v11700_v14, %v16108_v37  ;;  %v11702_v42 = vpop.eup %11701 }
0x10ed   : > { %v6861_v35 = vmul.f32 %v11702_v42, %v16072_v43  ;;  %10512 = vmatpush3.bf16.msra.mxu1 %v10988_v18 }
0x10ee   : > { %v6892_v9 = vpack.c.bf16 %v6859_v55, %v6858_v3  ;;  %10513 = vmatprep.subr.bf16.mxu1 %v10989_v51 }
0x10ef   : > { %v11704_v38 = vpop.eup %11703 }
0x10f0   : > { %10501 = vmatprep.mubr.bf16.mxu0 %v6892_v9  ;;  %v6860_v23 = vmul.f32 %v11704_v38, %v16113_v32 }
0x10f1   : > { %10514 = vmatpush3.bf16.msra.mxu1 %v10989_v51 }
0x10f2   : > { %v6893_v56 = vpack.c.bf16 %v6861_v35, %v6860_v23  ;;  %10515 = vmatprep.subr.bf16.mxu1 %v10990_v20 }
0x10f4   : > { %10502 = vmatmul.mubr.bf16.gmra.mrb[220].mxu0 %v6893_v56 }
0x10f5   : > { %8170 = vmatprep.mubr.bf16.mxu0 %v17936_v12  ;;  %10516 = vmatpush3.bf16.msra.mxu1 %v10990_v20 }
0x10f6   : > { %10517 = vmatprep.subr.bf16.mxu1 %v10991_v40 }
0x10f9   : > { %10518 = vmatpush3.bf16.msra.mxu1 %v10991_v40 }
0x10fa   : > { %10519 = vmatprep.subr.bf16.mxu1 %v10992_v5 }
0x10fd   : > { %10520 = vmatpush3.bf16.msra.mxu1 %v10992_v5 }
0x110b   : > { %v16183_v63 = vpop.f32.mrb[176].mxu1 }
0x110c   : > { %v16185_v62 = vpop.f32.mrb[177].mxu1 }
0x110d   : > { %v16187_v52 = vpop.f32.mrb[178].mxu1 }
0x110e   : > { %v16189_v37 = vpop.f32.mrb[179].mxu1 }
0x1113   : > { %v16191_v29 = vpop.f32.mrb[180].mxu1 }
0x1114   : > { %v16193_v0 = vpop.f32.mrb[181].mxu1 }
0x1115   : > { %v16195_v7 = vpop.f32.mrb[182].mxu1 }
0x1116   : > { %v16197_v32 = vpop.f32.mrb[183].mxu1 }
0x1124   : > { %v16199_v43 = vpop.f32.mrb[184].mxu1 }
0x1125   : > { %v16201_v8 = vpop.f32.mrb[185].mxu1 }
0x1126   : > { %v16203_v4 = vpop.f32.mrb[186].mxu1 }
0x1127   : > { %v16205_v44 = vpop.f32.mrb[187].mxu1  ;;  %v10427_v39 = vpop.f32.mrb[192].mxu0 }
0x1128   : > { %v7057_v27 = vpop.f32.mrb[193].mxu0 }
0x1129   : > { %v10428_v25 = vpop.f32.mrb[194].mxu0 }
0x112a   : > { %v10749_v30 = vpack.i.bf16 %v10428_v25, %v10427_v39  ;;  %v7060_v26 = vpop.f32.mrb[195].mxu0 }
0x112b   : > { %v10754_v31 = vpack.i.bf16 %v7060_v26, %v7057_v27 }
0x112c   : > { %10750 = vrot.lane.b32.xlu1 %v10749_v30, %s12033_s22 }
0x112d   : > { %10755 = vrot.lane.b32.xlu0 %v10754_v31, %s12033_s22 }
0x113b   : > { %v16209_v15 = vpop.f32.mrb[196].mxu0 }
0x113c   : > { %v16211_v59 = vpop.f32.mrb[197].mxu0 }
0x113d   : > { %v16213_v11 = vpop.f32.mrb[198].mxu0 }
0x113e   : > { %v10784_v48 = vpack.i.bf16 %v16213_v11, %v16209_v15  ;;  %v16217_v54 = vpop.f32.mrb[199].mxu0 }
0x113f   : > { %v10779_v16 = vpack.i.bf16 %v16217_v54, %v16211_v59 }
0x1140   : > { %v16221_v22 = vpop.f32.mrb[188].mxu1 }
0x1141   : > { %v16223_v50 = vpop.f32.mrb[189].mxu1 }
0x1142   : > { %v16225_v49 = vpop.f32.mrb[190].mxu1 }
0x1143   : > { %v16227_v10 = vpop.f32.mrb[191].mxu1 }
0x114c   : > { %v16229_v58 = vpop.f32.mrb[200].mxu0 }
0x114d   : > { %v16231_v13 = vpop.f32.mrb[201].mxu0 }
0x114e   : > { %v16233_v24 = vpop.f32.mrb[202].mxu0 }
0x114f   : > { %v10814_v53 = vpack.i.bf16 %v16233_v24, %v16229_v58  ;;  %v16237_v46 = vpop.f32.mrb[203].mxu0 }
0x1150   : > { %v10809_v6 = vpack.i.bf16 %v16237_v46, %v16231_v13 }
0x1164   : > { %v16241_v36 = vpop.f32.mrb[204].mxu0  ;;  %v10459_v45 = vpop.f32.mrb[192].mxu1 }
0x1165   : > { %v16243_v61 = vpop.f32.mrb[205].mxu0  ;;  %v7178_v47 = vpop.f32.mrb[193].mxu1 }
0x1166   : > { %v10440_v17 = vpop.f32.mrb[206].mxu0  ;;  %v10460_v21 = vpop.f32.mrb[194].mxu1 }
0x1167   : > { %v10844_v33 = vpack.i.bf16 %v10440_v17, %v16241_v36  ;;  %v10759_v34 = vpack.i.bf16 %v10460_v21, %v10459_v45  ;;  %v7108_v19 = vpop.f32.mrb[207].mxu0  ;;  %v7181_v60 = vpop.f32.mrb[195].mxu1 }
0x1168   : > { %v10839_v41 = vpack.i.bf16 %v7108_v19, %v16243_v61  ;;  %v10764_v57 = vpack.i.bf16 %v7181_v60, %v7178_v47 }
0x1169   : > { %10760 = vrot.lane.b32.xlu1 %v10759_v34, %s12032_s3 }
0x116c   : > { %v10463_v14 = vpop.f32.mrb[196].mxu1  ;;  %v10491_v3 = vpop.f32.mrb[208].mxu0 }
0x116d   : > { %v7299_v55 = vpop.f32.mrb[209].mxu0  ;;  %10765 = vrot.lane.b32.xlu1 %v10764_v57, %s12032_s3  ;;  %v7194_v42 = vpop.f32.mrb[197].mxu1 }
0x116e   : > { %v10464_v9 = vpop.f32.mrb[198].mxu1  ;;  %v10492_v38 = vpop.f32.mrb[210].mxu0 }
0x116f   : > { %v10794_v23 = vpack.i.bf16 %v10464_v9, %v10463_v14  ;;  %v10774_v35 = vpack.i.bf16 %v10492_v38, %v10491_v3  ;;  %v7197_v56 = vpop.f32.mrb[199].mxu1  ;;  %v7302_v39 = vpop.f32.mrb[211].mxu0 }
0x1170   : > { %v10789_v27 = vpack.i.bf16 %v7197_v56, %v7194_v42  ;;  %v10769_v25 = vpack.i.bf16 %v7302_v39, %v7299_v55 }
0x1171   : > { %10775 = vrot.lane.b32.xlu1 %v10774_v35, %s12031_s18 }
0x1172   : > { %10770 = vrot.lane.b32.xlu0 %v10769_v25, %s12031_s18 }
0x1175   : > { %10785 = vrot.lane.b32.xlu1 %v10784_v48, %s12033_s22 }
0x1176   : > { %10780 = vrot.lane.b32.xlu0 %v10779_v16, %s12033_s22 }
0x1179   : > { %10795 = vrot.lane.b32.xlu1 %v10794_v23, %s12032_s3 }
0x117a   : > { %10790 = vrot.lane.b32.xlu0 %v10789_v27, %s12032_s3 }
0x119f   : > { %v10756_v5 = vpop.permute.xlu0 %10755 }
0x11a0   : > { %v10758_v3 = vunpack.i.h.bf16 %v10756_v5  ;;  %v10757_v55 = vunpack.i.l.bf16 %v10756_v5 }
0x11a2   : > { %v7555_v27 = vsel %vm1889_vm0, %v16189_v37, %v10758_v3  ;;  %v7554_v25 = vsel %vm1889_vm0, %v16185_v62, %v10757_v55 }
0x11a4   : > { %v10495_v30 = vpop.f32.mrb[212].mxu0 }
0x11a5   : > { %v7315_v26 = vpop.f32.mrb[213].mxu0 }
0x11a6   : > { %v10496_v31 = vpop.f32.mrb[214].mxu0 }
0x11a7   : > { %v10804_v1 = vpack.i.bf16 %v10496_v31, %v10495_v30  ;;  %v7318_v58 = vpop.f32.mrb[215].mxu0 }
0x11a8   : > { %v10799_v13 = vpack.i.bf16 %v7318_v58, %v7315_v26 }
0x11a9   : > { %10805 = vrot.lane.b32.xlu1 %v10804_v1, %s12031_s18 }
0x11aa   : > { %10800 = vrot.lane.b32.xlu0 %v10799_v13, %s12031_s18 }
0x11ad   : > { %10815 = vrot.lane.b32.xlu1 %v10814_v53, %s12033_s22 }
0x11ae   : > { %10810 = vrot.lane.b32.xlu0 %v10809_v6, %s12033_s22 }
0x11af   : > { %v10467_v15 = vpop.f32.mrb[200].mxu1 }
0x11b0   : > { %v7210_v59 = vpop.f32.mrb[201].mxu1 }
0x11b1   : > { %v10468_v11 = vpop.f32.mrb[202].mxu1 }
0x11b2   : > { %v10824_v48 = vpack.i.bf16 %v10468_v11, %v10467_v15  ;;  %v7213_v54 = vpop.f32.mrb[203].mxu1 }
0x11b3   : > { %v10819_v16 = vpack.i.bf16 %v7213_v54, %v7210_v59 }
0x11b4   : > { %10825 = vrot.lane.b32.xlu1 %v10824_v48, %s12032_s3 }
0x11b5   : > { %10820 = vrot.lane.b32.xlu0 %v10819_v16, %s12032_s3 }
0x11b7   : > { %v10499_v2 = vpop.f32.mrb[216].mxu0 }
0x11b8   : > { %v7331_v24 = vpop.f32.mrb[217].mxu0 }
0x11b9   : > { %v10500_v46 = vpop.f32.mrb[218].mxu0 }
0x11ba   : > { %v10834_v28 = vpack.i.bf16 %v10500_v46, %v10499_v2  ;;  %v7334_v18 = vpop.f32.mrb[219].mxu0 }
0x11bb   : > { %v10829_v51 = vpack.i.bf16 %v7334_v18, %v7331_v24 }
0x11bc   : > { %10835 = vrot.lane.b32.xlu1 %v10834_v28, %s12031_s18 }
0x11bd   : > { %10830 = vrot.lane.b32.xlu0 %v10829_v51, %s12031_s18 }
0x11bf   : > { %v10471_v53 = vpop.f32.mrb[204].mxu1 }
0x11c0   : > { %10845 = vrot.lane.b32.xlu1 %v10844_v33, %s12033_s22  ;;  %v7226_v6 = vpop.f32.mrb[205].mxu1  ;;  %v10751_v33 = vpop.permute.xlu1 %10750 }
0x11c1   : > { %10840 = vrot.lane.b32.xlu0 %v10839_v41, %s12033_s22  ;;  %v10472_v20 = vpop.f32.mrb[206].mxu1  ;;  %v10753_v41 = vunpack.i.h.bf16 %v10751_v33  ;;  %v10752_v57 = vunpack.i.l.bf16 %v10751_v33 }
0x11c2   : > { %v10854_v40 = vpack.i.bf16 %v10472_v20, %v10471_v53  ;;  %v7229_v36 = vpop.f32.mrb[207].mxu1 }
0x11c3   : > { %v10849_v45 = vpack.i.bf16 %v7229_v36, %v7226_v6  ;;  %v7557_v35 = vsel %vm1889_vm0, %v16187_v52, %v10753_v41  ;;  %v7556_v56 = vsel %vm1889_vm0, %v16183_v63, %v10752_v57 }
0x11c4   : > { %10855 = vrot.lane.b32.xlu1 %v10854_v40, %s12032_s3 }
0x11c5   : > { %10850 = vrot.lane.b32.xlu0 %v10849_v45, %s12032_s3 }
0x11c7   : > { %v10503_v61 = vpop.f32.mrb[220].mxu0 }
0x11c8   : > { %v7347_v47 = vpop.f32.mrb[221].mxu0 }
0x11c9   : > { %v10504_v17 = vpop.f32.mrb[222].mxu0 }
0x11ca   : > { %v10864_v21 = vpack.i.bf16 %v10504_v17, %v10503_v61  ;;  %v7350_v34 = vpop.f32.mrb[223].mxu0 }
0x11cb   : > { %v10859_v19 = vpack.i.bf16 %v7350_v34, %v7347_v47 }
0x11cc   : > { %10865 = vrot.lane.b32.xlu1 %v10864_v21, %s12031_s18 }
0x11cd   : > { %10860 = vrot.lane.b32.xlu0 %v10859_v19, %s12031_s18  ;;  %s794_s18 = scalar_lea.vmem %s17955_s0, %s9367_s21 }
0x11db   : > { %v10761_v60 = vpop.permute.xlu1 %10760 }
0x11dc   : > { %v10763_v42 = vunpack.i.h.bf16 %v10761_v60  ;;  %v10762_v9 = vunpack.i.l.bf16 %v10761_v60 }
0x11de   : > { %v7573_v1 = vsel %vm3778_vm2, %v7557_v35, %v10763_v42  ;;  %v7572_v58 = vsel %vm3778_vm2, %v7556_v56, %v10762_v9 }
0x11df   : > { %v10766_v14 = vpop.permute.xlu1 %10765 }
0x11e0   : > { %v10768_v38 = vunpack.i.h.bf16 %v10766_v14  ;;  %v10767_v23 = vunpack.i.l.bf16 %v10766_v14 }
0x11e2   : > { %v7570_v52 = vsel %vm3778_vm2, %v7554_v25, %v10767_v23  ;;  %v7571_v63 = vsel %vm3778_vm2, %v7555_v27, %v10768_v38 }
0x11e3   : > { %v10776_v39 = vpop.permute.xlu1 %10775 }
0x11e4   : > { %v10778_v30 = vunpack.i.h.bf16 %v10776_v39  ;;  %v10777_v26 = vunpack.i.l.bf16 %v10776_v39  ;;  %v10771_v31 = vpop.permute.xlu0 %10770 }
0x11e5   : > { %v10773_v13 = vunpack.i.h.bf16 %v10771_v31  ;;  %v10772_v15 = vunpack.i.l.bf16 %v10771_v31 }
0x11e6   : > { %v7589_v59 = vsel %vm3795_vm5, %v7573_v1, %v10778_v30  ;;  %v7588_v37 = vsel %vm3795_vm5, %v7572_v58, %v10777_v26 }
0x11e7   : > { %v7603_v11 = vpack.c.bf16 %v7589_v59, %v7588_v37  ;;  %v7586_v62 = vsel %vm3795_vm5, %v7570_v52, %v10772_v15  ;;  %v7587_v48 = vsel %vm3795_vm5, %v7571_v63, %v10773_v13  ;;  %v10786_v16 = vpop.permute.xlu1 %10785 }
0x11e8   : > { %v7602_v54 = vpack.c.bf16 %v7587_v48, %v7586_v62  ;;  %v10781_v2 = vpop.permute.xlu0 %10780  ;;  %v10788_v46 = vunpack.i.h.bf16 %v10786_v16  ;;  %v10787_v28 = vunpack.i.l.bf16 %v10786_v16 }
0x11e9   : > { %v10783_v51 = vunpack.i.h.bf16 %v10781_v2  ;;  %v10782_v53 = vunpack.i.l.bf16 %v10781_v2 }
0x11ea   : > { %10521 = vmatprep.mubr.bf16.mxu1 %v7602_v54  ;;  %v7561_v45 = vsel %vm1889_vm0, %v16195_v7, %v10788_v46  ;;  %v7560_v61 = vsel %vm1889_vm0, %v16191_v29, %v10787_v28 }
0x11eb   : > { %10522 = vmatmul.mubr.bf16.vlgmr.msra.gmra.mrb[208].mxu1 %v7603_v11  ;;  %v10796_v24 = vpop.permute.xlu1 %10795  ;;  %v7559_v17 = vsel %vm1889_vm0, %v16197_v32, %v10783_v51  ;;  %v7558_v21 = vsel %vm1889_vm0, %v16193_v0, %v10782_v53 }
0x11ec   : > { %v10791_v18 = vpop.permute.xlu0 %10790  ;;  %v10798_v6 = vunpack.i.h.bf16 %v10796_v24  ;;  %v10797_v20 = vunpack.i.l.bf16 %v10796_v24 }
0x11ed   : > { %v10793_v40 = vunpack.i.h.bf16 %v10791_v18  ;;  %v10792_v36 = vunpack.i.l.bf16 %v10791_v18 }
0x11ee   : > { %v7577_v60 = vsel %vm3778_vm2, %v7561_v45, %v10798_v6  ;;  %v7576_v5 = vsel %vm3778_vm2, %v7560_v61, %v10797_v20 }
0x11ef   : > { %v7574_v7 = vsel %vm3778_vm2, %v7558_v21, %v10792_v36  ;;  %v7575_v29 = vsel %vm3778_vm2, %v7559_v17, %v10793_v40 }
0x121b   : > { %v10806_v47 = vpop.permute.xlu1 %10805 }
0x121c   : > { %v10808_v34 = vunpack.i.h.bf16 %v10806_v47  ;;  %v10807_v19 = vunpack.i.l.bf16 %v10806_v47  ;;  %v10801_v33 = vpop.permute.xlu0 %10800 }
0x121d   : > { %v10803_v41 = vunpack.i.h.bf16 %v10801_v33  ;;  %v10802_v57 = vunpack.i.l.bf16 %v10801_v33 }
0x121e   : > { %v7592_v14 = vsel %vm3795_vm5, %v7576_v5, %v10807_v19  ;;  %v7593_v32 = vsel %vm3795_vm5, %v7577_v60, %v10808_v34 }
0x121f   : > { %v7590_v3 = vsel %vm3795_vm5, %v7574_v7, %v10802_v57  ;;  %v7591_v0 = vsel %vm3795_vm5, %v7575_v29, %v10803_v41  ;;  %v7605_v55 = vpack.c.bf16 %v7593_v32, %v7592_v14  ;;  %v10816_v9 = vpop.permute.xlu1 %10815 }
0x1220   : > { %v7604_v42 = vpack.c.bf16 %v7591_v0, %v7590_v3  ;;  %v10811_v38 = vpop.permute.xlu0 %10810  ;;  %v10818_v35 = vunpack.i.h.bf16 %v10816_v9  ;;  %v10817_v56 = vunpack.i.l.bf16 %v10816_v9 }
0x1221   : > { %v10813_v27 = vunpack.i.h.bf16 %v10811_v38  ;;  %v10812_v25 = vunpack.i.l.bf16 %v10811_v38  ;;  %v9532_v38 = vld [vmem:[%s17218_s8 + $0x1] ss:$0 sm:$0xff] }
0x1222   : > { %10525 = vmatprep.mubr.bf16.mxu1 %v7604_v42  ;;  %v7565_v58 = vsel %vm1889_vm0, %v16203_v4, %v10818_v35  ;;  %v7564_v13 = vsel %vm1889_vm0, %v16199_v43, %v10817_v56 }
0x1223   : > { %10526 = vmatmul.mubr.bf16.gmra.mrb[212].mxu1 %v7605_v55  ;;  %v7563_v52 = vsel %vm1889_vm0, %v16205_v44, %v10813_v27  ;;  %v7562_v63 = vsel %vm1889_vm0, %v16201_v8, %v10812_v25 }
0x1226   : > { %v10826_v23 = vpop.permute.xlu1 %10825 }
0x1227   : > { %v10821_v39 = vpop.permute.xlu0 %10820  ;;  %v10828_v30 = vunpack.i.h.bf16 %v10826_v23  ;;  %v10827_v26 = vunpack.i.l.bf16 %v10826_v23 }
0x1228   : > { %v10823_v31 = vunpack.i.h.bf16 %v10821_v39  ;;  %v10822_v1 = vunpack.i.l.bf16 %v10821_v39 }
0x1229   : > { %v7581_v62 = vsel %vm3778_vm2, %v7565_v58, %v10828_v30  ;;  %v7580_v48 = vsel %vm3778_vm2, %v7564_v13, %v10827_v26  ;;  %v17937_v30 = vld [vmem:[#allocation32_spill] sm:$0xff]  ;;  %v17939_v13 = vld [vmem:[#allocation66_spill] sm:$0xff] }
0x122a   : > { %v7578_v4 = vsel %vm3778_vm2, %v7562_v63, %v10822_v1  ;;  %v7579_v43 = vsel %vm3778_vm2, %v7563_v52, %v10823_v31  ;;  %v17938_v1 = vld [vmem:[#allocation34_spill] sm:$0xff]  ;;  %v17940_v63 = vld [vmem:[#allocation128_spill] sm:$0xff] }
0x122e   : > { %v10836_v15 = vpop.permute.xlu1 %10835 }
0x122f   : > { %v10838_v59 = vunpack.i.h.bf16 %v10836_v15  ;;  %v10837_v37 = vunpack.i.l.bf16 %v10836_v15  ;;  %v10831_v11 = vpop.permute.xlu0 %10830 }
0x1230   : > { %v10833_v54 = vunpack.i.h.bf16 %v10831_v11  ;;  %v10832_v16 = vunpack.i.l.bf16 %v10831_v11 }
0x1231   : > { %v7596_v2 = vsel %vm3795_vm5, %v7580_v48, %v10837_v37  ;;  %v7597_v44 = vsel %vm3795_vm5, %v7581_v62, %v10838_v59 }
0x1232   : > { %v7594_v24 = vsel %vm3795_vm5, %v7578_v4, %v10832_v16  ;;  %v7595_v8 = vsel %vm3795_vm5, %v7579_v43, %v10833_v54  ;;  %v7607_v46 = vpack.c.bf16 %v7597_v44, %v7596_v2  ;;  %v10846_v28 = vpop.permute.xlu1 %10845  ;;  %v17941_v4 = vld [vmem:[#allocation71_spill] sm:$0xff] }
0x1233   : > { %v7606_v18 = vpack.c.bf16 %v7595_v8, %v7594_v24  ;;  %v10841_v51 = vpop.permute.xlu0 %10840  ;;  %v10848_v6 = vunpack.i.h.bf16 %v10846_v28  ;;  %v10847_v20 = vunpack.i.l.bf16 %v10846_v28  ;;  %v17942_v24 = vld [vmem:[#allocation58_spill] sm:$0xff] }
0x1234   : > { %v10843_v36 = vunpack.i.h.bf16 %v10841_v51  ;;  %v10842_v45 = vunpack.i.l.bf16 %v10841_v51 }
0x1235   : > { %10529 = vmatprep.mubr.bf16.mxu1 %v7606_v18  ;;  %v7569_v34 = vsel %vm1889_vm0, %v16225_v49, %v10848_v6  ;;  %v7568_v19 = vsel %vm1889_vm0, %v16221_v22, %v10847_v20  ;;  %v17944_v18 = vld [vmem:[#allocation126_spill] sm:$0xff] }
0x1236   : > { %10530 = vmatmul.mubr.bf16.gmra.mrb[216].mxu1 %v7607_v46  ;;  %v10856_v53 = vpop.permute.xlu1 %10855  ;;  %v7567_v60 = vsel %vm1889_vm0, %v16227_v10, %v10843_v36  ;;  %v7566_v5 = vsel %vm1889_vm0, %v16223_v50, %v10842_v45  ;;  %v17943_v46 = vld [vmem:[#allocation52_spill] sm:$0xff]  ;;  %vm9171_vm0 = vcmask 1041409  }
0x1237   : > { %v10851_v40 = vpop.permute.xlu0 %10850  ;;  %v10858_v61 = vunpack.i.h.bf16 %v10856_v53  ;;  %v10857_v47 = vunpack.i.l.bf16 %v10856_v53 }
0x1238   : > { %v10853_v17 = vunpack.i.h.bf16 %v10851_v40  ;;  %v10852_v21 = vunpack.i.l.bf16 %v10851_v40 }
0x1239   : > { %v7585_v29 = vsel %vm3778_vm2, %v7569_v34, %v10858_v61  ;;  %v7584_v14 = vsel %vm3778_vm2, %v7568_v19, %v10857_v47  ;;  %v17945_v61 = vld [vmem:[#allocation63_spill] sm:$0xff]  ;;  %v17946_v34 = vld [vmem:[#allocation56_spill] sm:$0xff] }
0x123a   : > { %v7582_v49 = vsel %vm3778_vm2, %v7566_v5, %v10852_v21  ;;  %v7583_v22 = vsel %vm3778_vm2, %v7567_v60, %v10853_v17  ;;  %v17948_v5 = vld [vmem:[#allocation35_spill] sm:$0xff] }
0x123e   : > { %v10866_v33 = vpop.permute.xlu1 %10865 }
0x123f   : > { %v10868_v41 = vunpack.i.h.bf16 %v10866_v33  ;;  %v10867_v57 = vunpack.i.l.bf16 %v10866_v33  ;;  %v10861_v7 = vpop.permute.xlu0 %10860  ;;  %v17947_v33 = vld [vmem:[#allocation54_spill] sm:$0xff] }
0x1240   : > { %v10863_v32 = vunpack.i.h.bf16 %v10861_v7  ;;  %v10862_v3 = vunpack.i.l.bf16 %v10861_v7 }
0x1241   : > { %v7600_v0 = vsel %vm3795_vm5, %v7584_v14, %v10867_v57  ;;  %v7601_v10 = vsel %vm3795_vm5, %v7585_v29, %v10868_v41 }
0x1242   : > { %v7598_v55 = vsel %vm3795_vm5, %v7582_v49, %v10862_v3  ;;  %v7599_v50 = vsel %vm3795_vm5, %v7583_v22, %v10863_v32  ;;  %v7609_v42 = vpack.c.bf16 %v7601_v10, %v7600_v0  ;;  %v17949_v49 = vld [vmem:[#allocation109_spill] sm:$0xff] }
0x1243   : > { %v7608_v9 = vpack.c.bf16 %v7599_v50, %v7598_v55  ;;  %v17950_v55 = vld [vmem:[#allocation116_spill] sm:$0xff] }
0x1245   : > { %10533 = vmatprep.mubr.bf16.mxu1 %v7608_v9 }
0x1246   : > { %10534 = vmatmul.mubr.bf16.gmra.mrb[220].mxu1 %v7609_v42  ;;  %v17951_v42 = vld [vmem:[#allocation120_spill] sm:$0xff] }
0x12be   : > { %v10523_v23 = vpop.f32.mrb[208].mxu1 }
0x12bf   : > { %v7717_v35 = vpop.f32.mrb[209].mxu1  ;;  %v7726_v25 = vadd.f32 %v10523_v23, %v9532_v38  ;;  %v17952_v23 = vld [vmem:[#allocation123_spill] sm:$0xff] }
0x12c0   : > { %v7718_v56 = vadd.f32 %v9532_v38, %v7717_v35  ;;  %v10524_v39 = vpop.f32.mrb[210].mxu1 }
0x12c1   : > { %v7720_v27 = vpop.f32.mrb[211].mxu1  ;;  %v16350_v15 = vadd.f32 %v7726_v25, %v17939_v13  ;;  %v7729_v52 = vadd.f32 %v10524_v39, %v9532_v38  ;;  %v10995_v39 = vld [vmem:[#allocation8 + $0x84] ss:$8 sps:$4 sm:$0xff]  }
0x12c2   : > { %v16343_v26 = vadd.f32 %v7718_v56, %v17937_v30  ;;  %v7721_v31 = vadd.f32 %v9532_v38, %v7720_v27  ;;  %v10993_v56 = vld [vmem:[#allocation8 + $0x80] ss:$8 sps:$4 sm:$0xff]   ;;  %8138 = vmatprep.subr.bf16.mxu0 %v10995_v39  ;;  %v10996_v27 = vld [vmem:[#allocation8 + $0x90] ss:$8 sps:$4 sm:$0xff]  }
0x12c3   : > { %v16355_v59 = vadd.f32 %v7729_v52, %v17940_v63  ;;  %8139 = vmatpush1.bf16.msra.mxu0 %v10993_v56 }
0x12c4   : > { %v16346_v58 = vadd.f32 %v7721_v31, %v17938_v1  ;;  %7800 = vadd.xlane.f32.xlu0 %v16343_v26 }
0x12c6   : > { %7802 = vadd.xlane.f32.xlu1 %v16346_v58 }
0x12c8   : > { %7804 = vadd.xlane.f32.xlu0 %v16350_v15 }
0x12cc   : > { %7806 = vadd.xlane.f32.xlu0 %v16355_v59 }
0x12f6   : > { %v10527_v37 = vpop.f32.mrb[212].mxu1 }
0x12f7   : > { %v7733_v11 = vpop.f32.mrb[213].mxu1  ;;  %v7742_v16 = vadd.f32 %v10527_v37, %v9532_v38 }
0x12f8   : > { %v7734_v62 = vadd.f32 %v9532_v38, %v7733_v11  ;;  %v10528_v48 = vpop.f32.mrb[214].mxu1 }
0x12f9   : > { %v7736_v54 = vpop.f32.mrb[215].mxu1  ;;  %v7745_v44 = vadd.f32 %v10528_v48, %v9532_v38  ;;  %v16366_v28 = vadd.f32 %v7742_v16, %v17943_v46  ;;  %v11005_v46 = vld [vmem:[#allocation8 + $0xc0] ss:$8 sps:$4 sm:$0xff]  }
0x12fa   : > { %v16359_v43 = vadd.f32 %v7734_v62, %v17941_v4  ;;  %v7737_v2 = vadd.f32 %v9532_v38, %v7736_v54 }
0x12fb   : > { %v16370_v51 = vadd.f32 %v7745_v44, %v17944_v18  ;;  %v11004_v44 = vld [vmem:[#allocation8 + $0xb4] ss:$8 sps:$4 sm:$0xff]   ;;  %v11007_v18 = vld [vmem:[#allocation8 + $0xc4] ss:$8 sps:$4 sm:$0xff]  }
0x12fc   : > { %v16362_v8 = vadd.f32 %v7737_v2, %v17942_v24  ;;  %7808 = vadd.xlane.f32.xlu0 %v16359_v43  ;;  %v10999_v2 = vld [vmem:[#allocation8 + $0xa0] ss:$8 sps:$4 sm:$0xff]   ;;  %v11002_v24 = vld [vmem:[#allocation8 + $0xb0] ss:$8 sps:$4 sm:$0xff]  }
0x12fe   : > { %7810 = vadd.xlane.f32.xlu1 %v16362_v8 }
0x1300   : > { %7812 = vadd.xlane.f32.xlu0 %v16366_v28 }
0x1302   : > { %7814 = vadd.xlane.f32.xlu1 %v16370_v51 }
0x1309   : > { %v10531_v53 = vpop.f32.mrb[216].mxu1 }
0x130a   : > { %v7749_v6 = vpop.f32.mrb[217].mxu1  ;;  %v7758_v45 = vadd.f32 %v10531_v53, %v9532_v38  ;;  %v11010_v53 = vld [vmem:[#allocation8 + $0xd4] ss:$8 sps:$4 sm:$0xff]  }
0x130b   : > { %v7750_v20 = vadd.f32 %v9532_v38, %v7749_v6  ;;  %v10532_v40 = vpop.f32.mrb[218].mxu1  ;;  %v11013_v6 = vld [vmem:[#allocation8 + $0xe4] ss:$8 sps:$4 sm:$0xff]  }
0x130c   : > { %v7752_v36 = vpop.f32.mrb[219].mxu1  ;;  %v7761_v21 = vadd.f32 %v10532_v40, %v9532_v38  ;;  %v16382_v60 = vadd.f32 %v7758_v45, %v17947_v33  ;;  %v11016_v40 = vld [vmem:[#allocation8 + $0xf4] ss:$8 sps:$4 sm:$0xff]  }
0x130d   : > { %v16375_v47 = vadd.f32 %v7750_v20, %v17945_v61  ;;  %v7753_v17 = vadd.f32 %v9532_v38, %v7752_v36  ;;  %v11011_v20 = vld [vmem:[#allocation8 + $0xe0] ss:$8 sps:$4 sm:$0xff]   ;;  %v11014_v36 = vld [vmem:[#allocation8 + $0xf0] ss:$8 sps:$4 sm:$0xff]  }
0x130e   : > { %v16386_v41 = vadd.f32 %v7761_v21, %v17948_v5 }
0x130f   : > { %v16378_v19 = vadd.f32 %v7753_v17, %v17946_v34  ;;  %7816 = vadd.xlane.f32.xlu0 %v16375_v47 }
0x1311   : > { %7818 = vadd.xlane.f32.xlu1 %v16378_v19 }
0x1313   : > { %7820 = vadd.xlane.f32.xlu0 %v16382_v60 }
0x1315   : > { %7822 = vadd.xlane.f32.xlu1 %v16386_v41 }
0x1319   : > { %v10535_v57 = vpop.f32.mrb[220].mxu1 }
0x131a   : > { %v7765_v7 = vpop.f32.mrb[221].mxu1  ;;  %v7774_v3 = vadd.f32 %v10535_v57, %v9532_v38 }
0x131b   : > { %v7766_v29 = vadd.f32 %v9532_v38, %v7765_v7  ;;  %v10536_v14 = vpop.f32.mrb[222].mxu1 }
0x131c   : > { %v7768_v32 = vpop.f32.mrb[223].mxu1  ;;  %v7777_v10 = vadd.f32 %v10536_v14, %v9532_v38  ;;  %v16398_v9 = vadd.f32 %v7774_v3, %v17951_v42 }
0x131d   : > { %v16391_v22 = vadd.f32 %v7766_v29, %v17949_v49  ;;  %v7769_v0 = vadd.f32 %v9532_v38, %v7768_v32  ;;  %v10998_v38 = vld [vmem:[#allocation8 + $0x94] ss:$8 sps:$4 sm:$0xff]  }
0x131e   : > { %v16402_v35 = vadd.f32 %v7777_v10, %v17952_v23  ;;  %8140 = vmatprep.subr.bf16.mxu0 %v10998_v38 }
0x131f   : > { %v16394_v50 = vadd.f32 %v7769_v0, %v17950_v55  ;;  %7824 = vadd.xlane.f32.xlu0 %v16391_v22  ;;  %8141 = vmatpush1.bf16.msra.mxu0 %v10996_v27 }
0x1321   : > { %7826 = vadd.xlane.f32.xlu1 %v16394_v50 }
0x1323   : > { %7828 = vadd.xlane.f32.xlu0 %v16398_v9 }
0x1325   : > { %7830 = vadd.xlane.f32.xlu1 %v16402_v35 }
0x1351   : > { %v7801_v25 = vpop.xlane.xlu0 %7800 }
0x1352   : > { %v7832_v30 = vmul.f32 0.0078125, %v7801_v25 }
0x1353   : > { %v7803_v31 = vpop.xlane.xlu1 %7802 }
0x1354   : > { %v16407_v1 = vsub.f32 %v16343_v26, %v7832_v30  ;;  %v7833_v13 = vmul.f32 0.0078125, %v7803_v31 }
0x1355   : > { %v7805_v52 = vpop.xlane.xlu0 %7804 }
0x1356   : > { %v16410_v63 = vsub.f32 %v16346_v58, %v7833_v13  ;;  %v7834_v37 = vmul.f32 0.0078125, %v7805_v52  ;;  %v7864_v11 = vmul.f32 %v16407_v1, %v16407_v1 }
0x1358   : > { %v16415_v62 = vsub.f32 %v16350_v15, %v7834_v37  ;;  %7880 = vadd.xlane.f32.xlu0 %v7864_v11  ;;  %v7865_v48 = vmul.f32 %v16410_v63, %v16410_v63  ;;  %v11001_v15 = vld [vmem:[#allocation8 + $0xa4] ss:$8 sps:$4 sm:$0xff]  }
0x1359   : > { %v7807_v54 = vpop.xlane.xlu0 %7806  ;;  %8142 = vmatprep.subr.bf16.mxu0 %v11001_v15 }
0x135a   : > { %v7835_v16 = vmul.f32 0.0078125, %v7807_v54  ;;  %7882 = vadd.xlane.f32.xlu1 %v7865_v48  ;;  %v7866_v26 = vmul.f32 %v16415_v62, %v16415_v62  ;;  %8143 = vmatpush1.bf16.msra.mxu0 %v10999_v2 }
0x135b   : > { %8144 = vmatprep.subr.bf16.mxu0 %v11004_v44 }
0x135c   : > { %v16422_v58 = vsub.f32 %v16355_v59, %v7835_v16  ;;  %7884 = vadd.xlane.f32.xlu0 %v7866_v26  ;;  %v11008_v59 = vld [vmem:[#allocation8 + $0xd0] ss:$8 sps:$4 sm:$0xff]  }
0x135e   : > { %v7867_v4 = vmul.f32 %v16422_v58, %v16422_v58  ;;  %8145 = vmatpush1.bf16.msra.mxu0 %v11002_v24 }
0x135f   : > { %8146 = vmatprep.subr.bf16.mxu0 %v11007_v18 }
0x1360   : > { %7886 = vadd.xlane.f32.xlu1 %v7867_v4 }
0x1362   : > { %8147 = vmatpush1.bf16.msra.mxu0 %v11005_v46 }
0x1363   : > { %8148 = vmatprep.subr.bf16.mxu0 %v11010_v53 }
0x1366   : > { %8149 = vmatpush1.bf16.msra.mxu0 %v11008_v59 }
0x1367   : > { %8150 = vmatprep.subr.bf16.mxu0 %v11013_v6 }
0x136a   : > { %8151 = vmatpush1.bf16.msra.mxu0 %v11011_v20 }
0x136b   : > { %8152 = vmatprep.subr.bf16.mxu0 %v11016_v40 }
0x136e   : > { %8153 = vmatpush1.bf16.msra.mxu0 %v11014_v36 }
0x1389   : > { %v7809_v45 = vpop.xlane.xlu0 %7808 }
0x138a   : > { %v7836_v61 = vmul.f32 0.0078125, %v7809_v45 }
0x138b   : > { %v7811_v17 = vpop.xlane.xlu1 %7810 }
0x138c   : > { %v16427_v21 = vsub.f32 %v16359_v43, %v7836_v61  ;;  %v7837_v34 = vmul.f32 0.0078125, %v7811_v17  ;;  %v16489_v17 = vld [vmem:[%s17219_s9 + $0x1] ss:$0 sm:$0xff] }
0x138d   : > { %v7813_v33 = vpop.xlane.xlu0 %7812 }
0x138e   : > { %v16430_v5 = vsub.f32 %v16362_v8, %v7837_v34  ;;  %v7838_v57 = vmul.f32 0.0078125, %v7813_v33  ;;  %v7868_v7 = vmul.f32 %v16427_v21, %v16427_v21 }
0x138f   : > { %v7815_v29 = vpop.xlane.xlu1 %7814 }
0x1390   : > { %v16435_v14 = vsub.f32 %v16366_v28, %v7838_v57  ;;  %v7839_v32 = vmul.f32 0.0078125, %v7815_v29  ;;  %7888 = vadd.xlane.f32.xlu0 %v7868_v7  ;;  %v7869_v3 = vmul.f32 %v16430_v5, %v16430_v5 }
0x1392   : > { %v16440_v43 = vsub.f32 %v16370_v51, %v7839_v32  ;;  %7890 = vadd.xlane.f32.xlu1 %v7869_v3  ;;  %v7870_v8 = vmul.f32 %v16435_v14, %v16435_v14  ;;  %v16497_v32 = vld [vmem:[%s17220_s10 + $0x1] ss:$0 sm:$0xff] }
0x1394   : > { %7892 = vadd.xlane.f32.xlu0 %v7870_v8  ;;  %v7871_v49 = vmul.f32 %v16440_v43, %v16440_v43 }
0x1396   : > { %7894 = vadd.xlane.f32.xlu1 %v7871_v49 }
0x139c   : > { %v7817_v0 = vpop.xlane.xlu0 %7816 }
0x139d   : > { %v7840_v28 = vmul.f32 0.0078125, %v7817_v0 }
0x139e   : > { %v7819_v10 = vpop.xlane.xlu1 %7818 }
0x139f   : > { %v16447_v55 = vsub.f32 %v16375_v47, %v7840_v28  ;;  %v7841_v42 = vmul.f32 0.0078125, %v7819_v10 }
0x13a0   : > { %v7821_v23 = vpop.xlane.xlu0 %7820 }
0x13a1   : > { %v16450_v51 = vsub.f32 %v16378_v19, %v7841_v42  ;;  %v7842_v56 = vmul.f32 0.0078125, %v7821_v23  ;;  %v7872_v39 = vmul.f32 %v16447_v55, %v16447_v55 }
0x13a2   : > { %v7823_v38 = vpop.xlane.xlu1 %7822 }
0x13a3   : > { %v16455_v27 = vsub.f32 %v16382_v60, %v7842_v56  ;;  %v7843_v25 = vmul.f32 0.0078125, %v7823_v38  ;;  %7896 = vadd.xlane.f32.xlu0 %v7872_v39  ;;  %v7873_v30 = vmul.f32 %v16450_v51, %v16450_v51 }
0x13a5   : > { %v16460_v47 = vsub.f32 %v16386_v41, %v7843_v25  ;;  %7898 = vadd.xlane.f32.xlu1 %v7873_v30  ;;  %v7874_v19 = vmul.f32 %v16455_v27, %v16455_v27 }
0x13a7   : > { %7900 = vadd.xlane.f32.xlu0 %v7874_v19  ;;  %v7875_v31 = vmul.f32 %v16460_v47, %v16460_v47 }
0x13a9   : > { %7902 = vadd.xlane.f32.xlu1 %v7875_v31 }
0x13ac   : > { %v7825_v13 = vpop.xlane.xlu0 %7824 }
0x13ad   : > { %v7844_v60 = vmul.f32 0.0078125, %v7825_v13 }
0x13ae   : > { %v7827_v52 = vpop.xlane.xlu1 %7826 }
0x13af   : > { %v16467_v37 = vsub.f32 %v16391_v22, %v7844_v60  ;;  %v7845_v11 = vmul.f32 0.0078125, %v7827_v52 }
0x13b0   : > { %v7829_v48 = vpop.xlane.xlu0 %7828 }
0x13b1   : > { %v16470_v41 = vsub.f32 %v16394_v50, %v7845_v11  ;;  %v7846_v54 = vmul.f32 0.0078125, %v7829_v48  ;;  %v7876_v16 = vmul.f32 %v16467_v37, %v16467_v37 }
0x13b2   : > { %v7831_v26 = vpop.xlane.xlu1 %7830 }
0x13b3   : > { %v16475_v4 = vsub.f32 %v16398_v9, %v7846_v54  ;;  %v7847_v15 = vmul.f32 0.0078125, %v7831_v26  ;;  %7904 = vadd.xlane.f32.xlu0 %v7876_v16  ;;  %v7877_v2 = vmul.f32 %v16470_v41, %v16470_v41 }
0x13b5   : > { %v16480_v22 = vsub.f32 %v16402_v35, %v7847_v15  ;;  %7906 = vadd.xlane.f32.xlu1 %v7877_v2  ;;  %v7878_v50 = vmul.f32 %v16475_v4, %v16475_v4 }
0x13b7   : > { %7908 = vadd.xlane.f32.xlu0 %v7878_v50  ;;  %v7879_v44 = vmul.f32 %v16480_v22, %v16480_v22 }
0x13b9   : > { %7910 = vadd.xlane.f32.xlu1 %v7879_v44 }
0x13e5   : > { %v7881_v24 = vpop.xlane.xlu0 %7880 }
0x13e6   : > { %v7912_v9 = vmul.f32 0.0078125, %v7881_v24 }
0x13e7   : > { %v7883_v46 = vpop.xlane.xlu1 %7882 }
0x13e8   : > { %v7928_v18 = vadd.f32 1e-12, %v7912_v9  ;;  %v7913_v53 = vmul.f32 0.0078125, %v7883_v46 }
0x13e9   : > { %v7885_v59 = vpop.xlane.xlu0 %7884 }
0x13ea   : > { %11705 = vrsqrt.f32 %v7928_v18  ;;  %v7929_v6 = vadd.f32 1e-12, %v7913_v53  ;;  %v7914_v20 = vmul.f32 0.0078125, %v7885_v59 }
0x13ec   : > { %11707 = vrsqrt.f32 %v7929_v6  ;;  %v7930_v35 = vadd.f32 1e-12, %v7914_v20 }
0x13ed   : > { %v7887_v40 = vpop.xlane.xlu1 %7886 }
0x13ee   : > { %11709 = vrsqrt.f32 %v7930_v35  ;;  %v7915_v36 = vmul.f32 0.0078125, %v7887_v40 }
0x13f0   : > { %v7931_v45 = vadd.f32 1e-12, %v7915_v36 }
0x13f2   : > { %11711 = vrsqrt.f32 %v7931_v45 }
0x13f4   : > { %v11706_v61 = vpop.eup %11705 }
0x13f5   : > { %v7960_v34 = vmul.f32 %v11706_v61, %v16407_v1 }
0x13f6   : > { %v11708_v33 = vpop.eup %11707 }
0x13f7   : > { %v7982_v57 = vmul.f32 %v16489_v17, %v7960_v34  ;;  %v7961_v7 = vmul.f32 %v11708_v33, %v16410_v63 }
0x13f8   : > { %v11710_v29 = vpop.eup %11709 }
0x13f9   : > { %v7983_v3 = vmul.f32 %v16489_v17, %v7961_v7  ;;  %v16501_v8 = vadd.f32 %v16497_v32, %v7982_v57  ;;  %v7962_v1 = vmul.f32 %v11710_v29, %v16415_v62 }
0x13fb   : > { %v16504_v49 = vadd.f32 %v16497_v32, %v7983_v3  ;;  %v7984_v10 = vmul.f32 %v16489_v17, %v7962_v1 }
0x13fc   : > { %v11712_v0 = vpop.eup %11711 }
0x13fd   : > { %v8020_v63 = vpack.c.bf16 %v16504_v49, %v16501_v8  ;;  %v7963_v28 = vmul.f32 %v11712_v0, %v16422_v58  ;;  %v16517_v56 = vadd.f32 %v16497_v32, %v7984_v10 }
0x13ff   : > { %8171 = vmatmul.mubr.bf16.vlgmr.msra.gmra.mrb[224].mxu0 %v8020_v63  ;;  %v7985_v42 = vmul.f32 %v16489_v17, %v7963_v28 }
0x1400   : > { %8180 = vmatprep.mubr.bf16.mxu0 %v17936_v12 }
0x1401   : > { %v16514_v23 = vadd.f32 %v16497_v32, %v7985_v42 }
0x1403   : > { %v8021_v62 = vpack.c.bf16 %v16514_v23, %v16517_v56 }
0x1407   : > { %8181 = vmatmul.mubr.bf16.gmra.mrb[228].mxu0 %v8021_v62 }
0x1408   : > { %8190 = vmatprep.mubr.bf16.mxu0 %v17936_v12 }
0x141d   : > { %v7889_v58 = vpop.xlane.xlu0 %7888 }
0x141e   : > { %v7916_v39 = vmul.f32 0.0078125, %v7889_v58 }
0x141f   : > { %v7891_v38 = vpop.xlane.xlu1 %7890 }
0x1420   : > { %v7932_v25 = vadd.f32 1e-12, %v7916_v39  ;;  %v7917_v30 = vmul.f32 0.0078125, %v7891_v38 }
0x1421   : > { %v7893_v19 = vpop.xlane.xlu0 %7892 }
0x1422   : > { %11713 = vrsqrt.f32 %v7932_v25  ;;  %v7933_v31 = vadd.f32 1e-12, %v7917_v30  ;;  %v7918_v13 = vmul.f32 0.0078125, %v7893_v19 }
0x1423   : > { %v7895_v60 = vpop.xlane.xlu1 %7894 }
0x1424   : > { %11715 = vrsqrt.f32 %v7933_v31  ;;  %v7934_v52 = vadd.f32 1e-12, %v7918_v13  ;;  %v7919_v11 = vmul.f32 0.0078125, %v7895_v60 }
0x1426   : > { %11717 = vrsqrt.f32 %v7934_v52  ;;  %v7935_v48 = vadd.f32 1e-12, %v7919_v11 }
0x1428   : > { %11719 = vrsqrt.f32 %v7935_v48 }
0x142c   : > { %v11714_v54 = vpop.eup %11713 }
0x142d   : > { %v7964_v16 = vmul.f32 %v11714_v54, %v16427_v21 }
0x142e   : > { %v11716_v26 = vpop.eup %11715 }
0x142f   : > { %v7965_v15 = vmul.f32 %v11716_v26, %v16430_v5  ;;  %v7986_v2 = vmul.f32 %v16489_v17, %v7964_v16 }
0x1430   : > { %v11718_v50 = vpop.eup %11717  ;;  %v7897_v44 = vpop.xlane.xlu0 %7896 }
0x1431   : > { %v7920_v24 = vmul.f32 0.0078125, %v7897_v44  ;;  %v7987_v9 = vmul.f32 %v16489_v17, %v7965_v15  ;;  %v16527_v53 = vadd.f32 %v16497_v32, %v7986_v2  ;;  %v7966_v59 = vmul.f32 %v11718_v50, %v16435_v14 }
0x1432   : > { %v11720_v46 = vpop.eup %11719  ;;  %v7899_v18 = vpop.xlane.xlu1 %7898 }
0x1433   : > { %v7936_v6 = vadd.f32 1e-12, %v7920_v24  ;;  %v7921_v20 = vmul.f32 0.0078125, %v7899_v18  ;;  %v16531_v21 = vadd.f32 %v16497_v32, %v7987_v9  ;;  %v7967_v5 = vmul.f32 %v11720_v46, %v16440_v43 }
0x1434   : > { %v7901_v35 = vpop.xlane.xlu0 %7900  ;;  %v7988_v57 = vmul.f32 %v16489_v17, %v7966_v59 }
0x1435   : > { %11721 = vrsqrt.f32 %v7936_v6  ;;  %v7937_v40 = vadd.f32 1e-12, %v7921_v20  ;;  %v7922_v36 = vmul.f32 0.0078125, %v7901_v35  ;;  %v8022_v45 = vpack.c.bf16 %v16531_v21, %v16527_v53 }
0x1436   : > { %v7903_v61 = vpop.xlane.xlu1 %7902  ;;  %v7989_v34 = vmul.f32 %v16489_v17, %v7967_v5  ;;  %v16543_v29 = vadd.f32 %v16497_v32, %v7988_v57  ;;  %v11019_v57 = vld [vmem:[#allocation10 + $0xc8] sm:$0xff]  }
0x1437   : > { %11723 = vrsqrt.f32 %v7937_v40  ;;  %v7938_v33 = vadd.f32 1e-12, %v7922_v36  ;;  %v7923_v14 = vmul.f32 0.0078125, %v7903_v61  ;;  %8191 = vmatmul.mubr.bf16.gmra.mrb[232].mxu0 %v8022_v45 }
0x1438   : > { %8200 = vmatprep.mubr.bf16.mxu0 %v17936_v12  ;;  %v16540_v7 = vadd.f32 %v16497_v32, %v7989_v34 }
0x1439   : > { %11725 = vrsqrt.f32 %v7938_v33  ;;  %v7939_v43 = vadd.f32 1e-12, %v7923_v14  ;;  %v11018_v14 = vld [vmem:[#allocation10 + $0x80] sm:$0xff]  }
0x143a   : > { %v8023_v3 = vpack.c.bf16 %v16540_v7, %v16543_v29 }
0x143b   : > { %11727 = vrsqrt.f32 %v7939_v43  ;;  %v11020_v43 = vld [vmem:[#allocation10 + $0x88] sm:$0xff]  }
0x143f   : > { %v11722_v1 = vpop.eup %11721  ;;  %8201 = vmatmul.mubr.bf16.gmra.mrb[236].mxu0 %v8023_v3  ;;  %v11023_v3 = vld [vmem:[#allocation10 + $0xd8] sm:$0xff]  }
0x1440   : > { %v7905_v0 = vpop.xlane.xlu0 %7904  ;;  %8210 = vmatprep.mubr.bf16.mxu0 %v17936_v12  ;;  %v7968_v63 = vmul.f32 %v11722_v1, %v16447_v55  ;;  %v11024_v1 = vld [vmem:[#allocation10 + $0x98] sm:$0xff]  }
0x1441   : > { %v11724_v28 = vpop.eup %11723  ;;  %v7924_v10 = vmul.f32 0.0078125, %v7905_v0  ;;  %v11026_v0 = vld [vmem:[#allocation10 + $0xa0] sm:$0xff]  }
0x1442   : > { %v7907_v42 = vpop.xlane.xlu1 %7906  ;;  %v7969_v62 = vmul.f32 %v11724_v28, %v16450_v51  ;;  %v7990_v58 = vmul.f32 %v16489_v17, %v7968_v63  ;;  %v11027_v63 = vld [vmem:[#allocation10 + $0xe8] sm:$0xff]  }
0x1443   : > { %v11726_v39 = vpop.eup %11725  ;;  %v7940_v38 = vadd.f32 1e-12, %v7924_v10  ;;  %v7925_v25 = vmul.f32 0.0078125, %v7907_v42  ;;  %v11028_v28 = vld [vmem:[#allocation10 + $0xa8] sm:$0xff]   ;;  %v11029_v10 = vld [vmem:[#allocation10 + $0xf0] sm:$0xff]  }
0x1444   : > { %v7909_v30 = vpop.xlane.xlu0 %7908  ;;  %v7991_v19 = vmul.f32 %v16489_v17, %v7969_v62  ;;  %v16553_v55 = vadd.f32 %v16497_v32, %v7990_v58  ;;  %v7970_v51 = vmul.f32 %v11726_v39, %v16455_v27  ;;  %v11030_v42 = vld [vmem:[#allocation10 + $0xb0] sm:$0xff]   ;;  %v11031_v62 = vld [vmem:[#allocation10 + $0xf8] sm:$0xff]   ;;  %v9545_v39 = vld [vmem:[%s17222_s12 + $0x2] sm:$0x3] }
0x1445   : > { %v11728_v31 = vpop.eup %11727  ;;  %11729 = vrsqrt.f32 %v7940_v38  ;;  %v7941_v13 = vadd.f32 1e-12, %v7925_v25  ;;  %v7926_v60 = vmul.f32 0.0078125, %v7909_v30  ;;  %v11032_v58 = vld [vmem:[#allocation10 + $0xb8] sm:$0xff]   ;;  %v17953_v38 = vld [vmem:[#allocation31_spill] sm:$0xff] }
0x1446   : > { %v7911_v52 = vpop.xlane.xlu1 %7910  ;;  %v16556_v11 = vadd.f32 %v16497_v32, %v7991_v19  ;;  %v7971_v48 = vmul.f32 %v11728_v31, %v16460_v47  ;;  %v7992_v50 = vmul.f32 %v16489_v17, %v7970_v51  ;;  %v16603_v25 = vrot.slane %v9545_v39, %v17953_v38  ;;  %v17954_v30 = vld [vmem:[#allocation33_spill] sm:$0xff] }
0x1447   : > { %11731 = vrsqrt.f32 %v7941_v13  ;;  %v7942_v54 = vadd.f32 1e-12, %v7926_v60  ;;  %v7927_v16 = vmul.f32 0.0078125, %v7911_v52  ;;  %v16606_v19 = vrot.slane %v9545_v39, %v17954_v30 }
0x1448   : > { %v8024_v26 = vpack.c.bf16 %v16556_v11, %v16553_v55  ;;  %v7993_v15 = vmul.f32 %v16489_v17, %v7971_v48  ;;  %v16569_v47 = vadd.f32 %v16497_v32, %v7992_v50 }
0x1449   : > { %11733 = vrsqrt.f32 %v7942_v54  ;;  %v7943_v2 = vadd.f32 1e-12, %v7927_v16 }
0x144a   : > { %8211 = vmatmul.mubr.bf16.gmra.mrb[240].mxu0 %v8024_v26  ;;  %v16566_v27 = vadd.f32 %v16497_v32, %v7993_v15 }
0x144b   : > { %11735 = vrsqrt.f32 %v7943_v2  ;;  %8220 = vmatprep.mubr.bf16.mxu0 %v17936_v12 }
0x144c   : > { %v8025_v24 = vpack.c.bf16 %v16566_v27, %v16569_v47 }
0x144f   : > { %v11730_v44 = vpop.eup %11729 }
0x1450   : > { %v7972_v9 = vmul.f32 %v11730_v44, %v16467_v37 }
0x1451   : > { %v11732_v46 = vpop.eup %11731 }
0x1452   : > { %8221 = vmatmul.mubr.bf16.gmra.mrb[244].mxu0 %v8025_v24  ;;  %v7973_v18 = vmul.f32 %v11732_v46, %v16470_v41  ;;  %v7994_v59 = vmul.f32 %v16489_v17, %v7972_v9 }
0x1453   : > { %v11734_v6 = vpop.eup %11733  ;;  %8230 = vmatprep.mubr.bf16.mxu0 %v17936_v12 }
0x1454   : > { %v7995_v20 = vmul.f32 %v16489_v17, %v7973_v18  ;;  %v16579_v35 = vadd.f32 %v16497_v32, %v7994_v59  ;;  %v7974_v37 = vmul.f32 %v11734_v6, %v16475_v4 }
0x1455   : > { %v11736_v5 = vpop.eup %11735 }
0x1456   : > { %v16582_v40 = vadd.f32 %v16497_v32, %v7995_v20  ;;  %v7975_v36 = vmul.f32 %v11736_v5, %v16480_v22  ;;  %v7996_v61 = vmul.f32 %v16489_v17, %v7974_v37  ;;  %v11017_v22 = vld [vmem:[#allocation10 + $0xc0] sm:$0xff]  }
0x1457   : > { %9929 = vmatprep.subr.bf16.mxu1 %v11017_v22 }
0x1458   : > { %v8026_v41 = vpack.c.bf16 %v16582_v40, %v16579_v35  ;;  %v7997_v45 = vmul.f32 %v16489_v17, %v7975_v36  ;;  %v16595_v33 = vadd.f32 %v16497_v32, %v7996_v61  ;;  %9930 = vmatpush3.bf16.msra.mxu1 %v11018_v14  ;;  %v11021_v17 = vld [vmem:[#allocation10 + $0xd0] sm:$0xff]  }
0x1459   : > { %9931 = vmatprep.subr.bf16.mxu1 %v11019_v57 }
0x145a   : > { %8231 = vmatmul.mubr.bf16.gmra.mrb[248].mxu0 %v8026_v41  ;;  %v16592_v34 = vadd.f32 %v16497_v32, %v7997_v45  ;;  %v11025_v32 = vld [vmem:[#allocation10 + $0xe0] sm:$0xff]  }
0x145b   : > { %8240 = vmatprep.mubr.bf16.mxu0 %v17936_v12  ;;  %v11022_v12 = vld [vmem:[#allocation10 + $0x90] sm:$0xff]  }
0x145c   : > { %v8027_v4 = vpack.c.bf16 %v16592_v34, %v16595_v33  ;;  %9932 = vmatpush3.bf16.msra.mxu1 %v11020_v43 }
0x145d   : > { %9933 = vmatprep.subr.bf16.mxu1 %v11021_v17 }
0x1460   : > { %9934 = vmatpush3.bf16.msra.mxu1 %v11022_v12 }
0x1461   : > { %9935 = vmatprep.subr.bf16.mxu1 %v11023_v3 }
0x1462   : > { %8241 = vmatmul.mubr.bf16.gmra.mrb[252].mxu0 %v8027_v4 }
0x1464   : > { %9936 = vmatpush3.bf16.msra.mxu1 %v11024_v1 }
0x1465   : > { %9937 = vmatprep.subr.bf16.mxu1 %v11025_v32 }
0x1468   : > { %9938 = vmatpush3.bf16.msra.mxu1 %v11026_v0 }
0x1469   : > { %9939 = vmatprep.subr.bf16.mxu1 %v11027_v63 }
0x146c   : > { %9940 = vmatpush3.bf16.msra.mxu1 %v11028_v28 }
0x146d   : > { %9941 = vmatprep.subr.bf16.mxu1 %v11029_v10 }
0x1470   : > { %9942 = vmatpush3.bf16.msra.mxu1 %v11030_v42 }
0x1471   : > { %9943 = vmatprep.subr.bf16.mxu1 %v11031_v62 }
0x1474   : > { %9944 = vmatpush3.bf16.msra.mxu1 %v11032_v58 }
0x14d2   : > { %v8172_v31 = vpop.f32.mrb[224].mxu0 }
0x14d3   : > { %v16609_v13 = vadd.f32 %v8172_v31, %v16603_v25  ;;  %v8174_v60 = vpop.f32.mrb[225].mxu0 }
0x14d4   : > { %v16612_v52 = vadd.f32 %v8174_v60, %v16606_v19  ;;  %v8176_v51 = vpop.f32.mrb[226].mxu0 }
0x14d5   : > { %v8251_v48 = vmul.f32 %v16609_v13, %v16609_v13  ;;  %v16617_v54 = vadd.f32 %v8176_v51, %v16603_v25  ;;  %v8178_v16 = vpop.f32.mrb[227].mxu0 }
0x14d6   : > { %v8252_v26 = vmul.f32 %v16612_v52, %v16612_v52  ;;  %v16622_v15 = vadd.f32 %v8178_v16, %v16606_v19 }
0x14d7   : > { %v8283_v2 = vmul.f32 %v8251_v48, %v16609_v13  ;;  %v8253_v50 = vmul.f32 %v16617_v54, %v16617_v54 }
0x14d8   : > { %v8284_v44 = vmul.f32 %v8252_v26, %v16612_v52  ;;  %v8254_v24 = vmul.f32 %v16622_v15, %v16622_v15 }
0x14d9   : > { %v8315_v9 = vmul.f32 0.044715, %v8283_v2  ;;  %v8285_v46 = vmul.f32 %v8253_v50, %v16617_v54 }
0x14da   : > { %v8316_v18 = vmul.f32 0.044715, %v8284_v44  ;;  %v8286_v59 = vmul.f32 %v8254_v24, %v16622_v15  ;;  %v8182_v6 = vpop.f32.mrb[228].mxu0 }
0x14db   : > { %v8347_v20 = vadd.f32 %v8315_v9, %v16609_v13  ;;  %v8317_v5 = vmul.f32 0.044715, %v8285_v46  ;;  %v16634_v37 = vadd.f32 %v8182_v6, %v16603_v25  ;;  %v8184_v36 = vpop.f32.mrb[229].mxu0 }
0x14dc   : > { %v8348_v41 = vadd.f32 %v8316_v18, %v16612_v52  ;;  %v8318_v45 = vmul.f32 0.044715, %v8286_v59  ;;  %v16638_v61 = vadd.f32 %v8184_v36, %v16606_v19  ;;  %v8186_v4 = vpop.f32.mrb[230].mxu0 }
0x14dd   : > { %v8379_v22 = vmul.f32 0.7978846, %v8347_v20  ;;  %v8349_v14 = vadd.f32 %v8317_v5, %v16617_v54  ;;  %v8255_v57 = vmul.f32 %v16634_v37, %v16634_v37  ;;  %v16644_v43 = vadd.f32 %v8186_v4, %v16603_v25  ;;  %v8188_v17 = vpop.f32.mrb[231].mxu0 }
0x14de   : > { %v8380_v12 = vmul.f32 0.7978846, %v8348_v41  ;;  %v8350_v3 = vadd.f32 %v8318_v45, %v16622_v15  ;;  %v8256_v1 = vmul.f32 %v16638_v61, %v16638_v61  ;;  %v16650_v32 = vadd.f32 %v8188_v17, %v16606_v19 }
0x14df   : > { %11737 = vtanh.f32 %v8379_v22  ;;  %v8381_v0 = vmul.f32 0.7978846, %v8349_v14  ;;  %v8287_v63 = vmul.f32 %v8255_v57, %v16634_v37  ;;  %v8257_v28 = vmul.f32 %v16644_v43, %v16644_v43 }
0x14e0   : > { %11739 = vtanh.f32 %v8380_v12  ;;  %v8382_v10 = vmul.f32 0.7978846, %v8350_v3  ;;  %v8288_v42 = vmul.f32 %v8256_v1, %v16638_v61  ;;  %v8258_v62 = vmul.f32 %v16650_v32, %v16650_v32 }
0x14e1   : > { %11741 = vtanh.f32 %v8381_v0  ;;  %v8319_v58 = vmul.f32 0.044715, %v8287_v63  ;;  %v8289_v39 = vmul.f32 %v8257_v28, %v16644_v43 }
0x14e2   : > { %11743 = vtanh.f32 %v8382_v10  ;;  %v8320_v38 = vmul.f32 0.044715, %v8288_v42  ;;  %v8290_v30 = vmul.f32 %v8258_v62, %v16650_v32 }
0x14e3   : > { %v8351_v31 = vadd.f32 %v8319_v58, %v16634_v37  ;;  %v8321_v60 = vmul.f32 0.044715, %v8289_v39 }
0x14e4   : > { %v8352_v51 = vadd.f32 %v8320_v38, %v16638_v61  ;;  %v8322_v48 = vmul.f32 0.044715, %v8290_v30 }
0x14e5   : > { %v8383_v16 = vmul.f32 0.7978846, %v8351_v31  ;;  %v8353_v26 = vadd.f32 %v8321_v60, %v16644_v43 }
0x14e6   : > { %v8384_v2 = vmul.f32 0.7978846, %v8352_v51  ;;  %v8354_v50 = vadd.f32 %v8322_v48, %v16650_v32 }
0x14e7   : > { %11745 = vtanh.f32 %v8383_v16  ;;  %v8385_v44 = vmul.f32 0.7978846, %v8353_v26 }
0x14e8   : > { %11747 = vtanh.f32 %v8384_v2  ;;  %v8386_v24 = vmul.f32 0.7978846, %v8354_v50 }
0x14e9   : > { %v11738_v9 = vpop.eup %11737  ;;  %11749 = vtanh.f32 %v8385_v44 }
0x14ea   : > { %v11740_v46 = vpop.eup %11739  ;;  %v8443_v18 = vadd.f32 1.0, %v11738_v9  ;;  %11751 = vtanh.f32 %v8386_v24 }
0x14eb   : > { %v11742_v59 = vpop.eup %11741  ;;  %v8444_v6 = vadd.f32 1.0, %v11740_v46 }
0x14ec   : > { %v11744_v20 = vpop.eup %11743  ;;  %v8475_v5 = vmul.f32 0.5, %v8443_v18  ;;  %v8445_v36 = vadd.f32 1.0, %v11742_v59 }
0x14ed   : > { %v8446_v41 = vadd.f32 1.0, %v11744_v20  ;;  %v8476_v45 = vmul.f32 0.5, %v8444_v6 }
0x14ee   : > { %v8477_v4 = vmul.f32 0.5, %v8445_v36  ;;  %v8507_v14 = vmul.f32 %v8475_v5, %v16609_v13 }
0x14ef   : > { %v8478_v22 = vmul.f32 0.5, %v8446_v41  ;;  %v8508_v12 = vmul.f32 %v8476_v45, %v16612_v52 }
0x14f0   : > { %v8509_v57 = vmul.f32 %v8477_v4, %v16617_v54 }
0x14f1   : > { %v11746_v17 = vpop.eup %11745  ;;  %v8510_v3 = vmul.f32 %v8478_v22, %v16622_v15 }
0x14f2   : > { %v11748_v1 = vpop.eup %11747  ;;  %v8539_v0 = vpack.c.bf16 %v8509_v57, %v8507_v14  ;;  %v8447_v63 = vadd.f32 1.0, %v11746_v17 }
0x14f3   : > { %v11750_v28 = vpop.eup %11749  ;;  %v8540_v10 = vpack.c.bf16 %v8510_v3, %v8508_v12  ;;  %v8448_v42 = vadd.f32 1.0, %v11748_v1 }
0x14f4   : > { %v11752_v62 = vpop.eup %11751  ;;  %v8449_v58 = vadd.f32 1.0, %v11750_v28  ;;  %v8479_v39 = vmul.f32 0.5, %v8447_v63 }
0x14f5   : > { %8724 = vmatprep.mubr.bf16.mxu1 %v8540_v10  ;;  %v8450_v38 = vadd.f32 1.0, %v11752_v62  ;;  %v8480_v30 = vmul.f32 0.5, %v8448_v42 }
0x14f6   : > { %8725 = vmatmul.mubr.bf16.vlgmr.msra.gmra.mrb[224].mxu1 %v8539_v0  ;;  %v8481_v13 = vmul.f32 0.5, %v8449_v58  ;;  %v8511_v31 = vmul.f32 %v8479_v39, %v16634_v37 }
0x14f7   : > { %v8482_v54 = vmul.f32 0.5, %v8450_v38  ;;  %v8512_v15 = vmul.f32 %v8480_v30, %v16638_v61 }
0x14f8   : > { %v8513_v52 = vmul.f32 %v8481_v13, %v16644_v43 }
0x14f9   : > { %v8514_v60 = vmul.f32 %v8482_v54, %v16650_v32 }
0x14fa   : > { %v8541_v51 = vpack.c.bf16 %v8513_v52, %v8511_v31 }
0x14fb   : > { %v8542_v48 = vpack.c.bf16 %v8514_v60, %v8512_v15 }
0x14fd   : > { %8732 = vmatprep.mubr.bf16.mxu1 %v8542_v48 }
0x14fe   : > { %8733 = vmatmul.mubr.bf16.gmra.mrb[228].mxu1 %v8541_v51 }
0x150a   : > { %v8192_v16 = vpop.f32.mrb[232].mxu0 }
0x150b   : > { %v16673_v26 = vadd.f32 %v8192_v16, %v16603_v25  ;;  %v8194_v2 = vpop.f32.mrb[233].mxu0 }
0x150c   : > { %v16676_v50 = vadd.f32 %v8194_v2, %v16606_v19  ;;  %v8196_v44 = vpop.f32.mrb[234].mxu0 }
0x150d   : > { %v8259_v37 = vmul.f32 %v16673_v26, %v16673_v26  ;;  %v16681_v61 = vadd.f32 %v8196_v44, %v16603_v25  ;;  %v8198_v43 = vpop.f32.mrb[235].mxu0 }
0x150e   : > { %v8260_v32 = vmul.f32 %v16676_v50, %v16676_v50  ;;  %v16686_v24 = vadd.f32 %v8198_v43, %v16606_v19 }
0x150f   : > { %v8291_v9 = vmul.f32 %v8259_v37, %v16673_v26  ;;  %v8261_v46 = vmul.f32 %v16681_v61, %v16681_v61 }
0x1510   : > { %v8292_v18 = vmul.f32 %v8260_v32, %v16676_v50  ;;  %v8262_v59 = vmul.f32 %v16686_v24, %v16686_v24 }
0x1511   : > { %v8323_v6 = vmul.f32 0.044715, %v8291_v9  ;;  %v8293_v20 = vmul.f32 %v8261_v46, %v16681_v61 }
0x1512   : > { %v8324_v5 = vmul.f32 0.044715, %v8292_v18  ;;  %v8294_v36 = vmul.f32 %v8262_v59, %v16686_v24  ;;  %v8202_v41 = vpop.f32.mrb[236].mxu0 }
0x1513   : > { %v8355_v45 = vadd.f32 %v8323_v6, %v16673_v26  ;;  %v8325_v4 = vmul.f32 0.044715, %v8293_v20  ;;  %v16698_v22 = vadd.f32 %v8202_v41, %v16603_v25  ;;  %v8204_v14 = vpop.f32.mrb[237].mxu0 }
0x1514   : > { %v8356_v57 = vadd.f32 %v8324_v5, %v16676_v50  ;;  %v8326_v17 = vmul.f32 0.044715, %v8294_v36  ;;  %v16702_v12 = vadd.f32 %v8204_v14, %v16606_v19  ;;  %v8206_v3 = vpop.f32.mrb[238].mxu0 }
0x1515   : > { %v8387_v1 = vmul.f32 0.7978846, %v8355_v45  ;;  %v8357_v0 = vadd.f32 %v8325_v4, %v16681_v61  ;;  %v8263_v63 = vmul.f32 %v16698_v22, %v16698_v22  ;;  %v16708_v28 = vadd.f32 %v8206_v3, %v16603_v25  ;;  %v8208_v10 = vpop.f32.mrb[239].mxu0 }
0x1516   : > { %v8388_v42 = vmul.f32 0.7978846, %v8356_v57  ;;  %v8358_v62 = vadd.f32 %v8326_v17, %v16686_v24  ;;  %v8264_v58 = vmul.f32 %v16702_v12, %v16702_v12  ;;  %v16714_v39 = vadd.f32 %v8208_v10, %v16606_v19 }
0x1517   : > { %11753 = vtanh.f32 %v8387_v1  ;;  %v8389_v38 = vmul.f32 0.7978846, %v8357_v0  ;;  %v8295_v30 = vmul.f32 %v8263_v63, %v16698_v22  ;;  %v8265_v13 = vmul.f32 %v16708_v28, %v16708_v28 }
0x1518   : > { %11755 = vtanh.f32 %v8388_v42  ;;  %v8390_v54 = vmul.f32 0.7978846, %v8358_v62  ;;  %v8296_v31 = vmul.f32 %v8264_v58, %v16702_v12  ;;  %v8266_v52 = vmul.f32 %v16714_v39, %v16714_v39 }
0x1519   : > { %11757 = vtanh.f32 %v8389_v38  ;;  %v8327_v15 = vmul.f32 0.044715, %v8295_v30  ;;  %v8297_v60 = vmul.f32 %v8265_v13, %v16708_v28 }
0x151a   : > { %11759 = vtanh.f32 %v8390_v54  ;;  %v8328_v51 = vmul.f32 0.044715, %v8296_v31  ;;  %v8298_v48 = vmul.f32 %v8266_v52, %v16714_v39 }
0x151b   : > { %v8359_v16 = vadd.f32 %v8327_v15, %v16698_v22  ;;  %v8329_v2 = vmul.f32 0.044715, %v8297_v60 }
0x151c   : > { %v8360_v44 = vadd.f32 %v8328_v51, %v16702_v12  ;;  %v8330_v37 = vmul.f32 0.044715, %v8298_v48 }
0x151d   : > { %v8391_v43 = vmul.f32 0.7978846, %v8359_v16  ;;  %v8361_v32 = vadd.f32 %v8329_v2, %v16708_v28  ;;  %v8212_v9 = vpop.f32.mrb[240].mxu0 }
0x151e   : > { %v8392_v46 = vmul.f32 0.7978846, %v8360_v44  ;;  %v8362_v18 = vadd.f32 %v8330_v37, %v16714_v39  ;;  %v16729_v59 = vadd.f32 %v8212_v9, %v16603_v25  ;;  %v8214_v6 = vpop.f32.mrb[241].mxu0 }
0x151f   : > { %v8393_v20 = vmul.f32 0.7978846, %v8361_v32  ;;  %v16732_v5 = vadd.f32 %v8214_v6, %v16606_v19  ;;  %v8216_v36 = vpop.f32.mrb[242].mxu0  ;;  %11761 = vtanh.f32 %v8391_v43 }
0x1520   : > { %v8394_v41 = vmul.f32 0.7978846, %v8362_v18  ;;  %v8267_v45 = vmul.f32 %v16729_v59, %v16729_v59  ;;  %v16737_v4 = vadd.f32 %v8216_v36, %v16603_v25  ;;  %v8218_v14 = vpop.f32.mrb[243].mxu0  ;;  %11763 = vtanh.f32 %v8392_v46 }
0x1521   : > { %v11754_v57 = vpop.eup %11753  ;;  %v8268_v17 = vmul.f32 %v16732_v5, %v16732_v5  ;;  %v16742_v3 = vadd.f32 %v8218_v14, %v16606_v19  ;;  %11765 = vtanh.f32 %v8393_v20 }
0x1522   : > { %v11756_v1 = vpop.eup %11755  ;;  %v8299_v0 = vmul.f32 %v8267_v45, %v16729_v59  ;;  %v8269_v63 = vmul.f32 %v16737_v4, %v16737_v4  ;;  %v8451_v10 = vadd.f32 1.0, %v11754_v57  ;;  %11767 = vtanh.f32 %v8394_v41 }
0x1523   : > { %v11758_v42 = vpop.eup %11757  ;;  %v8300_v62 = vmul.f32 %v8268_v17, %v16732_v5  ;;  %v8270_v58 = vmul.f32 %v16742_v3, %v16742_v3  ;;  %v8452_v38 = vadd.f32 1.0, %v11756_v1 }
0x1524   : > { %v11760_v30 = vpop.eup %11759  ;;  %v8331_v13 = vmul.f32 0.044715, %v8299_v0  ;;  %v8301_v54 = vmul.f32 %v8269_v63, %v16737_v4  ;;  %v8453_v31 = vadd.f32 1.0, %v11758_v42  ;;  %v8483_v52 = vmul.f32 0.5, %v8451_v10 }
0x1525   : > { %v8332_v15 = vmul.f32 0.044715, %v8300_v62  ;;  %v8302_v60 = vmul.f32 %v8270_v58, %v16742_v3  ;;  %v8222_v51 = vpop.f32.mrb[244].mxu0  ;;  %v8454_v48 = vadd.f32 1.0, %v11760_v30  ;;  %v8484_v16 = vmul.f32 0.5, %v8452_v38 }
0x1526   : > { %v8363_v2 = vadd.f32 %v8331_v13, %v16729_v59  ;;  %v8333_v44 = vmul.f32 0.044715, %v8301_v54  ;;  %v16754_v37 = vadd.f32 %v8222_v51, %v16603_v25  ;;  %v8224_v43 = vpop.f32.mrb[245].mxu0  ;;  %v8485_v32 = vmul.f32 0.5, %v8453_v31 }
0x1527   : > { %v8364_v9 = vadd.f32 %v8332_v15, %v16732_v5  ;;  %v8334_v46 = vmul.f32 0.044715, %v8302_v60  ;;  %v16758_v18 = vadd.f32 %v8224_v43, %v16606_v19  ;;  %v8226_v6 = vpop.f32.mrb[246].mxu0  ;;  %v8486_v20 = vmul.f32 0.5, %v8454_v48 }
0x1528   : > { %v8395_v36 = vmul.f32 0.7978846, %v8363_v2  ;;  %v8365_v41 = vadd.f32 %v8333_v44, %v16737_v4  ;;  %v8271_v45 = vmul.f32 %v16754_v37, %v16754_v37  ;;  %v16764_v14 = vadd.f32 %v8226_v6, %v16603_v25  ;;  %v8228_v57 = vpop.f32.mrb[247].mxu0 }
0x1529   : > { %v8396_v17 = vmul.f32 0.7978846, %v8364_v9  ;;  %v8366_v1 = vadd.f32 %v8334_v46, %v16742_v3  ;;  %v8272_v0 = vmul.f32 %v16758_v18, %v16758_v18  ;;  %v16770_v63 = vadd.f32 %v8228_v57, %v16606_v19  ;;  %v16772_v10 = vpop.eup %11761 }
0x152a   : > { %11769 = vtanh.f32 %v8395_v36  ;;  %v8397_v42 = vmul.f32 0.7978846, %v8365_v41  ;;  %v8303_v62 = vmul.f32 %v8271_v45, %v16754_v37  ;;  %v8273_v58 = vmul.f32 %v16764_v14, %v16764_v14  ;;  %v11764_v38 = vpop.eup %11763 }
0x152b   : > { %11771 = vtanh.f32 %v8396_v17  ;;  %v8398_v30 = vmul.f32 0.7978846, %v8366_v1  ;;  %v8304_v13 = vmul.f32 %v8272_v0, %v16758_v18  ;;  %v8274_v54 = vmul.f32 %v16770_v63, %v16770_v63  ;;  %v16780_v31 = vpop.eup %11765 }
0x152c   : > { %11773 = vtanh.f32 %v8397_v42  ;;  %v8335_v15 = vmul.f32 0.044715, %v8303_v62  ;;  %v8305_v60 = vmul.f32 %v8273_v58, %v16764_v14  ;;  %v8516_v51 = vmul.f32 %v8484_v16, %v16676_v50  ;;  %v11768_v48 = vpop.eup %11767 }
0x152d   : > { %11775 = vtanh.f32 %v8398_v30  ;;  %v8336_v2 = vmul.f32 0.044715, %v8304_v13  ;;  %v8306_v44 = vmul.f32 %v8274_v54, %v16770_v63  ;;  %v8232_v43 = vpop.f32.mrb[248].mxu0  ;;  %v8518_v9 = vmul.f32 %v8486_v20, %v16686_v24 }
0x152e   : > { %v8367_v46 = vadd.f32 %v8335_v15, %v16754_v37  ;;  %v8337_v6 = vmul.f32 0.044715, %v8305_v60  ;;  %v16788_v36 = vadd.f32 %v8232_v43, %v16603_v25  ;;  %v8234_v41 = vpop.f32.mrb[249].mxu0  ;;  %v8515_v45 = vmul.f32 %v8483_v52, %v16673_v26 }
0x152f   : > { %v8368_v57 = vadd.f32 %v8336_v2, %v16758_v18  ;;  %v8338_v50 = vmul.f32 0.044715, %v8306_v44  ;;  %v8544_v16 = vpack.c.bf16 %v8518_v9, %v8516_v51  ;;  %v16793_v17 = vadd.f32 %v8234_v41, %v16606_v19  ;;  %v8236_v1 = vpop.f32.mrb[250].mxu0 }
0x1530   : > { %v8399_v0 = vmul.f32 0.7978846, %v8367_v46  ;;  %v8369_v24 = vadd.f32 %v8337_v6, %v16764_v14  ;;  %v8275_v20 = vmul.f32 %v16788_v36, %v16788_v36  ;;  %v8517_v42 = vmul.f32 %v8485_v32, %v16681_v61  ;;  %v8238_v62 = vpop.f32.mrb[251].mxu0 }
0x1531   : > { %v8400_v58 = vmul.f32 0.7978846, %v8368_v57  ;;  %v8370_v26 = vadd.f32 %v8338_v50, %v16770_v63  ;;  %8740 = vmatprep.mubr.bf16.mxu1 %v8544_v16  ;;  %v8276_v52 = vmul.f32 %v16793_v17, %v16793_v17  ;;  %v16803_v30 = vadd.f32 %v8236_v1, %v16603_v25 }
0x1532   : > { %11777 = vtanh.f32 %v8399_v0  ;;  %v8401_v13 = vmul.f32 0.7978846, %v8369_v24  ;;  %v8307_v54 = vmul.f32 %v8275_v20, %v16788_v36  ;;  %v8543_v15 = vpack.c.bf16 %v8517_v42, %v8515_v45 }
0x1533   : > { %11779 = vtanh.f32 %v8400_v58  ;;  %v8402_v60 = vmul.f32 0.7978846, %v8370_v26  ;;  %v8308_v61 = vmul.f32 %v8276_v52, %v16793_v17  ;;  %v8277_v32 = vmul.f32 %v16803_v30, %v16803_v30 }
0x1534   : > { %v16809_v51 = vpop.eup %11769  ;;  %11781 = vtanh.f32 %v8401_v13  ;;  %v8339_v2 = vmul.f32 0.044715, %v8307_v54  ;;  %8741 = vmatmul.mubr.bf16.gmra.mrb[232].mxu1 %v8543_v15  ;;  %v16812_v44 = vadd.f32 %v8238_v62, %v16606_v19  ;;  %v8456_v43 = vadd.f32 1.0, %v11764_v38 }
0x1535   : > { %v11772_v9 = vpop.eup %11771  ;;  %11783 = vtanh.f32 %v8402_v60  ;;  %v8340_v46 = vmul.f32 0.044715, %v8308_v61  ;;  %v8309_v6 = vmul.f32 %v8277_v32, %v16803_v30  ;;  %v8242_v41 = vpop.f32.mrb[252].mxu0  ;;  %v8458_v45 = vadd.f32 1.0, %v11768_v48 }
0x1536   : > { %v16815_v57 = vpop.eup %11773  ;;  %v8371_v50 = vadd.f32 %v8339_v2, %v16788_v36  ;;  %v8278_v16 = vmul.f32 %v16812_v44, %v16812_v44  ;;  %v16821_v1 = vadd.f32 %v8242_v41, %v16603_v25  ;;  %v8488_v0 = vmul.f32 0.5, %v8456_v43  ;;  %v8244_v24 = vpop.f32.mrb[253].mxu0 }
0x1537   : > { %v11776_v38 = vpop.eup %11775  ;;  %v8372_v20 = vadd.f32 %v8340_v46, %v16793_v17  ;;  %v8341_v42 = vmul.f32 0.044715, %v8309_v6  ;;  %v8490_v62 = vmul.f32 0.5, %v8458_v45  ;;  %v16825_v58 = vadd.f32 %v8244_v24, %v16606_v19  ;;  %v8246_v48 = vpop.f32.mrb[254].mxu0 }
0x1538   : > { %v8403_v26 = vmul.f32 0.7978846, %v8371_v50  ;;  %v8310_v52 = vmul.f32 %v8278_v16, %v16812_v44  ;;  %v8279_v13 = vmul.f32 %v16821_v1, %v16821_v1  ;;  %v8520_v54 = vmul.f32 %v8488_v0, %v16702_v12  ;;  %v8248_v15 = vpop.f32.mrb[255].mxu0 }
0x1539   : > { %v8404_v60 = vmul.f32 0.7978846, %v8372_v20  ;;  %v8373_v61 = vadd.f32 %v8341_v42, %v16803_v30  ;;  %v8522_v32 = vmul.f32 %v8490_v62, %v16714_v39  ;;  %v8280_v2 = vmul.f32 %v16825_v58, %v16825_v58 }
0x153a   : > { %11785 = vtanh.f32 %v8403_v26  ;;  %v8342_v43 = vmul.f32 0.044715, %v8310_v52  ;;  %v8311_v46 = vmul.f32 %v8279_v13, %v16821_v1  ;;  %v8455_v6 = vadd.f32 1.0, %v16772_v10 }
0x153b   : > { %11787 = vtanh.f32 %v8404_v60  ;;  %v8405_v41 = vmul.f32 0.7978846, %v8373_v61  ;;  %v8546_v45 = vpack.c.bf16 %v8522_v32, %v8520_v54  ;;  %v8312_v12 = vmul.f32 %v8280_v2, %v16825_v58 }
0x153c   : > { %v11778_v50 = vpop.eup %11777  ;;  %v8374_v16 = vadd.f32 %v8342_v43, %v16812_v44  ;;  %v8343_v0 = vmul.f32 0.044715, %v8311_v46  ;;  %v8457_v39 = vadd.f32 1.0, %v16780_v31  ;;  %v8487_v24 = vmul.f32 0.5, %v8455_v6 }
0x153d   : > { %v11780_v20 = vpop.eup %11779  ;;  %11789 = vtanh.f32 %v8405_v41  ;;  %8748 = vmatprep.mubr.bf16.mxu1 %v8546_v45  ;;  %v8344_v42 = vmul.f32 0.044715, %v8312_v12  ;;  %v16841_v62 = vadd.f32 %v8246_v48, %v16603_v25  ;;  %v16844_v10 = vadd.f32 %v8248_v15, %v16606_v19 }
0x153e   : > { %v11782_v26 = vpop.eup %11781  ;;  %v8406_v52 = vmul.f32 0.7978846, %v8374_v16  ;;  %v8375_v13 = vadd.f32 %v8343_v0, %v16821_v1  ;;  %v8489_v54 = vmul.f32 0.5, %v8457_v39  ;;  %v8519_v60 = vmul.f32 %v8487_v24, %v16698_v22 }
0x153f   : > { %v11784_v61 = vpop.eup %11783  ;;  %v8376_v31 = vadd.f32 %v8344_v42, %v16825_v58  ;;  %v8281_v32 = vmul.f32 %v16841_v62, %v16841_v62  ;;  %v8282_v25 = vmul.f32 %v16844_v10, %v16844_v10  ;;  %v8460_v48 = vadd.f32 1.0, %v11772_v9 }
0x1540   : > { %11791 = vtanh.f32 %v8406_v52  ;;  %v8407_v19 = vmul.f32 0.7978846, %v8375_v13  ;;  %v8521_v15 = vmul.f32 %v8489_v54, %v16708_v28  ;;  %v8462_v2 = vadd.f32 1.0, %v11776_v38 }
0x1541   : > { %v8408_v43 = vmul.f32 0.7978846, %v8376_v31  ;;  %v8313_v46 = vmul.f32 %v8281_v32, %v16841_v62  ;;  %v8314_v22 = vmul.f32 %v8282_v25, %v16844_v10  ;;  %v8492_v6 = vmul.f32 0.5, %v8460_v48 }
0x1542   : > { %11793 = vtanh.f32 %v8407_v19  ;;  %v8545_v41 = vpack.c.bf16 %v8521_v15, %v8519_v60  ;;  %v8494_v45 = vmul.f32 0.5, %v8462_v2  ;;  %v8459_v12 = vadd.f32 1.0, %v16809_v51 }
0x1543   : > { %11795 = vtanh.f32 %v8408_v43  ;;  %v8345_v16 = vmul.f32 0.044715, %v8313_v46  ;;  %v8346_v0 = vmul.f32 0.044715, %v8314_v22  ;;  %v8524_v9 = vmul.f32 %v8492_v6, %v16732_v5 }
0x1544   : > { %v11786_v39 = vpop.eup %11785  ;;  %8749 = vmatmul.mubr.bf16.gmra.mrb[236].mxu1 %v8545_v41  ;;  %v8526_v28 = vmul.f32 %v8494_v45, %v16742_v3  ;;  %v8461_v38 = vadd.f32 1.0, %v16815_v57  ;;  %v8491_v24 = vmul.f32 0.5, %v8459_v12  ;;  %v8464_v42 = vadd.f32 1.0, %v11780_v20 }
0x1545   : > { %v11788_v52 = vpop.eup %11787  ;;  %v8377_v13 = vadd.f32 %v8345_v16, %v16841_v62  ;;  %v8378_v54 = vadd.f32 %v8346_v0, %v16844_v10  ;;  %v8466_v60 = vadd.f32 1.0, %v11784_v61  ;;  %v8463_v51 = vadd.f32 1.0, %v11778_v50 }
0x1546   : > { %v8548_v31 = vpack.c.bf16 %v8526_v28, %v8524_v9  ;;  %v8493_v32 = vmul.f32 0.5, %v8461_v38  ;;  %v8523_v25 = vmul.f32 %v8491_v24, %v16729_v59  ;;  %v8496_v5 = vmul.f32 0.5, %v8464_v42 }
0x1547   : > { %v11790_v48 = vpop.eup %11789  ;;  %v8409_v19 = vmul.f32 0.7978846, %v8377_v13  ;;  %v8410_v15 = vmul.f32 0.7978846, %v8378_v54  ;;  %v8498_v3 = vmul.f32 0.5, %v8466_v60  ;;  %v8465_v2 = vadd.f32 1.0, %v11782_v26 }
0x1548   : > { %8756 = vmatprep.mubr.bf16.mxu1 %v8548_v31  ;;  %v8525_v57 = vmul.f32 %v8493_v32, %v16737_v4  ;;  %v8528_v20 = vmul.f32 %v8496_v5, %v16758_v18  ;;  %v8495_v43 = vmul.f32 0.5, %v8463_v51  ;;  %v8468_v46 = vadd.f32 1.0, %v11788_v52 }
0x1549   : > { %11797 = vtanh.f32 %v8409_v19  ;;  %v8530_v50 = vmul.f32 %v8498_v3, %v16770_v63  ;;  %v8497_v61 = vmul.f32 0.5, %v8465_v2  ;;  %v8467_v22 = vadd.f32 1.0, %v11786_v39 }
0x154a   : > { %v11792_v6 = vpop.eup %11791  ;;  %11799 = vtanh.f32 %v8410_v15  ;;  %v8547_v59 = vpack.c.bf16 %v8525_v57, %v8523_v25  ;;  %v8527_v41 = vmul.f32 %v8495_v43, %v16754_v37  ;;  %v8500_v45 = vmul.f32 0.5, %v8468_v46  ;;  %v16879_v57 = vld [vmem:[%s17224_s14 + $0x1] ss:$0 sm:$0xff] }
0x154b   : > { %v8550_v12 = vpack.c.bf16 %v8530_v50, %v8528_v20  ;;  %v8529_v26 = vmul.f32 %v8497_v61, %v16764_v14  ;;  %v8470_v16 = vadd.f32 1.0, %v11792_v6  ;;  %v8469_v4 = vadd.f32 1.0, %v11790_v48 }
0x154c   : > { %v11794_v0 = vpop.eup %11793  ;;  %8757 = vmatmul.mubr.bf16.gmra.mrb[240].mxu1 %v8547_v59  ;;  %v8499_v18 = vmul.f32 0.5, %v8467_v22  ;;  %v8532_v39 = vmul.f32 %v8500_v45, %v16793_v17 }
0x154d   : > { %v11796_v9 = vpop.eup %11795  ;;  %8764 = vmatprep.mubr.bf16.mxu1 %v8550_v12  ;;  %v8549_v28 = vpack.c.bf16 %v8529_v26, %v8527_v41  ;;  %v8502_v63 = vmul.f32 0.5, %v8470_v16  ;;  %v8501_v38 = vmul.f32 0.5, %v8469_v4  ;;  %v8471_v52 = vadd.f32 1.0, %v11794_v0 }
0x154e   : > { %v8531_v37 = vmul.f32 %v8499_v18, %v16788_v36  ;;  %v8472_v54 = vadd.f32 1.0, %v11796_v9 }
0x154f   : > { %v8534_v24 = vmul.f32 %v8502_v63, %v16812_v44  ;;  %v8533_v42 = vmul.f32 %v8501_v38, %v16803_v30  ;;  %v8503_v32 = vmul.f32 0.5, %v8471_v52 }
0x1550   : > { %v8504_v5 = vmul.f32 0.5, %v8472_v54 }
0x1551   : > { %v8552_v14 = vpack.c.bf16 %v8534_v24, %v8532_v39  ;;  %v8551_v13 = vpack.c.bf16 %v8533_v42, %v8531_v37  ;;  %v8535_v44 = vmul.f32 %v8503_v32, %v16821_v1 }
0x1552   : > { %v8536_v30 = vmul.f32 %v8504_v5, %v16825_v58 }
0x1553   : > { %v11798_v60 = vpop.eup %11797 }
0x1554   : > { %v11800_v51 = vpop.eup %11799  ;;  %8765 = vmatmul.mubr.bf16.gmra.mrb[244].mxu1 %v8549_v28  ;;  %v8473_v31 = vadd.f32 1.0, %v11798_v60 }
0x1555   : > { %8772 = vmatprep.mubr.bf16.mxu1 %v8552_v14  ;;  %v8474_v25 = vadd.f32 1.0, %v11800_v51 }
0x1556   : > { %v8505_v48 = vmul.f32 0.5, %v8473_v31 }
0x1557   : > { %v8506_v17 = vmul.f32 0.5, %v8474_v25 }
0x1558   : > { %v8537_v36 = vmul.f32 %v8505_v48, %v16841_v62 }
0x1559   : > { %v8538_v19 = vmul.f32 %v8506_v17, %v16844_v10 }
0x155a   : > { %v8553_v15 = vpack.c.bf16 %v8537_v36, %v8535_v44 }
0x155b   : > { %v8554_v3 = vpack.c.bf16 %v8538_v19, %v8536_v30 }
0x155c   : > { %8773 = vmatmul.mubr.bf16.gmra.mrb[248].mxu1 %v8551_v13 }
0x155d   : > { %8780 = vmatprep.mubr.bf16.mxu1 %v8554_v3 }
0x1564   : > { %8781 = vmatmul.mubr.bf16.gmra.mrb[252].mxu1 %v8553_v15 }
0x15c9   : > { %v9945_v2 = vpop.f32.mrb[224].mxu1 }
0x15ca   : > { %v9946_v20 = vpop.f32.mrb[225].mxu1 }
0x15cb   : > { %v9947_v43 = vadd.f32 %v9946_v20, %v9945_v2  ;;  %v9948_v1 = vpop.f32.mrb[226].mxu1 }
0x15cc   : > { %v9949_v46 = vpop.f32.mrb[227].mxu1 }
0x15cd   : > { %v8727_v62 = vadd.f32 %v9947_v43, %v16879_v57  ;;  %v9950_v58 = vadd.f32 %v9949_v46, %v9948_v1 }
0x15cf   : > { %v8730_v10 = vadd.f32 %v9950_v58, %v16879_v57  ;;  %v16884_v50 = vadd.f32 %v8727_v62, %v16501_v8 }
0x15d1   : > { %8809 = vadd.xlane.f32.xlu1 %v16884_v50  ;;  %v9951_v61 = vpop.f32.mrb[228].mxu1  ;;  %v16888_v22 = vadd.f32 %v8730_v10, %v16504_v49 }
0x15d2   : > { %v9952_v6 = vpop.f32.mrb[229].mxu1 }
0x15d3   : > { %v9953_v59 = vadd.f32 %v9952_v6, %v9951_v61  ;;  %8811 = vadd.xlane.f32.xlu0 %v16888_v22  ;;  %v9954_v41 = vpop.f32.mrb[230].mxu1 }
0x15d4   : > { %v9955_v45 = vpop.f32.mrb[231].mxu1 }
0x15d5   : > { %v8735_v12 = vadd.f32 %v9953_v59, %v16879_v57  ;;  %v9956_v26 = vadd.f32 %v9955_v45, %v9954_v41 }
0x15d7   : > { %v8738_v16 = vadd.f32 %v9956_v26, %v16879_v57  ;;  %v16894_v8 = vadd.f32 %v8735_v12, %v16517_v56 }
0x15d9   : > { %8813 = vadd.xlane.f32.xlu1 %v16894_v8  ;;  %v16898_v4 = vadd.f32 %v8738_v16, %v16514_v23 }
0x15db   : > { %8815 = vadd.xlane.f32.xlu0 %v16898_v4 }
0x1607   : > { %v9957_v49 = vpop.f32.mrb[232].mxu1 }
0x1608   : > { %v9958_v0 = vpop.f32.mrb[233].mxu1 }
0x1609   : > { %v9959_v18 = vadd.f32 %v9958_v0, %v9957_v49  ;;  %v9960_v9 = vpop.f32.mrb[234].mxu1 }
0x160a   : > { %v9961_v28 = vpop.f32.mrb[235].mxu1 }
0x160b   : > { %v8743_v63 = vadd.f32 %v9959_v18, %v16879_v57  ;;  %v9962_v38 = vadd.f32 %v9961_v28, %v9960_v9 }
0x160d   : > { %v8746_v39 = vadd.f32 %v9962_v38, %v16879_v57  ;;  %v16904_v56 = vadd.f32 %v8743_v63, %v16527_v53 }
0x160f   : > { %8817 = vadd.xlane.f32.xlu0 %v16904_v56  ;;  %v16908_v23 = vadd.f32 %v8746_v39, %v16531_v21 }
0x1611   : > { %8819 = vadd.xlane.f32.xlu1 %v16908_v23 }
0x1617   : > { %v9963_v24 = vpop.f32.mrb[236].mxu1 }
0x1618   : > { %v9964_v37 = vpop.f32.mrb[237].mxu1 }
0x1619   : > { %v9965_v42 = vadd.f32 %v9964_v37, %v9963_v24  ;;  %v9966_v52 = vpop.f32.mrb[238].mxu1 }
0x161a   : > { %v9967_v14 = vpop.f32.mrb[239].mxu1 }
0x161b   : > { %v8751_v13 = vadd.f32 %v9965_v42, %v16879_v57  ;;  %v9968_v54 = vadd.f32 %v9967_v14, %v9966_v52 }
0x161d   : > { %v8754_v60 = vadd.f32 %v9968_v54, %v16879_v57  ;;  %v16914_v53 = vadd.f32 %v8751_v13, %v16543_v29 }
0x161f   : > { %8821 = vadd.xlane.f32.xlu1 %v16914_v53  ;;  %v9969_v51 = vpop.f32.mrb[240].mxu1  ;;  %v16918_v31 = vadd.f32 %v8754_v60, %v16540_v7 }
0x1620   : > { %v9970_v21 = vpop.f32.mrb[241].mxu1 }
0x1621   : > { %v9971_v32 = vadd.f32 %v9970_v21, %v9969_v51  ;;  %v9972_v25 = vpop.f32.mrb[242].mxu1 }
0x1622   : > { %v9973_v5 = vpop.f32.mrb[243].mxu1 }
0x1623   : > { %8823 = vadd.xlane.f32.xlu1 %v16918_v31  ;;  %v8759_v48 = vadd.f32 %v9971_v32, %v16879_v57  ;;  %v9974_v17 = vadd.f32 %v9973_v5, %v9972_v25 }
0x1625   : > { %v8762_v44 = vadd.f32 %v9974_v17, %v16879_v57  ;;  %v16924_v29 = vadd.f32 %v8759_v48, %v16553_v55 }
0x1627   : > { %8825 = vadd.xlane.f32.xlu1 %v16924_v29  ;;  %v9975_v36 = vpop.f32.mrb[244].mxu1  ;;  %v16928_v30 = vadd.f32 %v8762_v44, %v16556_v11 }
0x1628   : > { %v9976_v7 = vpop.f32.mrb[245].mxu1 }
0x1629   : > { %v9977_v19 = vadd.f32 %v9976_v7, %v9975_v36  ;;  %8827 = vadd.xlane.f32.xlu0 %v16928_v30  ;;  %v9978_v15 = vpop.f32.mrb[246].mxu1 }
0x162a   : > { %v9979_v3 = vpop.f32.mrb[247].mxu1 }
0x162b   : > { %v8767_v2 = vadd.f32 %v9977_v19, %v16879_v57  ;;  %v9980_v20 = vadd.f32 %v9979_v3, %v9978_v15 }
0x162d   : > { %v8770_v43 = vadd.f32 %v9980_v20, %v16879_v57  ;;  %v16934_v55 = vadd.f32 %v8767_v2, %v16569_v47 }
0x162f   : > { %8829 = vadd.xlane.f32.xlu1 %v16934_v55  ;;  %v9981_v1 = vpop.f32.mrb[248].mxu1  ;;  %v16938_v11 = vadd.f32 %v8770_v43, %v16566_v27 }
0x1630   : > { %v9982_v46 = vpop.f32.mrb[249].mxu1 }
0x1631   : > { %v9983_v62 = vadd.f32 %v9982_v46, %v9981_v1  ;;  %8831 = vadd.xlane.f32.xlu0 %v16938_v11  ;;  %v9984_v58 = vpop.f32.mrb[250].mxu1 }
0x1632   : > { %v9985_v10 = vpop.f32.mrb[251].mxu1 }
0x1633   : > { %v8775_v61 = vadd.f32 %v9983_v62, %v16879_v57  ;;  %v9986_v6 = vadd.f32 %v9985_v10, %v9984_v58 }
0x1635   : > { %v8778_v59 = vadd.f32 %v9986_v6, %v16879_v57  ;;  %v16944_v47 = vadd.f32 %v8775_v61, %v16579_v35 }
0x1637   : > { %8833 = vadd.xlane.f32.xlu0 %v16944_v47  ;;  %v9987_v41 = vpop.f32.mrb[252].mxu1  ;;  %v16948_v26 = vadd.f32 %v8778_v59, %v16582_v40 }
0x1638   : > { %v9988_v45 = vpop.f32.mrb[253].mxu1 }
0x1639   : > { %v9989_v27 = vadd.f32 %v9988_v45, %v9987_v41  ;;  %v9990_v12 = vpop.f32.mrb[254].mxu1 }
0x163a   : > { %v9991_v16 = vpop.f32.mrb[255].mxu1 }
0x163b   : > { %v8783_v49 = vadd.f32 %v9989_v27, %v16879_v57  ;;  %v9992_v0 = vadd.f32 %v9991_v16, %v9990_v12  ;;  %8835 = vadd.xlane.f32.xlu0 %v16948_v26 }
0x163d   : > { %v8786_v18 = vadd.f32 %v9992_v0, %v16879_v57  ;;  %v16954_v35 = vadd.f32 %v8783_v49, %v16595_v33  ;;  %v9030_v0 = vld [vmem:[%s794_s18 + $0x8] sm:$0xff] }
0x163f   : > { %8837 = vadd.xlane.f32.xlu0 %v16954_v35  ;;  %v16958_v9 = vadd.f32 %v8786_v18, %v16592_v34  ;;  %v9029_v18 = vld [vmem:[%s794_s18] sm:$0xff]  ;;  %s17958_s18 = sld [smem:[#allocation149_spill]] }
0x1641   : > { %8839 = vadd.xlane.f32.xlu1 %v16958_v9 }
0x165e   : > { %v8810_v40 = vpop.xlane.xlu1 %8809 }
0x165f   : > { %v8841_v28 = vmul.f32 0.0078125, %v8810_v40  ;;  %v12035_v40 = vmov 1  }
0x1660   : > { %v8812_v63 = vpop.xlane.xlu0 %8811 }
0x1661   : > { %v16962_v38 = vsub.f32 %v16884_v50, %v8841_v28  ;;  %v8842_v39 = vmul.f32 0.0078125, %v8812_v63 }
0x1663   : > { %v16965_v24 = vsub.f32 %v16888_v22, %v8842_v39  ;;  %v8873_v33 = vmul.f32 %v16962_v38, %v16962_v38 }
0x1665   : > { %8889 = vadd.xlane.f32.xlu1 %v8873_v33  ;;  %v8874_v34 = vmul.f32 %v16965_v24, %v16965_v24 }
0x1666   : > { %v8814_v57 = vpop.xlane.xlu1 %8813 }
0x1667   : > { %v8843_v37 = vmul.f32 0.0078125, %v8814_v57  ;;  %8891 = vadd.xlane.f32.xlu0 %v8874_v34 }
0x1668   : > { %v8816_v42 = vpop.xlane.xlu0 %8815 }
0x1669   : > { %v16972_v52 = vsub.f32 %v16894_v8, %v8843_v37  ;;  %v8844_v50 = vmul.f32 0.0078125, %v8816_v42 }
0x166b   : > { %v16975_v14 = vsub.f32 %v16898_v4, %v8844_v50  ;;  %v8875_v22 = vmul.f32 %v16972_v52, %v16972_v52 }
0x166d   : > { %8893 = vadd.xlane.f32.xlu1 %v8875_v22  ;;  %v8876_v13 = vmul.f32 %v16975_v14, %v16975_v14 }
0x166f   : > { %8895 = vadd.xlane.f32.xlu0 %v8876_v13 }
0x169c   : > { %v8818_v54 = vpop.xlane.xlu0 %8817 }
0x169d   : > { %v8845_v60 = vmul.f32 0.0078125, %v8818_v54 }
0x169e   : > { %v8820_v51 = vpop.xlane.xlu1 %8819 }
0x169f   : > { %v16982_v21 = vsub.f32 %v16904_v56, %v8845_v60  ;;  %v8846_v8 = vmul.f32 0.0078125, %v8820_v51 }
0x16a1   : > { %v16985_v32 = vsub.f32 %v16908_v23, %v8846_v8  ;;  %v8877_v4 = vmul.f32 %v16982_v21, %v16982_v21 }
0x16a3   : > { %8897 = vadd.xlane.f32.xlu0 %v8877_v4  ;;  %v8878_v25 = vmul.f32 %v16985_v32, %v16985_v32 }
0x16a5   : > { %8899 = vadd.xlane.f32.xlu1 %v8878_v25 }
0x16ac   : > { %v8822_v5 = vpop.xlane.xlu1 %8821 }
0x16ad   : > { %v8847_v48 = vmul.f32 0.0078125, %v8822_v5 }
0x16af   : > { %v16992_v17 = vsub.f32 %v16914_v53, %v8847_v48 }
0x16b0   : > { %v8824_v44 = vpop.xlane.xlu1 %8823 }
0x16b1   : > { %v8848_v56 = vmul.f32 0.0078125, %v8824_v44  ;;  %v8879_v36 = vmul.f32 %v16992_v17, %v16992_v17 }
0x16b3   : > { %v16997_v23 = vsub.f32 %v16918_v31, %v8848_v56  ;;  %8901 = vadd.xlane.f32.xlu1 %v8879_v36 }
0x16b4   : > { %v8826_v7 = vpop.xlane.xlu1 %8825 }
0x16b5   : > { %v8849_v19 = vmul.f32 0.0078125, %v8826_v7  ;;  %v8880_v15 = vmul.f32 %v16997_v23, %v16997_v23 }
0x16b6   : > { %v8828_v3 = vpop.xlane.xlu0 %8827 }
0x16b7   : > { %v17002_v2 = vsub.f32 %v16924_v29, %v8849_v19  ;;  %8903 = vadd.xlane.f32.xlu1 %v8880_v15  ;;  %v8850_v53 = vmul.f32 0.0078125, %v8828_v3 }
0x16b9   : > { %v17005_v20 = vsub.f32 %v16928_v30, %v8850_v53  ;;  %v8881_v31 = vmul.f32 %v17002_v2, %v17002_v2 }
0x16bb   : > { %8905 = vadd.xlane.f32.xlu1 %v8881_v31  ;;  %v8882_v43 = vmul.f32 %v17005_v20, %v17005_v20 }
0x16bc   : > { %v8830_v1 = vpop.xlane.xlu1 %8829 }
0x16bd   : > { %v8851_v46 = vmul.f32 0.0078125, %v8830_v1  ;;  %8907 = vadd.xlane.f32.xlu0 %v8882_v43 }
0x16be   : > { %v8832_v62 = vpop.xlane.xlu0 %8831 }
0x16bf   : > { %v17012_v58 = vsub.f32 %v16934_v55, %v8851_v46  ;;  %v8852_v29 = vmul.f32 0.0078125, %v8832_v62 }
0x16c1   : > { %v17016_v10 = vsub.f32 %v16938_v11, %v8852_v29  ;;  %v8883_v30 = vmul.f32 %v17012_v58, %v17012_v58 }
0x16c3   : > { %8909 = vadd.xlane.f32.xlu1 %v8883_v30  ;;  %v8884_v61 = vmul.f32 %v17016_v10, %v17016_v10 }
0x16c4   : > { %v8834_v6 = vpop.xlane.xlu0 %8833 }
0x16c5   : > { %v8853_v59 = vmul.f32 0.0078125, %v8834_v6  ;;  %8911 = vadd.xlane.f32.xlu0 %v8884_v61 }
0x16c7   : > { %v17023_v41 = vsub.f32 %v16944_v47, %v8853_v59 }
0x16c8   : > { %v8836_v55 = vpop.xlane.xlu0 %8835 }
0x16c9   : > { %v8854_v11 = vmul.f32 0.0078125, %v8836_v55  ;;  %v8885_v45 = vmul.f32 %v17023_v41, %v17023_v41 }
0x16cb   : > { %v17030_v27 = vsub.f32 %v16948_v26, %v8854_v11  ;;  %8913 = vadd.xlane.f32.xlu0 %v8885_v45 }
0x16cc   : > { %v8838_v12 = vpop.xlane.xlu0 %8837 }
0x16cd   : > { %v8855_v16 = vmul.f32 0.0078125, %v8838_v12  ;;  %v8886_v47 = vmul.f32 %v17030_v27, %v17030_v27 }
0x16ce   : > { %v8840_v28 = vpop.xlane.xlu1 %8839 }
0x16cf   : > { %v17041_v49 = vsub.f32 %v16954_v35, %v8855_v16  ;;  %8915 = vadd.xlane.f32.xlu0 %v8886_v47  ;;  %v8856_v63 = vmul.f32 0.0078125, %v8840_v28 }
0x16d1   : > { %v8887_v26 = vmul.f32 %v17041_v49, %v17041_v49  ;;  %v17046_v39 = vsub.f32 %v16958_v9, %v8856_v63 }
0x16d3   : > { %8917 = vadd.xlane.f32.xlu0 %v8887_v26  ;;  %v8888_v35 = vmul.f32 %v17046_v39, %v17046_v39  ;;  %v17069_v26 = vld [vmem:[%s17225_s15 + $0x1] ss:$0 sm:$0xff] }
0x16d4   : > { %9040 = vperm.xlu1 %10870, %v9030_v0  }
0x16d8   : > { %10871 = vset.pattern.permute.xlu1 %v12035_v40 }
0x16d9   : > { %9059 = vperm.xlu1 %10871, %v9029_v18  }
0x16e9   : > { %9035 = vperm.xlu0 %10869, %v9029_v18  }
0x16ed   : > { %10872 = vset.pattern.permute.xlu0 %v12035_v40 }
0x16f2   : > { %v8890_v33 = vpop.xlane.xlu1 %8889 }
0x16f3   : > { %v8921_v50 = vmul.f32 0.0078125, %v8890_v33 }
0x16f4   : > { %v8892_v34 = vpop.xlane.xlu0 %8891 }
0x16f5   : > { %v8922_v22 = vmul.f32 0.0078125, %v8892_v34  ;;  %v8937_v8 = vadd.f32 1e-12, %v8921_v50 }
0x16f7   : > { %v8938_v9 = vadd.f32 1e-12, %v8922_v22  ;;  %11801 = vrsqrt.f32 %v8937_v8 }
0x16f9   : > { %11803 = vrsqrt.f32 %v8938_v9 }
0x16fa   : > { %v8894_v57 = vpop.xlane.xlu1 %8893 }
0x16fb   : > { %v8923_v60 = vmul.f32 0.0078125, %v8894_v57  ;;  %v17091_v57 = vld [vmem:[%s17956_s29] ss:$0 sm:$0xff] }
0x16fc   : > { %v8896_v37 = vpop.xlane.xlu0 %8895 }
0x16fd   : > { %8919 = vadd.xlane.f32.xlu1 %v8888_v35  ;;  %v8924_v51 = vmul.f32 0.0078125, %v8896_v37  ;;  %v8939_v5 = vadd.f32 1e-12, %v8923_v60  ;;  %v17082_v35 = vld [vmem:[%s17750_s19 + $0x1] ss:$0 sm:$0xff] }
0x16fe   : > { %v17106_v60 = vld [vmem:[%s17958_s18] ss:$0 sm:$0xff] }
0x16ff   : > { %v8940_v48 = vadd.f32 1e-12, %v8924_v51  ;;  %11805 = vrsqrt.f32 %v8939_v5  ;;  %v17111_v51 = vld [vmem:[%s17959_s6] ss:$0 sm:$0xff] }
0x1701   : > { %11807 = vrsqrt.f32 %v8940_v48  ;;  %v11802_v46 = vpop.eup %11801  ;;  %v17121_v48 = vld [vmem:[%s17960_s16] ss:$0 sm:$0xff] }
0x1702   : > { %v8969_v11 = vmul.f32 %v11802_v46, %v16962_v38 }
0x1703   : > { %v11804_v62 = vpop.eup %11803 }
0x1704   : > { %v8970_v45 = vmul.f32 %v11804_v62, %v16965_v24  ;;  %v8991_v24 = vmul.f32 %v17069_v26, %v8969_v11 }
0x1709   : > { %v11806_v30 = vpop.eup %11805 }
0x170a   : > { %v8971_v12 = vmul.f32 %v11806_v30, %v16972_v52  ;;  %v8992_v52 = vmul.f32 %v17069_v26, %v8970_v45 }
0x170b   : > { %v11808_v61 = vpop.eup %11807 }
0x170c   : > { %v8972_v16 = vmul.f32 %v11808_v61, %v16975_v14  ;;  %v8993_v14 = vmul.f32 %v17069_v26, %v8971_v12 }
0x170e   : > { %9063 = vperm.xlu1 %10871, %v9030_v0   ;;  %v8994_v63 = vmul.f32 %v17069_v26, %v8972_v16 }
0x1730   : > { %v8898_v13 = vpop.xlane.xlu0 %8897 }
0x1731   : > { %v8925_v4 = vmul.f32 0.0078125, %v8898_v13  ;;  %v9013_v13 = vadd.f32 %v17082_v35, %v8991_v24 }
0x1732   : > { %v8900_v42 = vpop.xlane.xlu1 %8899 }
0x1733   : > { %v8926_v25 = vmul.f32 0.0078125, %v8900_v42  ;;  %v8941_v36 = vadd.f32 1e-12, %v8925_v4  ;;  %v17096_v42 = vld [vmem:[%s17957_s25 + $0x1] ss:$0 sm:$0xff] }
0x1735   : > { %v8942_v7 = vadd.f32 1e-12, %v8926_v25  ;;  %11809 = vrsqrt.f32 %v8941_v36 }
0x1737   : > { %11811 = vrsqrt.f32 %v8942_v7  ;;  %v9081_v7 = vmul.f32 %v17111_v51, %v9013_v13 }
0x173f   : > { %v11810_v59 = vpop.eup %11809 }
0x1740   : > { %v8902_v54 = vpop.xlane.xlu1 %8901  ;;  %v8973_v0 = vmul.f32 %v11810_v59, %v16982_v21 }
0x1741   : > { %v8927_v19 = vmul.f32 0.0078125, %v8902_v54  ;;  %v11812_v55 = vpop.eup %11811  ;;  %v9016_v54 = vadd.f32 %v17082_v35, %v8994_v63 }
0x1742   : > { %v8974_v18 = vmul.f32 %v11812_v55, %v16985_v32  ;;  %v8995_v21 = vmul.f32 %v17069_v26, %v8973_v0 }
0x1743   : > { %v8943_v53 = vadd.f32 1e-12, %v8927_v19 }
0x1744   : > { %v8904_v44 = vpop.xlane.xlu1 %8903  ;;  %v8996_v32 = vmul.f32 %v17069_v26, %v8974_v18  ;;  %v9017_v8 = vadd.f32 %v17082_v35, %v8995_v21 }
0x1745   : > { %v8928_v15 = vmul.f32 0.0078125, %v8904_v44  ;;  %11813 = vrsqrt.f32 %v8943_v53 }
0x1746   : > { %v9018_v25 = vadd.f32 %v17082_v35, %v8996_v32  ;;  %v9085_v46 = vmul.f32 %v17111_v51, %v9017_v8 }
0x1747   : > { %v8944_v31 = vadd.f32 1e-12, %v8928_v15 }
0x1748   : > { %v8906_v43 = vpop.xlane.xlu1 %8905  ;;  %v9086_v62 = vmul.f32 %v17111_v51, %v9018_v25 }
0x1749   : > { %11815 = vrsqrt.f32 %v8944_v31  ;;  %v9084_v31 = vmul.f32 %v17111_v51, %v9016_v54  ;;  %v8929_v30 = vmul.f32 0.0078125, %v8906_v43 }
0x174a   : > { %v17050_v56 = vpop.xlane.xlu0 %8907 }
0x174b   : > { %v8930_v61 = vmul.f32 0.0078125, %v17050_v56  ;;  %v8945_v8 = vadd.f32 1e-12, %v8929_v30 }
0x174d   : > { %v8946_v56 = vadd.f32 1e-12, %v8930_v61 }
0x174f   : > { %v11814_v40 = vpop.eup %11813  ;;  %11817 = vrsqrt.f32 %v8946_v56 }
0x1750   : > { %v17056_v29 = vpop.xlane.xlu1 %8909  ;;  %v8975_v33 = vmul.f32 %v11814_v40, %v16992_v17  ;;  %v9014_v17 = vadd.f32 %v17082_v35, %v8992_v52 }
0x1751   : > { %v8931_v0 = vmul.f32 0.0078125, %v17056_v29 }
0x1752   : > { %v17052_v3 = vpop.xlane.xlu0 %8911  ;;  %v8997_v5 = vmul.f32 %v17069_v26, %v8975_v33  ;;  %v9082_v19 = vmul.f32 %v17111_v51, %v9014_v17 }
0x1753   : > { %v11816_v38 = vpop.eup %11815  ;;  %v8932_v18 = vmul.f32 0.0078125, %v17052_v3 }
0x1754   : > { %v17064_v47 = vpop.permute.xlu1 %9040  ;;  %v8976_v34 = vmul.f32 %v11816_v38, %v16997_v23  ;;  %v9015_v23 = vadd.f32 %v17082_v35, %v8993_v14  ;;  %v9019_v59 = vadd.f32 %v17082_v35, %v8997_v5 }
0x1755   : > { %v8948_v13 = vadd.f32 1e-12, %v8932_v18 }
0x1756   : > { %v8998_v44 = vmul.f32 %v17069_v26, %v8976_v34  ;;  %v9083_v15 = vmul.f32 %v17111_v51, %v9015_v23  ;;  %v9087_v63 = vmul.f32 %v17111_v51, %v9019_v59 }
0x1758   : > { %v17054_v1 = vpop.xlane.xlu0 %8913  ;;  %v9060_v50 = vpop.permute.xlu1 %9059  ;;  %v9020_v55 = vadd.f32 %v17082_v35, %v8998_v44 }
0x1759   : > { %v9070_v9 = vmul.f32 %v17096_v42, %v9060_v50  ;;  %v8933_v29 = vmul.f32 0.0078125, %v17054_v1  ;;  %v11818_v30 = vpop.eup %11817 }
0x175a   : > { %v9088_v21 = vmul.f32 %v17111_v51, %v9020_v55 }
0x175b   : > { %v8949_v1 = vadd.f32 1e-12, %v8933_v29 }
0x175c   : > { %v17058_v6 = vpop.xlane.xlu0 %8915 }
0x175d   : > { %v8934_v25 = vmul.f32 0.0078125, %v17058_v6 }
0x1760   : > { %v17073_v28 = vpop.xlane.xlu0 %8917 }
0x1768   : > { %v9036_v37 = vpop.permute.xlu0 %9035 }
0x1769   : > { %v9047_v22 = vmul.f32 %v17091_v57, %v9036_v37 }
0x176b   : > { %v9055_v4 = vadd.f32 %v17106_v60, %v9047_v22  ;;  %v8947_v22 = vadd.f32 1e-12, %v8931_v0 }
0x176d   : > { %v9072_v36 = vadd.f32 %v9070_v9, %v9055_v4  ;;  %11819 = vrsqrt.f32 %v8947_v22 }
0x176e   : > { %11821 = vrsqrt.f32 %v8948_v13 }
0x176f   : > { %v9104_v53 = vmul.f32 %v17121_v48, %v9072_v36  ;;  %11823 = vrsqrt.f32 %v8945_v8 }
0x1770   : > { %11825 = vrsqrt.f32 %v8949_v1 }
0x1771   : > { %v9108_v11 = vrot.slane %v9104_v53, 1  ;;  %v9109_v45 = vrot.slane %v9104_v53, 2  ;;  %v9110_v12 = vrot.slane %v9104_v53, 3  ;;  %v9111_v16 = vrot.slane %v9104_v53, 4 }
0x1772   : > { %v9112_v40 = vrot.slane %v9104_v53, 5  ;;  %v9113_v38 = vrot.slane %v9104_v53, 6  ;;  %v9114_v24 = vrot.slane %v9104_v53, 7  ;;  %v9138_v33 = vadd.f32 %v9104_v53, %v9081_v7 }
0x1773   : > { %v9139_v52 = vadd.f32 %v9108_v11, %v9082_v19  ;;  %v9140_v43 = vadd.f32 %v9109_v45, %v9083_v15  ;;  %v9141_v14 = vadd.f32 %v9110_v12, %v9084_v31  ;;  %v9142_v32 = vadd.f32 %v9111_v16, %v9085_v46 }
0x1774   : > { %v9143_v34 = vadd.f32 %v9112_v40, %v9086_v62  ;;  %v9144_v3 = vadd.f32 %v9113_v38, %v9087_v63  ;;  %v9145_v17 = vadd.f32 %v9114_v24, %v9088_v21  ;;  %v8935_v19 = vmul.f32 0.0078125, %v17073_v28 }
0x1775   : > { %v9170_v37 = vrot.slane %v9139_v52, 7  ;;  %v9173_v50 = vrot.slane %v9140_v43, 6  ;;  %v9176_v54 = vrot.slane %v9141_v14, 5  ;;  %v9179_v9 = vrot.slane %v9142_v32, 4 }
0x1776   : > { %v9182_v44 = vrot.slane %v9143_v34, 3  ;;  %v9185_v7 = vrot.slane %v9144_v3, 2  ;;  %v9188_v53 = vrot.slane %v9145_v17, 1  ;;  %v8950_v46 = vadd.f32 1e-12, %v8934_v25 }
0x1777   : > { %v9172_v23 = vsel %vm9171_vm0, %v9170_v37, %v9138_v33  ;;  %v8951_v62 = vadd.f32 1e-12, %v8935_v19  ;;  %v11820_v61 = vpop.eup %11819  ;;  %v8978_v28 = vmul.f32 %v11818_v30, %v17005_v20  ;;  %v9048_v38 = vmul.f32 %v17091_v57, %v17064_v47 }
0x1778   : > { %v9175_v4 = vsel %vm9174_vm6, %v9173_v50, %v9172_v23  ;;  %11827 = vrsqrt.f32 %v8950_v46  ;;  %v11822_v59 = vpop.eup %11821  ;;  %v8979_v45 = vmul.f32 %v11820_v61, %v17012_v58 }
0x1779   : > { %v9178_v5 = vsel %vm9177_vm7, %v9176_v54, %v9175_v4  ;;  %11829 = vrsqrt.f32 %v8951_v62  ;;  %v11824_v55 = vpop.eup %11823  ;;  %v8980_v12 = vmul.f32 %v11822_v59, %v17016_v10  ;;  %v9000_v52 = vmul.f32 %v17069_v26, %v8978_v28 }
0x177a   : > { %v9181_v36 = vsel %vm9180_vm8, %v9179_v9, %v9178_v5  ;;  %v11826_v11 = vpop.eup %11825  ;;  %v8977_v16 = vmul.f32 %v11824_v55, %v17002_v2  ;;  %v9001_v43 = vmul.f32 %v17069_v26, %v8979_v45 }
0x177b   : > { %v9184_v15 = vsel %vm9183_vm9, %v9182_v44, %v9181_v36  ;;  %v8981_v40 = vmul.f32 %v11826_v11, %v17023_v41  ;;  %v9002_v20 = vmul.f32 %v17069_v26, %v8980_v12  ;;  %v9056_v41 = vadd.f32 %v17106_v60, %v9048_v38 }
0x177c   : > { %v9187_v31 = vsel %vm9186_vm10, %v9185_v7, %v9184_v15  ;;  %v8999_v10 = vmul.f32 %v17069_v26, %v8977_v16  ;;  %v9022_v57 = vadd.f32 %v17082_v35, %v9000_v52  ;;  %v9023_v21 = vadd.f32 %v17082_v35, %v9001_v43 }
0x177d   : > { %v9190_v6 = vsel %vm9189_vm11, %v9188_v53, %v9187_v31  ;;  %v9003_v63 = vmul.f32 %v17069_v26, %v8981_v40  ;;  %v9024_v32 = vadd.f32 %v17082_v35, %v9002_v20  ;;  %v9589_v20 = vld [vmem:[#allocation2] ss:$0 sm:$0xff] }
0x177e   : > { %9207 = vadd.xlane.f32.xlu1 %v9190_v6  ;;  %v9021_v37 = vadd.f32 %v17082_v35, %v8999_v10  ;;  %v9090_v22 = vmul.f32 %v17111_v51, %v9022_v57 }
0x177f   : > { %v9025_v50 = vadd.f32 %v17082_v35, %v9003_v63  ;;  %v9092_v3 = vmul.f32 %v17111_v51, %v9024_v32 }
0x1780   : > { %v9089_v54 = vmul.f32 %v17111_v51, %v9021_v37 }
0x1781   : > { %v9093_v4 = vmul.f32 %v17111_v51, %v9025_v50 }
0x1782   : > { %v11828_v18 = vpop.eup %11827 }
0x1783   : > { %v11830_v14 = vpop.eup %11829  ;;  %v8982_v2 = vmul.f32 %v11828_v18, %v17030_v27 }
0x1784   : > { %v8983_v33 = vmul.f32 %v11830_v14, %v17041_v49 }
0x1785   : > { %v9004_v27 = vmul.f32 %v17069_v26, %v8982_v2 }
0x1786   : > { %v9005_v29 = vmul.f32 %v17069_v26, %v8983_v33 }
0x1787   : > { %v9026_v8 = vadd.f32 %v17082_v35, %v9004_v27 }
0x1788   : > { %v9027_v5 = vadd.f32 %v17082_v35, %v9005_v29 }
0x1789   : > { %v9094_v31 = vmul.f32 %v17111_v51, %v9026_v8 }
0x178a   : > { %v8920_v0 = vpop.xlane.xlu1 %8919  ;;  %v9095_v55 = vmul.f32 %v17111_v51, %v9027_v5 }
0x178b   : > { %v8936_v24 = vmul.f32 0.0078125, %v8920_v0 }
0x178d   : > { %v8952_v58 = vadd.f32 1e-12, %v8936_v24 }
0x178e   : > { %v9064_v56 = vpop.permute.xlu1 %9063 }
0x178f   : > { %11831 = vrsqrt.f32 %v8952_v58  ;;  %v9071_v47 = vmul.f32 %v17096_v42, %v9064_v56  ;;  %v9091_v42 = vmul.f32 %v17111_v51, %v9023_v21 }
0x1791   : > { %v9073_v34 = vadd.f32 %v9071_v47, %v9056_v41 }
0x1793   : > { %v9105_v60 = vmul.f32 %v17121_v48, %v9073_v34 }
0x1795   : > { %v9115_v13 = vrot.slane %v9105_v60, 1  ;;  %v9116_v17 = vrot.slane %v9105_v60, 2  ;;  %v9117_v49 = vrot.slane %v9105_v60, 3  ;;  %v9118_v23 = vrot.slane %v9105_v60, 4 }
0x1796   : > { %v9119_v44 = vrot.slane %v9105_v60, 5  ;;  %v9146_v36 = vadd.f32 %v9105_v60, %v9089_v54  ;;  %v9120_v46 = vrot.slane %v9105_v60, 6  ;;  %v9121_v0 = vrot.slane %v9105_v60, 7 }
0x1797   : > { %v9147_v9 = vadd.f32 %v9115_v13, %v9090_v22  ;;  %v9148_v48 = vadd.f32 %v9116_v17, %v9091_v42  ;;  %v9149_v25 = vadd.f32 %v9117_v49, %v9092_v3  ;;  %v9150_v7 = vadd.f32 %v9118_v23, %v9093_v4 }
0x1798   : > { %v9151_v61 = vadd.f32 %v9119_v44, %v9094_v31 }
0x1799   : > { %v11832_v1 = vpop.eup %11831  ;;  %v9191_v19 = vrot.slane %v9147_v9, 7  ;;  %v9193_v15 = vrot.slane %v9148_v48, 6  ;;  %v9195_v62 = vrot.slane %v9149_v25, 5  ;;  %v9197_v28 = vrot.slane %v9150_v7, 4 }
0x179a   : > { %v8984_v53 = vmul.f32 %v11832_v1, %v17046_v39  ;;  %v9152_v39 = vadd.f32 %v9120_v46, %v9095_v55  ;;  %v9199_v18 = vrot.slane %v9151_v61, 3 }
0x179b   : > { %v9192_v6 = vsel %vm9171_vm0, %v9191_v19, %v9146_v36 }
0x179c   : > { %v9006_v30 = vmul.f32 %v17069_v26, %v8984_v53  ;;  %v9194_v59 = vsel %vm9174_vm6, %v9193_v15, %v9192_v6  ;;  %v9201_v38 = vrot.slane %v9152_v39, 2 }
0x179d   : > { %v9196_v11 = vsel %vm9177_vm7, %v9195_v62, %v9194_v59 }
0x179e   : > { %v9028_v45 = vadd.f32 %v17082_v35, %v9006_v30  ;;  %v9198_v12 = vsel %vm9180_vm8, %v9197_v28, %v9196_v11 }
0x179f   : > { %v9200_v26 = vsel %vm9183_vm9, %v9199_v18, %v9198_v12 }
0x17a0   : > { %v9096_v16 = vmul.f32 %v17111_v51, %v9028_v45  ;;  %v9202_v52 = vsel %vm9186_vm10, %v9201_v38, %v9200_v26 }
0x17a2   : > { %v9153_v40 = vadd.f32 %v9121_v0, %v9096_v16 }
0x17a4   : > { %v9203_v24 = vrot.slane %v9153_v40, 1 }
0x17a6   : > { %v9204_v43 = vsel %vm9189_vm11, %v9203_v24, %v9202_v52 }
0x17a7   : > { %9209 = vadd.xlane.f32.xlu0 %v9204_v43 }
0x180b   : > { %v9208_v35 = vpop.xlane.xlu1 %9207 }
0x180c   : > { %v9218_v51 = vadd.f32 %v9589_v20, %v9208_v35 }
0x180e   : > { %9221 = vst.msk [vmem:[%s800_s28] sm:$0xff] %vm9220_vm12, %v9218_v51 }
0x1834   : > { %v9210_v14 = vpop.xlane.xlu0 %9209 }
0x1835   : > { %v9219_v58 = vadd.f32 %v9589_v20, %v9210_v14 }
0x1837   : > { %9222 = vst.msk [vmem:[%s800_s28 + $0x8] sm:$0xff] %vm9220_vm12, %v9219_v58 }
0x1838 PF: > { %p36_p4 = scmp.ge.s32.totalorder %s12286_s5, 4   ;;  %s17962_s29 = smov %s12009_s30 }
0x1839   : > { %s17963_s30 = smov %s12013_s4  ;;  %s17964_s4 = smov %s12297_s20 }
0x183a   : > { %s17965_s0 = smov %s12286_s5  ;;  %38 = sbr.rel (!%p36_p4) target bundleno = 19 (0x13), region = 182 }
0x1841   :  { %9245 = vsyncpa [#allocation4], 1 }
0x1842   :  { %9247 = vsyncpa [#allocation4 + $0x1], 1 }
0x1843   :  { %9248 = vsyncpa [#allocation6], 1 }
0x1844   :  { %9249 = vsyncpa [#allocation9], 1 }

</bundles_post_ra>
